<compile_context>
chip_gen: v6e
topology: v6e:2x2x1
jax: 0.10.0
libtpu: 0.0.40
codegen_flags: <defaults>
</compile_context>

<pallas_src>
import functools

import jax
import jax.numpy as jnp
from jax.experimental import pallas as pl
from jax.experimental.pallas import tpu as pltpu


# ----------------------------------------------------------------------------
# Fused kernel: both BiGRU encoders (interleaved recurrences) + fc_layers.
# ----------------------------------------------------------------------------
def _fused_kernel(xp_ref, xc_ref,
                  pw_ih_ref, pw_hh_ref, pb_ih_ref, pb_hh_ref,
                  cw_ih_ref, cw_hh_ref, cb_ih_ref, cb_hh_ref,
                  w1p_ref, w1c_ref, b1_ref, w2_ref, b2_ref,
                  out_ref, gip_scr, gic_scr, *, B, H, T_P, T_C):
    H3 = 3 * H

    # ---- Input projection for ALL timesteps and BOTH directions of each
    # molecule: one big matmul, parked in bf16 VMEM scratch (time-major).
    gip = jnp.dot(xp_ref[...], pw_ih_ref[...],
                  preferred_element_type=jnp.float32) + pb_ih_ref[...]
    gip_scr[...] = gip.reshape(T_P, B, 6 * H).astype(jnp.bfloat16)

    gic = jnp.dot(xc_ref[...], cw_ih_ref[...],
                  preferred_element_type=jnp.float32) + cb_ih_ref[...]
    gic_scr[...] = gic.reshape(T_C, B, 6 * H).astype(jnp.bfloat16)

    # Hoist recurrent weights / biases out of the unrolled time loops.
    pw_f, pw_b = pw_hh_ref[0], pw_hh_ref[1]      # (H, 3H) bf16
    pb_f, pb_b = pb_hh_ref[0], pb_hh_ref[1]      # (1, 3H) f32
    cw_f, cw_b = cw_hh_ref[0], cw_hh_ref[1]
    cb_f, cb_b = cb_hh_ref[0], cb_hh_ref[1]

    def cell(gi_scr, t, col0, w_hh, b_hh, h):
        # One GRU cell for one direction at (static) timestep index t.
        gi = gi_scr[t, :, col0:col0 + H3].astype(jnp.float32)        # (B, 3H)
        gh = jnp.dot(h.astype(jnp.bfloat16), w_hh,
                     preferred_element_type=jnp.float32) + b_hh       # (B, 3H)
        r = jax.nn.sigmoid(gi[:, :H] + gh[:, :H])
        z = jax.nn.sigmoid(gi[:, H:2 * H] + gh[:, H:2 * H])
        n = jnp.tanh(gi[:, 2 * H:] + r * gh[:, 2 * H:])
        return (1.0 - z) * n + z * h

    h0 = jnp.zeros((B, H), jnp.float32)
    h_pf, h_pb, h_cf, h_cb = h0, h0, h0, h0

    # ---- Interleaved recurrence: 4 independent chains per joint step.
    T_min = min(T_P, T_C)
    for t in range(T_min):
        h_pf = cell(gip_scr, t,           0,  pw_f, pb_f, h_pf)
        h_pb = cell(gip_scr, T_P - 1 - t, H3, pw_b, pb_b, h_pb)
        h_cf = cell(gic_scr, t,           0,  cw_f, cb_f, h_cf)
        h_cb = cell(gic_scr, T_C - 1 - t, H3, cw_b, cb_b, h_cb)
    # Tail: only the longer molecule's two chains (no per-step gating needed,
    # the split is static).
    for t in range(T_min, T_P):
        h_pf = cell(gip_scr, t,           0,  pw_f, pb_f, h_pf)
        h_pb = cell(gip_scr, T_P - 1 - t, H3, pw_b, pb_b, h_pb)
    for t in range(T_min, T_C):
        h_cf = cell(gic_scr, t,           0,  cw_f, cb_f, h_cf)
        h_cb = cell(gic_scr, T_C - 1 - t, H3, cw_b, cb_b, h_cb)

    # torch.cat([init[0], init[1]], dim=1)  (reverse permutation already
    # applied to the inputs in the wrapper).
    p_vec = jnp.concatenate([h_pf, h_pb], axis=1)                    # (B, 2H)
    c_vec = jnp.concatenate([h_cf, h_cb], axis=1)                    # (B, 2H)

    # fc_layers: Linear(concat) -> ReLU -> Linear(., 1).  The concat is a split
    # first-layer weight (two matmuls + add); the 1-wide output matmul is a
    # VPU multiply + lane reduction instead of an N=1 MXU matmul.
    h1 = (jnp.dot(p_vec.astype(jnp.bfloat16), w1p_ref[...],
                  preferred_element_type=jnp.float32)
          + jnp.dot(c_vec.astype(jnp.bfloat16), w1c_ref[...],
                    preferred_element_type=jnp.float32)
          + b1_ref[...])
    h1 = jnp.maximum(h1, 0.0)
    out = jnp.sum(h1 * w2_ref[...], axis=-1, keepdims=True) + b2_ref[...]
    out_ref[...] = out.astype(out_ref.dtype)


# ----------------------------------------------------------------------------
# regression_model.forward
# ----------------------------------------------------------------------------
def regression_model_forward(params, protein_tokens, compound_tokens,
                             protein_reverse, compound_reverse):
    pp, cp, fc = params["protein"], params["compound"], params["fc"]
    B, T_P = protein_tokens.shape
    _, T_C = compound_tokens.shape
    E = pp["embedding"].shape[1]
    H = pp["w_hh_f"].shape[0]
    FC_H = fc["fc_w1_p"].shape[1]

    # Row permutation commutes with the per-row GRU, so `vector[reverse]` is
    # implemented by permuting the token batches up front (free XLA glue).
    p_tok = jnp.take(protein_tokens, protein_reverse.astype(jnp.int32), axis=0)
    c_tok = jnp.take(compound_tokens, compound_reverse.astype(jnp.int32), axis=0)

    # Embedding + time-major flatten (XLA glue), bf16 for the MXU.
    def embed_flat(tokens, emb):
        b, t = tokens.shape
        e = jnp.take(emb, tokens, axis=0)          # (B, T, E)
        e = jnp.transpose(e, (1, 0, 2))            # (T, B, E)
        return e.reshape(t * b, E).astype(jnp.bfloat16)

    xp = embed_flat(p_tok, pp["embedding"])
    xc = embed_flat(c_tok, cp["embedding"])

    def pack(p):
        w_ih = jnp.concatenate([p["w_ih_f"], p["w_ih_b"]], axis=1)      # (E, 6H)
        b_ih = jnp.concatenate([p["b_ih_f"], p["b_ih_b"]], axis=1)      # (1, 6H)
        w_hh = jnp.stack([p["w_hh_f"], p["w_hh_b"]], axis=0)            # (2, H, 3H)
        b_hh = jnp.stack([p["b_hh_f"], p["b_hh_b"]], axis=0)            # (2, 1, 3H)
        return (w_ih.astype(jnp.bfloat16), w_hh.astype(jnp.bfloat16), b_ih, b_hh)

    pw_ih, pw_hh, pb_ih, pb_hh = pack(pp)
    cw_ih, cw_hh, cb_ih, cb_hh = pack(cp)

    w1p = fc["fc_w1_p"].astype(jnp.bfloat16)
    w1c = fc["fc_w1_c"].astype(jnp.bfloat16)
    b1 = fc["fc_b1"]
    w2_row = fc["fc_w2"].reshape(1, FC_H)          # (FC_H, 1) -> (1, FC_H)
    b2 = fc["fc_b2"]

    def vfull(shape):
        n = len(shape)
        return pl.BlockSpec(shape, lambda i, n=n: (0,) * n)

    kernel = functools.partial(_fused_kernel, B=B, H=H, T_P=T_P, T_C=T_C)

    return pl.pallas_call(
        kernel,
        out_shape=jax.ShapeDtypeStruct((B, 1), jnp.float32),
        grid=(1,),
        in_specs=[
            vfull((T_P * B, E)), vfull((T_C * B, E)),
            vfull((E, 6 * H)), vfull((2, H, 3 * H)),
            vfull((1, 6 * H)), vfull((2, 1, 3 * H)),
            vfull((E, 6 * H)), vfull((2, H, 3 * H)),
            vfull((1, 6 * H)), vfull((2, 1, 3 * H)),
            vfull((2 * H, FC_H)), vfull((2 * H, FC_H)),
            vfull((1, FC_H)), vfull((1, FC_H)), vfull((1, 1)),
        ],
        out_specs=vfull((B, 1)),
        scratch_shapes=[
            pltpu.VMEM((T_P, B, 6 * H), jnp.bfloat16),   # protein gi (all t)
            pltpu.VMEM((T_C, B, 6 * H), jnp.bfloat16),   # compound gi (all t)
        ],
        compiler_params=pltpu.CompilerParams(
            dimension_semantics=("arbitrary",)),
    )(xp, xc,
      pw_ih, pw_hh, pb_ih, pb_hh,
      cw_ih, cw_hh, cb_ih, cb_hh,
      w1p, w1c, b1, w2_row, b2)


# ----------------------------------------------------------------------------
# Deterministic parameter construction (master copies in f32).
# ----------------------------------------------------------------------------
def _gru_params(key, vocab, emb_dim, hidden):
    ks = jax.random.split(key, 9)
    s = 0.1
    return {
        "embedding": jax.random.normal(ks[0], (vocab, emb_dim), jnp.float32) * s,
        "w_ih_f": jax.random.normal(ks[1], (emb_dim, 3 * hidden), jnp.float32) * s,
        "w_hh_f": jax.random.normal(ks[2], (hidden, 3 * hidden), jnp.float32) * s,
        "b_ih_f": jax.random.normal(ks[3], (1, 3 * hidden), jnp.float32) * s,
        "b_hh_f": jax.random.normal(ks[4], (1, 3 * hidden), jnp.float32) * s,
        "w_ih_b": jax.random.normal(ks[5], (emb_dim, 3 * hidden), jnp.float32) * s,
        "w_hh_b": jax.random.normal(ks[6], (hidden, 3 * hidden), jnp.float32) * s,
        "b_ih_b": jax.random.normal(ks[7], (1, 3 * hidden), jnp.float32) * s,
        "b_hh_b": jax.random.normal(ks[8], (1, 3 * hidden), jnp.float32) * s,
    }


def init_params(key, *, emb_dim, hidden, fc_hidden, vocab_p, vocab_c):
    kp, kc, kf = jax.random.split(key, 3)
    kf1, kf2, kf3, kf4 = jax.random.split(kf, 4)
    D = 2 * hidden  # per-molecule vector size (concat of fwd/bwd final hidden)
    s = 0.1
    return {
        "protein": _gru_params(kp, vocab_p, emb_dim, hidden),
        "compound": _gru_params(kc, vocab_c, emb_dim, hidden),
        "fc": {
            "fc_w1_p": jax.random.normal(kf1, (D, fc_hidden), jnp.float32) * s,
            "fc_w1_c": jax.random.normal(kf2, (D, fc_hidden), jnp.float32) * s,
            "fc_b1": jax.random.normal(kf3, (1, fc_hidden), jnp.float32) * s,
            "fc_w2": jax.random.normal(kf4, (fc_hidden, 1), jnp.float32) * s,
            "fc_b2": jnp.zeros((1, 1), jnp.float32),
        },
    }


if __name__ == "__main__":
    # NOTE: the kernel is latency-bound at B=8; throughput/sample improves
    # nearly linearly with larger B (up to the MXU M height) at no extra cost.
    B = 8              # batch (multiple of 8 for sublane alignment)
    T_P, T_C = 12, 8   # protein / compound sequence lengths
    E = 128            # embedding dim (lane-aligned)
    H = 128            # GRU hidden per direction -> vectors are (B, 256)
    FC_H = 256
    VOCAB_P, VOCAB_C = 25, 64

    key = jax.random.PRNGKey(0)
    kparams, kpt, kct, kpr, kcr = jax.random.split(key, 5)

    params = init_params(kparams, emb_dim=E, hidden=H, fc_hidden=FC_H,
                         vocab_p=VOCAB_P, vocab_c=VOCAB_C)

    protein_tokens = jax.random.randint(kpt, (B, T_P), 0, VOCAB_P, jnp.int32)
    compound_tokens = jax.random.randint(kct, (B, T_C), 0, VOCAB_C, jnp.int32)
    protein_reverse = jax.random.permutation(kpr, B)
    compound_reverse = jax.random.permutation(kcr, B)

    fwd = jax.jit(regression_model_forward)
    out = fwd(params, protein_tokens, compound_tokens,
              protein_reverse, compound_reverse)
    out = jax.block_until_ready(out)

    assert out.shape == (B, 1), out.shape
    assert bool(jnp.all(jnp.isfinite(out)))
    print("KERNEL_OK")
</pallas_src>

<mosaic_0001>
module attributes {stable_mosaic.version = 11 : i64} {
  func.func @_fused_kernel(%arg0: i32, %arg1: memref<96x128xbf16, #tpu.memory_space<vmem>>, %arg2: memref<64x128xbf16, #tpu.memory_space<vmem>>, %arg3: memref<128x768xbf16, #tpu.memory_space<vmem>>, %arg4: memref<2x128x384xbf16, #tpu.memory_space<vmem>>, %arg5: memref<1x768xf32, #tpu.memory_space<vmem>>, %arg6: memref<2x1x384xf32, #tpu.memory_space<vmem>>, %arg7: memref<128x768xbf16, #tpu.memory_space<vmem>>, %arg8: memref<2x128x384xbf16, #tpu.memory_space<vmem>>, %arg9: memref<1x768xf32, #tpu.memory_space<vmem>>, %arg10: memref<2x1x384xf32, #tpu.memory_space<vmem>>, %arg11: memref<256x256xbf16, #tpu.memory_space<vmem>>, %arg12: memref<256x256xbf16, #tpu.memory_space<vmem>>, %arg13: memref<1x256xf32, #tpu.memory_space<vmem>>, %arg14: memref<1x256xf32, #tpu.memory_space<vmem>>, %arg15: memref<1x1xf32, #tpu.memory_space<vmem>>, %arg16: memref<8x1xf32, #tpu.memory_space<vmem>>, %arg17: memref<12x8x768xbf16, #tpu.memory_space<vmem>>, %arg18: memref<8x8x768xbf16, #tpu.memory_space<vmem>>) attributes {dimension_semantics = [#tpu.dimension_semantics<arbitrary>], iteration_bounds = array<i64: 1>, scalar_prefetch = 0 : i64, scratch_operands = 2 : i64, tpu.core_type = #tpu.core_type<tc>, window_params = [{pipeline_mode = #tpu.pipeline_mode<synchronous>, transform_indices = @transform_0, window_bounds = array<i64: 96, 128>}, {pipeline_mode = #tpu.pipeline_mode<synchronous>, transform_indices = @transform_1, window_bounds = array<i64: 64, 128>}, {pipeline_mode = #tpu.pipeline_mode<synchronous>, transform_indices = @transform_2, window_bounds = array<i64: 128, 768>}, {pipeline_mode = #tpu.pipeline_mode<synchronous>, transform_indices = @transform_3, window_bounds = array<i64: 2, 128, 384>}, {pipeline_mode = #tpu.pipeline_mode<synchronous>, transform_indices = @transform_4, window_bounds = array<i64: 1, 768>}, {pipeline_mode = #tpu.pipeline_mode<synchronous>, transform_indices = @transform_5, window_bounds = array<i64: 2, 1, 384>}, {pipeline_mode = #tpu.pipeline_mode<synchronous>, transform_indices = @transform_6, window_bounds = array<i64: 128, 768>}, {pipeline_mode = #tpu.pipeline_mode<synchronous>, transform_indices = @transform_7, window_bounds = array<i64: 2, 128, 384>}, {pipeline_mode = #tpu.pipeline_mode<synchronous>, transform_indices = @transform_8, window_bounds = array<i64: 1, 768>}, {pipeline_mode = #tpu.pipeline_mode<synchronous>, transform_indices = @transform_9, window_bounds = array<i64: 2, 1, 384>}, {pipeline_mode = #tpu.pipeline_mode<synchronous>, transform_indices = @transform_10, window_bounds = array<i64: 256, 256>}, {pipeline_mode = #tpu.pipeline_mode<synchronous>, transform_indices = @transform_11, window_bounds = array<i64: 256, 256>}, {pipeline_mode = #tpu.pipeline_mode<synchronous>, transform_indices = @transform_12, window_bounds = array<i64: 1, 256>}, {pipeline_mode = #tpu.pipeline_mode<synchronous>, transform_indices = @transform_13, window_bounds = array<i64: 1, 256>}, {pipeline_mode = #tpu.pipeline_mode<synchronous>, transform_indices = @transform_14, window_bounds = array<i64: 1, 1>}, {pipeline_mode = #tpu.pipeline_mode<synchronous>, transform_indices = @transform_15, window_bounds = array<i64: 8, 1>}]} {
    %c0 = arith.constant 0 : index
    %c0_0 = arith.constant 0 : index
    %0 = vector.load %arg1[%c0, %c0_0] : memref<96x128xbf16, #tpu.memory_space<vmem>>, vector<96x128xbf16>
    %c0_1 = arith.constant 0 : index
    %c0_2 = arith.constant 0 : index
    %1 = vector.load %arg3[%c0_1, %c0_2] : memref<128x768xbf16, #tpu.memory_space<vmem>>, vector<128x768xbf16>
    %cst = arith.constant dense<0.000000e+00> : vector<96x768xf32>
    %2 = tpu.matmul %0, %1, %cst {dimension_numbers = #tpu.dot_dimension_numbers<[1], [0], [0], [1], [0, 0, 1, 1], [], []>} : vector<96x128xbf16>, vector<128x768xbf16>, vector<96x768xf32> -> vector<96x768xf32>
    %c0_3 = arith.constant 0 : index
    %c0_4 = arith.constant 0 : index
    %3 = vector.load %arg5[%c0_3, %c0_4] : memref<1x768xf32, #tpu.memory_space<vmem>>, vector<1x768xf32>
    %4 = vector.broadcast %3 : vector<1x768xf32> to vector<96x768xf32>
    %5 = arith.addf %2, %4 : vector<96x768xf32>
    %6 = vector.shape_cast %5 : vector<96x768xf32> to vector<12x8x768xf32>
    %7 = arith.truncf %6 : vector<12x8x768xf32> to vector<12x8x768xbf16>
    %c0_5 = arith.constant 0 : index
    %c0_6 = arith.constant 0 : index
    %c0_7 = arith.constant 0 : index
    %8 = vector.load %arg17[%c0_5, %c0_6, %c0_7] : memref<12x8x768xbf16, #tpu.memory_space<vmem>>, vector<12x8x768xbf16>
    tpu.vector_store %arg17[%c0_5, %c0_6, %c0_7], %7 {strides = array<i32>} : memref<12x8x768xbf16, #tpu.memory_space<vmem>>, vector<12x8x768xbf16>,
    %c0_8 = arith.constant 0 : index
    %c0_9 = arith.constant 0 : index
    %9 = vector.load %arg2[%c0_8, %c0_9] : memref<64x128xbf16, #tpu.memory_space<vmem>>, vector<64x128xbf16>
    %c0_10 = arith.constant 0 : index
    %c0_11 = arith.constant 0 : index
    %10 = vector.load %arg7[%c0_10, %c0_11] : memref<128x768xbf16, #tpu.memory_space<vmem>>, vector<128x768xbf16>
    %cst_12 = arith.constant dense<0.000000e+00> : vector<64x768xf32>
    %11 = tpu.matmul %9, %10, %cst_12 {dimension_numbers = #tpu.dot_dimension_numbers<[1], [0], [0], [1], [0, 0, 1, 1], [], []>} : vector<64x128xbf16>, vector<128x768xbf16>, vector<64x768xf32> -> vector<64x768xf32>
    %c0_13 = arith.constant 0 : index
    %c0_14 = arith.constant 0 : index
    %12 = vector.load %arg9[%c0_13, %c0_14] : memref<1x768xf32, #tpu.memory_space<vmem>>, vector<1x768xf32>
    %13 = vector.broadcast %12 : vector<1x768xf32> to vector<64x768xf32>
    %14 = arith.addf %11, %13 : vector<64x768xf32>
    %15 = vector.shape_cast %14 : vector<64x768xf32> to vector<8x8x768xf32>
    %16 = arith.truncf %15 : vector<8x8x768xf32> to vector<8x8x768xbf16>
    %c0_15 = arith.constant 0 : index
    %c0_16 = arith.constant 0 : index
    %c0_17 = arith.constant 0 : index
    %17 = vector.load %arg18[%c0_15, %c0_16, %c0_17] : memref<8x8x768xbf16, #tpu.memory_space<vmem>>, vector<8x8x768xbf16>
    tpu.vector_store %arg18[%c0_15, %c0_16, %c0_17], %16 {strides = array<i32>} : memref<8x8x768xbf16, #tpu.memory_space<vmem>>, vector<8x8x768xbf16>,
    %c0_18 = arith.constant 0 : index
    %c0_19 = arith.constant 0 : index
    %c0_20 = arith.constant 0 : index
    %18 = vector.load %arg4[%c0_18, %c0_19, %c0_20] : memref<2x128x384xbf16, #tpu.memory_space<vmem>>, vector<1x128x384xbf16>
    %19 = vector.shape_cast %18 : vector<1x128x384xbf16> to vector<128x384xbf16>
    %c1 = arith.constant 1 : index
    %c0_21 = arith.constant 0 : index
    %c0_22 = arith.constant 0 : index
    %20 = vector.load %arg4[%c1, %c0_21, %c0_22] : memref<2x128x384xbf16, #tpu.memory_space<vmem>>, vector<1x128x384xbf16>
    %21 = vector.shape_cast %20 : vector<1x128x384xbf16> to vector<128x384xbf16>
    %c0_23 = arith.constant 0 : index
    %c0_24 = arith.constant 0 : index
    %c0_25 = arith.constant 0 : index
    %22 = vector.load %arg6[%c0_23, %c0_24, %c0_25] : memref<2x1x384xf32, #tpu.memory_space<vmem>>, vector<1x1x384xf32>
    %23 = vector.shape_cast %22 : vector<1x1x384xf32> to vector<1x384xf32>
    %c1_26 = arith.constant 1 : index
    %c0_27 = arith.constant 0 : index
    %c0_28 = arith.constant 0 : index
    %24 = vector.load %arg6[%c1_26, %c0_27, %c0_28] : memref<2x1x384xf32, #tpu.memory_space<vmem>>, vector<1x1x384xf32>
    %25 = vector.shape_cast %24 : vector<1x1x384xf32> to vector<1x384xf32>
    %c0_29 = arith.constant 0 : index
    %c0_30 = arith.constant 0 : index
    %c0_31 = arith.constant 0 : index
    %26 = vector.load %arg8[%c0_29, %c0_30, %c0_31] : memref<2x128x384xbf16, #tpu.memory_space<vmem>>, vector<1x128x384xbf16>
    %27 = vector.shape_cast %26 : vector<1x128x384xbf16> to vector<128x384xbf16>
    %c1_32 = arith.constant 1 : index
    %c0_33 = arith.constant 0 : index
    %c0_34 = arith.constant 0 : index
    %28 = vector.load %arg8[%c1_32, %c0_33, %c0_34] : memref<2x128x384xbf16, #tpu.memory_space<vmem>>, vector<1x128x384xbf16>
    %29 = vector.shape_cast %28 : vector<1x128x384xbf16> to vector<128x384xbf16>
    %c0_35 = arith.constant 0 : index
    %c0_36 = arith.constant 0 : index
    %c0_37 = arith.constant 0 : index
    %30 = vector.load %arg10[%c0_35, %c0_36, %c0_37] : memref<2x1x384xf32, #tpu.memory_space<vmem>>, vector<1x1x384xf32>
    %31 = vector.shape_cast %30 : vector<1x1x384xf32> to vector<1x384xf32>
    %c1_38 = arith.constant 1 : index
    %c0_39 = arith.constant 0 : index
    %c0_40 = arith.constant 0 : index
    %32 = vector.load %arg10[%c1_38, %c0_39, %c0_40] : memref<2x1x384xf32, #tpu.memory_space<vmem>>, vector<1x1x384xf32>
    %33 = vector.shape_cast %32 : vector<1x1x384xf32> to vector<1x384xf32>
    %cst_41 = arith.constant 0.000000e+00 : f32
    %34 = vector.broadcast %cst_41 : f32 to vector<8x128xf32>
    %c0_42 = arith.constant 0 : index
    %c0_43 = arith.constant 0 : index
    %c0_44 = arith.constant 0 : index
    %35 = vector.load %arg17[%c0_42, %c0_43, %c0_44] : memref<12x8x768xbf16, #tpu.memory_space<vmem>>, vector<1x8x384xbf16>
    %36 = vector.shape_cast %35 : vector<1x8x384xbf16> to vector<8x384xbf16>
    %37 = arith.extf %36 : vector<8x384xbf16> to vector<8x384xf32>
    %38 = arith.truncf %34 : vector<8x128xf32> to vector<8x128xbf16>
    %cst_45 = arith.constant dense<0.000000e+00> : vector<8x384xf32>
    %39 = tpu.matmul %38, %19, %cst_45 {dimension_numbers = #tpu.dot_dimension_numbers<[1], [0], [0], [1], [0, 0, 1, 1], [], []>} : vector<8x128xbf16>, vector<128x384xbf16>, vector<8x384xf32> -> vector<8x384xf32>
    %40 = vector.broadcast %23 : vector<1x384xf32> to vector<8x384xf32>
    %41 = arith.addf %39, %40 : vector<8x384xf32>
    %42 = vector.extract_strided_slice %37 {offsets = [0, 0], sizes = [8, 128], strides = [1, 1]} : vector<8x384xf32> to vector<8x128xf32>
    %43 = vector.extract_strided_slice %41 {offsets = [0, 0], sizes = [8, 128], strides = [1, 1]} : vector<8x384xf32> to vector<8x128xf32>
    %44 = arith.addf %42, %43 : vector<8x128xf32>
    %45 = arith.negf %44 : vector<8x128xf32>
    %46 = math.exp %45 : vector<8x128xf32>
    %cst_46 = arith.constant 1.000000e+00 : f32
    %47 = vector.broadcast %cst_46 : f32 to vector<8x128xf32>
    %48 = arith.addf %47, %46 : vector<8x128xf32>
    %49 = arith.divf %47, %48 : vector<8x128xf32>
    %50 = vector.extract_strided_slice %37 {offsets = [0, 128], sizes = [8, 128], strides = [1, 1]} : vector<8x384xf32> to vector<8x128xf32>
    %51 = vector.extract_strided_slice %41 {offsets = [0, 128], sizes = [8, 128], strides = [1, 1]} : vector<8x384xf32> to vector<8x128xf32>
    %52 = arith.addf %50, %51 : vector<8x128xf32>
    %53 = arith.negf %52 : vector<8x128xf32>
    %54 = math.exp %53 : vector<8x128xf32>
    %cst_47 = arith.constant 1.000000e+00 : f32
    %55 = vector.broadcast %cst_47 : f32 to vector<8x128xf32>
    %56 = arith.addf %55, %54 : vector<8x128xf32>
    %57 = arith.divf %55, %56 : vector<8x128xf32>
    %58 = vector.extract_strided_slice %37 {offsets = [0, 256], sizes = [8, 128], strides = [1, 1]} : vector<8x384xf32> to vector<8x128xf32>
    %59 = vector.extract_strided_slice %41 {offsets = [0, 256], sizes = [8, 128], strides = [1, 1]} : vector<8x384xf32> to vector<8x128xf32>
    %60 = arith.mulf %49, %59 : vector<8x128xf32>
    %61 = arith.addf %58, %60 : vector<8x128xf32>
    %62 = math.tanh %61 : vector<8x128xf32>
    %cst_48 = arith.constant 1.000000e+00 : f32
    %63 = vector.broadcast %cst_48 : f32 to vector<8x128xf32>
    %64 = arith.subf %63, %57 : vector<8x128xf32>
    %65 = arith.mulf %64, %62 : vector<8x128xf32>
    %66 = arith.mulf %57, %34 : vector<8x128xf32>
    %67 = arith.addf %65, %66 : vector<8x128xf32>
    %c11 = arith.constant 11 : index
    %c0_49 = arith.constant 0 : index
    %c384 = arith.constant 384 : index
    %68 = vector.load %arg17[%c11, %c0_49, %c384] : memref<12x8x768xbf16, #tpu.memory_space<vmem>>, vector<1x8x384xbf16>
    %69 = vector.shape_cast %68 : vector<1x8x384xbf16> to vector<8x384xbf16>
    %70 = arith.extf %69 : vector<8x384xbf16> to vector<8x384xf32>
    %71 = arith.truncf %34 : vector<8x128xf32> to vector<8x128xbf16>
    %cst_50 = arith.constant dense<0.000000e+00> : vector<8x384xf32>
    %72 = tpu.matmul %71, %21, %cst_50 {dimension_numbers = #tpu.dot_dimension_numbers<[1], [0], [0], [1], [0, 0, 1, 1], [], []>} : vector<8x128xbf16>, vector<128x384xbf16>, vector<8x384xf32> -> vector<8x384xf32>
    %73 = vector.broadcast %25 : vector<1x384xf32> to vector<8x384xf32>
    %74 = arith.addf %72, %73 : vector<8x384xf32>
    %75 = vector.extract_strided_slice %70 {offsets = [0, 0], sizes = [8, 128], strides = [1, 1]} : vector<8x384xf32> to vector<8x128xf32>
    %76 = vector.extract_strided_slice %74 {offsets = [0, 0], sizes = [8, 128], strides = [1, 1]} : vector<8x384xf32> to vector<8x128xf32>
    %77 = arith.addf %75, %76 : vector<8x128xf32>
    %78 = arith.negf %77 : vector<8x128xf32>
    %79 = math.exp %78 : vector<8x128xf32>
    %cst_51 = arith.constant 1.000000e+00 : f32
    %80 = vector.broadcast %cst_51 : f32 to vector<8x128xf32>
    %81 = arith.addf %80, %79 : vector<8x128xf32>
    %82 = arith.divf %80, %81 : vector<8x128xf32>
    %83 = vector.extract_strided_slice %70 {offsets = [0, 128], sizes = [8, 128], strides = [1, 1]} : vector<8x384xf32> to vector<8x128xf32>
    %84 = vector.extract_strided_slice %74 {offsets = [0, 128], sizes = [8, 128], strides = [1, 1]} : vector<8x384xf32> to vector<8x128xf32>
    %85 = arith.addf %83, %84 : vector<8x128xf32>
    %86 = arith.negf %85 : vector<8x128xf32>
    %87 = math.exp %86 : vector<8x128xf32>
    %cst_52 = arith.constant 1.000000e+00 : f32
    %88 = vector.broadcast %cst_52 : f32 to vector<8x128xf32>
    %89 = arith.addf %88, %87 : vector<8x128xf32>
    %90 = arith.divf %88, %89 : vector<8x128xf32>
    %91 = vector.extract_strided_slice %70 {offsets = [0, 256], sizes = [8, 128], strides = [1, 1]} : vector<8x384xf32> to vector<8x128xf32>
    %92 = vector.extract_strided_slice %74 {offsets = [0, 256], sizes = [8, 128], strides = [1, 1]} : vector<8x384xf32> to vector<8x128xf32>
    %93 = arith.mulf %82, %92 : vector<8x128xf32>
    %94 = arith.addf %91, %93 : vector<8x128xf32>
    %95 = math.tanh %94 : vector<8x128xf32>
    %cst_53 = arith.constant 1.000000e+00 : f32
    %96 = vector.broadcast %cst_53 : f32 to vector<8x128xf32>
    %97 = arith.subf %96, %90 : vector<8x128xf32>
    %98 = arith.mulf %97, %95 : vector<8x128xf32>
    %99 = arith.mulf %90, %34 : vector<8x128xf32>
    %100 = arith.addf %98, %99 : vector<8x128xf32>
    %c0_54 = arith.constant 0 : index
    %c0_55 = arith.constant 0 : index
    %c0_56 = arith.constant 0 : index
    %101 = vector.load %arg18[%c0_54, %c0_55, %c0_56] : memref<8x8x768xbf16, #tpu.memory_space<vmem>>, vector<1x8x384xbf16>
    %102 = vector.shape_cast %101 : vector<1x8x384xbf16> to vector<8x384xbf16>
    %103 = arith.extf %102 : vector<8x384xbf16> to vector<8x384xf32>
    %104 = arith.truncf %34 : vector<8x128xf32> to vector<8x128xbf16>
    %cst_57 = arith.constant dense<0.000000e+00> : vector<8x384xf32>
    %105 = tpu.matmul %104, %27, %cst_57 {dimension_numbers = #tpu.dot_dimension_numbers<[1], [0], [0], [1], [0, 0, 1, 1], [], []>} : vector<8x128xbf16>, vector<128x384xbf16>, vector<8x384xf32> -> vector<8x384xf32>
    %106 = vector.broadcast %31 : vector<1x384xf32> to vector<8x384xf32>
    %107 = arith.addf %105, %106 : vector<8x384xf32>
    %108 = vector.extract_strided_slice %103 {offsets = [0, 0], sizes = [8, 128], strides = [1, 1]} : vector<8x384xf32> to vector<8x128xf32>
    %109 = vector.extract_strided_slice %107 {offsets = [0, 0], sizes = [8, 128], strides = [1, 1]} : vector<8x384xf32> to vector<8x128xf32>
    %110 = arith.addf %108, %109 : vector<8x128xf32>
    %111 = arith.negf %110 : vector<8x128xf32>
    %112 = math.exp %111 : vector<8x128xf32>
    %cst_58 = arith.constant 1.000000e+00 : f32
    %113 = vector.broadcast %cst_58 : f32 to vector<8x128xf32>
    %114 = arith.addf %113, %112 : vector<8x128xf32>
    %115 = arith.divf %113, %114 : vector<8x128xf32>
    %116 = vector.extract_strided_slice %103 {offsets = [0, 128], sizes = [8, 128], strides = [1, 1]} : vector<8x384xf32> to vector<8x128xf32>
    %117 = vector.extract_strided_slice %107 {offsets = [0, 128], sizes = [8, 128], strides = [1, 1]} : vector<8x384xf32> to vector<8x128xf32>
    %118 = arith.addf %116, %117 : vector<8x128xf32>
    %119 = arith.negf %118 : vector<8x128xf32>
    %120 = math.exp %119 : vector<8x128xf32>
    %cst_59 = arith.constant 1.000000e+00 : f32
    %121 = vector.broadcast %cst_59 : f32 to vector<8x128xf32>
    %122 = arith.addf %121, %120 : vector<8x128xf32>
    %123 = arith.divf %121, %122 : vector<8x128xf32>
    %124 = vector.extract_strided_slice %103 {offsets = [0, 256], sizes = [8, 128], strides = [1, 1]} : vector<8x384xf32> to vector<8x128xf32>
    %125 = vector.extract_strided_slice %107 {offsets = [0, 256], sizes = [8, 128], strides = [1, 1]} : vector<8x384xf32> to vector<8x128xf32>
    %126 = arith.mulf %115, %125 : vector<8x128xf32>
    %127 = arith.addf %124, %126 : vector<8x128xf32>
    %128 = math.tanh %127 : vector<8x128xf32>
    %cst_60 = arith.constant 1.000000e+00 : f32
    %129 = vector.broadcast %cst_60 : f32 to vector<8x128xf32>
    %130 = arith.subf %129, %123 : vector<8x128xf32>
    %131 = arith.mulf %130, %128 : vector<8x128xf32>
    %132 = arith.mulf %123, %34 : vector<8x128xf32>
    %133 = arith.addf %131, %132 : vector<8x128xf32>
    %c7 = arith.constant 7 : index
    %c0_61 = arith.constant 0 : index
    %c384_62 = arith.constant 384 : index
    %134 = vector.load %arg18[%c7, %c0_61, %c384_62] : memref<8x8x768xbf16, #tpu.memory_space<vmem>>, vector<1x8x384xbf16>
    %135 = vector.shape_cast %134 : vector<1x8x384xbf16> to vector<8x384xbf16>
    %136 = arith.extf %135 : vector<8x384xbf16> to vector<8x384xf32>
    %137 = arith.truncf %34 : vector<8x128xf32> to vector<8x128xbf16>
    %cst_63 = arith.constant dense<0.000000e+00> : vector<8x384xf32>
    %138 = tpu.matmul %137, %29, %cst_63 {dimension_numbers = #tpu.dot_dimension_numbers<[1], [0], [0], [1], [0, 0, 1, 1], [], []>} : vector<8x128xbf16>, vector<128x384xbf16>, vector<8x384xf32> -> vector<8x384xf32>
    %139 = vector.broadcast %33 : vector<1x384xf32> to vector<8x384xf32>
    %140 = arith.addf %138, %139 : vector<8x384xf32>
    %141 = vector.extract_strided_slice %136 {offsets = [0, 0], sizes = [8, 128], strides = [1, 1]} : vector<8x384xf32> to vector<8x128xf32>
    %142 = vector.extract_strided_slice %140 {offsets = [0, 0], sizes = [8, 128], strides = [1, 1]} : vector<8x384xf32> to vector<8x128xf32>
    %143 = arith.addf %141, %142 : vector<8x128xf32>
    %144 = arith.negf %143 : vector<8x128xf32>
    %145 = math.exp %144 : vector<8x128xf32>
    %cst_64 = arith.constant 1.000000e+00 : f32
    %146 = vector.broadcast %cst_64 : f32 to vector<8x128xf32>
    %147 = arith.addf %146, %145 : vector<8x128xf32>
    %148 = arith.divf %146, %147 : vector<8x128xf32>
    %149 = vector.extract_strided_slice %136 {offsets = [0, 128], sizes = [8, 128], strides = [1, 1]} : vector<8x384xf32> to vector<8x128xf32>
    %150 = vector.extract_strided_slice %140 {offsets = [0, 128], sizes = [8, 128], strides = [1, 1]} : vector<8x384xf32> to vector<8x128xf32>
    %151 = arith.addf %149, %150 : vector<8x128xf32>
    %152 = arith.negf %151 : vector<8x128xf32>
    %153 = math.exp %152 : vector<8x128xf32>
    %cst_65 = arith.constant 1.000000e+00 : f32
    %154 = vector.broadcast %cst_65 : f32 to vector<8x128xf32>
    %155 = arith.addf %154, %153 : vector<8x128xf32>
    %156 = arith.divf %154, %155 : vector<8x128xf32>
    %157 = vector.extract_strided_slice %136 {offsets = [0, 256], sizes = [8, 128], strides = [1, 1]} : vector<8x384xf32> to vector<8x128xf32>
    %158 = vector.extract_strided_slice %140 {offsets = [0, 256], sizes = [8, 128], strides = [1, 1]} : vector<8x384xf32> to vector<8x128xf32>
    %159 = arith.mulf %148, %158 : vector<8x128xf32>
    %160 = arith.addf %157, %159 : vector<8x128xf32>
    %161 = math.tanh %160 : vector<8x128xf32>
    %cst_66 = arith.constant 1.000000e+00 : f32
    %162 = vector.broadcast %cst_66 : f32 to vector<8x128xf32>
    %163 = arith.subf %162, %156 : vector<8x128xf32>
    %164 = arith.mulf %163, %161 : vector<8x128xf32>
    %165 = arith.mulf %156, %34 : vector<8x128xf32>
    %166 = arith.addf %164, %165 : vector<8x128xf32>
    %c1_67 = arith.constant 1 : index
    %c0_68 = arith.constant 0 : index
    %c0_69 = arith.constant 0 : index
    %167 = vector.load %arg17[%c1_67, %c0_68, %c0_69] : memref<12x8x768xbf16, #tpu.memory_space<vmem>>, vector<1x8x384xbf16>
    %168 = vector.shape_cast %167 : vector<1x8x384xbf16> to vector<8x384xbf16>
    %169 = arith.extf %168 : vector<8x384xbf16> to vector<8x384xf32>
    %170 = arith.truncf %67 : vector<8x128xf32> to vector<8x128xbf16>
    %cst_70 = arith.constant dense<0.000000e+00> : vector<8x384xf32>
    %171 = tpu.matmul %170, %19, %cst_70 {dimension_numbers = #tpu.dot_dimension_numbers<[1], [0], [0], [1], [0, 0, 1, 1], [], []>} : vector<8x128xbf16>, vector<128x384xbf16>, vector<8x384xf32> -> vector<8x384xf32>
    %172 = vector.broadcast %23 : vector<1x384xf32> to vector<8x384xf32>
    %173 = arith.addf %171, %172 : vector<8x384xf32>
    %174 = vector.extract_strided_slice %169 {offsets = [0, 0], sizes = [8, 128], strides = [1, 1]} : vector<8x384xf32> to vector<8x128xf32>
    %175 = vector.extract_strided_slice %173 {offsets = [0, 0], sizes = [8, 128], strides = [1, 1]} : vector<8x384xf32> to vector<8x128xf32>
    %176 = arith.addf %174, %175 : vector<8x128xf32>
    %177 = arith.negf %176 : vector<8x128xf32>
    %178 = math.exp %177 : vector<8x128xf32>
    %cst_71 = arith.constant 1.000000e+00 : f32
    %179 = vector.broadcast %cst_71 : f32 to vector<8x128xf32>
    %180 = arith.addf %179, %178 : vector<8x128xf32>
    %181 = arith.divf %179, %180 : vector<8x128xf32>
    %182 = vector.extract_strided_slice %169 {offsets = [0, 128], sizes = [8, 128], strides = [1, 1]} : vector<8x384xf32> to vector<8x128xf32>
    %183 = vector.extract_strided_slice %173 {offsets = [0, 128], sizes = [8, 128], strides = [1, 1]} : vector<8x384xf32> to vector<8x128xf32>
    %184 = arith.addf %182, %183 : vector<8x128xf32>
    %185 = arith.negf %184 : vector<8x128xf32>
    %186 = math.exp %185 : vector<8x128xf32>
    %cst_72 = arith.constant 1.000000e+00 : f32
    %187 = vector.broadcast %cst_72 : f32 to vector<8x128xf32>
    %188 = arith.addf %187, %186 : vector<8x128xf32>
    %189 = arith.divf %187, %188 : vector<8x128xf32>
    %190 = vector.extract_strided_slice %169 {offsets = [0, 256], sizes = [8, 128], strides = [1, 1]} : vector<8x384xf32> to vector<8x128xf32>
    %191 = vector.extract_strided_slice %173 {offsets = [0, 256], sizes = [8, 128], strides = [1, 1]} : vector<8x384xf32> to vector<8x128xf32>
    %192 = arith.mulf %181, %191 : vector<8x128xf32>
    %193 = arith.addf %190, %192 : vector<8x128xf32>
    %194 = math.tanh %193 : vector<8x128xf32>
    %cst_73 = arith.constant 1.000000e+00 : f32
    %195 = vector.broadcast %cst_73 : f32 to vector<8x128xf32>
    %196 = arith.subf %195, %189 : vector<8x128xf32>
    %197 = arith.mulf %196, %194 : vector<8x128xf32>
    %198 = arith.mulf %189, %67 : vector<8x128xf32>
    %199 = arith.addf %197, %198 : vector<8x128xf32>
    %c10 = arith.constant 10 : index
    %c0_74 = arith.constant 0 : index
    %c384_75 = arith.constant 384 : index
    %200 = vector.load %arg17[%c10, %c0_74, %c384_75] : memref<12x8x768xbf16, #tpu.memory_space<vmem>>, vector<1x8x384xbf16>
    %201 = vector.shape_cast %200 : vector<1x8x384xbf16> to vector<8x384xbf16>
    %202 = arith.extf %201 : vector<8x384xbf16> to vector<8x384xf32>
    %203 = arith.truncf %100 : vector<8x128xf32> to vector<8x128xbf16>
    %cst_76 = arith.constant dense<0.000000e+00> : vector<8x384xf32>
    %204 = tpu.matmul %203, %21, %cst_76 {dimension_numbers = #tpu.dot_dimension_numbers<[1], [0], [0], [1], [0, 0, 1, 1], [], []>} : vector<8x128xbf16>, vector<128x384xbf16>, vector<8x384xf32> -> vector<8x384xf32>
    %205 = vector.broadcast %25 : vector<1x384xf32> to vector<8x384xf32>
    %206 = arith.addf %204, %205 : vector<8x384xf32>
    %207 = vector.extract_strided_slice %202 {offsets = [0, 0], sizes = [8, 128], strides = [1, 1]} : vector<8x384xf32> to vector<8x128xf32>
    %208 = vector.extract_strided_slice %206 {offsets = [0, 0], sizes = [8, 128], strides = [1, 1]} : vector<8x384xf32> to vector<8x128xf32>
    %209 = arith.addf %207, %208 : vector<8x128xf32>
    %210 = arith.negf %209 : vector<8x128xf32>
    %211 = math.exp %210 : vector<8x128xf32>
    %cst_77 = arith.constant 1.000000e+00 : f32
    %212 = vector.broadcast %cst_77 : f32 to vector<8x128xf32>
    %213 = arith.addf %212, %211 : vector<8x128xf32>
    %214 = arith.divf %212, %213 : vector<8x128xf32>
    %215 = vector.extract_strided_slice %202 {offsets = [0, 128], sizes = [8, 128], strides = [1, 1]} : vector<8x384xf32> to vector<8x128xf32>
    %216 = vector.extract_strided_slice %206 {offsets = [0, 128], sizes = [8, 128], strides = [1, 1]} : vector<8x384xf32> to vector<8x128xf32>
    %217 = arith.addf %215, %216 : vector<8x128xf32>
    %218 = arith.negf %217 : vector<8x128xf32>
    %219 = math.exp %218 : vector<8x128xf32>
    %cst_78 = arith.constant 1.000000e+00 : f32
    %220 = vector.broadcast %cst_78 : f32 to vector<8x128xf32>
    %221 = arith.addf %220, %219 : vector<8x128xf32>
    %222 = arith.divf %220, %221 : vector<8x128xf32>
    %223 = vector.extract_strided_slice %202 {offsets = [0, 256], sizes = [8, 128], strides = [1, 1]} : vector<8x384xf32> to vector<8x128xf32>
    %224 = vector.extract_strided_slice %206 {offsets = [0, 256], sizes = [8, 128], strides = [1, 1]} : vector<8x384xf32> to vector<8x128xf32>
    %225 = arith.mulf %214, %224 : vector<8x128xf32>
    %226 = arith.addf %223, %225 : vector<8x128xf32>
    %227 = math.tanh %226 : vector<8x128xf32>
    %cst_79 = arith.constant 1.000000e+00 : f32
    %228 = vector.broadcast %cst_79 : f32 to vector<8x128xf32>
    %229 = arith.subf %228, %222 : vector<8x128xf32>
    %230 = arith.mulf %229, %227 : vector<8x128xf32>
    %231 = arith.mulf %222, %100 : vector<8x128xf32>
    %232 = arith.addf %230, %231 : vector<8x128xf32>
    %c1_80 = arith.constant 1 : index
    %c0_81 = arith.constant 0 : index
    %c0_82 = arith.constant 0 : index
    %233 = vector.load %arg18[%c1_80, %c0_81, %c0_82] : memref<8x8x768xbf16, #tpu.memory_space<vmem>>, vector<1x8x384xbf16>
    %234 = vector.shape_cast %233 : vector<1x8x384xbf16> to vector<8x384xbf16>
    %235 = arith.extf %234 : vector<8x384xbf16> to vector<8x384xf32>
    %236 = arith.truncf %133 : vector<8x128xf32> to vector<8x128xbf16>
    %cst_83 = arith.constant dense<0.000000e+00> : vector<8x384xf32>
    %237 = tpu.matmul %236, %27, %cst_83 {dimension_numbers = #tpu.dot_dimension_numbers<[1], [0], [0], [1], [0, 0, 1, 1], [], []>} : vector<8x128xbf16>, vector<128x384xbf16>, vector<8x384xf32> -> vector<8x384xf32>
    %238 = vector.broadcast %31 : vector<1x384xf32> to vector<8x384xf32>
    %239 = arith.addf %237, %238 : vector<8x384xf32>
    %240 = vector.extract_strided_slice %235 {offsets = [0, 0], sizes = [8, 128], strides = [1, 1]} : vector<8x384xf32> to vector<8x128xf32>
    %241 = vector.extract_strided_slice %239 {offsets = [0, 0], sizes = [8, 128], strides = [1, 1]} : vector<8x384xf32> to vector<8x128xf32>
    %242 = arith.addf %240, %241 : vector<8x128xf32>
    %243 = arith.negf %242 : vector<8x128xf32>
    %244 = math.exp %243 : vector<8x128xf32>
    %cst_84 = arith.constant 1.000000e+00 : f32
    %245 = vector.broadcast %cst_84 : f32 to vector<8x128xf32>
    %246 = arith.addf %245, %244 : vector<8x128xf32>
    %247 = arith.divf %245, %246 : vector<8x128xf32>
    %248 = vector.extract_strided_slice %235 {offsets = [0, 128], sizes = [8, 128], strides = [1, 1]} : vector<8x384xf32> to vector<8x128xf32>
    %249 = vector.extract_strided_slice %239 {offsets = [0, 128], sizes = [8, 128], strides = [1, 1]} : vector<8x384xf32> to vector<8x128xf32>
    %250 = arith.addf %248, %249 : vector<8x128xf32>
    %251 = arith.negf %250 : vector<8x128xf32>
    %252 = math.exp %251 : vector<8x128xf32>
    %cst_85 = arith.constant 1.000000e+00 : f32
    %253 = vector.broadcast %cst_85 : f32 to vector<8x128xf32>
    %254 = arith.addf %253, %252 : vector<8x128xf32>
    %255 = arith.divf %253, %254 : vector<8x128xf32>
    %256 = vector.extract_strided_slice %235 {offsets = [0, 256], sizes = [8, 128], strides = [1, 1]} : vector<8x384xf32> to vector<8x128xf32>
    %257 = vector.extract_strided_slice %239 {offsets = [0, 256], sizes = [8, 128], strides = [1, 1]} : vector<8x384xf32> to vector<8x128xf32>
    %258 = arith.mulf %247, %257 : vector<8x128xf32>
    %259 = arith.addf %256, %258 : vector<8x128xf32>
    %260 = math.tanh %259 : vector<8x128xf32>
    %cst_86 = arith.constant 1.000000e+00 : f32
    %261 = vector.broadcast %cst_86 : f32 to vector<8x128xf32>
    %262 = arith.subf %261, %255 : vector<8x128xf32>
    %263 = arith.mulf %262, %260 : vector<8x128xf32>
    %264 = arith.mulf %255, %133 : vector<8x128xf32>
    %265 = arith.addf %263, %264 : vector<8x128xf32>
    %c6 = arith.constant 6 : index
    %c0_87 = arith.constant 0 : index
    %c384_88 = arith.constant 384 : index
    %266 = vector.load %arg18[%c6, %c0_87, %c384_88] : memref<8x8x768xbf16, #tpu.memory_space<vmem>>, vector<1x8x384xbf16>
    %267 = vector.shape_cast %266 : vector<1x8x384xbf16> to vector<8x384xbf16>
    %268 = arith.extf %267 : vector<8x384xbf16> to vector<8x384xf32>
    %269 = arith.truncf %166 : vector<8x128xf32> to vector<8x128xbf16>
    %cst_89 = arith.constant dense<0.000000e+00> : vector<8x384xf32>
    %270 = tpu.matmul %269, %29, %cst_89 {dimension_numbers = #tpu.dot_dimension_numbers<[1], [0], [0], [1], [0, 0, 1, 1], [], []>} : vector<8x128xbf16>, vector<128x384xbf16>, vector<8x384xf32> -> vector<8x384xf32>
    %271 = vector.broadcast %33 : vector<1x384xf32> to vector<8x384xf32>
    %272 = arith.addf %270, %271 : vector<8x384xf32>
    %273 = vector.extract_strided_slice %268 {offsets = [0, 0], sizes = [8, 128], strides = [1, 1]} : vector<8x384xf32> to vector<8x128xf32>
    %274 = vector.extract_strided_slice %272 {offsets = [0, 0], sizes = [8, 128], strides = [1, 1]} : vector<8x384xf32> to vector<8x128xf32>
    %275 = arith.addf %273, %274 : vector<8x128xf32>
    %276 = arith.negf %275 : vector<8x128xf32>
    %277 = math.exp %276 : vector<8x128xf32>
    %cst_90 = arith.constant 1.000000e+00 : f32
    %278 = vector.broadcast %cst_90 : f32 to vector<8x128xf32>
    %279 = arith.addf %278, %277 : vector<8x128xf32>
    %280 = arith.divf %278, %279 : vector<8x128xf32>
    %281 = vector.extract_strided_slice %268 {offsets = [0, 128], sizes = [8, 128], strides = [1, 1]} : vector<8x384xf32> to vector<8x128xf32>
    %282 = vector.extract_strided_slice %272 {offsets = [0, 128], sizes = [8, 128], strides = [1, 1]} : vector<8x384xf32> to vector<8x128xf32>
    %283 = arith.addf %281, %282 : vector<8x128xf32>
    %284 = arith.negf %283 : vector<8x128xf32>
    %285 = math.exp %284 : vector<8x128xf32>
    %cst_91 = arith.constant 1.000000e+00 : f32
    %286 = vector.broadcast %cst_91 : f32 to vector<8x128xf32>
    %287 = arith.addf %286, %285 : vector<8x128xf32>
    %288 = arith.divf %286, %287 : vector<8x128xf32>
    %289 = vector.extract_strided_slice %268 {offsets = [0, 256], sizes = [8, 128], strides = [1, 1]} : vector<8x384xf32> to vector<8x128xf32>
    %290 = vector.extract_strided_slice %272 {offsets = [0, 256], sizes = [8, 128], strides = [1, 1]} : vector<8x384xf32> to vector<8x128xf32>
    %291 = arith.mulf %280, %290 : vector<8x128xf32>
    %292 = arith.addf %289, %291 : vector<8x128xf32>
    %293 = math.tanh %292 : vector<8x128xf32>
    %cst_92 = arith.constant 1.000000e+00 : f32
    %294 = vector.broadcast %cst_92 : f32 to vector<8x128xf32>
    %295 = arith.subf %294, %288 : vector<8x128xf32>
    %296 = arith.mulf %295, %293 : vector<8x128xf32>
    %297 = arith.mulf %288, %166 : vector<8x128xf32>
    %298 = arith.addf %296, %297 : vector<8x128xf32>
    %c2 = arith.constant 2 : index
    %c0_93 = arith.constant 0 : index
    %c0_94 = arith.constant 0 : index
    %299 = vector.load %arg17[%c2, %c0_93, %c0_94] : memref<12x8x768xbf16, #tpu.memory_space<vmem>>, vector<1x8x384xbf16>
    %300 = vector.shape_cast %299 : vector<1x8x384xbf16> to vector<8x384xbf16>
    %301 = arith.extf %300 : vector<8x384xbf16> to vector<8x384xf32>
    %302 = arith.truncf %199 : vector<8x128xf32> to vector<8x128xbf16>
    %cst_95 = arith.constant dense<0.000000e+00> : vector<8x384xf32>
    %303 = tpu.matmul %302, %19, %cst_95 {dimension_numbers = #tpu.dot_dimension_numbers<[1], [0], [0], [1], [0, 0, 1, 1], [], []>} : vector<8x128xbf16>, vector<128x384xbf16>, vector<8x384xf32> -> vector<8x384xf32>
    %304 = vector.broadcast %23 : vector<1x384xf32> to vector<8x384xf32>
    %305 = arith.addf %303, %304 : vector<8x384xf32>
    %306 = vector.extract_strided_slice %301 {offsets = [0, 0], sizes = [8, 128], strides = [1, 1]} : vector<8x384xf32> to vector<8x128xf32>
    %307 = vector.extract_strided_slice %305 {offsets = [0, 0], sizes = [8, 128], strides = [1, 1]} : vector<8x384xf32> to vector<8x128xf32>
    %308 = arith.addf %306, %307 : vector<8x128xf32>
    %309 = arith.negf %308 : vector<8x128xf32>
    %310 = math.exp %309 : vector<8x128xf32>
    %cst_96 = arith.constant 1.000000e+00 : f32
    %311 = vector.broadcast %cst_96 : f32 to vector<8x128xf32>
    %312 = arith.addf %311, %310 : vector<8x128xf32>
    %313 = arith.divf %311, %312 : vector<8x128xf32>
    %314 = vector.extract_strided_slice %301 {offsets = [0, 128], sizes = [8, 128], strides = [1, 1]} : vector<8x384xf32> to vector<8x128xf32>
    %315 = vector.extract_strided_slice %305 {offsets = [0, 128], sizes = [8, 128], strides = [1, 1]} : vector<8x384xf32> to vector<8x128xf32>
    %316 = arith.addf %314, %315 : vector<8x128xf32>
    %317 = arith.negf %316 : vector<8x128xf32>
    %318 = math.exp %317 : vector<8x128xf32>
    %cst_97 = arith.constant 1.000000e+00 : f32
    %319 = vector.broadcast %cst_97 : f32 to vector<8x128xf32>
    %320 = arith.addf %319, %318 : vector<8x128xf32>
    %321 = arith.divf %319, %320 : vector<8x128xf32>
    %322 = vector.extract_strided_slice %301 {offsets = [0, 256], sizes = [8, 128], strides = [1, 1]} : vector<8x384xf32> to vector<8x128xf32>
    %323 = vector.extract_strided_slice %305 {offsets = [0, 256], sizes = [8, 128], strides = [1, 1]} : vector<8x384xf32> to vector<8x128xf32>
    %324 = arith.mulf %313, %323 : vector<8x128xf32>
    %325 = arith.addf %322, %324 : vector<8x128xf32>
    %326 = math.tanh %325 : vector<8x128xf32>
    %cst_98 = arith.constant 1.000000e+00 : f32
    %327 = vector.broadcast %cst_98 : f32 to vector<8x128xf32>
    %328 = arith.subf %327, %321 : vector<8x128xf32>
    %329 = arith.mulf %328, %326 : vector<8x128xf32>
    %330 = arith.mulf %321, %199 : vector<8x128xf32>
    %331 = arith.addf %329, %330 : vector<8x128xf32>
    %c9 = arith.constant 9 : index
    %c0_99 = arith.constant 0 : index
    %c384_100 = arith.constant 384 : index
    %332 = vector.load %arg17[%c9, %c0_99, %c384_100] : memref<12x8x768xbf16, #tpu.memory_space<vmem>>, vector<1x8x384xbf16>
    %333 = vector.shape_cast %332 : vector<1x8x384xbf16> to vector<8x384xbf16>
    %334 = arith.extf %333 : vector<8x384xbf16> to vector<8x384xf32>
    %335 = arith.truncf %232 : vector<8x128xf32> to vector<8x128xbf16>
    %cst_101 = arith.constant dense<0.000000e+00> : vector<8x384xf32>
    %336 = tpu.matmul %335, %21, %cst_101 {dimension_numbers = #tpu.dot_dimension_numbers<[1], [0], [0], [1], [0, 0, 1, 1], [], []>} : vector<8x128xbf16>, vector<128x384xbf16>, vector<8x384xf32> -> vector<8x384xf32>
    %337 = vector.broadcast %25 : vector<1x384xf32> to vector<8x384xf32>
    %338 = arith.addf %336, %337 : vector<8x384xf32>
    %339 = vector.extract_strided_slice %334 {offsets = [0, 0], sizes = [8, 128], strides = [1, 1]} : vector<8x384xf32> to vector<8x128xf32>
    %340 = vector.extract_strided_slice %338 {offsets = [0, 0], sizes = [8, 128], strides = [1, 1]} : vector<8x384xf32> to vector<8x128xf32>
    %341 = arith.addf %339, %340 : vector<8x128xf32>
    %342 = arith.negf %341 : vector<8x128xf32>
    %343 = math.exp %342 : vector<8x128xf32>
    %cst_102 = arith.constant 1.000000e+00 : f32
    %344 = vector.broadcast %cst_102 : f32 to vector<8x128xf32>
    %345 = arith.addf %344, %343 : vector<8x128xf32>
    %346 = arith.divf %344, %345 : vector<8x128xf32>
    %347 = vector.extract_strided_slice %334 {offsets = [0, 128], sizes = [8, 128], strides = [1, 1]} : vector<8x384xf32> to vector<8x128xf32>
    %348 = vector.extract_strided_slice %338 {offsets = [0, 128], sizes = [8, 128], strides = [1, 1]} : vector<8x384xf32> to vector<8x128xf32>
    %349 = arith.addf %347, %348 : vector<8x128xf32>
    %350 = arith.negf %349 : vector<8x128xf32>
    %351 = math.exp %350 : vector<8x128xf32>
    %cst_103 = arith.constant 1.000000e+00 : f32
    %352 = vector.broadcast %cst_103 : f32 to vector<8x128xf32>
    %353 = arith.addf %352, %351 : vector<8x128xf32>
    %354 = arith.divf %352, %353 : vector<8x128xf32>
    %355 = vector.extract_strided_slice %334 {offsets = [0, 256], sizes = [8, 128], strides = [1, 1]} : vector<8x384xf32> to vector<8x128xf32>
    %356 = vector.extract_strided_slice %338 {offsets = [0, 256], sizes = [8, 128], strides = [1, 1]} : vector<8x384xf32> to vector<8x128xf32>
    %357 = arith.mulf %346, %356 : vector<8x128xf32>
    %358 = arith.addf %355, %357 : vector<8x128xf32>
    %359 = math.tanh %358 : vector<8x128xf32>
    %cst_104 = arith.constant 1.000000e+00 : f32
    %360 = vector.broadcast %cst_104 : f32 to vector<8x128xf32>
    %361 = arith.subf %360, %354 : vector<8x128xf32>
    %362 = arith.mulf %361, %359 : vector<8x128xf32>
    %363 = arith.mulf %354, %232 : vector<8x128xf32>
    %364 = arith.addf %362, %363 : vector<8x128xf32>
    %c2_105 = arith.constant 2 : index
    %c0_106 = arith.constant 0 : index
    %c0_107 = arith.constant 0 : index
    %365 = vector.load %arg18[%c2_105, %c0_106, %c0_107] : memref<8x8x768xbf16, #tpu.memory_space<vmem>>, vector<1x8x384xbf16>
    %366 = vector.shape_cast %365 : vector<1x8x384xbf16> to vector<8x384xbf16>
    %367 = arith.extf %366 : vector<8x384xbf16> to vector<8x384xf32>
    %368 = arith.truncf %265 : vector<8x128xf32> to vector<8x128xbf16>
    %cst_108 = arith.constant dense<0.000000e+00> : vector<8x384xf32>
    %369 = tpu.matmul %368, %27, %cst_108 {dimension_numbers = #tpu.dot_dimension_numbers<[1], [0], [0], [1], [0, 0, 1, 1], [], []>} : vector<8x128xbf16>, vector<128x384xbf16>, vector<8x384xf32> -> vector<8x384xf32>
    %370 = vector.broadcast %31 : vector<1x384xf32> to vector<8x384xf32>
    %371 = arith.addf %369, %370 : vector<8x384xf32>
    %372 = vector.extract_strided_slice %367 {offsets = [0, 0], sizes = [8, 128], strides = [1, 1]} : vector<8x384xf32> to vector<8x128xf32>
    %373 = vector.extract_strided_slice %371 {offsets = [0, 0], sizes = [8, 128], strides = [1, 1]} : vector<8x384xf32> to vector<8x128xf32>
    %374 = arith.addf %372, %373 : vector<8x128xf32>
    %375 = arith.negf %374 : vector<8x128xf32>
    %376 = math.exp %375 : vector<8x128xf32>
    %cst_109 = arith.constant 1.000000e+00 : f32
    %377 = vector.broadcast %cst_109 : f32 to vector<8x128xf32>
    %378 = arith.addf %377, %376 : vector<8x128xf32>
    %379 = arith.divf %377, %378 : vector<8x128xf32>
    %380 = vector.extract_strided_slice %367 {offsets = [0, 128], sizes = [8, 128], strides = [1, 1]} : vector<8x384xf32> to vector<8x128xf32>
    %381 = vector.extract_strided_slice %371 {offsets = [0, 128], sizes = [8, 128], strides = [1, 1]} : vector<8x384xf32> to vector<8x128xf32>
    %382 = arith.addf %380, %381 : vector<8x128xf32>
    %383 = arith.negf %382 : vector<8x128xf32>
    %384 = math.exp %383 : vector<8x128xf32>
    %cst_110 = arith.constant 1.000000e+00 : f32
    %385 = vector.broadcast %cst_110 : f32 to vector<8x128xf32>
    %386 = arith.addf %385, %384 : vector<8x128xf32>
    %387 = arith.divf %385, %386 : vector<8x128xf32>
    %388 = vector.extract_strided_slice %367 {offsets = [0, 256], sizes = [8, 128], strides = [1, 1]} : vector<8x384xf32> to vector<8x128xf32>
    %389 = vector.extract_strided_slice %371 {offsets = [0, 256], sizes = [8, 128], strides = [1, 1]} : vector<8x384xf32> to vector<8x128xf32>
    %390 = arith.mulf %379, %389 : vector<8x128xf32>
    %391 = arith.addf %388, %390 : vector<8x128xf32>
    %392 = math.tanh %391 : vector<8x128xf32>
    %cst_111 = arith.constant 1.000000e+00 : f32
    %393 = vector.broadcast %cst_111 : f32 to vector<8x128xf32>
    %394 = arith.subf %393, %387 : vector<8x128xf32>
    %395 = arith.mulf %394, %392 : vector<8x128xf32>
    %396 = arith.mulf %387, %265 : vector<8x128xf32>
    %397 = arith.addf %395, %396 : vector<8x128xf32>
    %c5 = arith.constant 5 : index
    %c0_112 = arith.constant 0 : index
    %c384_113 = arith.constant 384 : index
    %398 = vector.load %arg18[%c5, %c0_112, %c384_113] : memref<8x8x768xbf16, #tpu.memory_space<vmem>>, vector<1x8x384xbf16>
    %399 = vector.shape_cast %398 : vector<1x8x384xbf16> to vector<8x384xbf16>
    %400 = arith.extf %399 : vector<8x384xbf16> to vector<8x384xf32>
    %401 = arith.truncf %298 : vector<8x128xf32> to vector<8x128xbf16>
    %cst_114 = arith.constant dense<0.000000e+00> : vector<8x384xf32>
    %402 = tpu.matmul %401, %29, %cst_114 {dimension_numbers = #tpu.dot_dimension_numbers<[1], [0], [0], [1], [0, 0, 1, 1], [], []>} : vector<8x128xbf16>, vector<128x384xbf16>, vector<8x384xf32> -> vector<8x384xf32>
    %403 = vector.broadcast %33 : vector<1x384xf32> to vector<8x384xf32>
    %404 = arith.addf %402, %403 : vector<8x384xf32>
    %405 = vector.extract_strided_slice %400 {offsets = [0, 0], sizes = [8, 128], strides = [1, 1]} : vector<8x384xf32> to vector<8x128xf32>
    %406 = vector.extract_strided_slice %404 {offsets = [0, 0], sizes = [8, 128], strides = [1, 1]} : vector<8x384xf32> to vector<8x128xf32>
    %407 = arith.addf %405, %406 : vector<8x128xf32>
    %408 = arith.negf %407 : vector<8x128xf32>
    %409 = math.exp %408 : vector<8x128xf32>
    %cst_115 = arith.constant 1.000000e+00 : f32
    %410 = vector.broadcast %cst_115 : f32 to vector<8x128xf32>
    %411 = arith.addf %410, %409 : vector<8x128xf32>
    %412 = arith.divf %410, %411 : vector<8x128xf32>
    %413 = vector.extract_strided_slice %400 {offsets = [0, 128], sizes = [8, 128], strides = [1, 1]} : vector<8x384xf32> to vector<8x128xf32>
    %414 = vector.extract_strided_slice %404 {offsets = [0, 128], sizes = [8, 128], strides = [1, 1]} : vector<8x384xf32> to vector<8x128xf32>
    %415 = arith.addf %413, %414 : vector<8x128xf32>
    %416 = arith.negf %415 : vector<8x128xf32>
    %417 = math.exp %416 : vector<8x128xf32>
    %cst_116 = arith.constant 1.000000e+00 : f32
    %418 = vector.broadcast %cst_116 : f32 to vector<8x128xf32>
    %419 = arith.addf %418, %417 : vector<8x128xf32>
    %420 = arith.divf %418, %419 : vector<8x128xf32>
    %421 = vector.extract_strided_slice %400 {offsets = [0, 256], sizes = [8, 128], strides = [1, 1]} : vector<8x384xf32> to vector<8x128xf32>
    %422 = vector.extract_strided_slice %404 {offsets = [0, 256], sizes = [8, 128], strides = [1, 1]} : vector<8x384xf32> to vector<8x128xf32>
    %423 = arith.mulf %412, %422 : vector<8x128xf32>
    %424 = arith.addf %421, %423 : vector<8x128xf32>
    %425 = math.tanh %424 : vector<8x128xf32>
    %cst_117 = arith.constant 1.000000e+00 : f32
    %426 = vector.broadcast %cst_117 : f32 to vector<8x128xf32>
    %427 = arith.subf %426, %420 : vector<8x128xf32>
    %428 = arith.mulf %427, %425 : vector<8x128xf32>
    %429 = arith.mulf %420, %298 : vector<8x128xf32>
    %430 = arith.addf %428, %429 : vector<8x128xf32>
    %c3 = arith.constant 3 : index
    %c0_118 = arith.constant 0 : index
    %c0_119 = arith.constant 0 : index
    %431 = vector.load %arg17[%c3, %c0_118, %c0_119] : memref<12x8x768xbf16, #tpu.memory_space<vmem>>, vector<1x8x384xbf16>
    %432 = vector.shape_cast %431 : vector<1x8x384xbf16> to vector<8x384xbf16>
    %433 = arith.extf %432 : vector<8x384xbf16> to vector<8x384xf32>
    %434 = arith.truncf %331 : vector<8x128xf32> to vector<8x128xbf16>
    %cst_120 = arith.constant dense<0.000000e+00> : vector<8x384xf32>
    %435 = tpu.matmul %434, %19, %cst_120 {dimension_numbers = #tpu.dot_dimension_numbers<[1], [0], [0], [1], [0, 0, 1, 1], [], []>} : vector<8x128xbf16>, vector<128x384xbf16>, vector<8x384xf32> -> vector<8x384xf32>
    %436 = vector.broadcast %23 : vector<1x384xf32> to vector<8x384xf32>
    %437 = arith.addf %435, %436 : vector<8x384xf32>
    %438 = vector.extract_strided_slice %433 {offsets = [0, 0], sizes = [8, 128], strides = [1, 1]} : vector<8x384xf32> to vector<8x128xf32>
    %439 = vector.extract_strided_slice %437 {offsets = [0, 0], sizes = [8, 128], strides = [1, 1]} : vector<8x384xf32> to vector<8x128xf32>
    %440 = arith.addf %438, %439 : vector<8x128xf32>
    %441 = arith.negf %440 : vector<8x128xf32>
    %442 = math.exp %441 : vector<8x128xf32>
    %cst_121 = arith.constant 1.000000e+00 : f32
    %443 = vector.broadcast %cst_121 : f32 to vector<8x128xf32>
    %444 = arith.addf %443, %442 : vector<8x128xf32>
    %445 = arith.divf %443, %444 : vector<8x128xf32>
    %446 = vector.extract_strided_slice %433 {offsets = [0, 128], sizes = [8, 128], strides = [1, 1]} : vector<8x384xf32> to vector<8x128xf32>
    %447 = vector.extract_strided_slice %437 {offsets = [0, 128], sizes = [8, 128], strides = [1, 1]} : vector<8x384xf32> to vector<8x128xf32>
    %448 = arith.addf %446, %447 : vector<8x128xf32>
    %449 = arith.negf %448 : vector<8x128xf32>
    %450 = math.exp %449 : vector<8x128xf32>
    %cst_122 = arith.constant 1.000000e+00 : f32
    %451 = vector.broadcast %cst_122 : f32 to vector<8x128xf32>
    %452 = arith.addf %451, %450 : vector<8x128xf32>
    %453 = arith.divf %451, %452 : vector<8x128xf32>
    %454 = vector.extract_strided_slice %433 {offsets = [0, 256], sizes = [8, 128], strides = [1, 1]} : vector<8x384xf32> to vector<8x128xf32>
    %455 = vector.extract_strided_slice %437 {offsets = [0, 256], sizes = [8, 128], strides = [1, 1]} : vector<8x384xf32> to vector<8x128xf32>
    %456 = arith.mulf %445, %455 : vector<8x128xf32>
    %457 = arith.addf %454, %456 : vector<8x128xf32>
    %458 = math.tanh %457 : vector<8x128xf32>
    %cst_123 = arith.constant 1.000000e+00 : f32
    %459 = vector.broadcast %cst_123 : f32 to vector<8x128xf32>
    %460 = arith.subf %459, %453 : vector<8x128xf32>
    %461 = arith.mulf %460, %458 : vector<8x128xf32>
    %462 = arith.mulf %453, %331 : vector<8x128xf32>
    %463 = arith.addf %461, %462 : vector<8x128xf32>
    %c8 = arith.constant 8 : index
    %c0_124 = arith.constant 0 : index
    %c384_125 = arith.constant 384 : index
    %464 = vector.load %arg17[%c8, %c0_124, %c384_125] : memref<12x8x768xbf16, #tpu.memory_space<vmem>>, vector<1x8x384xbf16>
    %465 = vector.shape_cast %464 : vector<1x8x384xbf16> to vector<8x384xbf16>
    %466 = arith.extf %465 : vector<8x384xbf16> to vector<8x384xf32>
    %467 = arith.truncf %364 : vector<8x128xf32> to vector<8x128xbf16>
    %cst_126 = arith.constant dense<0.000000e+00> : vector<8x384xf32>
    %468 = tpu.matmul %467, %21, %cst_126 {dimension_numbers = #tpu.dot_dimension_numbers<[1], [0], [0], [1], [0, 0, 1, 1], [], []>} : vector<8x128xbf16>, vector<128x384xbf16>, vector<8x384xf32> -> vector<8x384xf32>
    %469 = vector.broadcast %25 : vector<1x384xf32> to vector<8x384xf32>
    %470 = arith.addf %468, %469 : vector<8x384xf32>
    %471 = vector.extract_strided_slice %466 {offsets = [0, 0], sizes = [8, 128], strides = [1, 1]} : vector<8x384xf32> to vector<8x128xf32>
    %472 = vector.extract_strided_slice %470 {offsets = [0, 0], sizes = [8, 128], strides = [1, 1]} : vector<8x384xf32> to vector<8x128xf32>
    %473 = arith.addf %471, %472 : vector<8x128xf32>
    %474 = arith.negf %473 : vector<8x128xf32>
    %475 = math.exp %474 : vector<8x128xf32>
    %cst_127 = arith.constant 1.000000e+00 : f32
    %476 = vector.broadcast %cst_127 : f32 to vector<8x128xf32>
    %477 = arith.addf %476, %475 : vector<8x128xf32>
    %478 = arith.divf %476, %477 : vector<8x128xf32>
    %479 = vector.extract_strided_slice %466 {offsets = [0, 128], sizes = [8, 128], strides = [1, 1]} : vector<8x384xf32> to vector<8x128xf32>
    %480 = vector.extract_strided_slice %470 {offsets = [0, 128], sizes = [8, 128], strides = [1, 1]} : vector<8x384xf32> to vector<8x128xf32>
    %481 = arith.addf %479, %480 : vector<8x128xf32>
    %482 = arith.negf %481 : vector<8x128xf32>
    %483 = math.exp %482 : vector<8x128xf32>
    %cst_128 = arith.constant 1.000000e+00 : f32
    %484 = vector.broadcast %cst_128 : f32 to vector<8x128xf32>
    %485 = arith.addf %484, %483 : vector<8x128xf32>
    %486 = arith.divf %484, %485 : vector<8x128xf32>
    %487 = vector.extract_strided_slice %466 {offsets = [0, 256], sizes = [8, 128], strides = [1, 1]} : vector<8x384xf32> to vector<8x128xf32>
    %488 = vector.extract_strided_slice %470 {offsets = [0, 256], sizes = [8, 128], strides = [1, 1]} : vector<8x384xf32> to vector<8x128xf32>
    %489 = arith.mulf %478, %488 : vector<8x128xf32>
    %490 = arith.addf %487, %489 : vector<8x128xf32>
    %491 = math.tanh %490 : vector<8x128xf32>
    %cst_129 = arith.constant 1.000000e+00 : f32
    %492 = vector.broadcast %cst_129 : f32 to vector<8x128xf32>
    %493 = arith.subf %492, %486 : vector<8x128xf32>
    %494 = arith.mulf %493, %491 : vector<8x128xf32>
    %495 = arith.mulf %486, %364 : vector<8x128xf32>
    %496 = arith.addf %494, %495 : vector<8x128xf32>
    %c3_130 = arith.constant 3 : index
    %c0_131 = arith.constant 0 : index
    %c0_132 = arith.constant 0 : index
    %497 = vector.load %arg18[%c3_130, %c0_131, %c0_132] : memref<8x8x768xbf16, #tpu.memory_space<vmem>>, vector<1x8x384xbf16>
    %498 = vector.shape_cast %497 : vector<1x8x384xbf16> to vector<8x384xbf16>
    %499 = arith.extf %498 : vector<8x384xbf16> to vector<8x384xf32>
    %500 = arith.truncf %397 : vector<8x128xf32> to vector<8x128xbf16>
    %cst_133 = arith.constant dense<0.000000e+00> : vector<8x384xf32>
    %501 = tpu.matmul %500, %27, %cst_133 {dimension_numbers = #tpu.dot_dimension_numbers<[1], [0], [0], [1], [0, 0, 1, 1], [], []>} : vector<8x128xbf16>, vector<128x384xbf16>, vector<8x384xf32> -> vector<8x384xf32>
    %502 = vector.broadcast %31 : vector<1x384xf32> to vector<8x384xf32>
    %503 = arith.addf %501, %502 : vector<8x384xf32>
    %504 = vector.extract_strided_slice %499 {offsets = [0, 0], sizes = [8, 128], strides = [1, 1]} : vector<8x384xf32> to vector<8x128xf32>
    %505 = vector.extract_strided_slice %503 {offsets = [0, 0], sizes = [8, 128], strides = [1, 1]} : vector<8x384xf32> to vector<8x128xf32>
    %506 = arith.addf %504, %505 : vector<8x128xf32>
    %507 = arith.negf %506 : vector<8x128xf32>
    %508 = math.exp %507 : vector<8x128xf32>
    %cst_134 = arith.constant 1.000000e+00 : f32
    %509 = vector.broadcast %cst_134 : f32 to vector<8x128xf32>
    %510 = arith.addf %509, %508 : vector<8x128xf32>
    %511 = arith.divf %509, %510 : vector<8x128xf32>
    %512 = vector.extract_strided_slice %499 {offsets = [0, 128], sizes = [8, 128], strides = [1, 1]} : vector<8x384xf32> to vector<8x128xf32>
    %513 = vector.extract_strided_slice %503 {offsets = [0, 128], sizes = [8, 128], strides = [1, 1]} : vector<8x384xf32> to vector<8x128xf32>
    %514 = arith.addf %512, %513 : vector<8x128xf32>
    %515 = arith.negf %514 : vector<8x128xf32>
    %516 = math.exp %515 : vector<8x128xf32>
    %cst_135 = arith.constant 1.000000e+00 : f32
    %517 = vector.broadcast %cst_135 : f32 to vector<8x128xf32>
    %518 = arith.addf %517, %516 : vector<8x128xf32>
    %519 = arith.divf %517, %518 : vector<8x128xf32>
    %520 = vector.extract_strided_slice %499 {offsets = [0, 256], sizes = [8, 128], strides = [1, 1]} : vector<8x384xf32> to vector<8x128xf32>
    %521 = vector.extract_strided_slice %503 {offsets = [0, 256], sizes = [8, 128], strides = [1, 1]} : vector<8x384xf32> to vector<8x128xf32>
    %522 = arith.mulf %511, %521 : vector<8x128xf32>
    %523 = arith.addf %520, %522 : vector<8x128xf32>
    %524 = math.tanh %523 : vector<8x128xf32>
    %cst_136 = arith.constant 1.000000e+00 : f32
    %525 = vector.broadcast %cst_136 : f32 to vector<8x128xf32>
    %526 = arith.subf %525, %519 : vector<8x128xf32>
    %527 = arith.mulf %526, %524 : vector<8x128xf32>
    %528 = arith.mulf %519, %397 : vector<8x128xf32>
    %529 = arith.addf %527, %528 : vector<8x128xf32>
    %c4 = arith.constant 4 : index
    %c0_137 = arith.constant 0 : index
    %c384_138 = arith.constant 384 : index
    %530 = vector.load %arg18[%c4, %c0_137, %c384_138] : memref<8x8x768xbf16, #tpu.memory_space<vmem>>, vector<1x8x384xbf16>
    %531 = vector.shape_cast %530 : vector<1x8x384xbf16> to vector<8x384xbf16>
    %532 = arith.extf %531 : vector<8x384xbf16> to vector<8x384xf32>
    %533 = arith.truncf %430 : vector<8x128xf32> to vector<8x128xbf16>
    %cst_139 = arith.constant dense<0.000000e+00> : vector<8x384xf32>
    %534 = tpu.matmul %533, %29, %cst_139 {dimension_numbers = #tpu.dot_dimension_numbers<[1], [0], [0], [1], [0, 0, 1, 1], [], []>} : vector<8x128xbf16>, vector<128x384xbf16>, vector<8x384xf32> -> vector<8x384xf32>
    %535 = vector.broadcast %33 : vector<1x384xf32> to vector<8x384xf32>
    %536 = arith.addf %534, %535 : vector<8x384xf32>
    %537 = vector.extract_strided_slice %532 {offsets = [0, 0], sizes = [8, 128], strides = [1, 1]} : vector<8x384xf32> to vector<8x128xf32>
    %538 = vector.extract_strided_slice %536 {offsets = [0, 0], sizes = [8, 128], strides = [1, 1]} : vector<8x384xf32> to vector<8x128xf32>
    %539 = arith.addf %537, %538 : vector<8x128xf32>
    %540 = arith.negf %539 : vector<8x128xf32>
    %541 = math.exp %540 : vector<8x128xf32>
    %cst_140 = arith.constant 1.000000e+00 : f32
    %542 = vector.broadcast %cst_140 : f32 to vector<8x128xf32>
    %543 = arith.addf %542, %541 : vector<8x128xf32>
    %544 = arith.divf %542, %543 : vector<8x128xf32>
    %545 = vector.extract_strided_slice %532 {offsets = [0, 128], sizes = [8, 128], strides = [1, 1]} : vector<8x384xf32> to vector<8x128xf32>
    %546 = vector.extract_strided_slice %536 {offsets = [0, 128], sizes = [8, 128], strides = [1, 1]} : vector<8x384xf32> to vector<8x128xf32>
    %547 = arith.addf %545, %546 : vector<8x128xf32>
    %548 = arith.negf %547 : vector<8x128xf32>
    %549 = math.exp %548 : vector<8x128xf32>
    %cst_141 = arith.constant 1.000000e+00 : f32
    %550 = vector.broadcast %cst_141 : f32 to vector<8x128xf32>
    %551 = arith.addf %550, %549 : vector<8x128xf32>
    %552 = arith.divf %550, %551 : vector<8x128xf32>
    %553 = vector.extract_strided_slice %532 {offsets = [0, 256], sizes = [8, 128], strides = [1, 1]} : vector<8x384xf32> to vector<8x128xf32>
    %554 = vector.extract_strided_slice %536 {offsets = [0, 256], sizes = [8, 128], strides = [1, 1]} : vector<8x384xf32> to vector<8x128xf32>
    %555 = arith.mulf %544, %554 : vector<8x128xf32>
    %556 = arith.addf %553, %555 : vector<8x128xf32>
    %557 = math.tanh %556 : vector<8x128xf32>
    %cst_142 = arith.constant 1.000000e+00 : f32
    %558 = vector.broadcast %cst_142 : f32 to vector<8x128xf32>
    %559 = arith.subf %558, %552 : vector<8x128xf32>
    %560 = arith.mulf %559, %557 : vector<8x128xf32>
    %561 = arith.mulf %552, %430 : vector<8x128xf32>
    %562 = arith.addf %560, %561 : vector<8x128xf32>
    %c4_143 = arith.constant 4 : index
    %c0_144 = arith.constant 0 : index
    %c0_145 = arith.constant 0 : index
    %563 = vector.load %arg17[%c4_143, %c0_144, %c0_145] : memref<12x8x768xbf16, #tpu.memory_space<vmem>>, vector<1x8x384xbf16>
    %564 = vector.shape_cast %563 : vector<1x8x384xbf16> to vector<8x384xbf16>
    %565 = arith.extf %564 : vector<8x384xbf16> to vector<8x384xf32>
    %566 = arith.truncf %463 : vector<8x128xf32> to vector<8x128xbf16>
    %cst_146 = arith.constant dense<0.000000e+00> : vector<8x384xf32>
    %567 = tpu.matmul %566, %19, %cst_146 {dimension_numbers = #tpu.dot_dimension_numbers<[1], [0], [0], [1], [0, 0, 1, 1], [], []>} : vector<8x128xbf16>, vector<128x384xbf16>, vector<8x384xf32> -> vector<8x384xf32>
    %568 = vector.broadcast %23 : vector<1x384xf32> to vector<8x384xf32>
    %569 = arith.addf %567, %568 : vector<8x384xf32>
    %570 = vector.extract_strided_slice %565 {offsets = [0, 0], sizes = [8, 128], strides = [1, 1]} : vector<8x384xf32> to vector<8x128xf32>
    %571 = vector.extract_strided_slice %569 {offsets = [0, 0], sizes = [8, 128], strides = [1, 1]} : vector<8x384xf32> to vector<8x128xf32>
    %572 = arith.addf %570, %571 : vector<8x128xf32>
    %573 = arith.negf %572 : vector<8x128xf32>
    %574 = math.exp %573 : vector<8x128xf32>
    %cst_147 = arith.constant 1.000000e+00 : f32
    %575 = vector.broadcast %cst_147 : f32 to vector<8x128xf32>
    %576 = arith.addf %575, %574 : vector<8x128xf32>
    %577 = arith.divf %575, %576 : vector<8x128xf32>
    %578 = vector.extract_strided_slice %565 {offsets = [0, 128], sizes = [8, 128], strides = [1, 1]} : vector<8x384xf32> to vector<8x128xf32>
    %579 = vector.extract_strided_slice %569 {offsets = [0, 128], sizes = [8, 128], strides = [1, 1]} : vector<8x384xf32> to vector<8x128xf32>
    %580 = arith.addf %578, %579 : vector<8x128xf32>
    %581 = arith.negf %580 : vector<8x128xf32>
    %582 = math.exp %581 : vector<8x128xf32>
    %cst_148 = arith.constant 1.000000e+00 : f32
    %583 = vector.broadcast %cst_148 : f32 to vector<8x128xf32>
    %584 = arith.addf %583, %582 : vector<8x128xf32>
    %585 = arith.divf %583, %584 : vector<8x128xf32>
    %586 = vector.extract_strided_slice %565 {offsets = [0, 256], sizes = [8, 128], strides = [1, 1]} : vector<8x384xf32> to vector<8x128xf32>
    %587 = vector.extract_strided_slice %569 {offsets = [0, 256], sizes = [8, 128], strides = [1, 1]} : vector<8x384xf32> to vector<8x128xf32>
    %588 = arith.mulf %577, %587 : vector<8x128xf32>
    %589 = arith.addf %586, %588 : vector<8x128xf32>
    %590 = math.tanh %589 : vector<8x128xf32>
    %cst_149 = arith.constant 1.000000e+00 : f32
    %591 = vector.broadcast %cst_149 : f32 to vector<8x128xf32>
    %592 = arith.subf %591, %585 : vector<8x128xf32>
    %593 = arith.mulf %592, %590 : vector<8x128xf32>
    %594 = arith.mulf %585, %463 : vector<8x128xf32>
    %595 = arith.addf %593, %594 : vector<8x128xf32>
    %c7_150 = arith.constant 7 : index
    %c0_151 = arith.constant 0 : index
    %c384_152 = arith.constant 384 : index
    %596 = vector.load %arg17[%c7_150, %c0_151, %c384_152] : memref<12x8x768xbf16, #tpu.memory_space<vmem>>, vector<1x8x384xbf16>
    %597 = vector.shape_cast %596 : vector<1x8x384xbf16> to vector<8x384xbf16>
    %598 = arith.extf %597 : vector<8x384xbf16> to vector<8x384xf32>
    %599 = arith.truncf %496 : vector<8x128xf32> to vector<8x128xbf16>
    %cst_153 = arith.constant dense<0.000000e+00> : vector<8x384xf32>
    %600 = tpu.matmul %599, %21, %cst_153 {dimension_numbers = #tpu.dot_dimension_numbers<[1], [0], [0], [1], [0, 0, 1, 1], [], []>} : vector<8x128xbf16>, vector<128x384xbf16>, vector<8x384xf32> -> vector<8x384xf32>
    %601 = vector.broadcast %25 : vector<1x384xf32> to vector<8x384xf32>
    %602 = arith.addf %600, %601 : vector<8x384xf32>
    %603 = vector.extract_strided_slice %598 {offsets = [0, 0], sizes = [8, 128], strides = [1, 1]} : vector<8x384xf32> to vector<8x128xf32>
    %604 = vector.extract_strided_slice %602 {offsets = [0, 0], sizes = [8, 128], strides = [1, 1]} : vector<8x384xf32> to vector<8x128xf32>
    %605 = arith.addf %603, %604 : vector<8x128xf32>
    %606 = arith.negf %605 : vector<8x128xf32>
    %607 = math.exp %606 : vector<8x128xf32>
    %cst_154 = arith.constant 1.000000e+00 : f32
    %608 = vector.broadcast %cst_154 : f32 to vector<8x128xf32>
    %609 = arith.addf %608, %607 : vector<8x128xf32>
    %610 = arith.divf %608, %609 : vector<8x128xf32>
    %611 = vector.extract_strided_slice %598 {offsets = [0, 128], sizes = [8, 128], strides = [1, 1]} : vector<8x384xf32> to vector<8x128xf32>
    %612 = vector.extract_strided_slice %602 {offsets = [0, 128], sizes = [8, 128], strides = [1, 1]} : vector<8x384xf32> to vector<8x128xf32>
    %613 = arith.addf %611, %612 : vector<8x128xf32>
    %614 = arith.negf %613 : vector<8x128xf32>
    %615 = math.exp %614 : vector<8x128xf32>
    %cst_155 = arith.constant 1.000000e+00 : f32
    %616 = vector.broadcast %cst_155 : f32 to vector<8x128xf32>
    %617 = arith.addf %616, %615 : vector<8x128xf32>
    %618 = arith.divf %616, %617 : vector<8x128xf32>
    %619 = vector.extract_strided_slice %598 {offsets = [0, 256], sizes = [8, 128], strides = [1, 1]} : vector<8x384xf32> to vector<8x128xf32>
    %620 = vector.extract_strided_slice %602 {offsets = [0, 256], sizes = [8, 128], strides = [1, 1]} : vector<8x384xf32> to vector<8x128xf32>
    %621 = arith.mulf %610, %620 : vector<8x128xf32>
    %622 = arith.addf %619, %621 : vector<8x128xf32>
    %623 = math.tanh %622 : vector<8x128xf32>
    %cst_156 = arith.constant 1.000000e+00 : f32
    %624 = vector.broadcast %cst_156 : f32 to vector<8x128xf32>
    %625 = arith.subf %624, %618 : vector<8x128xf32>
    %626 = arith.mulf %625, %623 : vector<8x128xf32>
    %627 = arith.mulf %618, %496 : vector<8x128xf32>
    %628 = arith.addf %626, %627 : vector<8x128xf32>
    %c4_157 = arith.constant 4 : index
    %c0_158 = arith.constant 0 : index
    %c0_159 = arith.constant 0 : index
    %629 = vector.load %arg18[%c4_157, %c0_158, %c0_159] : memref<8x8x768xbf16, #tpu.memory_space<vmem>>, vector<1x8x384xbf16>
    %630 = vector.shape_cast %629 : vector<1x8x384xbf16> to vector<8x384xbf16>
    %631 = arith.extf %630 : vector<8x384xbf16> to vector<8x384xf32>
    %632 = arith.truncf %529 : vector<8x128xf32> to vector<8x128xbf16>
    %cst_160 = arith.constant dense<0.000000e+00> : vector<8x384xf32>
    %633 = tpu.matmul %632, %27, %cst_160 {dimension_numbers = #tpu.dot_dimension_numbers<[1], [0], [0], [1], [0, 0, 1, 1], [], []>} : vector<8x128xbf16>, vector<128x384xbf16>, vector<8x384xf32> -> vector<8x384xf32>
    %634 = vector.broadcast %31 : vector<1x384xf32> to vector<8x384xf32>
    %635 = arith.addf %633, %634 : vector<8x384xf32>
    %636 = vector.extract_strided_slice %631 {offsets = [0, 0], sizes = [8, 128], strides = [1, 1]} : vector<8x384xf32> to vector<8x128xf32>
    %637 = vector.extract_strided_slice %635 {offsets = [0, 0], sizes = [8, 128], strides = [1, 1]} : vector<8x384xf32> to vector<8x128xf32>
    %638 = arith.addf %636, %637 : vector<8x128xf32>
    %639 = arith.negf %638 : vector<8x128xf32>
    %640 = math.exp %639 : vector<8x128xf32>
    %cst_161 = arith.constant 1.000000e+00 : f32
    %641 = vector.broadcast %cst_161 : f32 to vector<8x128xf32>
    %642 = arith.addf %641, %640 : vector<8x128xf32>
    %643 = arith.divf %641, %642 : vector<8x128xf32>
    %644 = vector.extract_strided_slice %631 {offsets = [0, 128], sizes = [8, 128], strides = [1, 1]} : vector<8x384xf32> to vector<8x128xf32>
    %645 = vector.extract_strided_slice %635 {offsets = [0, 128], sizes = [8, 128], strides = [1, 1]} : vector<8x384xf32> to vector<8x128xf32>
    %646 = arith.addf %644, %645 : vector<8x128xf32>
    %647 = arith.negf %646 : vector<8x128xf32>
    %648 = math.exp %647 : vector<8x128xf32>
    %cst_162 = arith.constant 1.000000e+00 : f32
    %649 = vector.broadcast %cst_162 : f32 to vector<8x128xf32>
    %650 = arith.addf %649, %648 : vector<8x128xf32>
    %651 = arith.divf %649, %650 : vector<8x128xf32>
    %652 = vector.extract_strided_slice %631 {offsets = [0, 256], sizes = [8, 128], strides = [1, 1]} : vector<8x384xf32> to vector<8x128xf32>
    %653 = vector.extract_strided_slice %635 {offsets = [0, 256], sizes = [8, 128], strides = [1, 1]} : vector<8x384xf32> to vector<8x128xf32>
    %654 = arith.mulf %643, %653 : vector<8x128xf32>
    %655 = arith.addf %652, %654 : vector<8x128xf32>
    %656 = math.tanh %655 : vector<8x128xf32>
    %cst_163 = arith.constant 1.000000e+00 : f32
    %657 = vector.broadcast %cst_163 : f32 to vector<8x128xf32>
    %658 = arith.subf %657, %651 : vector<8x128xf32>
    %659 = arith.mulf %658, %656 : vector<8x128xf32>
    %660 = arith.mulf %651, %529 : vector<8x128xf32>
    %661 = arith.addf %659, %660 : vector<8x128xf32>
    %c3_164 = arith.constant 3 : index
    %c0_165 = arith.constant 0 : index
    %c384_166 = arith.constant 384 : index
    %662 = vector.load %arg18[%c3_164, %c0_165, %c384_166] : memref<8x8x768xbf16, #tpu.memory_space<vmem>>, vector<1x8x384xbf16>
    %663 = vector.shape_cast %662 : vector<1x8x384xbf16> to vector<8x384xbf16>
    %664 = arith.extf %663 : vector<8x384xbf16> to vector<8x384xf32>
    %665 = arith.truncf %562 : vector<8x128xf32> to vector<8x128xbf16>
    %cst_167 = arith.constant dense<0.000000e+00> : vector<8x384xf32>
    %666 = tpu.matmul %665, %29, %cst_167 {dimension_numbers = #tpu.dot_dimension_numbers<[1], [0], [0], [1], [0, 0, 1, 1], [], []>} : vector<8x128xbf16>, vector<128x384xbf16>, vector<8x384xf32> -> vector<8x384xf32>
    %667 = vector.broadcast %33 : vector<1x384xf32> to vector<8x384xf32>
    %668 = arith.addf %666, %667 : vector<8x384xf32>
    %669 = vector.extract_strided_slice %664 {offsets = [0, 0], sizes = [8, 128], strides = [1, 1]} : vector<8x384xf32> to vector<8x128xf32>
    %670 = vector.extract_strided_slice %668 {offsets = [0, 0], sizes = [8, 128], strides = [1, 1]} : vector<8x384xf32> to vector<8x128xf32>
    %671 = arith.addf %669, %670 : vector<8x128xf32>
    %672 = arith.negf %671 : vector<8x128xf32>
    %673 = math.exp %672 : vector<8x128xf32>
    %cst_168 = arith.constant 1.000000e+00 : f32
    %674 = vector.broadcast %cst_168 : f32 to vector<8x128xf32>
    %675 = arith.addf %674, %673 : vector<8x128xf32>
    %676 = arith.divf %674, %675 : vector<8x128xf32>
    %677 = vector.extract_strided_slice %664 {offsets = [0, 128], sizes = [8, 128], strides = [1, 1]} : vector<8x384xf32> to vector<8x128xf32>
    %678 = vector.extract_strided_slice %668 {offsets = [0, 128], sizes = [8, 128], strides = [1, 1]} : vector<8x384xf32> to vector<8x128xf32>
    %679 = arith.addf %677, %678 : vector<8x128xf32>
    %680 = arith.negf %679 : vector<8x128xf32>
    %681 = math.exp %680 : vector<8x128xf32>
    %cst_169 = arith.constant 1.000000e+00 : f32
    %682 = vector.broadcast %cst_169 : f32 to vector<8x128xf32>
    %683 = arith.addf %682, %681 : vector<8x128xf32>
    %684 = arith.divf %682, %683 : vector<8x128xf32>
    %685 = vector.extract_strided_slice %664 {offsets = [0, 256], sizes = [8, 128], strides = [1, 1]} : vector<8x384xf32> to vector<8x128xf32>
    %686 = vector.extract_strided_slice %668 {offsets = [0, 256], sizes = [8, 128], strides = [1, 1]} : vector<8x384xf32> to vector<8x128xf32>
    %687 = arith.mulf %676, %686 : vector<8x128xf32>
    %688 = arith.addf %685, %687 : vector<8x128xf32>
    %689 = math.tanh %688 : vector<8x128xf32>
    %cst_170 = arith.constant 1.000000e+00 : f32
    %690 = vector.broadcast %cst_170 : f32 to vector<8x128xf32>
    %691 = arith.subf %690, %684 : vector<8x128xf32>
    %692 = arith.mulf %691, %689 : vector<8x128xf32>
    %693 = arith.mulf %684, %562 : vector<8x128xf32>
    %694 = arith.addf %692, %693 : vector<8x128xf32>
    %c5_171 = arith.constant 5 : index
    %c0_172 = arith.constant 0 : index
    %c0_173 = arith.constant 0 : index
    %695 = vector.load %arg17[%c5_171, %c0_172, %c0_173] : memref<12x8x768xbf16, #tpu.memory_space<vmem>>, vector<1x8x384xbf16>
    %696 = vector.shape_cast %695 : vector<1x8x384xbf16> to vector<8x384xbf16>
    %697 = arith.extf %696 : vector<8x384xbf16> to vector<8x384xf32>
    %698 = arith.truncf %595 : vector<8x128xf32> to vector<8x128xbf16>
    %cst_174 = arith.constant dense<0.000000e+00> : vector<8x384xf32>
    %699 = tpu.matmul %698, %19, %cst_174 {dimension_numbers = #tpu.dot_dimension_numbers<[1], [0], [0], [1], [0, 0, 1, 1], [], []>} : vector<8x128xbf16>, vector<128x384xbf16>, vector<8x384xf32> -> vector<8x384xf32>
    %700 = vector.broadcast %23 : vector<1x384xf32> to vector<8x384xf32>
    %701 = arith.addf %699, %700 : vector<8x384xf32>
    %702 = vector.extract_strided_slice %697 {offsets = [0, 0], sizes = [8, 128], strides = [1, 1]} : vector<8x384xf32> to vector<8x128xf32>
    %703 = vector.extract_strided_slice %701 {offsets = [0, 0], sizes = [8, 128], strides = [1, 1]} : vector<8x384xf32> to vector<8x128xf32>
    %704 = arith.addf %702, %703 : vector<8x128xf32>
    %705 = arith.negf %704 : vector<8x128xf32>
    %706 = math.exp %705 : vector<8x128xf32>
    %cst_175 = arith.constant 1.000000e+00 : f32
    %707 = vector.broadcast %cst_175 : f32 to vector<8x128xf32>
    %708 = arith.addf %707, %706 : vector<8x128xf32>
    %709 = arith.divf %707, %708 : vector<8x128xf32>
    %710 = vector.extract_strided_slice %697 {offsets = [0, 128], sizes = [8, 128], strides = [1, 1]} : vector<8x384xf32> to vector<8x128xf32>
    %711 = vector.extract_strided_slice %701 {offsets = [0, 128], sizes = [8, 128], strides = [1, 1]} : vector<8x384xf32> to vector<8x128xf32>
    %712 = arith.addf %710, %711 : vector<8x128xf32>
    %713 = arith.negf %712 : vector<8x128xf32>
    %714 = math.exp %713 : vector<8x128xf32>
    %cst_176 = arith.constant 1.000000e+00 : f32
    %715 = vector.broadcast %cst_176 : f32 to vector<8x128xf32>
    %716 = arith.addf %715, %714 : vector<8x128xf32>
    %717 = arith.divf %715, %716 : vector<8x128xf32>
    %718 = vector.extract_strided_slice %697 {offsets = [0, 256], sizes = [8, 128], strides = [1, 1]} : vector<8x384xf32> to vector<8x128xf32>
    %719 = vector.extract_strided_slice %701 {offsets = [0, 256], sizes = [8, 128], strides = [1, 1]} : vector<8x384xf32> to vector<8x128xf32>
    %720 = arith.mulf %709, %719 : vector<8x128xf32>
    %721 = arith.addf %718, %720 : vector<8x128xf32>
    %722 = math.tanh %721 : vector<8x128xf32>
    %cst_177 = arith.constant 1.000000e+00 : f32
    %723 = vector.broadcast %cst_177 : f32 to vector<8x128xf32>
    %724 = arith.subf %723, %717 : vector<8x128xf32>
    %725 = arith.mulf %724, %722 : vector<8x128xf32>
    %726 = arith.mulf %717, %595 : vector<8x128xf32>
    %727 = arith.addf %725, %726 : vector<8x128xf32>
    %c6_178 = arith.constant 6 : index
    %c0_179 = arith.constant 0 : index
    %c384_180 = arith.constant 384 : index
    %728 = vector.load %arg17[%c6_178, %c0_179, %c384_180] : memref<12x8x768xbf16, #tpu.memory_space<vmem>>, vector<1x8x384xbf16>
    %729 = vector.shape_cast %728 : vector<1x8x384xbf16> to vector<8x384xbf16>
    %730 = arith.extf %729 : vector<8x384xbf16> to vector<8x384xf32>
    %731 = arith.truncf %628 : vector<8x128xf32> to vector<8x128xbf16>
    %cst_181 = arith.constant dense<0.000000e+00> : vector<8x384xf32>
    %732 = tpu.matmul %731, %21, %cst_181 {dimension_numbers = #tpu.dot_dimension_numbers<[1], [0], [0], [1], [0, 0, 1, 1], [], []>} : vector<8x128xbf16>, vector<128x384xbf16>, vector<8x384xf32> -> vector<8x384xf32>
    %733 = vector.broadcast %25 : vector<1x384xf32> to vector<8x384xf32>
    %734 = arith.addf %732, %733 : vector<8x384xf32>
    %735 = vector.extract_strided_slice %730 {offsets = [0, 0], sizes = [8, 128], strides = [1, 1]} : vector<8x384xf32> to vector<8x128xf32>
    %736 = vector.extract_strided_slice %734 {offsets = [0, 0], sizes = [8, 128], strides = [1, 1]} : vector<8x384xf32> to vector<8x128xf32>
    %737 = arith.addf %735, %736 : vector<8x128xf32>
    %738 = arith.negf %737 : vector<8x128xf32>
    %739 = math.exp %738 : vector<8x128xf32>
    %cst_182 = arith.constant 1.000000e+00 : f32
    %740 = vector.broadcast %cst_182 : f32 to vector<8x128xf32>
    %741 = arith.addf %740, %739 : vector<8x128xf32>
    %742 = arith.divf %740, %741 : vector<8x128xf32>
    %743 = vector.extract_strided_slice %730 {offsets = [0, 128], sizes = [8, 128], strides = [1, 1]} : vector<8x384xf32> to vector<8x128xf32>
    %744 = vector.extract_strided_slice %734 {offsets = [0, 128], sizes = [8, 128], strides = [1, 1]} : vector<8x384xf32> to vector<8x128xf32>
    %745 = arith.addf %743, %744 : vector<8x128xf32>
    %746 = arith.negf %745 : vector<8x128xf32>
    %747 = math.exp %746 : vector<8x128xf32>
    %cst_183 = arith.constant 1.000000e+00 : f32
    %748 = vector.broadcast %cst_183 : f32 to vector<8x128xf32>
    %749 = arith.addf %748, %747 : vector<8x128xf32>
    %750 = arith.divf %748, %749 : vector<8x128xf32>
    %751 = vector.extract_strided_slice %730 {offsets = [0, 256], sizes = [8, 128], strides = [1, 1]} : vector<8x384xf32> to vector<8x128xf32>
    %752 = vector.extract_strided_slice %734 {offsets = [0, 256], sizes = [8, 128], strides = [1, 1]} : vector<8x384xf32> to vector<8x128xf32>
    %753 = arith.mulf %742, %752 : vector<8x128xf32>
    %754 = arith.addf %751, %753 : vector<8x128xf32>
    %755 = math.tanh %754 : vector<8x128xf32>
    %cst_184 = arith.constant 1.000000e+00 : f32
    %756 = vector.broadcast %cst_184 : f32 to vector<8x128xf32>
    %757 = arith.subf %756, %750 : vector<8x128xf32>
    %758 = arith.mulf %757, %755 : vector<8x128xf32>
    %759 = arith.mulf %750, %628 : vector<8x128xf32>
    %760 = arith.addf %758, %759 : vector<8x128xf32>
    %c5_185 = arith.constant 5 : index
    %c0_186 = arith.constant 0 : index
    %c0_187 = arith.constant 0 : index
    %761 = vector.load %arg18[%c5_185, %c0_186, %c0_187] : memref<8x8x768xbf16, #tpu.memory_space<vmem>>, vector<1x8x384xbf16>
    %762 = vector.shape_cast %761 : vector<1x8x384xbf16> to vector<8x384xbf16>
    %763 = arith.extf %762 : vector<8x384xbf16> to vector<8x384xf32>
    %764 = arith.truncf %661 : vector<8x128xf32> to vector<8x128xbf16>
    %cst_188 = arith.constant dense<0.000000e+00> : vector<8x384xf32>
    %765 = tpu.matmul %764, %27, %cst_188 {dimension_numbers = #tpu.dot_dimension_numbers<[1], [0], [0], [1], [0, 0, 1, 1], [], []>} : vector<8x128xbf16>, vector<128x384xbf16>, vector<8x384xf32> -> vector<8x384xf32>
    %766 = vector.broadcast %31 : vector<1x384xf32> to vector<8x384xf32>
    %767 = arith.addf %765, %766 : vector<8x384xf32>
    %768 = vector.extract_strided_slice %763 {offsets = [0, 0], sizes = [8, 128], strides = [1, 1]} : vector<8x384xf32> to vector<8x128xf32>
    %769 = vector.extract_strided_slice %767 {offsets = [0, 0], sizes = [8, 128], strides = [1, 1]} : vector<8x384xf32> to vector<8x128xf32>
    %770 = arith.addf %768, %769 : vector<8x128xf32>
    %771 = arith.negf %770 : vector<8x128xf32>
    %772 = math.exp %771 : vector<8x128xf32>
    %cst_189 = arith.constant 1.000000e+00 : f32
    %773 = vector.broadcast %cst_189 : f32 to vector<8x128xf32>
    %774 = arith.addf %773, %772 : vector<8x128xf32>
    %775 = arith.divf %773, %774 : vector<8x128xf32>
    %776 = vector.extract_strided_slice %763 {offsets = [0, 128], sizes = [8, 128], strides = [1, 1]} : vector<8x384xf32> to vector<8x128xf32>
    %777 = vector.extract_strided_slice %767 {offsets = [0, 128], sizes = [8, 128], strides = [1, 1]} : vector<8x384xf32> to vector<8x128xf32>
    %778 = arith.addf %776, %777 : vector<8x128xf32>
    %779 = arith.negf %778 : vector<8x128xf32>
    %780 = math.exp %779 : vector<8x128xf32>
    %cst_190 = arith.constant 1.000000e+00 : f32
    %781 = vector.broadcast %cst_190 : f32 to vector<8x128xf32>
    %782 = arith.addf %781, %780 : vector<8x128xf32>
    %783 = arith.divf %781, %782 : vector<8x128xf32>
    %784 = vector.extract_strided_slice %763 {offsets = [0, 256], sizes = [8, 128], strides = [1, 1]} : vector<8x384xf32> to vector<8x128xf32>
    %785 = vector.extract_strided_slice %767 {offsets = [0, 256], sizes = [8, 128], strides = [1, 1]} : vector<8x384xf32> to vector<8x128xf32>
    %786 = arith.mulf %775, %785 : vector<8x128xf32>
    %787 = arith.addf %784, %786 : vector<8x128xf32>
    %788 = math.tanh %787 : vector<8x128xf32>
    %cst_191 = arith.constant 1.000000e+00 : f32
    %789 = vector.broadcast %cst_191 : f32 to vector<8x128xf32>
    %790 = arith.subf %789, %783 : vector<8x128xf32>
    %791 = arith.mulf %790, %788 : vector<8x128xf32>
    %792 = arith.mulf %783, %661 : vector<8x128xf32>
    %793 = arith.addf %791, %792 : vector<8x128xf32>
    %c2_192 = arith.constant 2 : index
    %c0_193 = arith.constant 0 : index
    %c384_194 = arith.constant 384 : index
    %794 = vector.load %arg18[%c2_192, %c0_193, %c384_194] : memref<8x8x768xbf16, #tpu.memory_space<vmem>>, vector<1x8x384xbf16>
    %795 = vector.shape_cast %794 : vector<1x8x384xbf16> to vector<8x384xbf16>
    %796 = arith.extf %795 : vector<8x384xbf16> to vector<8x384xf32>
    %797 = arith.truncf %694 : vector<8x128xf32> to vector<8x128xbf16>
    %cst_195 = arith.constant dense<0.000000e+00> : vector<8x384xf32>
    %798 = tpu.matmul %797, %29, %cst_195 {dimension_numbers = #tpu.dot_dimension_numbers<[1], [0], [0], [1], [0, 0, 1, 1], [], []>} : vector<8x128xbf16>, vector<128x384xbf16>, vector<8x384xf32> -> vector<8x384xf32>
    %799 = vector.broadcast %33 : vector<1x384xf32> to vector<8x384xf32>
    %800 = arith.addf %798, %799 : vector<8x384xf32>
    %801 = vector.extract_strided_slice %796 {offsets = [0, 0], sizes = [8, 128], strides = [1, 1]} : vector<8x384xf32> to vector<8x128xf32>
    %802 = vector.extract_strided_slice %800 {offsets = [0, 0], sizes = [8, 128], strides = [1, 1]} : vector<8x384xf32> to vector<8x128xf32>
    %803 = arith.addf %801, %802 : vector<8x128xf32>
    %804 = arith.negf %803 : vector<8x128xf32>
    %805 = math.exp %804 : vector<8x128xf32>
    %cst_196 = arith.constant 1.000000e+00 : f32
    %806 = vector.broadcast %cst_196 : f32 to vector<8x128xf32>
    %807 = arith.addf %806, %805 : vector<8x128xf32>
    %808 = arith.divf %806, %807 : vector<8x128xf32>
    %809 = vector.extract_strided_slice %796 {offsets = [0, 128], sizes = [8, 128], strides = [1, 1]} : vector<8x384xf32> to vector<8x128xf32>
    %810 = vector.extract_strided_slice %800 {offsets = [0, 128], sizes = [8, 128], strides = [1, 1]} : vector<8x384xf32> to vector<8x128xf32>
    %811 = arith.addf %809, %810 : vector<8x128xf32>
    %812 = arith.negf %811 : vector<8x128xf32>
    %813 = math.exp %812 : vector<8x128xf32>
    %cst_197 = arith.constant 1.000000e+00 : f32
    %814 = vector.broadcast %cst_197 : f32 to vector<8x128xf32>
    %815 = arith.addf %814, %813 : vector<8x128xf32>
    %816 = arith.divf %814, %815 : vector<8x128xf32>
    %817 = vector.extract_strided_slice %796 {offsets = [0, 256], sizes = [8, 128], strides = [1, 1]} : vector<8x384xf32> to vector<8x128xf32>
    %818 = vector.extract_strided_slice %800 {offsets = [0, 256], sizes = [8, 128], strides = [1, 1]} : vector<8x384xf32> to vector<8x128xf32>
    %819 = arith.mulf %808, %818 : vector<8x128xf32>
    %820 = arith.addf %817, %819 : vector<8x128xf32>
    %821 = math.tanh %820 : vector<8x128xf32>
    %cst_198 = arith.constant 1.000000e+00 : f32
    %822 = vector.broadcast %cst_198 : f32 to vector<8x128xf32>
    %823 = arith.subf %822, %816 : vector<8x128xf32>
    %824 = arith.mulf %823, %821 : vector<8x128xf32>
    %825 = arith.mulf %816, %694 : vector<8x128xf32>
    %826 = arith.addf %824, %825 : vector<8x128xf32>
    %c6_199 = arith.constant 6 : index
    %c0_200 = arith.constant 0 : index
    %c0_201 = arith.constant 0 : index
    %827 = vector.load %arg17[%c6_199, %c0_200, %c0_201] : memref<12x8x768xbf16, #tpu.memory_space<vmem>>, vector<1x8x384xbf16>
    %828 = vector.shape_cast %827 : vector<1x8x384xbf16> to vector<8x384xbf16>
    %829 = arith.extf %828 : vector<8x384xbf16> to vector<8x384xf32>
    %830 = arith.truncf %727 : vector<8x128xf32> to vector<8x128xbf16>
    %cst_202 = arith.constant dense<0.000000e+00> : vector<8x384xf32>
    %831 = tpu.matmul %830, %19, %cst_202 {dimension_numbers = #tpu.dot_dimension_numbers<[1], [0], [0], [1], [0, 0, 1, 1], [], []>} : vector<8x128xbf16>, vector<128x384xbf16>, vector<8x384xf32> -> vector<8x384xf32>
    %832 = vector.broadcast %23 : vector<1x384xf32> to vector<8x384xf32>
    %833 = arith.addf %831, %832 : vector<8x384xf32>
    %834 = vector.extract_strided_slice %829 {offsets = [0, 0], sizes = [8, 128], strides = [1, 1]} : vector<8x384xf32> to vector<8x128xf32>
    %835 = vector.extract_strided_slice %833 {offsets = [0, 0], sizes = [8, 128], strides = [1, 1]} : vector<8x384xf32> to vector<8x128xf32>
    %836 = arith.addf %834, %835 : vector<8x128xf32>
    %837 = arith.negf %836 : vector<8x128xf32>
    %838 = math.exp %837 : vector<8x128xf32>
    %cst_203 = arith.constant 1.000000e+00 : f32
    %839 = vector.broadcast %cst_203 : f32 to vector<8x128xf32>
    %840 = arith.addf %839, %838 : vector<8x128xf32>
    %841 = arith.divf %839, %840 : vector<8x128xf32>
    %842 = vector.extract_strided_slice %829 {offsets = [0, 128], sizes = [8, 128], strides = [1, 1]} : vector<8x384xf32> to vector<8x128xf32>
    %843 = vector.extract_strided_slice %833 {offsets = [0, 128], sizes = [8, 128], strides = [1, 1]} : vector<8x384xf32> to vector<8x128xf32>
    %844 = arith.addf %842, %843 : vector<8x128xf32>
    %845 = arith.negf %844 : vector<8x128xf32>
    %846 = math.exp %845 : vector<8x128xf32>
    %cst_204 = arith.constant 1.000000e+00 : f32
    %847 = vector.broadcast %cst_204 : f32 to vector<8x128xf32>
    %848 = arith.addf %847, %846 : vector<8x128xf32>
    %849 = arith.divf %847, %848 : vector<8x128xf32>
    %850 = vector.extract_strided_slice %829 {offsets = [0, 256], sizes = [8, 128], strides = [1, 1]} : vector<8x384xf32> to vector<8x128xf32>
    %851 = vector.extract_strided_slice %833 {offsets = [0, 256], sizes = [8, 128], strides = [1, 1]} : vector<8x384xf32> to vector<8x128xf32>
    %852 = arith.mulf %841, %851 : vector<8x128xf32>
    %853 = arith.addf %850, %852 : vector<8x128xf32>
    %854 = math.tanh %853 : vector<8x128xf32>
    %cst_205 = arith.constant 1.000000e+00 : f32
    %855 = vector.broadcast %cst_205 : f32 to vector<8x128xf32>
    %856 = arith.subf %855, %849 : vector<8x128xf32>
    %857 = arith.mulf %856, %854 : vector<8x128xf32>
    %858 = arith.mulf %849, %727 : vector<8x128xf32>
    %859 = arith.addf %857, %858 : vector<8x128xf32>
    %c5_206 = arith.constant 5 : index
    %c0_207 = arith.constant 0 : index
    %c384_208 = arith.constant 384 : index
    %860 = vector.load %arg17[%c5_206, %c0_207, %c384_208] : memref<12x8x768xbf16, #tpu.memory_space<vmem>>, vector<1x8x384xbf16>
    %861 = vector.shape_cast %860 : vector<1x8x384xbf16> to vector<8x384xbf16>
    %862 = arith.extf %861 : vector<8x384xbf16> to vector<8x384xf32>
    %863 = arith.truncf %760 : vector<8x128xf32> to vector<8x128xbf16>
    %cst_209 = arith.constant dense<0.000000e+00> : vector<8x384xf32>
    %864 = tpu.matmul %863, %21, %cst_209 {dimension_numbers = #tpu.dot_dimension_numbers<[1], [0], [0], [1], [0, 0, 1, 1], [], []>} : vector<8x128xbf16>, vector<128x384xbf16>, vector<8x384xf32> -> vector<8x384xf32>
    %865 = vector.broadcast %25 : vector<1x384xf32> to vector<8x384xf32>
    %866 = arith.addf %864, %865 : vector<8x384xf32>
    %867 = vector.extract_strided_slice %862 {offsets = [0, 0], sizes = [8, 128], strides = [1, 1]} : vector<8x384xf32> to vector<8x128xf32>
    %868 = vector.extract_strided_slice %866 {offsets = [0, 0], sizes = [8, 128], strides = [1, 1]} : vector<8x384xf32> to vector<8x128xf32>
    %869 = arith.addf %867, %868 : vector<8x128xf32>
    %870 = arith.negf %869 : vector<8x128xf32>
    %871 = math.exp %870 : vector<8x128xf32>
    %cst_210 = arith.constant 1.000000e+00 : f32
    %872 = vector.broadcast %cst_210 : f32 to vector<8x128xf32>
    %873 = arith.addf %872, %871 : vector<8x128xf32>
    %874 = arith.divf %872, %873 : vector<8x128xf32>
    %875 = vector.extract_strided_slice %862 {offsets = [0, 128], sizes = [8, 128], strides = [1, 1]} : vector<8x384xf32> to vector<8x128xf32>
    %876 = vector.extract_strided_slice %866 {offsets = [0, 128], sizes = [8, 128], strides = [1, 1]} : vector<8x384xf32> to vector<8x128xf32>
    %877 = arith.addf %875, %876 : vector<8x128xf32>
    %878 = arith.negf %877 : vector<8x128xf32>
    %879 = math.exp %878 : vector<8x128xf32>
    %cst_211 = arith.constant 1.000000e+00 : f32
    %880 = vector.broadcast %cst_211 : f32 to vector<8x128xf32>
    %881 = arith.addf %880, %879 : vector<8x128xf32>
    %882 = arith.divf %880, %881 : vector<8x128xf32>
    %883 = vector.extract_strided_slice %862 {offsets = [0, 256], sizes = [8, 128], strides = [1, 1]} : vector<8x384xf32> to vector<8x128xf32>
    %884 = vector.extract_strided_slice %866 {offsets = [0, 256], sizes = [8, 128], strides = [1, 1]} : vector<8x384xf32> to vector<8x128xf32>
    %885 = arith.mulf %874, %884 : vector<8x128xf32>
    %886 = arith.addf %883, %885 : vector<8x128xf32>
    %887 = math.tanh %886 : vector<8x128xf32>
    %cst_212 = arith.constant 1.000000e+00 : f32
    %888 = vector.broadcast %cst_212 : f32 to vector<8x128xf32>
    %889 = arith.subf %888, %882 : vector<8x128xf32>
    %890 = arith.mulf %889, %887 : vector<8x128xf32>
    %891 = arith.mulf %882, %760 : vector<8x128xf32>
    %892 = arith.addf %890, %891 : vector<8x128xf32>
    %c6_213 = arith.constant 6 : index
    %c0_214 = arith.constant 0 : index
    %c0_215 = arith.constant 0 : index
    %893 = vector.load %arg18[%c6_213, %c0_214, %c0_215] : memref<8x8x768xbf16, #tpu.memory_space<vmem>>, vector<1x8x384xbf16>
    %894 = vector.shape_cast %893 : vector<1x8x384xbf16> to vector<8x384xbf16>
    %895 = arith.extf %894 : vector<8x384xbf16> to vector<8x384xf32>
    %896 = arith.truncf %793 : vector<8x128xf32> to vector<8x128xbf16>
    %cst_216 = arith.constant dense<0.000000e+00> : vector<8x384xf32>
    %897 = tpu.matmul %896, %27, %cst_216 {dimension_numbers = #tpu.dot_dimension_numbers<[1], [0], [0], [1], [0, 0, 1, 1], [], []>} : vector<8x128xbf16>, vector<128x384xbf16>, vector<8x384xf32> -> vector<8x384xf32>
    %898 = vector.broadcast %31 : vector<1x384xf32> to vector<8x384xf32>
    %899 = arith.addf %897, %898 : vector<8x384xf32>
    %900 = vector.extract_strided_slice %895 {offsets = [0, 0], sizes = [8, 128], strides = [1, 1]} : vector<8x384xf32> to vector<8x128xf32>
    %901 = vector.extract_strided_slice %899 {offsets = [0, 0], sizes = [8, 128], strides = [1, 1]} : vector<8x384xf32> to vector<8x128xf32>
    %902 = arith.addf %900, %901 : vector<8x128xf32>
    %903 = arith.negf %902 : vector<8x128xf32>
    %904 = math.exp %903 : vector<8x128xf32>
    %cst_217 = arith.constant 1.000000e+00 : f32
    %905 = vector.broadcast %cst_217 : f32 to vector<8x128xf32>
    %906 = arith.addf %905, %904 : vector<8x128xf32>
    %907 = arith.divf %905, %906 : vector<8x128xf32>
    %908 = vector.extract_strided_slice %895 {offsets = [0, 128], sizes = [8, 128], strides = [1, 1]} : vector<8x384xf32> to vector<8x128xf32>
    %909 = vector.extract_strided_slice %899 {offsets = [0, 128], sizes = [8, 128], strides = [1, 1]} : vector<8x384xf32> to vector<8x128xf32>
    %910 = arith.addf %908, %909 : vector<8x128xf32>
    %911 = arith.negf %910 : vector<8x128xf32>
    %912 = math.exp %911 : vector<8x128xf32>
    %cst_218 = arith.constant 1.000000e+00 : f32
    %913 = vector.broadcast %cst_218 : f32 to vector<8x128xf32>
    %914 = arith.addf %913, %912 : vector<8x128xf32>
    %915 = arith.divf %913, %914 : vector<8x128xf32>
    %916 = vector.extract_strided_slice %895 {offsets = [0, 256], sizes = [8, 128], strides = [1, 1]} : vector<8x384xf32> to vector<8x128xf32>
    %917 = vector.extract_strided_slice %899 {offsets = [0, 256], sizes = [8, 128], strides = [1, 1]} : vector<8x384xf32> to vector<8x128xf32>
    %918 = arith.mulf %907, %917 : vector<8x128xf32>
    %919 = arith.addf %916, %918 : vector<8x128xf32>
    %920 = math.tanh %919 : vector<8x128xf32>
    %cst_219 = arith.constant 1.000000e+00 : f32
    %921 = vector.broadcast %cst_219 : f32 to vector<8x128xf32>
    %922 = arith.subf %921, %915 : vector<8x128xf32>
    %923 = arith.mulf %922, %920 : vector<8x128xf32>
    %924 = arith.mulf %915, %793 : vector<8x128xf32>
    %925 = arith.addf %923, %924 : vector<8x128xf32>
    %c1_220 = arith.constant 1 : index
    %c0_221 = arith.constant 0 : index
    %c384_222 = arith.constant 384 : index
    %926 = vector.load %arg18[%c1_220, %c0_221, %c384_222] : memref<8x8x768xbf16, #tpu.memory_space<vmem>>, vector<1x8x384xbf16>
    %927 = vector.shape_cast %926 : vector<1x8x384xbf16> to vector<8x384xbf16>
    %928 = arith.extf %927 : vector<8x384xbf16> to vector<8x384xf32>
    %929 = arith.truncf %826 : vector<8x128xf32> to vector<8x128xbf16>
    %cst_223 = arith.constant dense<0.000000e+00> : vector<8x384xf32>
    %930 = tpu.matmul %929, %29, %cst_223 {dimension_numbers = #tpu.dot_dimension_numbers<[1], [0], [0], [1], [0, 0, 1, 1], [], []>} : vector<8x128xbf16>, vector<128x384xbf16>, vector<8x384xf32> -> vector<8x384xf32>
    %931 = vector.broadcast %33 : vector<1x384xf32> to vector<8x384xf32>
    %932 = arith.addf %930, %931 : vector<8x384xf32>
    %933 = vector.extract_strided_slice %928 {offsets = [0, 0], sizes = [8, 128], strides = [1, 1]} : vector<8x384xf32> to vector<8x128xf32>
    %934 = vector.extract_strided_slice %932 {offsets = [0, 0], sizes = [8, 128], strides = [1, 1]} : vector<8x384xf32> to vector<8x128xf32>
    %935 = arith.addf %933, %934 : vector<8x128xf32>
    %936 = arith.negf %935 : vector<8x128xf32>
    %937 = math.exp %936 : vector<8x128xf32>
    %cst_224 = arith.constant 1.000000e+00 : f32
    %938 = vector.broadcast %cst_224 : f32 to vector<8x128xf32>
    %939 = arith.addf %938, %937 : vector<8x128xf32>
    %940 = arith.divf %938, %939 : vector<8x128xf32>
    %941 = vector.extract_strided_slice %928 {offsets = [0, 128], sizes = [8, 128], strides = [1, 1]} : vector<8x384xf32> to vector<8x128xf32>
    %942 = vector.extract_strided_slice %932 {offsets = [0, 128], sizes = [8, 128], strides = [1, 1]} : vector<8x384xf32> to vector<8x128xf32>
    %943 = arith.addf %941, %942 : vector<8x128xf32>
    %944 = arith.negf %943 : vector<8x128xf32>
    %945 = math.exp %944 : vector<8x128xf32>
    %cst_225 = arith.constant 1.000000e+00 : f32
    %946 = vector.broadcast %cst_225 : f32 to vector<8x128xf32>
    %947 = arith.addf %946, %945 : vector<8x128xf32>
    %948 = arith.divf %946, %947 : vector<8x128xf32>
    %949 = vector.extract_strided_slice %928 {offsets = [0, 256], sizes = [8, 128], strides = [1, 1]} : vector<8x384xf32> to vector<8x128xf32>
    %950 = vector.extract_strided_slice %932 {offsets = [0, 256], sizes = [8, 128], strides = [1, 1]} : vector<8x384xf32> to vector<8x128xf32>
    %951 = arith.mulf %940, %950 : vector<8x128xf32>
    %952 = arith.addf %949, %951 : vector<8x128xf32>
    %953 = math.tanh %952 : vector<8x128xf32>
    %cst_226 = arith.constant 1.000000e+00 : f32
    %954 = vector.broadcast %cst_226 : f32 to vector<8x128xf32>
    %955 = arith.subf %954, %948 : vector<8x128xf32>
    %956 = arith.mulf %955, %953 : vector<8x128xf32>
    %957 = arith.mulf %948, %826 : vector<8x128xf32>
    %958 = arith.addf %956, %957 : vector<8x128xf32>
    %c7_227 = arith.constant 7 : index
    %c0_228 = arith.constant 0 : index
    %c0_229 = arith.constant 0 : index
    %959 = vector.load %arg17[%c7_227, %c0_228, %c0_229] : memref<12x8x768xbf16, #tpu.memory_space<vmem>>, vector<1x8x384xbf16>
    %960 = vector.shape_cast %959 : vector<1x8x384xbf16> to vector<8x384xbf16>
    %961 = arith.extf %960 : vector<8x384xbf16> to vector<8x384xf32>
    %962 = arith.truncf %859 : vector<8x128xf32> to vector<8x128xbf16>
    %cst_230 = arith.constant dense<0.000000e+00> : vector<8x384xf32>
    %963 = tpu.matmul %962, %19, %cst_230 {dimension_numbers = #tpu.dot_dimension_numbers<[1], [0], [0], [1], [0, 0, 1, 1], [], []>} : vector<8x128xbf16>, vector<128x384xbf16>, vector<8x384xf32> -> vector<8x384xf32>
    %964 = vector.broadcast %23 : vector<1x384xf32> to vector<8x384xf32>
    %965 = arith.addf %963, %964 : vector<8x384xf32>
    %966 = vector.extract_strided_slice %961 {offsets = [0, 0], sizes = [8, 128], strides = [1, 1]} : vector<8x384xf32> to vector<8x128xf32>
    %967 = vector.extract_strided_slice %965 {offsets = [0, 0], sizes = [8, 128], strides = [1, 1]} : vector<8x384xf32> to vector<8x128xf32>
    %968 = arith.addf %966, %967 : vector<8x128xf32>
    %969 = arith.negf %968 : vector<8x128xf32>
    %970 = math.exp %969 : vector<8x128xf32>
    %cst_231 = arith.constant 1.000000e+00 : f32
    %971 = vector.broadcast %cst_231 : f32 to vector<8x128xf32>
    %972 = arith.addf %971, %970 : vector<8x128xf32>
    %973 = arith.divf %971, %972 : vector<8x128xf32>
    %974 = vector.extract_strided_slice %961 {offsets = [0, 128], sizes = [8, 128], strides = [1, 1]} : vector<8x384xf32> to vector<8x128xf32>
    %975 = vector.extract_strided_slice %965 {offsets = [0, 128], sizes = [8, 128], strides = [1, 1]} : vector<8x384xf32> to vector<8x128xf32>
    %976 = arith.addf %974, %975 : vector<8x128xf32>
    %977 = arith.negf %976 : vector<8x128xf32>
    %978 = math.exp %977 : vector<8x128xf32>
    %cst_232 = arith.constant 1.000000e+00 : f32
    %979 = vector.broadcast %cst_232 : f32 to vector<8x128xf32>
    %980 = arith.addf %979, %978 : vector<8x128xf32>
    %981 = arith.divf %979, %980 : vector<8x128xf32>
    %982 = vector.extract_strided_slice %961 {offsets = [0, 256], sizes = [8, 128], strides = [1, 1]} : vector<8x384xf32> to vector<8x128xf32>
    %983 = vector.extract_strided_slice %965 {offsets = [0, 256], sizes = [8, 128], strides = [1, 1]} : vector<8x384xf32> to vector<8x128xf32>
    %984 = arith.mulf %973, %983 : vector<8x128xf32>
    %985 = arith.addf %982, %984 : vector<8x128xf32>
    %986 = math.tanh %985 : vector<8x128xf32>
    %cst_233 = arith.constant 1.000000e+00 : f32
    %987 = vector.broadcast %cst_233 : f32 to vector<8x128xf32>
    %988 = arith.subf %987, %981 : vector<8x128xf32>
    %989 = arith.mulf %988, %986 : vector<8x128xf32>
    %990 = arith.mulf %981, %859 : vector<8x128xf32>
    %991 = arith.addf %989, %990 : vector<8x128xf32>
    %c4_234 = arith.constant 4 : index
    %c0_235 = arith.constant 0 : index
    %c384_236 = arith.constant 384 : index
    %992 = vector.load %arg17[%c4_234, %c0_235, %c384_236] : memref<12x8x768xbf16, #tpu.memory_space<vmem>>, vector<1x8x384xbf16>
    %993 = vector.shape_cast %992 : vector<1x8x384xbf16> to vector<8x384xbf16>
    %994 = arith.extf %993 : vector<8x384xbf16> to vector<8x384xf32>
    %995 = arith.truncf %892 : vector<8x128xf32> to vector<8x128xbf16>
    %cst_237 = arith.constant dense<0.000000e+00> : vector<8x384xf32>
    %996 = tpu.matmul %995, %21, %cst_237 {dimension_numbers = #tpu.dot_dimension_numbers<[1], [0], [0], [1], [0, 0, 1, 1], [], []>} : vector<8x128xbf16>, vector<128x384xbf16>, vector<8x384xf32> -> vector<8x384xf32>
    %997 = vector.broadcast %25 : vector<1x384xf32> to vector<8x384xf32>
    %998 = arith.addf %996, %997 : vector<8x384xf32>
    %999 = vector.extract_strided_slice %994 {offsets = [0, 0], sizes = [8, 128], strides = [1, 1]} : vector<8x384xf32> to vector<8x128xf32>
    %1000 = vector.extract_strided_slice %998 {offsets = [0, 0], sizes = [8, 128], strides = [1, 1]} : vector<8x384xf32> to vector<8x128xf32>
    %1001 = arith.addf %999, %1000 : vector<8x128xf32>
    %1002 = arith.negf %1001 : vector<8x128xf32>
    %1003 = math.exp %1002 : vector<8x128xf32>
    %cst_238 = arith.constant 1.000000e+00 : f32
    %1004 = vector.broadcast %cst_238 : f32 to vector<8x128xf32>
    %1005 = arith.addf %1004, %1003 : vector<8x128xf32>
    %1006 = arith.divf %1004, %1005 : vector<8x128xf32>
    %1007 = vector.extract_strided_slice %994 {offsets = [0, 128], sizes = [8, 128], strides = [1, 1]} : vector<8x384xf32> to vector<8x128xf32>
    %1008 = vector.extract_strided_slice %998 {offsets = [0, 128], sizes = [8, 128], strides = [1, 1]} : vector<8x384xf32> to vector<8x128xf32>
    %1009 = arith.addf %1007, %1008 : vector<8x128xf32>
    %1010 = arith.negf %1009 : vector<8x128xf32>
    %1011 = math.exp %1010 : vector<8x128xf32>
    %cst_239 = arith.constant 1.000000e+00 : f32
    %1012 = vector.broadcast %cst_239 : f32 to vector<8x128xf32>
    %1013 = arith.addf %1012, %1011 : vector<8x128xf32>
    %1014 = arith.divf %1012, %1013 : vector<8x128xf32>
    %1015 = vector.extract_strided_slice %994 {offsets = [0, 256], sizes = [8, 128], strides = [1, 1]} : vector<8x384xf32> to vector<8x128xf32>
    %1016 = vector.extract_strided_slice %998 {offsets = [0, 256], sizes = [8, 128], strides = [1, 1]} : vector<8x384xf32> to vector<8x128xf32>
    %1017 = arith.mulf %1006, %1016 : vector<8x128xf32>
    %1018 = arith.addf %1015, %1017 : vector<8x128xf32>
    %1019 = math.tanh %1018 : vector<8x128xf32>
    %cst_240 = arith.constant 1.000000e+00 : f32
    %1020 = vector.broadcast %cst_240 : f32 to vector<8x128xf32>
    %1021 = arith.subf %1020, %1014 : vector<8x128xf32>
    %1022 = arith.mulf %1021, %1019 : vector<8x128xf32>
    %1023 = arith.mulf %1014, %892 : vector<8x128xf32>
    %1024 = arith.addf %1022, %1023 : vector<8x128xf32>
    %c7_241 = arith.constant 7 : index
    %c0_242 = arith.constant 0 : index
    %c0_243 = arith.constant 0 : index
    %1025 = vector.load %arg18[%c7_241, %c0_242, %c0_243] : memref<8x8x768xbf16, #tpu.memory_space<vmem>>, vector<1x8x384xbf16>
    %1026 = vector.shape_cast %1025 : vector<1x8x384xbf16> to vector<8x384xbf16>
    %1027 = arith.extf %1026 : vector<8x384xbf16> to vector<8x384xf32>
    %1028 = arith.truncf %925 : vector<8x128xf32> to vector<8x128xbf16>
    %cst_244 = arith.constant dense<0.000000e+00> : vector<8x384xf32>
    %1029 = tpu.matmul %1028, %27, %cst_244 {dimension_numbers = #tpu.dot_dimension_numbers<[1], [0], [0], [1], [0, 0, 1, 1], [], []>} : vector<8x128xbf16>, vector<128x384xbf16>, vector<8x384xf32> -> vector<8x384xf32>
    %1030 = vector.broadcast %31 : vector<1x384xf32> to vector<8x384xf32>
    %1031 = arith.addf %1029, %1030 : vector<8x384xf32>
    %1032 = vector.extract_strided_slice %1027 {offsets = [0, 0], sizes = [8, 128], strides = [1, 1]} : vector<8x384xf32> to vector<8x128xf32>
    %1033 = vector.extract_strided_slice %1031 {offsets = [0, 0], sizes = [8, 128], strides = [1, 1]} : vector<8x384xf32> to vector<8x128xf32>
    %1034 = arith.addf %1032, %1033 : vector<8x128xf32>
    %1035 = arith.negf %1034 : vector<8x128xf32>
    %1036 = math.exp %1035 : vector<8x128xf32>
    %cst_245 = arith.constant 1.000000e+00 : f32
    %1037 = vector.broadcast %cst_245 : f32 to vector<8x128xf32>
    %1038 = arith.addf %1037, %1036 : vector<8x128xf32>
    %1039 = arith.divf %1037, %1038 : vector<8x128xf32>
    %1040 = vector.extract_strided_slice %1027 {offsets = [0, 128], sizes = [8, 128], strides = [1, 1]} : vector<8x384xf32> to vector<8x128xf32>
    %1041 = vector.extract_strided_slice %1031 {offsets = [0, 128], sizes = [8, 128], strides = [1, 1]} : vector<8x384xf32> to vector<8x128xf32>
    %1042 = arith.addf %1040, %1041 : vector<8x128xf32>
    %1043 = arith.negf %1042 : vector<8x128xf32>
    %1044 = math.exp %1043 : vector<8x128xf32>
    %cst_246 = arith.constant 1.000000e+00 : f32
    %1045 = vector.broadcast %cst_246 : f32 to vector<8x128xf32>
    %1046 = arith.addf %1045, %1044 : vector<8x128xf32>
    %1047 = arith.divf %1045, %1046 : vector<8x128xf32>
    %1048 = vector.extract_strided_slice %1027 {offsets = [0, 256], sizes = [8, 128], strides = [1, 1]} : vector<8x384xf32> to vector<8x128xf32>
    %1049 = vector.extract_strided_slice %1031 {offsets = [0, 256], sizes = [8, 128], strides = [1, 1]} : vector<8x384xf32> to vector<8x128xf32>
    %1050 = arith.mulf %1039, %1049 : vector<8x128xf32>
    %1051 = arith.addf %1048, %1050 : vector<8x128xf32>
    %1052 = math.tanh %1051 : vector<8x128xf32>
    %cst_247 = arith.constant 1.000000e+00 : f32
    %1053 = vector.broadcast %cst_247 : f32 to vector<8x128xf32>
    %1054 = arith.subf %1053, %1047 : vector<8x128xf32>
    %1055 = arith.mulf %1054, %1052 : vector<8x128xf32>
    %1056 = arith.mulf %1047, %925 : vector<8x128xf32>
    %1057 = arith.addf %1055, %1056 : vector<8x128xf32>
    %c0_248 = arith.constant 0 : index
    %c0_249 = arith.constant 0 : index
    %c384_250 = arith.constant 384 : index
    %1058 = vector.load %arg18[%c0_248, %c0_249, %c384_250] : memref<8x8x768xbf16, #tpu.memory_space<vmem>>, vector<1x8x384xbf16>
    %1059 = vector.shape_cast %1058 : vector<1x8x384xbf16> to vector<8x384xbf16>
    %1060 = arith.extf %1059 : vector<8x384xbf16> to vector<8x384xf32>
    %1061 = arith.truncf %958 : vector<8x128xf32> to vector<8x128xbf16>
    %cst_251 = arith.constant dense<0.000000e+00> : vector<8x384xf32>
    %1062 = tpu.matmul %1061, %29, %cst_251 {dimension_numbers = #tpu.dot_dimension_numbers<[1], [0], [0], [1], [0, 0, 1, 1], [], []>} : vector<8x128xbf16>, vector<128x384xbf16>, vector<8x384xf32> -> vector<8x384xf32>
    %1063 = vector.broadcast %33 : vector<1x384xf32> to vector<8x384xf32>
    %1064 = arith.addf %1062, %1063 : vector<8x384xf32>
    %1065 = vector.extract_strided_slice %1060 {offsets = [0, 0], sizes = [8, 128], strides = [1, 1]} : vector<8x384xf32> to vector<8x128xf32>
    %1066 = vector.extract_strided_slice %1064 {offsets = [0, 0], sizes = [8, 128], strides = [1, 1]} : vector<8x384xf32> to vector<8x128xf32>
    %1067 = arith.addf %1065, %1066 : vector<8x128xf32>
    %1068 = arith.negf %1067 : vector<8x128xf32>
    %1069 = math.exp %1068 : vector<8x128xf32>
    %cst_252 = arith.constant 1.000000e+00 : f32
    %1070 = vector.broadcast %cst_252 : f32 to vector<8x128xf32>
    %1071 = arith.addf %1070, %1069 : vector<8x128xf32>
    %1072 = arith.divf %1070, %1071 : vector<8x128xf32>
    %1073 = vector.extract_strided_slice %1060 {offsets = [0, 128], sizes = [8, 128], strides = [1, 1]} : vector<8x384xf32> to vector<8x128xf32>
    %1074 = vector.extract_strided_slice %1064 {offsets = [0, 128], sizes = [8, 128], strides = [1, 1]} : vector<8x384xf32> to vector<8x128xf32>
    %1075 = arith.addf %1073, %1074 : vector<8x128xf32>
    %1076 = arith.negf %1075 : vector<8x128xf32>
    %1077 = math.exp %1076 : vector<8x128xf32>
    %cst_253 = arith.constant 1.000000e+00 : f32
    %1078 = vector.broadcast %cst_253 : f32 to vector<8x128xf32>
    %1079 = arith.addf %1078, %1077 : vector<8x128xf32>
    %1080 = arith.divf %1078, %1079 : vector<8x128xf32>
    %1081 = vector.extract_strided_slice %1060 {offsets = [0, 256], sizes = [8, 128], strides = [1, 1]} : vector<8x384xf32> to vector<8x128xf32>
    %1082 = vector.extract_strided_slice %1064 {offsets = [0, 256], sizes = [8, 128], strides = [1, 1]} : vector<8x384xf32> to vector<8x128xf32>
    %1083 = arith.mulf %1072, %1082 : vector<8x128xf32>
    %1084 = arith.addf %1081, %1083 : vector<8x128xf32>
    %1085 = math.tanh %1084 : vector<8x128xf32>
    %cst_254 = arith.constant 1.000000e+00 : f32
    %1086 = vector.broadcast %cst_254 : f32 to vector<8x128xf32>
    %1087 = arith.subf %1086, %1080 : vector<8x128xf32>
    %1088 = arith.mulf %1087, %1085 : vector<8x128xf32>
    %1089 = arith.mulf %1080, %958 : vector<8x128xf32>
    %1090 = arith.addf %1088, %1089 : vector<8x128xf32>
    %c8_255 = arith.constant 8 : index
    %c0_256 = arith.constant 0 : index
    %c0_257 = arith.constant 0 : index
    %1091 = vector.load %arg17[%c8_255, %c0_256, %c0_257] : memref<12x8x768xbf16, #tpu.memory_space<vmem>>, vector<1x8x384xbf16>
    %1092 = vector.shape_cast %1091 : vector<1x8x384xbf16> to vector<8x384xbf16>
    %1093 = arith.extf %1092 : vector<8x384xbf16> to vector<8x384xf32>
    %1094 = arith.truncf %991 : vector<8x128xf32> to vector<8x128xbf16>
    %cst_258 = arith.constant dense<0.000000e+00> : vector<8x384xf32>
    %1095 = tpu.matmul %1094, %19, %cst_258 {dimension_numbers = #tpu.dot_dimension_numbers<[1], [0], [0], [1], [0, 0, 1, 1], [], []>} : vector<8x128xbf16>, vector<128x384xbf16>, vector<8x384xf32> -> vector<8x384xf32>
    %1096 = vector.broadcast %23 : vector<1x384xf32> to vector<8x384xf32>
    %1097 = arith.addf %1095, %1096 : vector<8x384xf32>
    %1098 = vector.extract_strided_slice %1093 {offsets = [0, 0], sizes = [8, 128], strides = [1, 1]} : vector<8x384xf32> to vector<8x128xf32>
    %1099 = vector.extract_strided_slice %1097 {offsets = [0, 0], sizes = [8, 128], strides = [1, 1]} : vector<8x384xf32> to vector<8x128xf32>
    %1100 = arith.addf %1098, %1099 : vector<8x128xf32>
    %1101 = arith.negf %1100 : vector<8x128xf32>
    %1102 = math.exp %1101 : vector<8x128xf32>
    %cst_259 = arith.constant 1.000000e+00 : f32
    %1103 = vector.broadcast %cst_259 : f32 to vector<8x128xf32>
    %1104 = arith.addf %1103, %1102 : vector<8x128xf32>
    %1105 = arith.divf %1103, %1104 : vector<8x128xf32>
    %1106 = vector.extract_strided_slice %1093 {offsets = [0, 128], sizes = [8, 128], strides = [1, 1]} : vector<8x384xf32> to vector<8x128xf32>
    %1107 = vector.extract_strided_slice %1097 {offsets = [0, 128], sizes = [8, 128], strides = [1, 1]} : vector<8x384xf32> to vector<8x128xf32>
    %1108 = arith.addf %1106, %1107 : vector<8x128xf32>
    %1109 = arith.negf %1108 : vector<8x128xf32>
    %1110 = math.exp %1109 : vector<8x128xf32>
    %cst_260 = arith.constant 1.000000e+00 : f32
    %1111 = vector.broadcast %cst_260 : f32 to vector<8x128xf32>
    %1112 = arith.addf %1111, %1110 : vector<8x128xf32>
    %1113 = arith.divf %1111, %1112 : vector<8x128xf32>
    %1114 = vector.extract_strided_slice %1093 {offsets = [0, 256], sizes = [8, 128], strides = [1, 1]} : vector<8x384xf32> to vector<8x128xf32>
    %1115 = vector.extract_strided_slice %1097 {offsets = [0, 256], sizes = [8, 128], strides = [1, 1]} : vector<8x384xf32> to vector<8x128xf32>
    %1116 = arith.mulf %1105, %1115 : vector<8x128xf32>
    %1117 = arith.addf %1114, %1116 : vector<8x128xf32>
    %1118 = math.tanh %1117 : vector<8x128xf32>
    %cst_261 = arith.constant 1.000000e+00 : f32
    %1119 = vector.broadcast %cst_261 : f32 to vector<8x128xf32>
    %1120 = arith.subf %1119, %1113 : vector<8x128xf32>
    %1121 = arith.mulf %1120, %1118 : vector<8x128xf32>
    %1122 = arith.mulf %1113, %991 : vector<8x128xf32>
    %1123 = arith.addf %1121, %1122 : vector<8x128xf32>
    %c3_262 = arith.constant 3 : index
    %c0_263 = arith.constant 0 : index
    %c384_264 = arith.constant 384 : index
    %1124 = vector.load %arg17[%c3_262, %c0_263, %c384_264] : memref<12x8x768xbf16, #tpu.memory_space<vmem>>, vector<1x8x384xbf16>
    %1125 = vector.shape_cast %1124 : vector<1x8x384xbf16> to vector<8x384xbf16>
    %1126 = arith.extf %1125 : vector<8x384xbf16> to vector<8x384xf32>
    %1127 = arith.truncf %1024 : vector<8x128xf32> to vector<8x128xbf16>
    %cst_265 = arith.constant dense<0.000000e+00> : vector<8x384xf32>
    %1128 = tpu.matmul %1127, %21, %cst_265 {dimension_numbers = #tpu.dot_dimension_numbers<[1], [0], [0], [1], [0, 0, 1, 1], [], []>} : vector<8x128xbf16>, vector<128x384xbf16>, vector<8x384xf32> -> vector<8x384xf32>
    %1129 = vector.broadcast %25 : vector<1x384xf32> to vector<8x384xf32>
    %1130 = arith.addf %1128, %1129 : vector<8x384xf32>
    %1131 = vector.extract_strided_slice %1126 {offsets = [0, 0], sizes = [8, 128], strides = [1, 1]} : vector<8x384xf32> to vector<8x128xf32>
    %1132 = vector.extract_strided_slice %1130 {offsets = [0, 0], sizes = [8, 128], strides = [1, 1]} : vector<8x384xf32> to vector<8x128xf32>
    %1133 = arith.addf %1131, %1132 : vector<8x128xf32>
    %1134 = arith.negf %1133 : vector<8x128xf32>
    %1135 = math.exp %1134 : vector<8x128xf32>
    %cst_266 = arith.constant 1.000000e+00 : f32
    %1136 = vector.broadcast %cst_266 : f32 to vector<8x128xf32>
    %1137 = arith.addf %1136, %1135 : vector<8x128xf32>
    %1138 = arith.divf %1136, %1137 : vector<8x128xf32>
    %1139 = vector.extract_strided_slice %1126 {offsets = [0, 128], sizes = [8, 128], strides = [1, 1]} : vector<8x384xf32> to vector<8x128xf32>
    %1140 = vector.extract_strided_slice %1130 {offsets = [0, 128], sizes = [8, 128], strides = [1, 1]} : vector<8x384xf32> to vector<8x128xf32>
    %1141 = arith.addf %1139, %1140 : vector<8x128xf32>
    %1142 = arith.negf %1141 : vector<8x128xf32>
    %1143 = math.exp %1142 : vector<8x128xf32>
    %cst_267 = arith.constant 1.000000e+00 : f32
    %1144 = vector.broadcast %cst_267 : f32 to vector<8x128xf32>
    %1145 = arith.addf %1144, %1143 : vector<8x128xf32>
    %1146 = arith.divf %1144, %1145 : vector<8x128xf32>
    %1147 = vector.extract_strided_slice %1126 {offsets = [0, 256], sizes = [8, 128], strides = [1, 1]} : vector<8x384xf32> to vector<8x128xf32>
    %1148 = vector.extract_strided_slice %1130 {offsets = [0, 256], sizes = [8, 128], strides = [1, 1]} : vector<8x384xf32> to vector<8x128xf32>
    %1149 = arith.mulf %1138, %1148 : vector<8x128xf32>
    %1150 = arith.addf %1147, %1149 : vector<8x128xf32>
    %1151 = math.tanh %1150 : vector<8x128xf32>
    %cst_268 = arith.constant 1.000000e+00 : f32
    %1152 = vector.broadcast %cst_268 : f32 to vector<8x128xf32>
    %1153 = arith.subf %1152, %1146 : vector<8x128xf32>
    %1154 = arith.mulf %1153, %1151 : vector<8x128xf32>
    %1155 = arith.mulf %1146, %1024 : vector<8x128xf32>
    %1156 = arith.addf %1154, %1155 : vector<8x128xf32>
    %c9_269 = arith.constant 9 : index
    %c0_270 = arith.constant 0 : index
    %c0_271 = arith.constant 0 : index
    %1157 = vector.load %arg17[%c9_269, %c0_270, %c0_271] : memref<12x8x768xbf16, #tpu.memory_space<vmem>>, vector<1x8x384xbf16>
    %1158 = vector.shape_cast %1157 : vector<1x8x384xbf16> to vector<8x384xbf16>
    %1159 = arith.extf %1158 : vector<8x384xbf16> to vector<8x384xf32>
    %1160 = arith.truncf %1123 : vector<8x128xf32> to vector<8x128xbf16>
    %cst_272 = arith.constant dense<0.000000e+00> : vector<8x384xf32>
    %1161 = tpu.matmul %1160, %19, %cst_272 {dimension_numbers = #tpu.dot_dimension_numbers<[1], [0], [0], [1], [0, 0, 1, 1], [], []>} : vector<8x128xbf16>, vector<128x384xbf16>, vector<8x384xf32> -> vector<8x384xf32>
    %1162 = vector.broadcast %23 : vector<1x384xf32> to vector<8x384xf32>
    %1163 = arith.addf %1161, %1162 : vector<8x384xf32>
    %1164 = vector.extract_strided_slice %1159 {offsets = [0, 0], sizes = [8, 128], strides = [1, 1]} : vector<8x384xf32> to vector<8x128xf32>
    %1165 = vector.extract_strided_slice %1163 {offsets = [0, 0], sizes = [8, 128], strides = [1, 1]} : vector<8x384xf32> to vector<8x128xf32>
    %1166 = arith.addf %1164, %1165 : vector<8x128xf32>
    %1167 = arith.negf %1166 : vector<8x128xf32>
    %1168 = math.exp %1167 : vector<8x128xf32>
    %cst_273 = arith.constant 1.000000e+00 : f32
    %1169 = vector.broadcast %cst_273 : f32 to vector<8x128xf32>
    %1170 = arith.addf %1169, %1168 : vector<8x128xf32>
    %1171 = arith.divf %1169, %1170 : vector<8x128xf32>
    %1172 = vector.extract_strided_slice %1159 {offsets = [0, 128], sizes = [8, 128], strides = [1, 1]} : vector<8x384xf32> to vector<8x128xf32>
    %1173 = vector.extract_strided_slice %1163 {offsets = [0, 128], sizes = [8, 128], strides = [1, 1]} : vector<8x384xf32> to vector<8x128xf32>
    %1174 = arith.addf %1172, %1173 : vector<8x128xf32>
    %1175 = arith.negf %1174 : vector<8x128xf32>
    %1176 = math.exp %1175 : vector<8x128xf32>
    %cst_274 = arith.constant 1.000000e+00 : f32
    %1177 = vector.broadcast %cst_274 : f32 to vector<8x128xf32>
    %1178 = arith.addf %1177, %1176 : vector<8x128xf32>
    %1179 = arith.divf %1177, %1178 : vector<8x128xf32>
    %1180 = vector.extract_strided_slice %1159 {offsets = [0, 256], sizes = [8, 128], strides = [1, 1]} : vector<8x384xf32> to vector<8x128xf32>
    %1181 = vector.extract_strided_slice %1163 {offsets = [0, 256], sizes = [8, 128], strides = [1, 1]} : vector<8x384xf32> to vector<8x128xf32>
    %1182 = arith.mulf %1171, %1181 : vector<8x128xf32>
    %1183 = arith.addf %1180, %1182 : vector<8x128xf32>
    %1184 = math.tanh %1183 : vector<8x128xf32>
    %cst_275 = arith.constant 1.000000e+00 : f32
    %1185 = vector.broadcast %cst_275 : f32 to vector<8x128xf32>
    %1186 = arith.subf %1185, %1179 : vector<8x128xf32>
    %1187 = arith.mulf %1186, %1184 : vector<8x128xf32>
    %1188 = arith.mulf %1179, %1123 : vector<8x128xf32>
    %1189 = arith.addf %1187, %1188 : vector<8x128xf32>
    %c2_276 = arith.constant 2 : index
    %c0_277 = arith.constant 0 : index
    %c384_278 = arith.constant 384 : index
    %1190 = vector.load %arg17[%c2_276, %c0_277, %c384_278] : memref<12x8x768xbf16, #tpu.memory_space<vmem>>, vector<1x8x384xbf16>
    %1191 = vector.shape_cast %1190 : vector<1x8x384xbf16> to vector<8x384xbf16>
    %1192 = arith.extf %1191 : vector<8x384xbf16> to vector<8x384xf32>
    %1193 = arith.truncf %1156 : vector<8x128xf32> to vector<8x128xbf16>
    %cst_279 = arith.constant dense<0.000000e+00> : vector<8x384xf32>
    %1194 = tpu.matmul %1193, %21, %cst_279 {dimension_numbers = #tpu.dot_dimension_numbers<[1], [0], [0], [1], [0, 0, 1, 1], [], []>} : vector<8x128xbf16>, vector<128x384xbf16>, vector<8x384xf32> -> vector<8x384xf32>
    %1195 = vector.broadcast %25 : vector<1x384xf32> to vector<8x384xf32>
    %1196 = arith.addf %1194, %1195 : vector<8x384xf32>
    %1197 = vector.extract_strided_slice %1192 {offsets = [0, 0], sizes = [8, 128], strides = [1, 1]} : vector<8x384xf32> to vector<8x128xf32>
    %1198 = vector.extract_strided_slice %1196 {offsets = [0, 0], sizes = [8, 128], strides = [1, 1]} : vector<8x384xf32> to vector<8x128xf32>
    %1199 = arith.addf %1197, %1198 : vector<8x128xf32>
    %1200 = arith.negf %1199 : vector<8x128xf32>
    %1201 = math.exp %1200 : vector<8x128xf32>
    %cst_280 = arith.constant 1.000000e+00 : f32
    %1202 = vector.broadcast %cst_280 : f32 to vector<8x128xf32>
    %1203 = arith.addf %1202, %1201 : vector<8x128xf32>
    %1204 = arith.divf %1202, %1203 : vector<8x128xf32>
    %1205 = vector.extract_strided_slice %1192 {offsets = [0, 128], sizes = [8, 128], strides = [1, 1]} : vector<8x384xf32> to vector<8x128xf32>
    %1206 = vector.extract_strided_slice %1196 {offsets = [0, 128], sizes = [8, 128], strides = [1, 1]} : vector<8x384xf32> to vector<8x128xf32>
    %1207 = arith.addf %1205, %1206 : vector<8x128xf32>
    %1208 = arith.negf %1207 : vector<8x128xf32>
    %1209 = math.exp %1208 : vector<8x128xf32>
    %cst_281 = arith.constant 1.000000e+00 : f32
    %1210 = vector.broadcast %cst_281 : f32 to vector<8x128xf32>
    %1211 = arith.addf %1210, %1209 : vector<8x128xf32>
    %1212 = arith.divf %1210, %1211 : vector<8x128xf32>
    %1213 = vector.extract_strided_slice %1192 {offsets = [0, 256], sizes = [8, 128], strides = [1, 1]} : vector<8x384xf32> to vector<8x128xf32>
    %1214 = vector.extract_strided_slice %1196 {offsets = [0, 256], sizes = [8, 128], strides = [1, 1]} : vector<8x384xf32> to vector<8x128xf32>
    %1215 = arith.mulf %1204, %1214 : vector<8x128xf32>
    %1216 = arith.addf %1213, %1215 : vector<8x128xf32>
    %1217 = math.tanh %1216 : vector<8x128xf32>
    %cst_282 = arith.constant 1.000000e+00 : f32
    %1218 = vector.broadcast %cst_282 : f32 to vector<8x128xf32>
    %1219 = arith.subf %1218, %1212 : vector<8x128xf32>
    %1220 = arith.mulf %1219, %1217 : vector<8x128xf32>
    %1221 = arith.mulf %1212, %1156 : vector<8x128xf32>
    %1222 = arith.addf %1220, %1221 : vector<8x128xf32>
    %c10_283 = arith.constant 10 : index
    %c0_284 = arith.constant 0 : index
    %c0_285 = arith.constant 0 : index
    %1223 = vector.load %arg17[%c10_283, %c0_284, %c0_285] : memref<12x8x768xbf16, #tpu.memory_space<vmem>>, vector<1x8x384xbf16>
    %1224 = vector.shape_cast %1223 : vector<1x8x384xbf16> to vector<8x384xbf16>
    %1225 = arith.extf %1224 : vector<8x384xbf16> to vector<8x384xf32>
    %1226 = arith.truncf %1189 : vector<8x128xf32> to vector<8x128xbf16>
    %cst_286 = arith.constant dense<0.000000e+00> : vector<8x384xf32>
    %1227 = tpu.matmul %1226, %19, %cst_286 {dimension_numbers = #tpu.dot_dimension_numbers<[1], [0], [0], [1], [0, 0, 1, 1], [], []>} : vector<8x128xbf16>, vector<128x384xbf16>, vector<8x384xf32> -> vector<8x384xf32>
    %1228 = vector.broadcast %23 : vector<1x384xf32> to vector<8x384xf32>
    %1229 = arith.addf %1227, %1228 : vector<8x384xf32>
    %1230 = vector.extract_strided_slice %1225 {offsets = [0, 0], sizes = [8, 128], strides = [1, 1]} : vector<8x384xf32> to vector<8x128xf32>
    %1231 = vector.extract_strided_slice %1229 {offsets = [0, 0], sizes = [8, 128], strides = [1, 1]} : vector<8x384xf32> to vector<8x128xf32>
    %1232 = arith.addf %1230, %1231 : vector<8x128xf32>
    %1233 = arith.negf %1232 : vector<8x128xf32>
    %1234 = math.exp %1233 : vector<8x128xf32>
    %cst_287 = arith.constant 1.000000e+00 : f32
    %1235 = vector.broadcast %cst_287 : f32 to vector<8x128xf32>
    %1236 = arith.addf %1235, %1234 : vector<8x128xf32>
    %1237 = arith.divf %1235, %1236 : vector<8x128xf32>
    %1238 = vector.extract_strided_slice %1225 {offsets = [0, 128], sizes = [8, 128], strides = [1, 1]} : vector<8x384xf32> to vector<8x128xf32>
    %1239 = vector.extract_strided_slice %1229 {offsets = [0, 128], sizes = [8, 128], strides = [1, 1]} : vector<8x384xf32> to vector<8x128xf32>
    %1240 = arith.addf %1238, %1239 : vector<8x128xf32>
    %1241 = arith.negf %1240 : vector<8x128xf32>
    %1242 = math.exp %1241 : vector<8x128xf32>
    %cst_288 = arith.constant 1.000000e+00 : f32
    %1243 = vector.broadcast %cst_288 : f32 to vector<8x128xf32>
    %1244 = arith.addf %1243, %1242 : vector<8x128xf32>
    %1245 = arith.divf %1243, %1244 : vector<8x128xf32>
    %1246 = vector.extract_strided_slice %1225 {offsets = [0, 256], sizes = [8, 128], strides = [1, 1]} : vector<8x384xf32> to vector<8x128xf32>
    %1247 = vector.extract_strided_slice %1229 {offsets = [0, 256], sizes = [8, 128], strides = [1, 1]} : vector<8x384xf32> to vector<8x128xf32>
    %1248 = arith.mulf %1237, %1247 : vector<8x128xf32>
    %1249 = arith.addf %1246, %1248 : vector<8x128xf32>
    %1250 = math.tanh %1249 : vector<8x128xf32>
    %cst_289 = arith.constant 1.000000e+00 : f32
    %1251 = vector.broadcast %cst_289 : f32 to vector<8x128xf32>
    %1252 = arith.subf %1251, %1245 : vector<8x128xf32>
    %1253 = arith.mulf %1252, %1250 : vector<8x128xf32>
    %1254 = arith.mulf %1245, %1189 : vector<8x128xf32>
    %1255 = arith.addf %1253, %1254 : vector<8x128xf32>
    %c1_290 = arith.constant 1 : index
    %c0_291 = arith.constant 0 : index
    %c384_292 = arith.constant 384 : index
    %1256 = vector.load %arg17[%c1_290, %c0_291, %c384_292] : memref<12x8x768xbf16, #tpu.memory_space<vmem>>, vector<1x8x384xbf16>
    %1257 = vector.shape_cast %1256 : vector<1x8x384xbf16> to vector<8x384xbf16>
    %1258 = arith.extf %1257 : vector<8x384xbf16> to vector<8x384xf32>
    %1259 = arith.truncf %1222 : vector<8x128xf32> to vector<8x128xbf16>
    %cst_293 = arith.constant dense<0.000000e+00> : vector<8x384xf32>
    %1260 = tpu.matmul %1259, %21, %cst_293 {dimension_numbers = #tpu.dot_dimension_numbers<[1], [0], [0], [1], [0, 0, 1, 1], [], []>} : vector<8x128xbf16>, vector<128x384xbf16>, vector<8x384xf32> -> vector<8x384xf32>
    %1261 = vector.broadcast %25 : vector<1x384xf32> to vector<8x384xf32>
    %1262 = arith.addf %1260, %1261 : vector<8x384xf32>
    %1263 = vector.extract_strided_slice %1258 {offsets = [0, 0], sizes = [8, 128], strides = [1, 1]} : vector<8x384xf32> to vector<8x128xf32>
    %1264 = vector.extract_strided_slice %1262 {offsets = [0, 0], sizes = [8, 128], strides = [1, 1]} : vector<8x384xf32> to vector<8x128xf32>
    %1265 = arith.addf %1263, %1264 : vector<8x128xf32>
    %1266 = arith.negf %1265 : vector<8x128xf32>
    %1267 = math.exp %1266 : vector<8x128xf32>
    %cst_294 = arith.constant 1.000000e+00 : f32
    %1268 = vector.broadcast %cst_294 : f32 to vector<8x128xf32>
    %1269 = arith.addf %1268, %1267 : vector<8x128xf32>
    %1270 = arith.divf %1268, %1269 : vector<8x128xf32>
    %1271 = vector.extract_strided_slice %1258 {offsets = [0, 128], sizes = [8, 128], strides = [1, 1]} : vector<8x384xf32> to vector<8x128xf32>
    %1272 = vector.extract_strided_slice %1262 {offsets = [0, 128], sizes = [8, 128], strides = [1, 1]} : vector<8x384xf32> to vector<8x128xf32>
    %1273 = arith.addf %1271, %1272 : vector<8x128xf32>
    %1274 = arith.negf %1273 : vector<8x128xf32>
    %1275 = math.exp %1274 : vector<8x128xf32>
    %cst_295 = arith.constant 1.000000e+00 : f32
    %1276 = vector.broadcast %cst_295 : f32 to vector<8x128xf32>
    %1277 = arith.addf %1276, %1275 : vector<8x128xf32>
    %1278 = arith.divf %1276, %1277 : vector<8x128xf32>
    %1279 = vector.extract_strided_slice %1258 {offsets = [0, 256], sizes = [8, 128], strides = [1, 1]} : vector<8x384xf32> to vector<8x128xf32>
    %1280 = vector.extract_strided_slice %1262 {offsets = [0, 256], sizes = [8, 128], strides = [1, 1]} : vector<8x384xf32> to vector<8x128xf32>
    %1281 = arith.mulf %1270, %1280 : vector<8x128xf32>
    %1282 = arith.addf %1279, %1281 : vector<8x128xf32>
    %1283 = math.tanh %1282 : vector<8x128xf32>
    %cst_296 = arith.constant 1.000000e+00 : f32
    %1284 = vector.broadcast %cst_296 : f32 to vector<8x128xf32>
    %1285 = arith.subf %1284, %1278 : vector<8x128xf32>
    %1286 = arith.mulf %1285, %1283 : vector<8x128xf32>
    %1287 = arith.mulf %1278, %1222 : vector<8x128xf32>
    %1288 = arith.addf %1286, %1287 : vector<8x128xf32>
    %c11_297 = arith.constant 11 : index
    %c0_298 = arith.constant 0 : index
    %c0_299 = arith.constant 0 : index
    %1289 = vector.load %arg17[%c11_297, %c0_298, %c0_299] : memref<12x8x768xbf16, #tpu.memory_space<vmem>>, vector<1x8x384xbf16>
    %1290 = vector.shape_cast %1289 : vector<1x8x384xbf16> to vector<8x384xbf16>
    %1291 = arith.extf %1290 : vector<8x384xbf16> to vector<8x384xf32>
    %1292 = arith.truncf %1255 : vector<8x128xf32> to vector<8x128xbf16>
    %cst_300 = arith.constant dense<0.000000e+00> : vector<8x384xf32>
    %1293 = tpu.matmul %1292, %19, %cst_300 {dimension_numbers = #tpu.dot_dimension_numbers<[1], [0], [0], [1], [0, 0, 1, 1], [], []>} : vector<8x128xbf16>, vector<128x384xbf16>, vector<8x384xf32> -> vector<8x384xf32>
    %1294 = vector.broadcast %23 : vector<1x384xf32> to vector<8x384xf32>
    %1295 = arith.addf %1293, %1294 : vector<8x384xf32>
    %1296 = vector.extract_strided_slice %1291 {offsets = [0, 0], sizes = [8, 128], strides = [1, 1]} : vector<8x384xf32> to vector<8x128xf32>
    %1297 = vector.extract_strided_slice %1295 {offsets = [0, 0], sizes = [8, 128], strides = [1, 1]} : vector<8x384xf32> to vector<8x128xf32>
    %1298 = arith.addf %1296, %1297 : vector<8x128xf32>
    %1299 = arith.negf %1298 : vector<8x128xf32>
    %1300 = math.exp %1299 : vector<8x128xf32>
    %cst_301 = arith.constant 1.000000e+00 : f32
    %1301 = vector.broadcast %cst_301 : f32 to vector<8x128xf32>
    %1302 = arith.addf %1301, %1300 : vector<8x128xf32>
    %1303 = arith.divf %1301, %1302 : vector<8x128xf32>
    %1304 = vector.extract_strided_slice %1291 {offsets = [0, 128], sizes = [8, 128], strides = [1, 1]} : vector<8x384xf32> to vector<8x128xf32>
    %1305 = vector.extract_strided_slice %1295 {offsets = [0, 128], sizes = [8, 128], strides = [1, 1]} : vector<8x384xf32> to vector<8x128xf32>
    %1306 = arith.addf %1304, %1305 : vector<8x128xf32>
    %1307 = arith.negf %1306 : vector<8x128xf32>
    %1308 = math.exp %1307 : vector<8x128xf32>
    %cst_302 = arith.constant 1.000000e+00 : f32
    %1309 = vector.broadcast %cst_302 : f32 to vector<8x128xf32>
    %1310 = arith.addf %1309, %1308 : vector<8x128xf32>
    %1311 = arith.divf %1309, %1310 : vector<8x128xf32>
    %1312 = vector.extract_strided_slice %1291 {offsets = [0, 256], sizes = [8, 128], strides = [1, 1]} : vector<8x384xf32> to vector<8x128xf32>
    %1313 = vector.extract_strided_slice %1295 {offsets = [0, 256], sizes = [8, 128], strides = [1, 1]} : vector<8x384xf32> to vector<8x128xf32>
    %1314 = arith.mulf %1303, %1313 : vector<8x128xf32>
    %1315 = arith.addf %1312, %1314 : vector<8x128xf32>
    %1316 = math.tanh %1315 : vector<8x128xf32>
    %cst_303 = arith.constant 1.000000e+00 : f32
    %1317 = vector.broadcast %cst_303 : f32 to vector<8x128xf32>
    %1318 = arith.subf %1317, %1311 : vector<8x128xf32>
    %1319 = arith.mulf %1318, %1316 : vector<8x128xf32>
    %1320 = arith.mulf %1311, %1255 : vector<8x128xf32>
    %1321 = arith.addf %1319, %1320 : vector<8x128xf32>
    %c0_304 = arith.constant 0 : index
    %c0_305 = arith.constant 0 : index
    %c384_306 = arith.constant 384 : index
    %1322 = vector.load %arg17[%c0_304, %c0_305, %c384_306] : memref<12x8x768xbf16, #tpu.memory_space<vmem>>, vector<1x8x384xbf16>
    %1323 = vector.shape_cast %1322 : vector<1x8x384xbf16> to vector<8x384xbf16>
    %1324 = arith.extf %1323 : vector<8x384xbf16> to vector<8x384xf32>
    %1325 = arith.truncf %1288 : vector<8x128xf32> to vector<8x128xbf16>
    %cst_307 = arith.constant dense<0.000000e+00> : vector<8x384xf32>
    %1326 = tpu.matmul %1325, %21, %cst_307 {dimension_numbers = #tpu.dot_dimension_numbers<[1], [0], [0], [1], [0, 0, 1, 1], [], []>} : vector<8x128xbf16>, vector<128x384xbf16>, vector<8x384xf32> -> vector<8x384xf32>
    %1327 = vector.broadcast %25 : vector<1x384xf32> to vector<8x384xf32>
    %1328 = arith.addf %1326, %1327 : vector<8x384xf32>
    %1329 = vector.extract_strided_slice %1324 {offsets = [0, 0], sizes = [8, 128], strides = [1, 1]} : vector<8x384xf32> to vector<8x128xf32>
    %1330 = vector.extract_strided_slice %1328 {offsets = [0, 0], sizes = [8, 128], strides = [1, 1]} : vector<8x384xf32> to vector<8x128xf32>
    %1331 = arith.addf %1329, %1330 : vector<8x128xf32>
    %1332 = arith.negf %1331 : vector<8x128xf32>
    %1333 = math.exp %1332 : vector<8x128xf32>
    %cst_308 = arith.constant 1.000000e+00 : f32
    %1334 = vector.broadcast %cst_308 : f32 to vector<8x128xf32>
    %1335 = arith.addf %1334, %1333 : vector<8x128xf32>
    %1336 = arith.divf %1334, %1335 : vector<8x128xf32>
    %1337 = vector.extract_strided_slice %1324 {offsets = [0, 128], sizes = [8, 128], strides = [1, 1]} : vector<8x384xf32> to vector<8x128xf32>
    %1338 = vector.extract_strided_slice %1328 {offsets = [0, 128], sizes = [8, 128], strides = [1, 1]} : vector<8x384xf32> to vector<8x128xf32>
    %1339 = arith.addf %1337, %1338 : vector<8x128xf32>
    %1340 = arith.negf %1339 : vector<8x128xf32>
    %1341 = math.exp %1340 : vector<8x128xf32>
    %cst_309 = arith.constant 1.000000e+00 : f32
    %1342 = vector.broadcast %cst_309 : f32 to vector<8x128xf32>
    %1343 = arith.addf %1342, %1341 : vector<8x128xf32>
    %1344 = arith.divf %1342, %1343 : vector<8x128xf32>
    %1345 = vector.extract_strided_slice %1324 {offsets = [0, 256], sizes = [8, 128], strides = [1, 1]} : vector<8x384xf32> to vector<8x128xf32>
    %1346 = vector.extract_strided_slice %1328 {offsets = [0, 256], sizes = [8, 128], strides = [1, 1]} : vector<8x384xf32> to vector<8x128xf32>
    %1347 = arith.mulf %1336, %1346 : vector<8x128xf32>
    %1348 = arith.addf %1345, %1347 : vector<8x128xf32>
    %1349 = math.tanh %1348 : vector<8x128xf32>
    %cst_310 = arith.constant 1.000000e+00 : f32
    %1350 = vector.broadcast %cst_310 : f32 to vector<8x128xf32>
    %1351 = arith.subf %1350, %1344 : vector<8x128xf32>
    %1352 = arith.mulf %1351, %1349 : vector<8x128xf32>
    %1353 = arith.mulf %1344, %1288 : vector<8x128xf32>
    %1354 = arith.addf %1352, %1353 : vector<8x128xf32>
    %1355 = tpu.concatenate %1321, %1354 in 1 : vector<8x128xf32>, vector<8x128xf32> -> vector<8x256xf32>
    %1356 = tpu.concatenate %1057, %1090 in 1 : vector<8x128xf32>, vector<8x128xf32> -> vector<8x256xf32>
    %1357 = arith.truncf %1355 : vector<8x256xf32> to vector<8x256xbf16>
    %c0_311 = arith.constant 0 : index
    %c0_312 = arith.constant 0 : index
    %1358 = vector.load %arg11[%c0_311, %c0_312] : memref<256x256xbf16, #tpu.memory_space<vmem>>, vector<256x256xbf16>
    %cst_313 = arith.constant dense<0.000000e+00> : vector<8x256xf32>
    %1359 = tpu.matmul %1357, %1358, %cst_313 {dimension_numbers = #tpu.dot_dimension_numbers<[1], [0], [0], [1], [0, 0, 1, 1], [], []>} : vector<8x256xbf16>, vector<256x256xbf16>, vector<8x256xf32> -> vector<8x256xf32>
    %1360 = arith.truncf %1356 : vector<8x256xf32> to vector<8x256xbf16>
    %c0_314 = arith.constant 0 : index
    %c0_315 = arith.constant 0 : index
    %1361 = vector.load %arg12[%c0_314, %c0_315] : memref<256x256xbf16, #tpu.memory_space<vmem>>, vector<256x256xbf16>
    %cst_316 = arith.constant dense<0.000000e+00> : vector<8x256xf32>
    %1362 = tpu.matmul %1360, %1361, %cst_316 {dimension_numbers = #tpu.dot_dimension_numbers<[1], [0], [0], [1], [0, 0, 1, 1], [], []>} : vector<8x256xbf16>, vector<256x256xbf16>, vector<8x256xf32> -> vector<8x256xf32>
    %1363 = arith.addf %1359, %1362 : vector<8x256xf32>
    %c0_317 = arith.constant 0 : index
    %c0_318 = arith.constant 0 : index
    %1364 = vector.load %arg13[%c0_317, %c0_318] : memref<1x256xf32, #tpu.memory_space<vmem>>, vector<1x256xf32>
    %1365 = vector.broadcast %1364 : vector<1x256xf32> to vector<8x256xf32>
    %1366 = arith.addf %1363, %1365 : vector<8x256xf32>
    %cst_319 = arith.constant 0.000000e+00 : f32
    %1367 = vector.broadcast %cst_319 : f32 to vector<8x256xf32>
    %1368 = arith.maximumf %1366, %1367 : vector<8x256xf32>
    %c0_320 = arith.constant 0 : index
    %c0_321 = arith.constant 0 : index
    %1369 = vector.load %arg14[%c0_320, %c0_321] : memref<1x256xf32, #tpu.memory_space<vmem>>, vector<1x256xf32>
    %1370 = vector.broadcast %1369 : vector<1x256xf32> to vector<8x256xf32>
    %1371 = arith.mulf %1368, %1370 : vector<8x256xf32>
    %cst_322 = arith.constant dense<0.000000e+00> : vector<8xf32>
    %1372 = vector.multi_reduction <add>, %1371, %cst_322 [1] : vector<8x256xf32> to vector<8xf32>
    %1373 = vector.shape_cast %1372 : vector<8xf32> to vector<8x1xf32>
    %c0_323 = arith.constant 0 : index
    %c0_324 = arith.constant 0 : index
    %1374 = vector.load %arg15[%c0_323, %c0_324] : memref<1x1xf32, #tpu.memory_space<vmem>>, vector<1x1xf32>
    %1375 = vector.broadcast %1374 : vector<1x1xf32> to vector<8x1xf32>
    %1376 = arith.addf %1373, %1375 : vector<8x1xf32>
    %c0_325 = arith.constant 0 : index
    %c0_326 = arith.constant 0 : index
    %1377 = vector.load %arg16[%c0_325, %c0_326] : memref<8x1xf32, #tpu.memory_space<vmem>>, vector<8x1xf32>
    tpu.vector_store %arg16[%c0_325, %c0_326], %1376 {strides = array<i32>} : memref<8x1xf32, #tpu.memory_space<vmem>>, vector<8x1xf32>,
    return
  }
  func.func @transform_0(%arg0: i32) -> (i32, i32) {
    %c0_i32 = arith.constant 0 : i32
    %c0_i32_0 = arith.constant 0 : i32
    %c0_i32_1 = arith.constant 0 : i32
    return %c0_i32, %c0_i32_0 : i32, i32
  }
  func.func @transform_1(%arg0: i32) -> (i32, i32) {
    %c0_i32 = arith.constant 0 : i32
    %c0_i32_0 = arith.constant 0 : i32
    %c0_i32_1 = arith.constant 0 : i32
    return %c0_i32, %c0_i32_0 : i32, i32
  }
  func.func @transform_2(%arg0: i32) -> (i32, i32) {
    %c0_i32 = arith.constant 0 : i32
    %c0_i32_0 = arith.constant 0 : i32
    %c0_i32_1 = arith.constant 0 : i32
    return %c0_i32, %c0_i32_0 : i32, i32
  }
  func.func @transform_3(%arg0: i32) -> (i32, i32, i32) {
    %c0_i32 = arith.constant 0 : i32
    %c0_i32_0 = arith.constant 0 : i32
    %c0_i32_1 = arith.constant 0 : i32
    %c0_i32_2 = arith.constant 0 : i32
    return %c0_i32, %c0_i32_0, %c0_i32_1 : i32, i32, i32
  }
  func.func @transform_4(%arg0: i32) -> (i32, i32) {
    %c0_i32 = arith.constant 0 : i32
    %c0_i32_0 = arith.constant 0 : i32
    %c0_i32_1 = arith.constant 0 : i32
    return %c0_i32, %c0_i32_0 : i32, i32
  }
  func.func @transform_5(%arg0: i32) -> (i32, i32, i32) {
    %c0_i32 = arith.constant 0 : i32
    %c0_i32_0 = arith.constant 0 : i32
    %c0_i32_1 = arith.constant 0 : i32
    %c0_i32_2 = arith.constant 0 : i32
    return %c0_i32, %c0_i32_0, %c0_i32_1 : i32, i32, i32
  }
  func.func @transform_6(%arg0: i32) -> (i32, i32) {
    %c0_i32 = arith.constant 0 : i32
    %c0_i32_0 = arith.constant 0 : i32
    %c0_i32_1 = arith.constant 0 : i32
    return %c0_i32, %c0_i32_0 : i32, i32
  }
  func.func @transform_7(%arg0: i32) -> (i32, i32, i32) {
    %c0_i32 = arith.constant 0 : i32
    %c0_i32_0 = arith.constant 0 : i32
    %c0_i32_1 = arith.constant 0 : i32
    %c0_i32_2 = arith.constant 0 : i32
    return %c0_i32, %c0_i32_0, %c0_i32_1 : i32, i32, i32
  }
  func.func @transform_8(%arg0: i32) -> (i32, i32) {
    %c0_i32 = arith.constant 0 : i32
    %c0_i32_0 = arith.constant 0 : i32
    %c0_i32_1 = arith.constant 0 : i32
    return %c0_i32, %c0_i32_0 : i32, i32
  }
  func.func @transform_9(%arg0: i32) -> (i32, i32, i32) {
    %c0_i32 = arith.constant 0 : i32
    %c0_i32_0 = arith.constant 0 : i32
    %c0_i32_1 = arith.constant 0 : i32
    %c0_i32_2 = arith.constant 0 : i32
    return %c0_i32, %c0_i32_0, %c0_i32_1 : i32, i32, i32
  }
  func.func @transform_10(%arg0: i32) -> (i32, i32) {
    %c0_i32 = arith.constant 0 : i32
    %c0_i32_0 = arith.constant 0 : i32
    %c0_i32_1 = arith.constant 0 : i32
    return %c0_i32, %c0_i32_0 : i32, i32
  }
  func.func @transform_11(%arg0: i32) -> (i32, i32) {
    %c0_i32 = arith.constant 0 : i32
    %c0_i32_0 = arith.constant 0 : i32
    %c0_i32_1 = arith.constant 0 : i32
    return %c0_i32, %c0_i32_0 : i32, i32
  }
  func.func @transform_12(%arg0: i32) -> (i32, i32) {
    %c0_i32 = arith.constant 0 : i32
    %c0_i32_0 = arith.constant 0 : i32
    %c0_i32_1 = arith.constant 0 : i32
    return %c0_i32, %c0_i32_0 : i32, i32
  }
  func.func @transform_13(%arg0: i32) -> (i32, i32) {
    %c0_i32 = arith.constant 0 : i32
    %c0_i32_0 = arith.constant 0 : i32
    %c0_i32_1 = arith.constant 0 : i32
    return %c0_i32, %c0_i32_0 : i32, i32
  }
  func.func @transform_14(%arg0: i32) -> (i32, i32) {
    %c0_i32 = arith.constant 0 : i32
    %c0_i32_0 = arith.constant 0 : i32
    %c0_i32_1 = arith.constant 0 : i32
    return %c0_i32, %c0_i32_0 : i32, i32
  }
  func.func @transform_15(%arg0: i32) -> (i32, i32) {
    %c0_i32 = arith.constant 0 : i32
    %c0_i32_0 = arith.constant 0 : i32
    %c0_i32_1 = arith.constant 0 : i32
    return %c0_i32, %c0_i32_0 : i32, i32
  }
}

</mosaic_0001>

<bundles_post_ra>
// kernel: regression_model_forward.1
= control target key start
LH: loop header
LB: loop body
LE: loop exit
PB: predicated region body
PF: predicated region fallthrough
CT: control target
= control target key end

     0   :  { %v15288_v1 = vmov 0   ;;  %vm10282_vm0 = vmmov 0   ;;  %vm7368_vm1 = vcmask 7168   ;;  %s15272_s2 = inlined_call_operand.vmem [shape: bf16[128,768], index: 2, kind: input, shape index: {}]   ;;  %s15273_s0 = inlined_call_operand.vmem [shape: bf16[96,128], index: 0, kind: input, shape index: {}]   ;;  %s15274_s6 = inlined_call_operand.vmem [shape: bf16[128,768], index: 6, kind: input, shape index: {}]   ;;  %s15275_s1 = inlined_call_operand.vmem [shape: bf16[64,128], index: 1, kind: input, shape index: {}]   ;;  %s15276_s3 = inlined_call_operand.vmem [shape: bf16[2,128,384], index: 3, kind: input, shape index: {}]   ;;  %s15277_s7 = inlined_call_operand.vmem [shape: bf16[2,128,384], index: 7, kind: input, shape index: {}]   ;;  %s15278_s4 = inlined_call_operand.vmem [shape: f32[1,768], index: 4, kind: input, shape index: {}]   ;;  %s15279_s8 = inlined_call_operand.vmem [shape: f32[1,768], index: 8, kind: input, shape index: {}]   ;;  %s15280_s5 = inlined_call_operand.vmem [shape: f32[2,1,384], index: 5, kind: input, shape index: {}]   ;;  %s15281_s9 = inlined_call_operand.vmem [shape: f32[2,1,384], index: 9, kind: input, shape index: {}]   ;;  %s15282_s11 = inlined_call_operand.vmem [shape: bf16[256,256], index: 11, kind: input, shape index: {}]   ;;  %s15283_s10 = inlined_call_operand.vmem [shape: bf16[256,256], index: 10, kind: input, shape index: {}]   ;;  %s15284_s14 = inlined_call_operand.<no memory space> [shape: f32[1,1], index: 14, kind: input, shape index: {}]   ;;  %s15285_s12 = inlined_call_operand.vmem [shape: f32[1,256], index: 12, kind: input, shape index: {}]   ;;  %s15286_s13 = inlined_call_operand.vmem [shape: f32[1,256], index: 13, kind: input, shape index: {}]   ;;  %s15287_s15 = inlined_call_operand.vmem [shape: f32[8,1], index: 15, kind: output, shape index: {}]  }
   0x1   :  { %v9070_v0 = vld [vmem:[%s15272_s2 + $0x154] ss:$24 sps:$4 sm:$0xff]   ;;  %453 = vmatprep.mubr.bf16.mxu0 %v15288_v1  ;;  %546 = vmatprep.mubr.bf16.mxu1 %v15288_v1  ;;  %v9074_v3 = vld [vmem:[%s15272_s2 + $0x150] ss:$24 sps:$4 sm:$0xff]   ;;  %v9076_v5 = vld [vmem:[%s15272_s2 + $0x124] ss:$24 sps:$4 sm:$0xff]  }
   0x2   :  { %v9072_v2 = vld [vmem:[%s15272_s2 + $0x15c] ss:$24 sps:$4 sm:$0xff]   ;;  %421 = vmatprep.subr.bf16.mxu0 %v9070_v0  ;;  %v9075_v4 = vld [vmem:[%s15272_s2 + $0x158] ss:$24 sps:$4 sm:$0xff]   ;;  %v9078_v6 = vld [vmem:[%s15272_s2 + $0x12c] ss:$24 sps:$4 sm:$0xff]  }
   0x3   :  { %514 = vmatprep.subr.bf16.mxu1 %v9072_v2  ;;  %422 = vmatpush1.bf16.msra.mxu0 %v9074_v3  ;;  %v9080_v7 = vld [vmem:[%s15272_s2 + $0x120] ss:$24 sps:$4 sm:$0xff]   ;;  %v9082_v9 = vld [vmem:[%s15272_s2 + $0xf4] ss:$24 sps:$4 sm:$0xff]   ;;  %v9086_v11 = vld [vmem:[%s15272_s2 + $0xf0] ss:$24 sps:$4 sm:$0xff]  }
   0x4   :  { %515 = vmatpush1.bf16.msra.mxu1 %v9075_v4  ;;  %423 = vmatprep.subr.bf16.mxu0 %v9076_v5  ;;  %v9081_v8 = vld [vmem:[%s15272_s2 + $0x128] ss:$24 sps:$4 sm:$0xff]   ;;  %v9084_v10 = vld [vmem:[%s15272_s2 + $0xfc] ss:$24 sps:$4 sm:$0xff]   ;;  %v9087_v12 = vld [vmem:[%s15272_s2 + $0xf8] ss:$24 sps:$4 sm:$0xff]  }
   0x5   :  { %516 = vmatprep.subr.bf16.mxu1 %v9078_v6  ;;  %v9088_v13 = vld [vmem:[%s15272_s2 + $0xc4] ss:$24 sps:$4 sm:$0xff]   ;;  %v9092_v15 = vld [vmem:[%s15272_s2 + $0xc0] ss:$24 sps:$4 sm:$0xff]   ;;  %v9094_v17 = vld [vmem:[%s15272_s2 + $0x94] ss:$24 sps:$4 sm:$0xff]  }
   0x6   :  { %v9090_v14 = vld [vmem:[%s15272_s2 + $0xcc] ss:$24 sps:$4 sm:$0xff]   ;;  %v9093_v16 = vld [vmem:[%s15272_s2 + $0xc8] ss:$24 sps:$4 sm:$0xff]   ;;  %v9096_v18 = vld [vmem:[%s15272_s2 + $0x9c] ss:$24 sps:$4 sm:$0xff]  }
   0x7   :  { %424 = vmatpush1.bf16.msra.mxu0 %v9080_v7  ;;  %v9098_v19 = vld [vmem:[%s15272_s2 + $0x90] ss:$24 sps:$4 sm:$0xff]   ;;  %v9100_v21 = vld [vmem:[%s15272_s2 + $0x64] ss:$24 sps:$4 sm:$0xff]   ;;  %v9104_v23 = vld [vmem:[%s15272_s2 + $0x60] ss:$24 sps:$4 sm:$0xff]  }
   0x8   :  { %517 = vmatpush1.bf16.msra.mxu1 %v9081_v8  ;;  %425 = vmatprep.subr.bf16.mxu0 %v9082_v9  ;;  %v9099_v20 = vld [vmem:[%s15272_s2 + $0x98] ss:$24 sps:$4 sm:$0xff]   ;;  %v9102_v22 = vld [vmem:[%s15272_s2 + $0x6c] ss:$24 sps:$4 sm:$0xff]   ;;  %v9105_v24 = vld [vmem:[%s15272_s2 + $0x68] ss:$24 sps:$4 sm:$0xff]  }
   0x9   :  { %518 = vmatprep.subr.bf16.mxu1 %v9084_v10  ;;  %v9106_v25 = vld [vmem:[%s15272_s2 + $0x34] ss:$24 sps:$4 sm:$0xff]   ;;  %v9110_v27 = vld [vmem:[%s15272_s2 + $0x30] ss:$24 sps:$4 sm:$0xff]   ;;  %v9112_v29 = vld [vmem:[%s15272_s2 + $0x4] ss:$24 sps:$4 sm:$0xff]  }
   0xa   :  { %v9108_v26 = vld [vmem:[%s15272_s2 + $0x3c] ss:$24 sps:$4 sm:$0xff]   ;;  %v9111_v28 = vld [vmem:[%s15272_s2 + $0x38] ss:$24 sps:$4 sm:$0xff]   ;;  %v9114_v30 = vld [vmem:[%s15272_s2 + $0xc] ss:$24 sps:$4 sm:$0xff]  }
   0xb   :  { %426 = vmatpush1.bf16.msra.mxu0 %v9086_v11  ;;  %v9116_v31 = vld [vmem:[%s15272_s2] ss:$24 sps:$4 sm:$0xff]   ;;  %v9121_v33 = vld [vmem:[%s15274_s6 + $0x154] ss:$24 sps:$4 sm:$0xff]   ;;  %v9132_v34 = vld [vmem:[%s15272_s2 + $0x164] ss:$24 sps:$4 sm:$0xff]  }
   0xc   :  { %519 = vmatpush1.bf16.msra.mxu1 %v9087_v12  ;;  %427 = vmatprep.subr.bf16.mxu0 %v9088_v13  ;;  %v9117_v32 = vld [vmem:[%s15272_s2 + $0x8] ss:$24 sps:$4 sm:$0xff]   ;;  %v9124_v37 = vld [vmem:[%s15274_s6 + $0x124] ss:$24 sps:$4 sm:$0xff]   ;;  %v9138_v39 = vld [vmem:[%s15272_s2 + $0x134] ss:$24 sps:$4 sm:$0xff]  }
   0xd   :  { %520 = vmatprep.subr.bf16.mxu1 %v9090_v14  ;;  %v10470_v35 = vld [vmem:[%s15273_s0] sm:$0xff]   ;;  %v9119_v36 = vld [vmem:[%s15274_s6 + $0x150] ss:$24 sps:$4 sm:$0xff]   ;;  %v9128_v41 = vld [vmem:[%s15274_s6 + $0xf4] ss:$24 sps:$4 sm:$0xff]  }
   0xe   :  { %v9130_v38 = vld [vmem:[%s15272_s2 + $0x160] ss:$24 sps:$4 sm:$0xff]   ;;  %v9136_v42 = vld [vmem:[%s15272_s2 + $0x130] ss:$24 sps:$4 sm:$0xff]   ;;  %v9135_v45 = vld [vmem:[%s15274_s6 + $0xc4] ss:$24 sps:$4 sm:$0xff]  }
   0xf   :  { %428 = vmatpush1.bf16.msra.mxu0 %v9092_v15  ;;  %v9122_v40 = vld [vmem:[%s15274_s6 + $0x120] ss:$24 sps:$4 sm:$0xff]   ;;  %v10500_v43 = vld [vmem:[%s15273_s0 + $0x8] sm:$0xff]   ;;  %v9142_v46 = vld [vmem:[%s15272_s2 + $0x104] ss:$24 sps:$4 sm:$0xff]  }
  0x10   :  { %521 = vmatpush1.bf16.msra.mxu1 %v9093_v16  ;;  %429 = vmatprep.subr.bf16.mxu0 %v9094_v17  ;;  %v9126_v44 = vld [vmem:[%s15274_s6 + $0xf0] ss:$24 sps:$4 sm:$0xff]   ;;  %v9133_v47 = vld [vmem:[%s15274_s6 + $0xc0] ss:$24 sps:$4 sm:$0xff]   ;;  %v9148_v49 = vld [vmem:[%s15272_s2 + $0xd4] ss:$24 sps:$4 sm:$0xff]  }
  0x11   :  { %522 = vmatprep.subr.bf16.mxu1 %v9096_v18  ;;  %v9140_v48 = vld [vmem:[%s15272_s2 + $0x100] ss:$24 sps:$4 sm:$0xff]   ;;  %v9145_v50 = vld [vmem:[%s15274_s6 + $0x94] ss:$24 sps:$4 sm:$0xff]   ;;  %v9143_v52 = vld [vmem:[%s15274_s6 + $0x90] ss:$24 sps:$4 sm:$0xff]  }
  0x12   :  { %v10530_v51 = vld [vmem:[%s15273_s0 + $0x10] sm:$0xff]   ;;  %v9151_v54 = vld [vmem:[%s15274_s6 + $0x64] ss:$24 sps:$4 sm:$0xff]   ;;  %v9149_v56 = vld [vmem:[%s15274_s6 + $0x60] ss:$24 sps:$4 sm:$0xff]  }
  0x13   :  { %430 = vmatpush1.bf16.msra.mxu0 %v9098_v19  ;;  %v9146_v53 = vld [vmem:[%s15272_s2 + $0xd0] ss:$24 sps:$4 sm:$0xff]   ;;  %v9155_v55 = vld [vmem:[%s15272_s2 + $0xa4] ss:$24 sps:$4 sm:$0xff]   ;;  %v9153_v57 = vld [vmem:[%s15272_s2 + $0xa0] ss:$24 sps:$4 sm:$0xff]  }
  0x14   :  { %523 = vmatpush1.bf16.msra.mxu1 %v9099_v20  ;;  %431 = vmatprep.subr.bf16.mxu0 %v9100_v21  ;;  %v9158_v58 = vld [vmem:[%s15272_s2 + $0x74] ss:$24 sps:$4 sm:$0xff]   ;;  %v10563_v60 = vld [vmem:[%s15273_s0 + $0x18] sm:$0xff]   ;;  %v9156_v61 = vld [vmem:[%s15272_s2 + $0x70] ss:$24 sps:$4 sm:$0xff]  }
  0x15   :  { %524 = vmatprep.subr.bf16.mxu1 %v9102_v22  ;;  %v9161_v59 = vld [vmem:[%s15274_s6 + $0x34] ss:$24 sps:$4 sm:$0xff]   ;;  %v9159_v62 = vld [vmem:[%s15274_s6 + $0x30] ss:$24 sps:$4 sm:$0xff]   ;;  %v9165_v63 = vld [vmem:[%s15272_s2 + $0x44] ss:$24 sps:$4 sm:$0xff]  }
  0x16   :  { %v9168_v0 = vld [vmem:[%s15274_s6 + $0x4] ss:$24 sps:$4 sm:$0xff]   ;;  %v9163_v2 = vld [vmem:[%s15272_s2 + $0x40] ss:$24 sps:$4 sm:$0xff]   ;;  %v9171_v4 = vld [vmem:[%s15272_s2 + $0x14] ss:$24 sps:$4 sm:$0xff]  }
  0x17   :  { %432 = vmatpush1.bf16.msra.mxu0 %v9104_v23  ;;  %v9166_v3 = vld [vmem:[%s15274_s6] ss:$24 sps:$4 sm:$0xff]   ;;  %v9174_v5 = vld [vmem:[%s15274_s6 + $0x15c] ss:$24 sps:$4 sm:$0xff]   ;;  %v9169_v7 = vld [vmem:[%s15272_s2 + $0x10] ss:$24 sps:$4 sm:$0xff]  }
  0x18   :  { %525 = vmatpush1.bf16.msra.mxu1 %v9105_v24  ;;  %433 = vmatprep.subr.bf16.mxu0 %v9106_v25  ;;  %v10596_v6 = vld [vmem:[%s15273_s0 + $0x20] sm:$0xff]   ;;  %v10611_v9 = vld [vmem:[%s15273_s0 + $0x28] sm:$0xff]   ;;  %v9172_v11 = vld [vmem:[%s15274_s6 + $0x158] ss:$24 sps:$4 sm:$0xff]  }
  0x19   :  { %526 = vmatprep.subr.bf16.mxu1 %v9108_v26  ;;  %v9192_v8 = vld [vmem:[%s15274_s6 + $0x164] ss:$24 sps:$4 sm:$0xff]   ;;  %v9190_v13 = vld [vmem:[%s15274_s6 + $0x160] ss:$24 sps:$4 sm:$0xff]   ;;  %v9198_v14 = vld [vmem:[%s15274_s6 + $0x134] ss:$24 sps:$4 sm:$0xff]  }
  0x1a   :  { %v10620_v10 = vld [vmem:[%s15275_s1] sm:$0xff]   ;;  %v9181_v16 = vld [vmem:[%s15274_s6 + $0xfc] ss:$24 sps:$4 sm:$0xff]   ;;  %v9196_v17 = vld [vmem:[%s15274_s6 + $0x130] ss:$24 sps:$4 sm:$0xff]  }
  0x1b   :  { %434 = vmatpush1.bf16.msra.mxu0 %v9110_v27  ;;  %v9178_v12 = vld [vmem:[%s15274_s6 + $0x12c] ss:$24 sps:$4 sm:$0xff]   ;;  %v9176_v15 = vld [vmem:[%s15274_s6 + $0x128] ss:$24 sps:$4 sm:$0xff]   ;;  %v9179_v19 = vld [vmem:[%s15274_s6 + $0xf8] ss:$24 sps:$4 sm:$0xff]  }
  0x1c   :  { %527 = vmatpush1.bf16.msra.mxu1 %v9111_v28  ;;  %435 = vmatprep.subr.bf16.mxu0 %v9112_v29  ;;  %v10650_v18 = vld [vmem:[%s15275_s1 + $0x8] sm:$0xff]   ;;  %v9205_v21 = vld [vmem:[%s15274_s6 + $0x104] ss:$24 sps:$4 sm:$0xff]   ;;  %v9203_v23 = vld [vmem:[%s15274_s6 + $0x100] ss:$24 sps:$4 sm:$0xff]  }
  0x1d   :  { %528 = vmatprep.subr.bf16.mxu1 %v9114_v30  ;;  %v9185_v20 = vld [vmem:[%s15274_s6 + $0xcc] ss:$24 sps:$4 sm:$0xff]   ;;  %v9183_v22 = vld [vmem:[%s15274_s6 + $0xc8] ss:$24 sps:$4 sm:$0xff]   ;;  %v9188_v25 = vld [vmem:[%s15274_s6 + $0x9c] ss:$24 sps:$4 sm:$0xff]  }
  0x1e   :  { %v9211_v24 = vld [vmem:[%s15274_s6 + $0xd4] ss:$24 sps:$4 sm:$0xff]   ;;  %v9186_v27 = vld [vmem:[%s15274_s6 + $0x98] ss:$24 sps:$4 sm:$0xff]   ;;  %v9216_v30 = vld [vmem:[%s15274_s6 + $0xa4] ss:$24 sps:$4 sm:$0xff]  }
  0x1f   :  { %436 = vmatpush1.bf16.msra.mxu0 %v9116_v31  ;;  %v10680_v26 = vld [vmem:[%s15275_s1 + $0x10] sm:$0xff]   ;;  %v9195_v28 = vld [vmem:[%s15274_s6 + $0x6c] ss:$24 sps:$4 sm:$0xff]   ;;  %v9193_v31 = vld [vmem:[%s15274_s6 + $0x68] ss:$24 sps:$4 sm:$0xff]  }
  0x20   :  { %529 = vmatpush1.bf16.msra.mxu1 %v9117_v32  ;;  %607 = vmatprep.subr.bf16.mxu0 %v9132_v34  ;;  %v9209_v29 = vld [vmem:[%s15274_s6 + $0xd0] ss:$24 sps:$4 sm:$0xff]   ;;  %v9201_v32 = vld [vmem:[%s15274_s6 + $0x3c] ss:$24 sps:$4 sm:$0xff]  }
  0x21   :  { %1376 = vmatprep.subr.bf16.mxu1 %v9121_v33  ;;  %v9214_v33 = vld [vmem:[%s15274_s6 + $0xa0] ss:$24 sps:$4 sm:$0xff]  }
  0x22   :  { %454 = vmatmul.mubr.bf16.vlgmr.msra.gmra.mxu0 %v10470_v35  ;;  %v10710_v34 = vld [vmem:[%s15275_s1 + $0x18] sm:$0xff]  }
  0x23   :  { %547 = vmatmul.mubr.bf16.vlgmr.msra.gmra.mxu1 %v10470_v35  ;;  %463 = vmatprep.mubr.bf16.mxu0 %v15288_v1 }
  0x24   :  { %1377 = vmatpush1.bf16.msra.mxu1 %v9119_v36  ;;  %556 = vmatprep.mubr.bf16.mxu1 %v15288_v1  ;;  %v9208_v36 = vld [vmem:[%s15274_s6 + $0xc] ss:$24 sps:$4 sm:$0xff]  }
  0x25   :  { %1378 = vmatprep.subr.bf16.mxu1 %v9124_v37  ;;  %608 = vmatpush1.bf16.msra.mxu0 %v9130_v38  ;;  %v9222_v37 = vld [vmem:[%s15274_s6 + $0x74] ss:$24 sps:$4 sm:$0xff]   ;;  %v9206_v38 = vld [vmem:[%s15274_s6 + $0x8] ss:$24 sps:$4 sm:$0xff]  }
  0x26   :  { %609 = vmatprep.subr.bf16.mxu0 %v9138_v39  ;;  %v9220_v39 = vld [vmem:[%s15274_s6 + $0x70] ss:$24 sps:$4 sm:$0xff]  }
  0x28   :  { %1379 = vmatpush1.bf16.msra.mxu1 %v9122_v40  ;;  %v9228_v40 = vld [vmem:[%s15274_s6 + $0x44] ss:$24 sps:$4 sm:$0xff]  }
  0x29   :  { %1380 = vmatprep.subr.bf16.mxu1 %v9128_v41  ;;  %610 = vmatpush1.bf16.msra.mxu0 %v9136_v42  ;;  %v10737_v41 = vld [vmem:[%s15276_s3 + $0xac] ss:$12 sps:$4 sm:$0xff]   ;;  %v10742_v42 = vld [vmem:[%s15276_s3 + $0xa8] ss:$12 sps:$4 sm:$0xff]  }
  0x2a   :  { %464 = vmatmul.mubr.bf16.gmra.mxu0 %v10500_v43  ;;  %611 = vmatprep.subr.bf16.mxu0 %v9142_v46  ;;  %v10762_v46 = vld [vmem:[%s15276_s3 + $0x90] ss:$12 sps:$4 sm:$0xff]  }
  0x2b   :  { %557 = vmatmul.mubr.bf16.gmra.mxu1 %v10500_v43  ;;  %473 = vmatprep.mubr.bf16.mxu0 %v15288_v1 }
  0x2c   :  { %1381 = vmatpush1.bf16.msra.mxu1 %v9126_v44  ;;  %566 = vmatprep.mubr.bf16.mxu1 %v15288_v1  ;;  %v9226_v44 = vld [vmem:[%s15274_s6 + $0x40] ss:$24 sps:$4 sm:$0xff]  }
  0x2d   :  { %1382 = vmatprep.subr.bf16.mxu1 %v9135_v45  ;;  %612 = vmatpush1.bf16.msra.mxu0 %v9140_v48  ;;  %v9234_v45 = vld [vmem:[%s15274_s6 + $0x14] ss:$24 sps:$4 sm:$0xff]   ;;  %v9232_v48 = vld [vmem:[%s15274_s6 + $0x10] ss:$24 sps:$4 sm:$0xff]  }
  0x2e   :  { %613 = vmatprep.subr.bf16.mxu0 %v9148_v49  ;;  %v10779_v49 = vld [vmem:[%s15276_s3 + $0x78] ss:$12 sps:$4 sm:$0xff]  }
  0x30   :  { %1383 = vmatpush1.bf16.msra.mxu1 %v9133_v47  ;;  %v10770_v47 = vld [vmem:[%s15276_s3 + $0x7c] ss:$12 sps:$4 sm:$0xff]  }
  0x31   :  { %1384 = vmatprep.subr.bf16.mxu1 %v9145_v50  ;;  %614 = vmatpush1.bf16.msra.mxu0 %v9146_v53  ;;  %v10785_v50 = vld [vmem:[%s15276_s3 + $0x64] ss:$12 sps:$4 sm:$0xff]   ;;  %v15302_v53 = vmov 0.0  }
  0x32   :  { %474 = vmatmul.mubr.bf16.gmra.mxu0 %v10530_v51  ;;  %615 = vmatprep.subr.bf16.mxu0 %v9155_v55  ;;  %v10814_v55 = vld [vmem:[%s15276_s3 + $0x34] ss:$12 sps:$4 sm:$0xff]  }
  0x33   :  { %567 = vmatmul.mubr.bf16.gmra.mxu1 %v10530_v51  ;;  %483 = vmatprep.mubr.bf16.mxu0 %v15288_v1 }
  0x34   :  { %576 = vmatprep.mubr.bf16.mxu1 %v15288_v1  ;;  %1385 = vmatpush1.bf16.msra.mxu1 %v9143_v52  ;;  %v10801_v52 = vld [vmem:[%s15276_s3 + $0x4c] ss:$12 sps:$4 sm:$0xff]  }
  0x35   :  { %1386 = vmatprep.subr.bf16.mxu1 %v9151_v54  ;;  %616 = vmatpush1.bf16.msra.mxu0 %v9153_v57  ;;  %v10808_v54 = vld [vmem:[%s15276_s3 + $0x48] ss:$12 sps:$4 sm:$0xff]   ;;  %v10827_v57 = vld [vmem:[%s15276_s3 + $0x30] ss:$12 sps:$4 sm:$0xff]  }
  0x36   :  { %617 = vmatprep.subr.bf16.mxu0 %v9158_v58  ;;  %v10835_v58 = vld [vmem:[%s15276_s3 + $0x1c] ss:$12 sps:$4 sm:$0xff]  }
  0x38   :  { %1387 = vmatpush1.bf16.msra.mxu1 %v9149_v56  ;;  %v10819_v56 = vld [vmem:[%s15276_s3 + $0xb0] ss:$12 sps:$4 sm:$0xff]  }
  0x39   :  { %1388 = vmatprep.subr.bf16.mxu1 %v9161_v59  ;;  %618 = vmatpush1.bf16.msra.mxu0 %v9156_v61  ;;  %v10841_v59 = vld [vmem:[%s15276_s3 + $0x98] ss:$12 sps:$4 sm:$0xff]  }
  0x3a   :  { %484 = vmatmul.mubr.bf16.gmra.mxu0 %v10563_v60  ;;  %619 = vmatprep.subr.bf16.mxu0 %v9165_v63  ;;  %v10854_v61 = vld [vmem:[%s15276_s3 + $0x4] ss:$12 sps:$4 sm:$0xff]   ;;  %v10868_v63 = vld [vmem:[%s15276_s3] ss:$12 sps:$4 sm:$0xff]  }
  0x3b   :  { %577 = vmatmul.mubr.bf16.gmra.mxu1 %v10563_v60  ;;  %493 = vmatprep.mubr.bf16.mxu0 %v15288_v1 }
  0x3c   :  { %586 = vmatprep.mubr.bf16.mxu1 %v15288_v1  ;;  %1389 = vmatpush1.bf16.msra.mxu1 %v9159_v62  ;;  %v10862_v62 = vld [vmem:[%s15276_s3 + $0x80] ss:$12 sps:$4 sm:$0xff]  }
  0x3d   :  { %1390 = vmatprep.subr.bf16.mxu1 %v9168_v0  ;;  %620 = vmatpush1.bf16.msra.mxu0 %v9163_v2  ;;  %v10876_v0 = vld [vmem:[%s15276_s3 + $0x16c] ss:$12 sps:$4 sm:$0xff]   ;;  %v9251_v2 = vld [vmem:[%s15276_s3 + $0x168] ss:$12 sps:$4 sm:$0xff]  }
  0x3e   :  { %621 = vmatprep.subr.bf16.mxu0 %v9171_v4  ;;  %v10892_v4 = vld [vmem:[%s15276_s3 + $0x68] ss:$12 sps:$4 sm:$0xff]  }
  0x40   :  { %1391 = vmatpush1.bf16.msra.mxu1 %v9166_v3  ;;  %v9253_v3 = vld [vmem:[%s15276_s3 + $0x154] ss:$12 sps:$4 sm:$0xff]  }
  0x41   :  { %1449 = vmatprep.subr.bf16.mxu1 %v9174_v5  ;;  %622 = vmatpush1.bf16.msra.mxu0 %v9169_v7  ;;  %v9255_v5 = vld [vmem:[%s15276_s3 + $0x150] ss:$12 sps:$4 sm:$0xff]  }
  0x42   :  { %494 = vmatmul.mubr.bf16.gmra.mxu0 %v10596_v6  ;;  %1522 = vmatprep.subr.bf16.mxu0 %v9192_v8  ;;  %v10907_v7 = vld [vmem:[%s15276_s3 + $0x50] ss:$12 sps:$4 sm:$0xff]   ;;  %v9259_v8 = vld [vmem:[%s15276_s3 + $0x138] ss:$12 sps:$4 sm:$0xff]  }
  0x43   :  { %587 = vmatmul.mubr.bf16.gmra.mxu1 %v10596_v6  ;;  %503 = vmatprep.mubr.bf16.mxu0 %v15288_v1 }
  0x44   :  { %596 = vmatprep.mubr.bf16.mxu1 %v15288_v1 }
  0x4a   :  { %504 = vmatmul.mubr.bf16.gmra.mxu0 %v10611_v9 }
  0x4b   :  { %597 = vmatmul.mubr.bf16.gmra.mxu1 %v10611_v9  ;;  %639 = vmatprep.mubr.bf16.mxu0 %v15288_v1 }
  0x4c   :  { %1408 = vmatprep.mubr.bf16.mxu1 %v15288_v1 }
  0x52   :  { %640 = vmatmul.mubr.bf16.vlgmr.msra.gmra.mxu0 %v10470_v35  ;;  %v9199_v35 = vld [vmem:[%s15274_s6 + $0x38] ss:$24 sps:$4 sm:$0xff]  }
  0x53   :  { %1409 = vmatmul.mubr.bf16.vlgmr.msra.gmra.mxu1 %v10620_v10  ;;  %649 = vmatprep.mubr.bf16.mxu0 %v15288_v1 }
  0x54   :  { %1450 = vmatpush1.bf16.msra.mxu1 %v9172_v11  ;;  %1418 = vmatprep.mubr.bf16.mxu1 %v15288_v1  ;;  %v9263_v11 = vld [vmem:[%s15276_s3 + $0x120] ss:$12 sps:$4 sm:$0xff]  }
  0x55   :  { %1451 = vmatprep.subr.bf16.mxu1 %v9178_v12  ;;  %1523 = vmatpush1.bf16.msra.mxu0 %v9190_v13  ;;  %v9265_v12 = vld [vmem:[%s15276_s3 + $0x10c] ss:$12 sps:$4 sm:$0xff]  }
  0x56   :  { %1524 = vmatprep.subr.bf16.mxu0 %v9198_v14  ;;  %v10937_v13 = vld [vmem:[%s15276_s3 + $0x20] ss:$12 sps:$4 sm:$0xff]   ;;  %v9267_v14 = vld [vmem:[%s15276_s3 + $0x108] ss:$12 sps:$4 sm:$0xff]  }
  0x58   :  { %1452 = vmatpush1.bf16.msra.mxu1 %v9176_v15  ;;  %v9269_v15 = vld [vmem:[%s15276_s3 + $0xf4] ss:$12 sps:$4 sm:$0xff]  }
  0x59   :  { %1453 = vmatprep.subr.bf16.mxu1 %v9181_v16  ;;  %1525 = vmatpush1.bf16.msra.mxu0 %v9196_v17  ;;  %v10950_v16 = vld [vmem:[%s15276_s3 + $0x8] ss:$12 sps:$4 sm:$0xff]   ;;  %v9271_v17 = vld [vmem:[%s15276_s3 + $0xf0] ss:$12 sps:$4 sm:$0xff]  }
  0x5a   :  { %650 = vmatmul.mubr.bf16.gmra.mxu0 %v10500_v43  ;;  %1526 = vmatprep.subr.bf16.mxu0 %v9205_v21  ;;  %v10748_v43 = vld [vmem:[%s15276_s3 + $0x94] ss:$12 sps:$4 sm:$0xff]   ;;  %v9277_v21 = vld [vmem:[%s15276_s3 + $0xc4] ss:$12 sps:$4 sm:$0xff]  }
  0x5b   :  { %1419 = vmatmul.mubr.bf16.gmra.mxu1 %v10650_v18  ;;  %659 = vmatprep.mubr.bf16.mxu0 %v15288_v1 }
  0x5c   :  { %1454 = vmatpush1.bf16.msra.mxu1 %v9179_v19  ;;  %1428 = vmatprep.mubr.bf16.mxu1 %v15288_v1  ;;  %v9280_v19 = vld [vmem:[%s15276_s3 + $0x170] ss:$12 sps:$4 sm:$0xff]  }
  0x5d   :  { %1455 = vmatprep.subr.bf16.mxu1 %v9185_v20  ;;  %1527 = vmatpush1.bf16.msra.mxu0 %v9203_v23  ;;  %v9275_v20 = vld [vmem:[%s15276_s3 + $0xd8] ss:$12 sps:$4 sm:$0xff]   ;;  %v9279_v23 = vld [vmem:[%s15276_s3 + $0xc0] ss:$12 sps:$4 sm:$0xff]  }
  0x5e   :  { %1528 = vmatprep.subr.bf16.mxu0 %v9211_v24  ;;  %v9281_v24 = vld [vmem:[%s15277_s7 + $0xac] ss:$12 sps:$4 sm:$0xff]  }
  0x60   :  { %1456 = vmatpush1.bf16.msra.mxu1 %v9183_v22  ;;  %v9284_v22 = vld [vmem:[%s15276_s3 + $0x158] ss:$12 sps:$4 sm:$0xff]  }
  0x61   :  { %1457 = vmatprep.subr.bf16.mxu1 %v9188_v25  ;;  %1529 = vmatpush1.bf16.msra.mxu0 %v9209_v29  ;;  %v9288_v25 = vld [vmem:[%s15276_s3 + $0x140] ss:$12 sps:$4 sm:$0xff]   ;;  %v9287_v29 = vld [vmem:[%s15277_s7 + $0x90] ss:$12 sps:$4 sm:$0xff]  }
  0x62   :  { %660 = vmatmul.mubr.bf16.gmra.mxu0 %v10530_v51  ;;  %1530 = vmatprep.subr.bf16.mxu0 %v9216_v30  ;;  %v10793_v51 = vld [vmem:[%s15276_s3 + $0x60] ss:$12 sps:$4 sm:$0xff]   ;;  %v9289_v30 = vld [vmem:[%s15277_s7 + $0x7c] ss:$12 sps:$4 sm:$0xff]  }
  0x63   :  { %1429 = vmatmul.mubr.bf16.gmra.mxu1 %v10680_v26  ;;  %669 = vmatprep.mubr.bf16.mxu0 %v15288_v1 }
  0x64   :  { %1458 = vmatpush1.bf16.msra.mxu1 %v9186_v27  ;;  %1438 = vmatprep.mubr.bf16.mxu1 %v15288_v1  ;;  %v9285_v27 = vld [vmem:[%s15277_s7 + $0x94] ss:$12 sps:$4 sm:$0xff]  }
  0x65   :  { %1459 = vmatprep.subr.bf16.mxu1 %v9195_v28  ;;  %1531 = vmatpush1.bf16.msra.mxu0 %v9214_v33  ;;  %v9292_v28 = vld [vmem:[%s15276_s3 + $0x128] ss:$12 sps:$4 sm:$0xff]   ;;  %v9293_v33 = vld [vmem:[%s15277_s7 + $0x64] ss:$12 sps:$4 sm:$0xff]  }
  0x66   :  { %1532 = vmatprep.subr.bf16.mxu0 %v9222_v37  ;;  %v9304_v37 = vld [vmem:[%s15276_s3 + $0xe0] ss:$12 sps:$4 sm:$0xff]  }
  0x68   :  { %1460 = vmatpush1.bf16.msra.mxu1 %v9193_v31  ;;  %v9296_v31 = vld [vmem:[%s15276_s3 + $0x110] ss:$12 sps:$4 sm:$0xff]  }
  0x69   :  { %1461 = vmatprep.subr.bf16.mxu1 %v9201_v32  ;;  %1533 = vmatpush1.bf16.msra.mxu0 %v9220_v39  ;;  %v9291_v32 = vld [vmem:[%s15277_s7 + $0x78] ss:$12 sps:$4 sm:$0xff]   ;;  %v9301_v39 = vld [vmem:[%s15277_s7 + $0x34] ss:$12 sps:$4 sm:$0xff]  }
  0x6a   :  { %670 = vmatmul.mubr.bf16.gmra.mxu0 %v10563_v60  ;;  %1534 = vmatprep.subr.bf16.mxu0 %v9228_v40  ;;  %v10848_v60 = vld [vmem:[%s15276_s3 + $0x18] ss:$12 sps:$4 sm:$0xff]   ;;  %v9308_v40 = vld [vmem:[%s15276_s3 + $0xc8] ss:$12 sps:$4 sm:$0xff]  }
  0x6b   :  { %1439 = vmatmul.mubr.bf16.gmra.mxu1 %v10710_v34  ;;  %679 = vmatprep.mubr.bf16.mxu0 %v15288_v1 }
  0x6c   :  { %1462 = vmatpush1.bf16.msra.mxu1 %v9199_v35  ;;  %1481 = vmatprep.mubr.bf16.mxu1 %v15288_v1  ;;  %v9295_v35 = vld [vmem:[%s15277_s7 + $0x60] ss:$12 sps:$4 sm:$0xff]  }
  0x6d   :  { %1463 = vmatprep.subr.bf16.mxu1 %v9208_v36  ;;  %1535 = vmatpush1.bf16.msra.mxu0 %v9226_v44  ;;  %v9297_v36 = vld [vmem:[%s15277_s7 + $0x4c] ss:$12 sps:$4 sm:$0xff]   ;;  %v9303_v44 = vld [vmem:[%s15277_s7 + $0x30] ss:$12 sps:$4 sm:$0xff]  }
  0x6e   :  { %1536 = vmatprep.subr.bf16.mxu0 %v9234_v45  ;;  %v9305_v45 = vld [vmem:[%s15277_s7 + $0x1c] ss:$12 sps:$4 sm:$0xff]  }
  0x70   :  { %1464 = vmatpush1.bf16.msra.mxu1 %v9206_v38  ;;  %v9299_v38 = vld [vmem:[%s15277_s7 + $0x48] ss:$12 sps:$4 sm:$0xff]  }
  0x71   :  { %2096 = vmatprep.subr.bf16.mxu1 %v10737_v41  ;;  %1537 = vmatpush1.bf16.msra.mxu0 %v9232_v48  ;;  %v9315_v48 = vld [vmem:[%s15277_s7 + $0xb0] ss:$12 sps:$4 sm:$0xff]  }
  0x72   :  { %680 = vmatmul.mubr.bf16.gmra.mxu0 %v10596_v6  ;;  %8267 = vmatprep.subr.bf16.mxu0 %v15302_v53  ;;  %v9257_v6 = vld [vmem:[%s15276_s3 + $0x13c] ss:$12 sps:$4 sm:$0xff]  }
  0x73   :  { %1482 = vmatmul.mubr.bf16.vlgmr.msra.gmra.mxu1 %v10620_v10  ;;  %689 = vmatprep.mubr.bf16.mxu0 %v15288_v1 }
  0x74   :  { %2097 = vmatpush1.bf16.msra.mxu1 %v10742_v42  ;;  %1491 = vmatprep.mubr.bf16.mxu1 %v15288_v1 }
  0x75   :  { %2098 = vmatprep.subr.bf16.mxu1 %v10748_v43 }
  0x78   :  { %2099 = vmatpush1.bf16.msra.mxu1 %v10762_v46 }
  0x79   :  { %2100 = vmatprep.subr.bf16.mxu1 %v10770_v47 }
  0x7a   :  { %690 = vmatmul.mubr.bf16.gmra.mxu0 %v10611_v9  ;;  %v9261_v9 = vld [vmem:[%s15276_s3 + $0x124] ss:$12 sps:$4 sm:$0xff]  }
  0x7b   :  { %1492 = vmatmul.mubr.bf16.gmra.mxu1 %v10650_v18  ;;  %1554 = vmatprep.mubr.bf16.mxu0 %v15288_v1 }
  0x7c   :  { %2101 = vmatpush1.bf16.msra.mxu1 %v10779_v49  ;;  %1501 = vmatprep.mubr.bf16.mxu1 %v15288_v1 }
  0x7d   :  { %2102 = vmatprep.subr.bf16.mxu1 %v10785_v50 }
  0x80   :  { %2103 = vmatpush1.bf16.msra.mxu1 %v10793_v51 }
  0x81   :  { %2104 = vmatprep.subr.bf16.mxu1 %v10801_v52 }
  0x82   :  { %1555 = vmatmul.mubr.bf16.vlgmr.msra.gmra.mxu0 %v10620_v10  ;;  %v10921_v10 = vld [vmem:[%s15276_s3 + $0x38] ss:$12 sps:$4 sm:$0xff]  }
  0x83   :  { %1502 = vmatmul.mubr.bf16.gmra.mxu1 %v10680_v26  ;;  %1564 = vmatprep.mubr.bf16.mxu0 %v15288_v1 }
  0x84   :  { %2105 = vmatpush1.bf16.msra.mxu1 %v10808_v54  ;;  %1511 = vmatprep.mubr.bf16.mxu1 %v15288_v1 }
  0x85   :  { %2106 = vmatprep.subr.bf16.mxu1 %v10814_v55  ;;  %8268 = vmatpush3.bf16.msra.mxu0 %v10819_v56 }
  0x86   :  { %8269 = vmatprep.subr.bf16.mxu0 %v15302_v53 }
  0x88   :  { %2107 = vmatpush1.bf16.msra.mxu1 %v10827_v57 }
  0x89   :  { %2108 = vmatprep.subr.bf16.mxu1 %v10835_v58  ;;  %8270 = vmatpush3.bf16.msra.mxu0 %v10841_v59 }
  0x8a   :  { %1565 = vmatmul.mubr.bf16.gmra.mxu0 %v10650_v18  ;;  %8271 = vmatprep.subr.bf16.mxu0 %v15302_v53  ;;  %v9273_v18 = vld [vmem:[%s15276_s3 + $0xdc] ss:$12 sps:$4 sm:$0xff]  }
  0x8b   :  { %1512 = vmatmul.mubr.bf16.gmra.mxu1 %v10710_v34  ;;  %1574 = vmatprep.mubr.bf16.mxu0 %v15288_v1 }
  0x8c   :  { %2109 = vmatpush1.bf16.msra.mxu1 %v10848_v60  ;;  %2128 = vmatprep.mubr.bf16.mxu1 %v15288_v1 }
  0x8d   :  { %2110 = vmatprep.subr.bf16.mxu1 %v10854_v61  ;;  %8272 = vmatpush3.bf16.msra.mxu0 %v10862_v62 }
  0x8e   :  { %8273 = vmatprep.subr.bf16.mxu0 %v15302_v53 }
  0x90   :  { %2111 = vmatpush1.bf16.msra.mxu1 %v10868_v63 }
  0x91   :  { %2348 = vmatprep.subr.bf16.mxu1 %v10876_v0  ;;  %8274 = vmatpush3.bf16.msra.mxu0 %v10892_v4 }
  0x92   :  { %1575 = vmatmul.mubr.bf16.gmra.mxu0 %v10680_v26  ;;  %8275 = vmatprep.subr.bf16.mxu0 %v15302_v53  ;;  %v9283_v26 = vld [vmem:[%s15277_s7 + $0xa8] ss:$12 sps:$4 sm:$0xff]  }
  0x93   :  { %2129 = vmatmul.mubr.bf16.vlgmr.msra.gmra.mxu1 %v15288_v1  ;;  %1584 = vmatprep.mubr.bf16.mxu0 %v15288_v1 }
  0x94   :  { %2349 = vmatpush1.bf16.msra.mxu1 %v9251_v2  ;;  %2380 = vmatprep.mubr.bf16.mxu1 %v15288_v1  ;;  %v9307_v2 = vld [vmem:[%s15277_s7 + $0x18] ss:$12 sps:$4 sm:$0xff]  }
  0x95   :  { %2350 = vmatprep.subr.bf16.mxu1 %v9253_v3  ;;  %8276 = vmatpush3.bf16.msra.mxu0 %v10907_v7  ;;  %v9309_v3 = vld [vmem:[%s15277_s7 + $0x4] ss:$12 sps:$4 sm:$0xff]  }
  0x96   :  { %8277 = vmatprep.subr.bf16.mxu0 %v15302_v53 }
  0x98   :  { %2351 = vmatpush1.bf16.msra.mxu1 %v9255_v5  ;;  %v9319_v5 = vld [vmem:[%s15277_s7 + $0x98] ss:$12 sps:$4 sm:$0xff]  }
  0x99   :  { %2352 = vmatprep.subr.bf16.mxu1 %v9257_v6  ;;  %8278 = vmatpush3.bf16.msra.mxu0 %v10921_v10  ;;  %v9311_v6 = vld [vmem:[%s15277_s7] ss:$12 sps:$4 sm:$0xff]  }
  0x9a   :  { %1585 = vmatmul.mubr.bf16.gmra.mxu0 %v10710_v34  ;;  %8279 = vmatprep.subr.bf16.mxu0 %v15302_v53  ;;  %v9300_v34 = vld [vmem:[%s15276_s3 + $0xf8] ss:$12 sps:$4 sm:$0xff]  }
  0x9b   :  { %8283 = vmatprep.mubr.msk.bf16.mxu0 %vm10282_vm0, %v15302_v53 }
  0x9c   :  { %2353 = vmatpush1.bf16.msra.mxu1 %v9259_v8  ;;  %v9312_v8 = vld [vmem:[%s15277_s7 + $0x16c] ss:$12 sps:$4 sm:$0xff]  }
  0x9d   :  { %2354 = vmatprep.subr.bf16.mxu1 %v9261_v9  ;;  %8280 = vmatpush3.bf16.msra.mxu0 %v10937_v13  ;;  %v9323_v9 = vld [vmem:[%s15277_s7 + $0x80] ss:$12 sps:$4 sm:$0xff]  }
  0x9e   :  { %8281 = vmatprep.subr.bf16.mxu0 %v15302_v53 }
  0xa0   :  { %2355 = vmatpush1.bf16.msra.mxu1 %v9263_v11  ;;  %v9314_v11 = vld [vmem:[%s15277_s7 + $0x168] ss:$12 sps:$4 sm:$0xff]  }
  0xa1   :  { %2356 = vmatprep.subr.bf16.mxu1 %v9265_v12  ;;  %8282 = vmatpush3.bf16.msra.mxu0 %v10950_v16  ;;  %v9316_v12 = vld [vmem:[%s15277_s7 + $0x154] ss:$12 sps:$4 sm:$0xff]  }
  0xa2   :  { %8287 = vmatprep.subr.bf16.mxu0 %v15302_v53 }
  0xa4   :  { %2357 = vmatpush1.bf16.msra.mxu1 %v9267_v14  ;;  %8284 = vmatmul.mubr.bf16.vlgmr.msra.gmra.mxu0 %v15288_v1  ;;  %v9327_v14 = vld [vmem:[%s15277_s7 + $0x68] ss:$12 sps:$4 sm:$0xff]  }
  0xa5   :  { %2358 = vmatprep.subr.bf16.mxu1 %v9269_v15  ;;  %8288 = vmatpush3.bf16.msra.mxu0 %v9280_v19  ;;  %v9318_v15 = vld [vmem:[%s15277_s7 + $0x150] ss:$12 sps:$4 sm:$0xff]   ;;  %v115_v19 = vlaneseq }
  0xa6   :  { %8289 = vmatprep.subr.bf16.mxu0 %v15302_v53  ;;  %8303 = vmatprep.mubr.msk.bf16.mxu0 %vm10282_vm0, %v15302_v53 }
  0xa8   :  { %2359 = vmatpush1.bf16.msra.mxu1 %v9271_v17  ;;  %v9320_v17 = vld [vmem:[%s15277_s7 + $0x13c] ss:$12 sps:$4 sm:$0xff]  }
  0xa9   :  { %2360 = vmatprep.subr.bf16.mxu1 %v9273_v18  ;;  %8290 = vmatpush3.bf16.msra.mxu0 %v9284_v22  ;;  %v9331_v18 = vld [vmem:[%s15277_s7 + $0x50] ss:$12 sps:$4 sm:$0xff]   ;;  %v9335_v22 = vld [vmem:[%s15277_s7 + $0x38] ss:$12 sps:$4 sm:$0xff]  }
  0xaa   :  { %8291 = vmatprep.subr.bf16.mxu0 %v15302_v53 }
  0xac   :  { %2361 = vmatpush1.bf16.msra.mxu1 %v9275_v20  ;;  %v9322_v20 = vld [vmem:[%s15277_s7 + $0x138] ss:$12 sps:$4 sm:$0xff]  }
  0xad   :  { %2362 = vmatprep.subr.bf16.mxu1 %v9277_v21  ;;  %8292 = vmatpush3.bf16.msra.mxu0 %v9288_v25  ;;  %v9324_v21 = vld [vmem:[%s15277_s7 + $0x124] ss:$12 sps:$4 sm:$0xff]  }
  0xae   :  { %8293 = vmatprep.subr.bf16.mxu0 %v15302_v53 }
  0xb0   :  { %2363 = vmatpush1.bf16.msra.mxu1 %v9279_v23  ;;  %v11103_v23 = vshrl.u32 %v115_v19, 7 }
  0xb1   :  { %2599 = vmatprep.subr.bf16.mxu1 %v9281_v24  ;;  %8294 = vmatpush3.bf16.msra.mxu0 %v9292_v28  ;;  %v9326_v24 = vld [vmem:[%s15277_s7 + $0x120] ss:$12 sps:$4 sm:$0xff]  }
  0xb2   :  { %8295 = vmatprep.subr.bf16.mxu0 %v15302_v53  ;;  %v11110_v25 = vsub.s32 0, %v11103_v23  ;;  %v11119_v28 = vsub.s32 2, %v11103_v23 }
  0xb3   :  { %2381 = vmatmul.mubr.bf16.vlgmr.msra.gmra.mxu1 %v15288_v1 }
  0xb4   :  { %2600 = vmatpush1.bf16.msra.mxu1 %v9283_v26  ;;  %2631 = vmatprep.mubr.bf16.mxu1 %v15288_v1  ;;  %15569 = vst [vmem:[#allocation5_spill] sm:$0xff] %v11110_v25  ;;  %v9328_v26 = vld [vmem:[%s15277_s7 + $0x10c] ss:$12 sps:$4 sm:$0xff]  }
  0xb5   :  { %2601 = vmatprep.subr.bf16.mxu1 %v9285_v27  ;;  %8296 = vmatpush3.bf16.msra.mxu0 %v9296_v31  ;;  %v9339_v27 = vld [vmem:[%s15277_s7 + $0x20] ss:$12 sps:$4 sm:$0xff]  }
  0xb6   :  { %8297 = vmatprep.subr.bf16.mxu0 %v15302_v53  ;;  %v11129_v31 = vld [vmem:[%s15278_s4] sm:$0x3f] }
  0xb8   :  { %2602 = vmatpush1.bf16.msra.mxu1 %v9287_v29  ;;  %v11122_v29 = vsub.s32 1, %v11103_v23 }
  0xb9   :  { %2603 = vmatprep.subr.bf16.mxu1 %v9289_v30  ;;  %8298 = vmatpush3.bf16.msra.mxu0 %v9300_v34  ;;  %v129_v30 = vsub.s32 3, %v11103_v23  ;;  %v9332_v34 = vld [vmem:[%s15277_s7 + $0xf4] ss:$12 sps:$4 sm:$0xff]  }
  0xba   :  { %8299 = vmatprep.subr.bf16.mxu0 %v15302_v53  ;;  %15570 = vst [vmem:[#allocation6_spill] sm:$0xff] %v11122_v29 }
  0xbc   :  { %2604 = vmatpush1.bf16.msra.mxu1 %v9291_v32  ;;  %v11133_v32 = vrot.slane %v11129_v31, %v11110_v25 }
  0xbd   :  { %2605 = vmatprep.subr.bf16.mxu1 %v9293_v33  ;;  %8300 = vmatpush3.bf16.msra.mxu0 %v9304_v37  ;;  %v9330_v33 = vld [vmem:[%s15277_s7 + $0x108] ss:$12 sps:$4 sm:$0xff]   ;;  %v11150_v37 = vrot.slane %v11129_v31, %v11122_v29 }
  0xbe   :  { %8301 = vmatprep.subr.bf16.mxu0 %v15302_v53 }
  0xc0   :  { %2606 = vmatpush1.bf16.msra.mxu1 %v9295_v35  ;;  %v9343_v35 = vld [vmem:[%s15277_s7 + $0x8] ss:$12 sps:$4 sm:$0xff]  }
  0xc1   :  { %2607 = vmatprep.subr.bf16.mxu1 %v9297_v36  ;;  %8302 = vmatpush3.bf16.msra.mxu0 %v9308_v40  ;;  %v11146_v36 = vrot.slane %v11129_v31, %v11119_v28 }
  0xc2   :  { %8307 = vmatprep.subr.bf16.mxu0 %v15302_v53 }
  0xc4   :  { %2608 = vmatpush1.bf16.msra.mxu1 %v9299_v38  ;;  %8304 = vmatmul.mubr.bf16.vlgmr.msra.gmra.mxu0 %v15288_v1  ;;  %v11155_v38 = vrot.slane %v11129_v31, %v129_v30 }
  0xc5   :  { %2609 = vmatprep.subr.bf16.mxu1 %v9301_v39  ;;  %8308 = vmatpush3.bf16.msra.mxu0 %v9315_v48 }
  0xc6   :  { %8309 = vmatprep.subr.bf16.mxu0 %v15302_v53  ;;  %8323 = vmatprep.mubr.msk.bf16.mxu0 %vm10282_vm0, %v15302_v53 }
  0xc8   :  { %2610 = vmatpush1.bf16.msra.mxu1 %v9303_v44 }
  0xc9   :  { %2611 = vmatprep.subr.bf16.mxu1 %v9305_v45  ;;  %8310 = vmatpush3.bf16.msra.mxu0 %v9319_v5  ;;  %v9334_v45 = vld [vmem:[%s15277_s7 + $0xf0] ss:$12 sps:$4 sm:$0xff]  }
  0xca   :  { %8311 = vmatprep.subr.bf16.mxu0 %v15302_v53 }
  0xcc   :  { %2612 = vmatpush1.bf16.msra.mxu1 %v9307_v2 }
  0xcd   :  { %2613 = vmatprep.subr.bf16.mxu1 %v9309_v3  ;;  %8312 = vmatpush3.bf16.msra.mxu0 %v9323_v9  ;;  %v9336_v3 = vld [vmem:[%s15277_s7 + $0xdc] ss:$12 sps:$4 sm:$0xff]  }
  0xce   :  { %8313 = vmatprep.subr.bf16.mxu0 %v15302_v53  ;;  %v9344_v9 = vld [vmem:[%s15277_s7 + $0x170] ss:$12 sps:$4 sm:$0xff]  }
  0xd0   :  { %2614 = vmatpush1.bf16.msra.mxu1 %v9311_v6 }
  0xd1   :  { %2851 = vmatprep.subr.bf16.mxu1 %v9312_v8  ;;  %8314 = vmatpush3.bf16.msra.mxu0 %v9327_v14 }
  0xd2   :  { %8315 = vmatprep.subr.bf16.mxu0 %v15302_v53 }
  0xd3   :  { %2632 = vmatmul.mubr.bf16.vlgmr.msra.gmra.mxu1 %v15288_v1 }
  0xd4   :  { %2852 = vmatpush1.bf16.msra.mxu1 %v9314_v11  ;;  %2883 = vmatprep.mubr.bf16.mxu1 %v15288_v1 }
  0xd5   :  { %2853 = vmatprep.subr.bf16.mxu1 %v9316_v12  ;;  %8316 = vmatpush3.bf16.msra.mxu0 %v9331_v18  ;;  %v9338_v18 = vld [vmem:[%s15277_s7 + $0xd8] ss:$12 sps:$4 sm:$0xff]  }
  0xd6   :  { %8317 = vmatprep.subr.bf16.mxu0 %v15302_v53 }
  0xd8   :  { %2854 = vmatpush1.bf16.msra.mxu1 %v9318_v15 }
  0xd9   :  { %2855 = vmatprep.subr.bf16.mxu1 %v9320_v17  ;;  %8318 = vmatpush3.bf16.msra.mxu0 %v9335_v22 }
  0xda   :  { %8319 = vmatprep.subr.bf16.mxu0 %v15302_v53 }
  0xdc   :  { %2856 = vmatpush1.bf16.msra.mxu1 %v9322_v20 }
  0xdd   :  { %2857 = vmatprep.subr.bf16.mxu1 %v9324_v21  ;;  %8320 = vmatpush3.bf16.msra.mxu0 %v9339_v27  ;;  %v9340_v21 = vld [vmem:[%s15277_s7 + $0xc4] ss:$12 sps:$4 sm:$0xff]  }
  0xde   :  { %8321 = vmatprep.subr.bf16.mxu0 %v15302_v53  ;;  %v9345_v27 = vld [vmem:[%s15277_s7 + $0x158] ss:$12 sps:$4 sm:$0xff]  }
  0xe0   :  { %2858 = vmatpush1.bf16.msra.mxu1 %v9326_v24 }
  0xe1   :  { %2859 = vmatprep.subr.bf16.mxu1 %v9328_v26  ;;  %8322 = vmatpush3.bf16.msra.mxu0 %v9343_v35 }
  0xe2   :  { %v455_v39 = vpop.f32.mrf.mxu0  ;;  %8327 = vmatprep.subr.bf16.mxu0 %v15302_v53 }
  0xe3   :  { %v548_v40 = vpop.f32.mrf.mxu1  ;;  %v456_v44 = vadd.f32 %v455_v39, %v11133_v32 }
  0xe4   :  { %2860 = vmatpush1.bf16.msra.mxu1 %v9330_v33  ;;  %v457_v48 = vpop.f32.mrf.mxu0  ;;  %v549_v5 = vadd.f32 %v548_v40, %v11146_v36  ;;  %8324 = vmatmul.mubr.bf16.vlgmr.msra.gmra.mxu0 %v15288_v1 }
  0xe5   :  { %v550_v2 = vpop.f32.mrf.mxu1  ;;  %2861 = vmatprep.subr.bf16.mxu1 %v9332_v34  ;;  %v458_v6 = vadd.f32 %v457_v48, %v11150_v37  ;;  %8328 = vmatpush3.bf16.msra.mxu0 %v9344_v9 }
  0xe6   :  { %v551_v8 = vadd.f32 %v550_v2, %v11155_v38  ;;  %v459_v11 = vpop.f32.mrf.mxu0  ;;  %8343 = vmatprep.mubr.msk.bf16.mxu0 %vm10282_vm0, %v15302_v53  ;;  %8329 = vmatprep.subr.bf16.mxu0 %v15302_v53 }
  0xe7   :  { %v552_v12 = vpop.f32.mrf.mxu1  ;;  %v11172_v14 = vpack.c.bf16 %v458_v6, %v456_v44  ;;  %v460_v17 = vadd.f32 %v459_v11, %v11133_v32  ;;  %v9342_v44 = vld [vmem:[%s15277_s7 + $0xc0] ss:$12 sps:$4 sm:$0xff]  }
  0xe8   :  { %v7848_v15 = vpack.c.bf16 %v551_v8, %v549_v5  ;;  %2862 = vmatpush1.bf16.msra.mxu1 %v9334_v45  ;;  %v461_v19 = vpop.f32.mrf.mxu0  ;;  %v553_v22 = vadd.f32 %v552_v12, %v11146_v36  ;;  %v9346_v6 = vld [vmem:[%s15277_s7 + $0x140] ss:$12 sps:$4 sm:$0xff]  }
  0xe9   :  { %v554_v20 = vpop.f32.mrf.mxu1  ;;  %2863 = vmatprep.subr.bf16.mxu1 %v9336_v3  ;;  %v462_v24 = vadd.f32 %v461_v19, %v11150_v37  ;;  %8330 = vmatpush3.bf16.msra.mxu0 %v9345_v27 }
  0xea   :  { %989 = vst [vmem:[#allocation2 + $0x8] sm:$0xff] %v7848_v15  ;;  %v555_v26 = vadd.f32 %v554_v20, %v11155_v38  ;;  %v465_v33 = vpop.f32.mrf.mxu0  ;;  %8331 = vmatprep.subr.bf16.mxu0 %v15302_v53 }
  0xeb   :  { %v558_v34 = vpop.f32.mrf.mxu1  ;;  %v7850_v35 = vpack.c.bf16 %v462_v24, %v460_v17  ;;  %v466_v40 = vadd.f32 %v465_v33, %v11133_v32 }
  0xec   :  { %v7851_v39 = vpack.c.bf16 %v555_v26, %v553_v22  ;;  %2864 = vmatpush1.bf16.msra.mxu1 %v9338_v18  ;;  %v467_v45 = vpop.f32.mrf.mxu0  ;;  %v559_v2 = vadd.f32 %v558_v34, %v11146_v36  ;;  %v9347_v22 = vld [vmem:[%s15277_s7 + $0x128] ss:$12 sps:$4 sm:$0xff]  }
  0xed   :  { %v560_v48 = vpop.f32.mrf.mxu1  ;;  %2865 = vmatprep.subr.bf16.mxu1 %v9340_v21  ;;  %991 = vst [vmem:[#allocation2 + $0x18] sm:$0xff] %v7850_v35  ;;  %v468_v3 = vadd.f32 %v467_v45, %v11150_v37  ;;  %8332 = vmatpush3.bf16.msra.mxu0 %v9346_v6  ;;  %v9348_v45 = vld [vmem:[%s15277_s7 + $0x110] ss:$12 sps:$4 sm:$0xff]  }
  0xee   :  { %992 = vst [vmem:[#allocation2 + $0x20] sm:$0xff] %v7851_v39  ;;  %v561_v5 = vadd.f32 %v560_v48, %v11155_v38  ;;  %v469_v8 = vpop.f32.mrf.mxu0  ;;  %8333 = vmatprep.subr.bf16.mxu0 %v15302_v53 }
  0xef   :  { %v562_v9 = vpop.f32.mrf.mxu1  ;;  %v7853_v11 = vpack.c.bf16 %v468_v3, %v466_v40  ;;  %v470_v15 = vadd.f32 %v469_v8, %v11133_v32 }
  0xf0   :  { %v7854_v12 = vpack.c.bf16 %v561_v5, %v559_v2  ;;  %2866 = vmatpush1.bf16.msra.mxu1 %v9342_v44  ;;  %v471_v17 = vpop.f32.mrf.mxu0  ;;  %v563_v19 = vadd.f32 %v562_v9, %v11146_v36 }
  0xf1   :  { %v564_v18 = vpop.f32.mrf.mxu1  ;;  %2960 = vmatprep.subr.bf16.mxu1 %v10737_v41  ;;  %994 = vst [vmem:[#allocation2 + $0x30] sm:$0xff] %v7853_v11  ;;  %v472_v20 = vadd.f32 %v471_v17, %v11150_v37  ;;  %8334 = vmatpush3.bf16.msra.mxu0 %v9347_v22 }
  0xf2   :  { %995 = vst [vmem:[#allocation2 + $0x38] sm:$0xff] %v7854_v12  ;;  %v565_v21 = vadd.f32 %v564_v18, %v11155_v38  ;;  %v475_v24 = vpop.f32.mrf.mxu0  ;;  %8335 = vmatprep.subr.bf16.mxu0 %v15302_v53  ;;  %v9349_v12 = vld [vmem:[%s15277_s7 + $0xf8] ss:$12 sps:$4 sm:$0xff]  }
  0xf3   :  { %2884 = vmatmul.mubr.bf16.vlgmr.msra.gmra.mxu1 %v15288_v1  ;;  %v568_v26 = vpop.f32.mrf.mxu1  ;;  %v7856_v41 = vpack.c.bf16 %v472_v20, %v470_v15  ;;  %v476_v33 = vadd.f32 %v475_v24, %v11133_v32 }
  0xf4   :  { %v7857_v27 = vpack.c.bf16 %v565_v21, %v563_v19  ;;  %2961 = vmatpush1.bf16.msra.mxu1 %v10742_v42  ;;  %v477_v34 = vpop.f32.mrf.mxu0  ;;  %2992 = vmatprep.mubr.bf16.mxu1 %v15288_v1  ;;  %v569_v39 = vadd.f32 %v568_v26, %v11146_v36  ;;  %v9350_v26 = vld [vmem:[%s15277_s7 + $0xe0] ss:$12 sps:$4 sm:$0xff]  }
  0xf5   :  { %v570_v35 = vpop.f32.mrf.mxu1  ;;  %2962 = vmatprep.subr.bf16.mxu1 %v10748_v43  ;;  %997 = vst [vmem:[#allocation2 + $0x48] sm:$0xff] %v7856_v41  ;;  %v478_v40 = vadd.f32 %v477_v34, %v11150_v37  ;;  %8336 = vmatpush3.bf16.msra.mxu0 %v9348_v45  ;;  %v9351_v45 = vld [vmem:[%s15277_s7 + $0xc8] ss:$12 sps:$4 sm:$0xff]  }
  0xf6   :  { %998 = vst [vmem:[#allocation2 + $0x50] sm:$0xff] %v7857_v27  ;;  %v571_v44 = vadd.f32 %v570_v35, %v11155_v38  ;;  %v479_v42 = vpop.f32.mrf.mxu0  ;;  %8337 = vmatprep.subr.bf16.mxu0 %v15302_v53 }
  0xf7   :  { %v572_v48 = vpop.f32.mrf.mxu1  ;;  %v7859_v43 = vpack.c.bf16 %v478_v40, %v476_v33  ;;  %v480_v3 = vadd.f32 %v479_v42, %v11133_v32 }
  0xf8   :  { %v7860_v2 = vpack.c.bf16 %v571_v44, %v569_v39  ;;  %2963 = vmatpush1.bf16.msra.mxu1 %v10762_v46  ;;  %v481_v5 = vpop.f32.mrf.mxu0  ;;  %v573_v8 = vadd.f32 %v572_v48, %v11146_v36 }
  0xf9   :  { %v574_v6 = vpop.f32.mrf.mxu1  ;;  %2964 = vmatprep.subr.bf16.mxu1 %v10770_v47  ;;  %1000 = vst [vmem:[#allocation2 + $0x60] sm:$0xff] %v7859_v43  ;;  %v482_v9 = vadd.f32 %v481_v5, %v11150_v37  ;;  %8338 = vmatpush3.bf16.msra.mxu0 %v9349_v12 }
  0xfa   :  { %1001 = vst [vmem:[#allocation2 + $0x68] sm:$0xff] %v7860_v2  ;;  %v575_v11 = vadd.f32 %v574_v6, %v11155_v38  ;;  %v485_v15 = vpop.f32.mrf.mxu0  ;;  %8339 = vmatprep.subr.bf16.mxu0 %v15302_v53 }
  0xfb   :  { %v578_v17 = vpop.f32.mrf.mxu1  ;;  %v7862_v46 = vpack.c.bf16 %v482_v9, %v480_v3  ;;  %v486_v47 = vadd.f32 %v485_v15, %v11133_v32 }
  0xfc   :  { %v7863_v18 = vpack.c.bf16 %v575_v11, %v573_v8  ;;  %2965 = vmatpush1.bf16.msra.mxu1 %v10779_v49  ;;  %v487_v19 = vpop.f32.mrf.mxu0  ;;  %v579_v21 = vadd.f32 %v578_v17, %v11146_v36 }
  0xfd   :  { %v580_v20 = vpop.f32.mrf.mxu1  ;;  %2966 = vmatprep.subr.bf16.mxu1 %v10785_v50  ;;  %1003 = vst [vmem:[#allocation2 + $0x78] sm:$0xff] %v7862_v46  ;;  %v488_v22 = vadd.f32 %v487_v19, %v11150_v37  ;;  %8340 = vmatpush3.bf16.msra.mxu0 %v9350_v26 }
  0xfe   :  { %1004 = vst [vmem:[#allocation2 + $0x80] sm:$0xff] %v7863_v18  ;;  %v581_v24 = vadd.f32 %v580_v20, %v11155_v38  ;;  %v489_v41 = vpop.f32.mrf.mxu0  ;;  %8341 = vmatprep.subr.bf16.mxu0 %v15302_v53 }
  0xff   :  { %v582_v27 = vpop.f32.mrf.mxu1  ;;  %v7865_v49 = vpack.c.bf16 %v488_v22, %v486_v47  ;;  %v490_v50 = vadd.f32 %v489_v41, %v11133_v32  ;;  %v133_v22 = vsub.s32 4, %v11103_v23 }
 0x100   :  { %v7866_v33 = vpack.c.bf16 %v581_v24, %v579_v21  ;;  %2967 = vmatpush1.bf16.msra.mxu1 %v10793_v51  ;;  %v491_v34 = vpop.f32.mrf.mxu0  ;;  %v583_v39 = vadd.f32 %v582_v27, %v11146_v36 }
 0x101   :  { %v584_v35 = vpop.f32.mrf.mxu1  ;;  %2968 = vmatprep.subr.bf16.mxu1 %v10801_v52  ;;  %1006 = vst [vmem:[#allocation2 + $0x90] sm:$0xff] %v7865_v49  ;;  %v492_v40 = vadd.f32 %v491_v34, %v11150_v37  ;;  %8342 = vmatpush3.bf16.msra.mxu0 %v9351_v45  ;;  %v11281_v49 = vld [vmem:[%s15279_s8] sm:$0x3f] }
 0x102   :  { %1007 = vst [vmem:[#allocation2 + $0x98] sm:$0xff] %v7866_v33  ;;  %v585_v44 = vadd.f32 %v584_v35, %v11155_v38  ;;  %v495_v42 = vpop.f32.mrf.mxu0  ;;  %8347 = vmatprep.subr.bf16.mxu0 %v15302_v53  ;;  %v137_v33 = vsub.s32 5, %v11103_v23  ;;  %v11299_v45 = vrot.slane %v11281_v49, %v11122_v29 }
 0x103   :  { %v588_v48 = vpop.f32.mrf.mxu1  ;;  %v7868_v51 = vpack.c.bf16 %v492_v40, %v490_v50  ;;  %v496_v52 = vadd.f32 %v495_v42, %v11133_v32 }
 0x104   :  { %v7869_v43 = vpack.c.bf16 %v585_v44, %v583_v39  ;;  %2969 = vmatpush1.bf16.msra.mxu1 %v10808_v54  ;;  %v497_v2 = vpop.f32.mrf.mxu0  ;;  %v589_v5 = vadd.f32 %v588_v48, %v11146_v36  ;;  %8344 = vmatmul.mubr.bf16.vlgmr.msra.gmra.mxu0 %v15288_v1  ;;  %v11290_v39 = vrot.slane %v11129_v31, %v133_v22 }
 0x105   :  { %v590_v3 = vpop.f32.mrf.mxu1  ;;  %2970 = vmatprep.subr.bf16.mxu1 %v10814_v55  ;;  %1009 = vst [vmem:[#allocation2 + $0xa8] sm:$0xff] %v7868_v51  ;;  %v498_v6 = vadd.f32 %v497_v2, %v11150_v37  ;;  %8348 = vmatpush3.bf16.msra.mxu0 %v10819_v56  ;;  %v11308_v48 = vrot.slane %v11129_v31, %v137_v33 }
 0x106   :  { %1010 = vst [vmem:[#allocation2 + $0xb0] sm:$0xff] %v7869_v43  ;;  %v591_v8 = vadd.f32 %v590_v3, %v11155_v38  ;;  %v499_v9 = vpop.f32.mrf.mxu0  ;;  %8363 = vmatprep.mubr.msk.bf16.mxu0 %vm10282_vm0, %v15302_v53  ;;  %8349 = vmatprep.subr.bf16.mxu0 %v15302_v53 }
 0x107   :  { %v592_v11 = vpop.f32.mrf.mxu1  ;;  %v7871_v12 = vpack.c.bf16 %v498_v6, %v496_v52  ;;  %v500_v54 = vadd.f32 %v499_v9, %v11133_v32 }
 0x108   :  { %v7872_v15 = vpack.c.bf16 %v591_v8, %v589_v5  ;;  %2971 = vmatpush1.bf16.msra.mxu1 %v10827_v57  ;;  %v501_v55 = vpop.f32.mrf.mxu0  ;;  %v593_v46 = vadd.f32 %v592_v11, %v11146_v36 }
 0x109   :  { %v594_v17 = vpop.f32.mrf.mxu1  ;;  %2972 = vmatprep.subr.bf16.mxu1 %v10835_v58  ;;  %1012 = vst [vmem:[#allocation2 + $0xc0] sm:$0xff] %v7871_v12  ;;  %v502_v18 = vadd.f32 %v501_v55, %v11150_v37  ;;  %8350 = vmatpush3.bf16.msra.mxu0 %v10841_v59  ;;  %v11295_v59 = vrot.slane %v11281_v49, %v11110_v25 }
 0x10a   :  { %1013 = vst [vmem:[#allocation2 + $0xc8] sm:$0xff] %v7872_v15  ;;  %v595_v47 = vadd.f32 %v594_v17, %v11155_v38  ;;  %v505_v57 = vpop.f32.mrf.mxu0  ;;  %8351 = vmatprep.subr.bf16.mxu0 %v15302_v53 }
 0x10b   :  { %v598_v19 = vpop.f32.mrf.mxu1  ;;  %v7874_v20 = vpack.c.bf16 %v502_v18, %v500_v54  ;;  %v506_v58 = vadd.f32 %v505_v57, %v11133_v32 }
 0x10c   :  { %v7875_v21 = vpack.c.bf16 %v595_v47, %v593_v46  ;;  %2973 = vmatpush1.bf16.msra.mxu1 %v10848_v60  ;;  %v507_v24 = vpop.f32.mrf.mxu0  ;;  %v599_v56 = vadd.f32 %v598_v19, %v11146_v36 }
 0x10d   :  { %v600_v26 = vpop.f32.mrf.mxu1  ;;  %2974 = vmatprep.subr.bf16.mxu1 %v10854_v61  ;;  %1015 = vst [vmem:[#allocation2 + $0xd8] sm:$0xff] %v7874_v20  ;;  %v508_v41 = vadd.f32 %v507_v24, %v11150_v37  ;;  %8352 = vmatpush3.bf16.msra.mxu0 %v10862_v62 }
 0x10e   :  { %1016 = vst [vmem:[#allocation2 + $0xe0] sm:$0xff] %v7875_v21  ;;  %v601_v27 = vadd.f32 %v600_v26, %v11155_v38  ;;  %v509_v60 = vpop.f32.mrf.mxu0  ;;  %8353 = vmatprep.subr.bf16.mxu0 %v15302_v53 }
 0x10f   :  { %v602_v50 = vpop.f32.mrf.mxu1  ;;  %v7877_v61 = vpack.c.bf16 %v508_v41, %v506_v58  ;;  %v510_v35 = vadd.f32 %v509_v60, %v11133_v32 }
 0x110   :  { %v7878_v34 = vpack.c.bf16 %v601_v27, %v599_v56  ;;  %2975 = vmatpush1.bf16.msra.mxu1 %v10868_v63  ;;  %v511_v40 = vpop.f32.mrf.mxu0  ;;  %v603_v32 = vadd.f32 %v602_v50, %v11146_v36 }
 0x111   :  { %v604_v44 = vpop.f32.mrf.mxu1  ;;  %3069 = vmatprep.subr.bf16.mxu1 %v10876_v0  ;;  %1018 = vst [vmem:[#allocation2 + $0xf0] sm:$0xff] %v7877_v61  ;;  %v512_v42 = vadd.f32 %v511_v40, %v11150_v37  ;;  %8354 = vmatpush3.bf16.msra.mxu0 %v10892_v4 }
 0x112   :  { %1019 = vst [vmem:[#allocation2 + $0xf8] sm:$0xff] %v7878_v34  ;;  %v605_v63 = vadd.f32 %v604_v44, %v11155_v38  ;;  %v641_v51 = vpop.f32.mrf.mxu0  ;;  %8355 = vmatprep.subr.bf16.mxu0 %v15302_v53 }
 0x113   :  { %v1410_v43 = vpop.f32.mrf.mxu1  ;;  %v7880_v0 = vpack.c.bf16 %v512_v42, %v510_v35  ;;  %v642_v2 = vadd.f32 %v641_v51, %v11290_v39 }
 0x114   :  { %v7881_v52 = vpack.c.bf16 %v605_v63, %v603_v32  ;;  %v643_v36 = vpop.f32.mrf.mxu0  ;;  %v1411_v37 = vadd.f32 %v1410_v43, %v11295_v59 }
 0x115   :  { %v1412_v3 = vpop.f32.mrf.mxu1  ;;  %1021 = vst [vmem:[#allocation2 + $0x108] sm:$0xff] %v7880_v0  ;;  %v644_v38 = vadd.f32 %v643_v36, %v11308_v48  ;;  %8356 = vmatpush3.bf16.msra.mxu0 %v10907_v7 }
 0x116   :  { %1022 = vst [vmem:[#allocation2 + $0x110] sm:$0xff] %v7881_v52  ;;  %v1413_v31 = vadd.f32 %v1412_v3, %v11299_v45  ;;  %v645_v62 = vpop.f32.mrf.mxu0  ;;  %8357 = vmatprep.subr.bf16.mxu0 %v15302_v53 }
 0x117   :  { %v1414_v5 = vpop.f32.mrf.mxu1  ;;  %v7849_v6 = vpack.c.bf16 %v644_v38, %v642_v2  ;;  %v646_v9 = vadd.f32 %v645_v62, %v11290_v39 }
 0x118   :  { %v11318_v8 = vpack.c.bf16 %v1413_v31, %v1411_v37  ;;  %v647_v11 = vpop.f32.mrf.mxu0  ;;  %v1415_v15 = vadd.f32 %v1414_v5, %v11295_v59 }
 0x119   :  { %v1416_v12 = vpop.f32.mrf.mxu1  ;;  %990 = vst [vmem:[#allocation2 + $0x10] sm:$0xff] %v7849_v6  ;;  %v648_v54 = vadd.f32 %v647_v11, %v11308_v48  ;;  %8358 = vmatpush3.bf16.msra.mxu0 %v10921_v10 }
 0x11a   :  { %v1417_v55 = vadd.f32 %v1416_v12, %v11299_v45  ;;  %v651_v4 = vpop.f32.mrf.mxu0  ;;  %8359 = vmatprep.subr.bf16.mxu0 %v15302_v53 }
 0x11b   :  { %v1420_v17 = vpop.f32.mrf.mxu1  ;;  %v7852_v46 = vpack.c.bf16 %v648_v54, %v646_v9  ;;  %v652_v47 = vadd.f32 %v651_v4, %v11290_v39 }
 0x11c   :  { %v7886_v18 = vpack.c.bf16 %v1417_v55, %v1415_v15  ;;  %v653_v57 = vpop.f32.mrf.mxu0  ;;  %v1421_v20 = vadd.f32 %v1420_v17, %v11295_v59 }
 0x11d   :  { %v1422_v19 = vpop.f32.mrf.mxu1  ;;  %993 = vst [vmem:[#allocation2 + $0x28] sm:$0xff] %v7852_v46  ;;  %v654_v21 = vadd.f32 %v653_v57, %v11308_v48  ;;  %8360 = vmatpush3.bf16.msra.mxu0 %v10937_v13 }
 0x11e   :  { %1790 = vst [vmem:[#allocation3 + $0x18] sm:$0xff] %v7886_v18  ;;  %v1423_v58 = vadd.f32 %v1422_v19, %v11299_v45  ;;  %v655_v7 = vpop.f32.mrf.mxu0  ;;  %8361 = vmatprep.subr.bf16.mxu0 %v15302_v53 }
 0x11f   :  { %v1424_v24 = vpop.f32.mrf.mxu1  ;;  %v7855_v26 = vpack.c.bf16 %v654_v21, %v652_v47  ;;  %v656_v41 = vadd.f32 %v655_v7, %v11290_v39 }
 0x120   :  { %v7889_v56 = vpack.c.bf16 %v1423_v58, %v1421_v20  ;;  %v657_v27 = vpop.f32.mrf.mxu0  ;;  %v1425_v50 = vadd.f32 %v1424_v24, %v11295_v59  ;;  %v11355_v58 = vrot.slane %v11281_v49, %v11119_v28 }
 0x121   :  { %v1426_v60 = vpop.f32.mrf.mxu1  ;;  %996 = vst [vmem:[#allocation2 + $0x40] sm:$0xff] %v7855_v26  ;;  %v658_v61 = vadd.f32 %v657_v27, %v11308_v48  ;;  %8362 = vmatpush3.bf16.msra.mxu0 %v10950_v16 }
 0x122   :  { %1793 = vst [vmem:[#allocation3 + $0x30] sm:$0xff] %v7889_v56  ;;  %v1427_v34 = vadd.f32 %v1426_v60, %v11299_v45  ;;  %v661_v10 = vpop.f32.mrf.mxu0  ;;  %8367 = vmatprep.subr.bf16.mxu0 %v15302_v53  ;;  %v11363_v56 = vrot.slane %v11281_v49, %v129_v30 }
 0x123   :  { %v1430_v35 = vpop.f32.mrf.mxu1  ;;  %v7858_v40 = vpack.c.bf16 %v658_v61, %v656_v41  ;;  %v662_v32 = vadd.f32 %v661_v10, %v11290_v39 }
 0x124   :  { %v7892_v44 = vpack.c.bf16 %v1427_v34, %v1425_v50  ;;  %v663_v42 = vpop.f32.mrf.mxu0  ;;  %v1431_v51 = vadd.f32 %v1430_v35, %v11295_v59 }
 0x125   :  { %v1432_v63 = vpop.f32.mrf.mxu1  ;;  %999 = vst [vmem:[#allocation2 + $0x58] sm:$0xff] %v7858_v40  ;;  %v664_v43 = vadd.f32 %v663_v42, %v11308_v48 }
 0x126   :  { %1796 = vst [vmem:[#allocation3 + $0x48] sm:$0xff] %v7892_v44  ;;  %v1433_v0 = vadd.f32 %v1432_v63, %v11299_v45  ;;  %v665_v13 = vpop.f32.mrf.mxu0 }
 0x127   :  { %v1434_v52 = vpop.f32.mrf.mxu1  ;;  %v7861_v2 = vpack.c.bf16 %v664_v43, %v662_v32  ;;  %v666_v3 = vadd.f32 %v665_v13, %v11290_v39 }
 0x128   :  { %v7895_v36 = vpack.c.bf16 %v1433_v0, %v1431_v51  ;;  %v667_v37 = vpop.f32.mrf.mxu0  ;;  %v1435_v31 = vadd.f32 %v1434_v52, %v11295_v59 }
 0x129   :  { %v1436_v38 = vpop.f32.mrf.mxu1  ;;  %1002 = vst [vmem:[#allocation2 + $0x70] sm:$0xff] %v7861_v2  ;;  %v668_v62 = vadd.f32 %v667_v37, %v11308_v48 }
 0x12a   :  { %1799 = vst [vmem:[#allocation3 + $0x60] sm:$0xff] %v7895_v36  ;;  %v1437_v5 = vadd.f32 %v1436_v38, %v11299_v45  ;;  %v671_v6 = vpop.f32.mrf.mxu0 }
 0x12b   :  { %v1440_v16 = vpop.f32.mrf.mxu1  ;;  %v7864_v9 = vpack.c.bf16 %v668_v62, %v666_v3  ;;  %v672_v12 = vadd.f32 %v671_v6, %v11290_v39 }
 0x12c   :  { %v7898_v11 = vpack.c.bf16 %v1437_v5, %v1435_v31  ;;  %v673_v15 = vpop.f32.mrf.mxu0  ;;  %v1441_v55 = vadd.f32 %v1440_v16, %v11295_v59 }
 0x12d   :  { %v1442_v54 = vpop.f32.mrf.mxu1  ;;  %1005 = vst [vmem:[#allocation2 + $0x88] sm:$0xff] %v7864_v9  ;;  %v674_v4 = vadd.f32 %v673_v15, %v11308_v48 }
 0x12e   :  { %1802 = vst [vmem:[#allocation3 + $0x78] sm:$0xff] %v7898_v11  ;;  %v1443_v17 = vadd.f32 %v1442_v54, %v11299_v45  ;;  %v675_v46 = vpop.f32.mrf.mxu0  ;;  %v11381_v54 = vrot.slane %v11281_v49, %v133_v22 }
 0x12f   :  { %v1444_v18 = vpop.f32.mrf.mxu1  ;;  %v7867_v47 = vpack.c.bf16 %v674_v4, %v672_v12  ;;  %v676_v19 = vadd.f32 %v675_v46, %v11290_v39 }
 0x130   :  { %v7901_v57 = vpack.c.bf16 %v1443_v17, %v1441_v55  ;;  %v677_v20 = vpop.f32.mrf.mxu0  ;;  %v1445_v7 = vadd.f32 %v1444_v18, %v11295_v59 }
 0x131   :  { %v1446_v21 = vpop.f32.mrf.mxu1  ;;  %1008 = vst [vmem:[#allocation2 + $0xa0] sm:$0xff] %v7867_v47  ;;  %v678_v24 = vadd.f32 %v677_v20, %v11308_v48  ;;  %v11389_v47 = vrot.slane %v11281_v49, %v137_v33 }
 0x132   :  { %1805 = vst [vmem:[#allocation3 + $0x90] sm:$0xff] %v7901_v57  ;;  %v1447_v26 = vadd.f32 %v1446_v21, %v11299_v45  ;;  %v681_v41 = vpop.f32.mrf.mxu0 }
 0x133   :  { %v1483_v27 = vpop.f32.mrf.mxu1  ;;  %v7870_v60 = vpack.c.bf16 %v678_v24, %v676_v19  ;;  %v682_v61 = vadd.f32 %v681_v41, %v11290_v39 }
 0x134   :  { %v7904_v50 = vpack.c.bf16 %v1447_v26, %v1445_v7  ;;  %v683_v34 = vpop.f32.mrf.mxu0  ;;  %v1484_v59 = vadd.f32 %v1483_v27, %v11355_v58 }
 0x135   :  { %v1485_v10 = vpop.f32.mrf.mxu1  ;;  %1011 = vst [vmem:[#allocation2 + $0xb8] sm:$0xff] %v7870_v60  ;;  %v684_v35 = vadd.f32 %v683_v34, %v11308_v48 }
 0x136   :  { %1808 = vst [vmem:[#allocation3 + $0xa8] sm:$0xff] %v7904_v50  ;;  %v1486_v45 = vadd.f32 %v1485_v10, %v11363_v56  ;;  %v685_v40 = vpop.f32.mrf.mxu0 }
 0x137   :  { %v1487_v44 = vpop.f32.mrf.mxu1  ;;  %v7873_v30 = vpack.c.bf16 %v684_v35, %v682_v61  ;;  %v686_v42 = vadd.f32 %v685_v40, %v11290_v39 }
 0x138   :  { %v7884_v32 = vpack.c.bf16 %v1486_v45, %v1484_v59  ;;  %v687_v63 = vpop.f32.mrf.mxu0  ;;  %v1488_v43 = vadd.f32 %v1487_v44, %v11355_v58 }
 0x139   :  { %v1489_v51 = vpop.f32.mrf.mxu1  ;;  %1014 = vst [vmem:[#allocation2 + $0xd0] sm:$0xff] %v7873_v30  ;;  %v688_v0 = vadd.f32 %v687_v63, %v11308_v48 }
 0x13a   :  { %1788 = vst [vmem:[#allocation3 + $0x8] sm:$0xff] %v7884_v32  ;;  %v1490_v13 = vadd.f32 %v1489_v51, %v11363_v56  ;;  %v691_v52 = vpop.f32.mrf.mxu0 }
 0x13b   :  { %v1493_v2 = vpop.f32.mrf.mxu1  ;;  %v7876_v36 = vpack.c.bf16 %v688_v0, %v686_v42  ;;  %v692_v37 = vadd.f32 %v691_v52, %v11290_v39  ;;  %v11403_v42 = vld [vmem:[%s15280_s5] sm:$0x7] }
 0x13c   :  { %v7887_v3 = vpack.c.bf16 %v1490_v13, %v1488_v43  ;;  %v693_v38 = vpop.f32.mrf.mxu0  ;;  %v1494_v62 = vadd.f32 %v1493_v2, %v11355_v58 }
 0x13d   :  { %v1495_v31 = vpop.f32.mrf.mxu1  ;;  %1017 = vst [vmem:[#allocation2 + $0xe8] sm:$0xff] %v7876_v36  ;;  %v694_v5 = vadd.f32 %v693_v38, %v11308_v48 }
 0x13e   :  { %1791 = vst [vmem:[#allocation3 + $0x20] sm:$0xff] %v7887_v3  ;;  %v1496_v6 = vadd.f32 %v1495_v31, %v11363_v56  ;;  %v695_v16 = vpop.f32.mrf.mxu0  ;;  %v11411_v3 = vrot.slane %v11403_v42, %v11110_v25 }
 0x13f   :  { %v1497_v9 = vpop.f32.mrf.mxu1  ;;  %v7879_v11 = vpack.c.bf16 %v694_v5, %v692_v37  ;;  %v696_v15 = vadd.f32 %v695_v16, %v11290_v39  ;;  %v1949_v16 = vunpack.c.l.bf16 %v11172_v14 }
 0x140   :  { %v7890_v12 = vpack.c.bf16 %v1496_v6, %v1494_v62  ;;  %v697_v55 = vpop.f32.mrf.mxu0  ;;  %v1498_v17 = vadd.f32 %v1497_v9, %v11355_v58  ;;  %15571 = vst [vmem:[#allocation7_spill] sm:$0xff] %v11411_v3 }
 0x141   :  { %v1499_v4 = vpop.f32.mrf.mxu1  ;;  %1020 = vst [vmem:[#allocation2 + $0x100] sm:$0xff] %v7879_v11  ;;  %v698_v46 = vadd.f32 %v697_v55, %v11308_v48  ;;  %v11419_v11 = vrot.slane %v11403_v42, %v11122_v29 }
 0x142   :  { %1794 = vst [vmem:[#allocation3 + $0x38] sm:$0xff] %v7890_v12  ;;  %v1500_v18 = vadd.f32 %v1499_v4, %v11363_v56  ;;  %v1556_v57 = vpop.f32.mrf.mxu0 }
 0x143   :  { %v1503_v39 = vpop.f32.mrf.mxu1  ;;  %v7882_v19 = vpack.c.bf16 %v698_v46, %v696_v15  ;;  %v1557_v20 = vadd.f32 %v1556_v57, %v11381_v54  ;;  %15572 = vst [vmem:[#allocation8_spill] sm:$0xff] %v11419_v11 }
 0x144   :  { %v7893_v22 = vpack.c.bf16 %v1500_v18, %v1498_v17  ;;  %v1558_v7 = vpop.f32.mrf.mxu0  ;;  %v1504_v24 = vadd.f32 %v1503_v39, %v11355_v58 }
 0x145   :  { %v1505_v21 = vpop.f32.mrf.mxu1  ;;  %1023 = vst [vmem:[#allocation2 + $0x118] sm:$0xff] %v7882_v19  ;;  %v1559_v26 = vadd.f32 %v1558_v7, %v11389_v47 }
 0x146   :  { %1797 = vst [vmem:[#allocation3 + $0x50] sm:$0xff] %v7893_v22  ;;  %v1506_v48 = vadd.f32 %v1505_v21, %v11363_v56  ;;  %v1560_v41 = vpop.f32.mrf.mxu0 }
 0x147   :  { %v1507_v23 = vpop.f32.mrf.mxu1  ;;  %v7885_v33 = vpack.c.bf16 %v1559_v26, %v1557_v20  ;;  %v1561_v27 = vadd.f32 %v1560_v41, %v11381_v54 }
 0x148   :  { %v7896_v49 = vpack.c.bf16 %v1506_v48, %v1504_v24  ;;  %v1562_v50 = vpop.f32.mrf.mxu0  ;;  %v1508_v61 = vadd.f32 %v1507_v23, %v11355_v58  ;;  %v1950_v24 = vunpack.c.h.bf16 %v11172_v14 }
 0x149   :  { %v1509_v60 = vpop.f32.mrf.mxu1  ;;  %1789 = vst [vmem:[#allocation3 + $0x10] sm:$0xff] %v7885_v33  ;;  %v1563_v10 = vadd.f32 %v1562_v50, %v11389_v47 }
 0x14a   :  { %1800 = vst [vmem:[#allocation3 + $0x68] sm:$0xff] %v7896_v49  ;;  %v1510_v34 = vadd.f32 %v1509_v60, %v11363_v56  ;;  %v1566_v35 = vpop.f32.mrf.mxu0 }
 0x14b   :  { %v1513_v59 = vpop.f32.mrf.mxu1  ;;  %v7888_v40 = vpack.c.bf16 %v1563_v10, %v1561_v27  ;;  %v1567_v44 = vadd.f32 %v1566_v35, %v11381_v54 }
 0x14c   :  { %v7899_v45 = vpack.c.bf16 %v1510_v34, %v1508_v61  ;;  %v1568_v32 = vpop.f32.mrf.mxu0  ;;  %v1514_v63 = vadd.f32 %v1513_v59, %v11355_v58 }
 0x14d   :  { %v1515_v30 = vpop.f32.mrf.mxu1  ;;  %1792 = vst [vmem:[#allocation3 + $0x28] sm:$0xff] %v7888_v40  ;;  %v1569_v43 = vadd.f32 %v1568_v32, %v11389_v47  ;;  %v7572_v32 = vld [vmem:[%s15280_s5 + $0x3] sm:$0x7] }
 0x14e   :  { %1803 = vst [vmem:[#allocation3 + $0x80] sm:$0xff] %v7899_v45  ;;  %v1516_v51 = vadd.f32 %v1515_v30, %v11363_v56  ;;  %v1570_v13 = vpop.f32.mrf.mxu0 }
 0x14f   :  { %v1517_v0 = vpop.f32.mrf.mxu1  ;;  %v7891_v2 = vpack.c.bf16 %v1569_v43, %v1567_v44  ;;  %v1571_v36 = vadd.f32 %v1570_v13, %v11381_v54  ;;  %v2199_v43 = vld [vmem:[#allocation2 + $0x114] sm:$0xff]  ;;  %v11443_v13 = vrot.slane %v7572_v32, %v11122_v29 }
 0x150   :  { %v7902_v52 = vpack.c.bf16 %v1516_v51, %v1514_v63  ;;  %v1572_v38 = vpop.f32.mrf.mxu0  ;;  %v1518_v31 = vadd.f32 %v1517_v0, %v11355_v58 }
 0x151   :  { %v1519_v37 = vpop.f32.mrf.mxu1  ;;  %1795 = vst [vmem:[#allocation3 + $0x40] sm:$0xff] %v7891_v2  ;;  %v1573_v5 = vadd.f32 %v1572_v38, %v11389_v47  ;;  %v11445_v2 = vld [vmem:[#allocation2 + $0x8] ss:$276 sps:$4 sm:$0xff]  }
 0x152   :  { %1806 = vst [vmem:[#allocation3 + $0x98] sm:$0xff] %v7902_v52  ;;  %v1520_v62 = vadd.f32 %v1519_v37, %v11363_v56  ;;  %v1576_v6 = vpop.f32.mrf.mxu0  ;;  %v2201_v37 = vunpack.c.l.bf16 %v2199_v43 }
 0x153   :  { %v2130_v9 = vpop.f32.mrf.mxu1  ;;  %v7894_v15 = vpack.c.bf16 %v1573_v5, %v1571_v36  ;;  %v1577_v55 = vadd.f32 %v1576_v6, %v11381_v54  ;;  %v1951_v5 = vunpack.c.l.bf16 %v11445_v2 }
 0x154   :  { %v7905_v12 = vpack.c.bf16 %v1520_v62, %v1518_v31  ;;  %v2131_v4 = vadd.f32 %v2130_v9, %v11411_v3  ;;  %v1578_v17 = vpop.f32.mrf.mxu0 }
 0x155   :  { %v2132_v58 = vpop.f32.mrf.mxu1  ;;  %1798 = vst [vmem:[#allocation3 + $0x58] sm:$0xff] %v7894_v15  ;;  %v1579_v46 = vadd.f32 %v1578_v17, %v11389_v47 }
 0x156   :  { %1809 = vst [vmem:[#allocation3 + $0xb0] sm:$0xff] %v7905_v12  ;;  %v2177_v56 = vadd.f32 %v2131_v4, %v1949_v16  ;;  %v1580_v18 = vpop.f32.mrf.mxu0  ;;  %v2133_v22 = vadd.f32 %v2132_v58, %v11419_v11  ;;  %v2202_v4 = vunpack.c.h.bf16 %v2199_v43 }
 0x157   :  { %v2134_v39 = vpop.f32.mrf.mxu1  ;;  %v7897_v19 = vpack.c.bf16 %v1579_v46, %v1577_v55  ;;  %v1581_v20 = vadd.f32 %v1580_v18, %v11381_v54 }
 0x158   :  { %v7630_v57 = vmul.f32 -1.442695, %v2177_v56  ;;  %v1582_v21 = vpop.f32.mrf.mxu0  ;;  %v2184_v23 = vadd.f32 %v2133_v22, %v1950_v24 }
 0x159   :  { %v2135_v7 = vpop.f32.mrf.mxu1  ;;  %1801 = vst [vmem:[#allocation3 + $0x70] sm:$0xff] %v7897_v19  ;;  %v1583_v48 = vadd.f32 %v1582_v21, %v11389_v47 }
 0x15a   :  { %9448 = vpow2.f32 %v7630_v57  ;;  %v1586_v26 = vpop.f32.mrf.mxu0  ;;  %v7631_v50 = vmul.f32 -1.442695, %v2184_v23 }
 0x15b   :  { %v7900_v41 = vpack.c.bf16 %v1583_v48, %v1581_v20  ;;  %v1587_v49 = vadd.f32 %v1586_v26, %v11381_v54  ;;  %v11456_v48 = vld [vmem:[%s15281_s9] sm:$0x7] }
 0x15c   :  { %v1588_v33 = vpop.f32.mrf.mxu0  ;;  %9450 = vpow2.f32 %v7631_v50  ;;  %v11482_v50 = vld [vmem:[%s15276_s3 + $0x154] ss:$12 sps:$4 sm:$0xff]  }
 0x15d   :  { %1804 = vst [vmem:[#allocation3 + $0x88] sm:$0xff] %v7900_v41  ;;  %v1589_v27 = vadd.f32 %v1588_v33, %v11389_v47  ;;  %v11461_v41 = vrot.slane %v7572_v32, %v11119_v28 }
 0x15e   :  { %v1590_v60 = vpop.f32.mrf.mxu0 }
 0x15f   :  { %v7903_v61 = vpack.c.bf16 %v1589_v27, %v1587_v49  ;;  %v1591_v34 = vadd.f32 %v1590_v60, %v11381_v54  ;;  %v11437_v54 = vrot.slane %v11403_v42, %v11119_v28  ;;  %v11465_v49 = vrot.slane %v11456_v48, %v11110_v25  ;;  %v11470_v27 = vld [vmem:[%s15276_s3 + $0x168] ss:$12 sps:$4 sm:$0xff]   ;;  %v11476_v60 = vld [vmem:[%s15276_s3 + $0x170] ss:$12 sps:$4 sm:$0xff]  }
 0x160   :  { %v1592_v10 = vpop.f32.mrf.mxu0 }
 0x161   :  { %1807 = vst [vmem:[#allocation3 + $0xa0] sm:$0xff] %v7903_v61  ;;  %v1593_v14 = vadd.f32 %v1592_v10, %v11389_v47  ;;  %15573 = vst [vmem:[#allocation9_spill] sm:$0xff] %v11437_v54  ;;  %v11440_v47 = vrot.slane %v7572_v32, %v11110_v25  ;;  %v11511_v32 = vld [vmem:[%s15276_s3 + $0x13c] ss:$12 sps:$4 sm:$0xff]  }
 0x163   :  { %v7906_v59 = vpack.c.bf16 %v1593_v14, %v1591_v34  ;;  %15574 = vst [vmem:[#allocation10_spill] sm:$0xff] %v11440_v47  ;;  %v11488_v34 = vrot.slane %v11456_v48, %v11122_v29 }
 0x164   :  { %v2171_v40 = vpop.f32.mrf.mxu0 }
 0x165   :  { %1810 = vst [vmem:[#allocation3 + $0xb8] sm:$0xff] %v7906_v59  ;;  %v2172_v36 = vadd.f32 %v2171_v40, %v11437_v54  ;;  %v2452_v59 = vunpack.c.l.bf16 %v11318_v8  ;;  %v11499_v40 = vld [vmem:[%s15276_s3 + $0x150] ss:$12 sps:$4 sm:$0xff]  }
 0x166   :  { %v8285_v44 = vpop.f32.mrf.mxu0 }
 0x167   :  { %v9449_v35 = vpop.eup %9448  ;;  %v11505_v44 = vld [vmem:[%s15276_s3 + $0x158] ss:$12 sps:$4 sm:$0xff]  }
 0x168   :  { %v2181_v45 = vadd.f32 1.0, %v9449_v35  ;;  %v2174_v30 = vpop.f32.mrf.mxu0 }
 0x169   :  { %v9451_v51 = vpop.eup %9450 }
 0x16a   :  { %9452 = vrcp.f32 %v2181_v45  ;;  %v8286_v63 = vpop.f32.mrf.mxu0  ;;  %v2188_v52 = vadd.f32 1.0, %v9451_v51  ;;  %v2203_v51 = vunpack.c.h.bf16 %v11445_v2 }
 0x16c   :  { %9454 = vrcp.f32 %v2188_v52 }
 0x173   :  { %v2382_v0 = vpop.f32.mrf.mxu1 }
 0x174   :  { %v2383_v38 = vadd.f32 %v2382_v0, %v11440_v47 }
 0x175   :  { %v2384_v31 = vpop.f32.mrf.mxu1 }
 0x176   :  { %v2429_v42 = vadd.f32 %v2383_v38, %v2201_v37  ;;  %v2385_v12 = vadd.f32 %v2384_v31, %v11443_v13  ;;  %v11520_v37 = vld [vmem:[%s15276_s3 + $0x138] ss:$12 sps:$4 sm:$0xff]   ;;  %v11526_v38 = vld [vmem:[%s15276_s3 + $0x140] ss:$12 sps:$4 sm:$0xff]  }
 0x177   :  { %v9453_v62 = vpop.eup %9452  ;;  %v2386_v6 = vpop.f32.mrf.mxu1 }
 0x178   :  { %v2191_v16 = vmul.f32 %v9453_v62, %v2172_v36  ;;  %v7656_v9 = vmul.f32 -1.442695, %v2429_v42  ;;  %v2436_v17 = vadd.f32 %v2385_v12, %v2202_v4  ;;  %v2453_v42 = vunpack.c.h.bf16 %v11318_v8  ;;  %v11533_v62 = vld [vmem:[%s15276_s3 + $0x124] ss:$12 sps:$4 sm:$0xff]   ;;  %v11540_v6 = vld [vmem:[%s15276_s3 + $0x120] ss:$12 sps:$4 sm:$0xff]  }
 0x179   :  { %v2387_v15 = vpop.f32.mrf.mxu1  ;;  %v9455_v56 = vpop.eup %9454  ;;  %v11546_v8 = vld [vmem:[%s15276_s3 + $0x128] ss:$12 sps:$4 sm:$0xff]  }
 0x17a   :  { %v2192_v55 = vadd.f32 %v2191_v16, %v1951_v5  ;;  %9456 = vpow2.f32 %v7656_v9  ;;  %v7657_v58 = vmul.f32 -1.442695, %v2436_v17  ;;  %v2194_v57 = vsub.f32 1.0, %v9455_v56  ;;  %v11552_v16 = vld [vmem:[%s15276_s3 + $0x10c] ss:$12 sps:$4 sm:$0xff]  }
 0x17b   :  { %v2196_v20 = vmul.f32 0.0, %v9455_v56  ;;  %v11559_v12 = vld [vmem:[%s15276_s3 + $0x108] ss:$12 sps:$4 sm:$0xff]   ;;  %v11565_v15 = vld [vmem:[%s15276_s3 + $0x110] ss:$12 sps:$4 sm:$0xff]  }
 0x17c   :  { %9458 = vtanh.f32 %v2192_v55  ;;  %v11571_v55 = vld [vmem:[%s15276_s3 + $0xf4] ss:$12 sps:$4 sm:$0xff]   ;;  %v11578_v17 = vld [vmem:[%s15276_s3 + $0xf0] ss:$12 sps:$4 sm:$0xff]  }
 0x17d   :  { %9460 = vpow2.f32 %v7657_v58  ;;  %v11584_v58 = vld [vmem:[%s15276_s3 + $0xf8] ss:$12 sps:$4 sm:$0xff]   ;;  %v11590_v56 = vld [vmem:[%s15276_s3 + $0xdc] ss:$12 sps:$4 sm:$0xff]  }
 0x184   :  { %v2423_v39 = vpop.f32.mrf.mxu0 }
 0x185   :  { %v2424_v14 = vadd.f32 %v2423_v39, %v11461_v41 }
 0x186   :  { %v8305_v21 = vpop.f32.mrf.mxu0 }
 0x187   :  { %v9457_v46 = vpop.eup %9456  ;;  %v11609_v21 = vld [vmem:[%s15276_s3 + $0xc4] ss:$12 sps:$4 sm:$0xff]  }
 0x188   :  { %v2433_v18 = vadd.f32 1.0, %v9457_v46  ;;  %v2426_v24 = vpop.f32.mrf.mxu0 }
 0x189   :  { %v9459_v19 = vpop.eup %9458 }
 0x18a   :  { %9462 = vrcp.f32 %v2433_v18  ;;  %v2195_v22 = vmul.f32 %v9459_v19, %v2194_v57  ;;  %v8306_v23 = vpop.f32.mrf.mxu0  ;;  %v9461_v33 = vpop.eup %9460  ;;  %v11597_v19 = vld [vmem:[%s15276_s3 + $0xd8] ss:$12 sps:$4 sm:$0xff]  }
 0x18b   :  { %v2440_v10 = vadd.f32 1.0, %v9461_v33 }
 0x18c   :  { %v11451_v7 = vadd.f32 %v2196_v20, %v2195_v22  ;;  %v11603_v22 = vld [vmem:[%s15276_s3 + $0xe0] ss:$12 sps:$4 sm:$0xff]  }
 0x18d   :  { %9464 = vrcp.f32 %v2440_v10  ;;  %v11624_v10 = vld [vmem:[%s15276_s3 + $0xc8] ss:$12 sps:$4 sm:$0xff]  }
 0x18e   :  { %v2959_v26 = vpack.c.bf16 %v11451_v7, %v11451_v7 }
 0x190   :  { %2993 = vmatmul.mubr.bf16.vlgmr.msra.gmra.mxu1 %v2959_v26  ;;  %8364 = vmatmul.mubr.bf16.vlgmr.msra.gmra.mxu0 %v2959_v26 }
 0x191   :  { %3070 = vmatpush1.bf16.msra.mxu1 %v11470_v27  ;;  %8368 = vmatpush3.bf16.msra.mxu0 %v11476_v60 }
 0x192   :  { %3071 = vmatprep.subr.bf16.mxu1 %v11482_v50  ;;  %8369 = vmatprep.subr.bf16.mxu0 %v15302_v53 }
 0x193   :  { %v2633_v61 = vpop.f32.mrf.mxu1  ;;  %3101 = vmatprep.mubr.bf16.mxu1 %v15288_v1  ;;  %8383 = vmatprep.mubr.msk.bf16.mxu0 %vm10282_vm0, %v15302_v53 }
 0x194   :  { %v2634_v35 = vadd.f32 %v2633_v61, %v11465_v49  ;;  %v11618_v61 = vld [vmem:[%s15276_s3 + $0xc0] ss:$12 sps:$4 sm:$0xff]  }
 0x195   :  { %v2635_v45 = vpop.f32.mrf.mxu1  ;;  %3072 = vmatpush1.bf16.msra.mxu1 %v11499_v40  ;;  %8370 = vmatpush3.bf16.msra.mxu0 %v11505_v44 }
 0x196   :  { %v2680_v30 = vadd.f32 %v2634_v35, %v2452_v59  ;;  %3073 = vmatprep.subr.bf16.mxu1 %v11511_v32  ;;  %8371 = vmatprep.subr.bf16.mxu0 %v15302_v53  ;;  %v2636_v36 = vadd.f32 %v2635_v45, %v11488_v34  ;;  %v11637_v45 = vld [vmem:[%s15277_s7 + $0xac] ss:$12 sps:$4 sm:$0xff]  }
 0x197   :  { %v9463_v63 = vpop.eup %9462  ;;  %v2637_v43 = vpop.f32.mrf.mxu1 }
 0x198   :  { %v2443_v0 = vmul.f32 %v9463_v63, %v2424_v14  ;;  %v7682_v52 = vmul.f32 -1.442695, %v2680_v30  ;;  %v2687_v5 = vadd.f32 %v2636_v36, %v2453_v42  ;;  %v11630_v14 = vld [vmem:[%s15281_s9 + $0x3] sm:$0x7]  ;;  %v2702_v36 = vld [vmem:[#allocation3 + $0xb4] sm:$0xff] }
 0x199   :  { %3074 = vmatpush1.bf16.msra.mxu1 %v11520_v37  ;;  %8372 = vmatpush3.bf16.msra.mxu0 %v11526_v38  ;;  %v2638_v2 = vpop.f32.mrf.mxu1  ;;  %v11643_v63 = vrot.slane %v11630_v14, %v11110_v25 }
 0x19a   :  { %v2444_v31 = vadd.f32 %v2443_v0, %v2203_v51  ;;  %9466 = vpow2.f32 %v7682_v52  ;;  %3075 = vmatprep.subr.bf16.mxu1 %v11533_v62  ;;  %8373 = vmatprep.subr.bf16.mxu0 %v15302_v53  ;;  %v7683_v9 = vmul.f32 -1.442695, %v2687_v5  ;;  %v9465_v4 = vpop.eup %9464  ;;  %v11647_v51 = vrot.slane %v11456_v48, %v11119_v28  ;;  %v11652_v0 = vld [vmem:[%s15277_s7 + $0xa8] ss:$12 sps:$4 sm:$0xff]   ;;  %v11658_v52 = vld [vmem:[%s15277_s7 + $0xb0] ss:$12 sps:$4 sm:$0xff]  }
 0x19b   :  { %v2446_v39 = vsub.f32 1.0, %v9465_v4  ;;  %v2448_v26 = vmul.f32 0.0, %v9465_v4  ;;  %v11664_v48 = vld [vmem:[%s15277_s7 + $0x94] ss:$12 sps:$4 sm:$0xff]   ;;  %v2704_v5 = vunpack.c.l.bf16 %v2702_v36  ;;  %v11676_v4 = vld [vmem:[#allocation3 + $0x8] ss:$180 sps:$4 sm:$0xff]  }
 0x19c   :  { %9468 = vtanh.f32 %v2444_v31  ;;  %15575 = vst [vmem:[#allocation11_spill] sm:$0xff] %v11647_v51  ;;  %v11670_v31 = vrot.slane %v11630_v14, %v11122_v29 }
 0x19d   :  { %3076 = vmatpush1.bf16.msra.mxu1 %v11540_v6  ;;  %8374 = vmatpush3.bf16.msra.mxu0 %v11546_v8  ;;  %9470 = vpow2.f32 %v7683_v9 }
 0x19e   :  { %3077 = vmatprep.subr.bf16.mxu1 %v11552_v16  ;;  %8375 = vmatprep.subr.bf16.mxu0 %v15302_v53  ;;  %15576 = vst [vmem:[#allocation12_spill] sm:$0xff] %v11670_v31 }
 0x1a1   :  { %3078 = vmatpush1.bf16.msra.mxu1 %v11559_v12  ;;  %8376 = vmatpush3.bf16.msra.mxu0 %v11565_v15 }
 0x1a2   :  { %3079 = vmatprep.subr.bf16.mxu1 %v11571_v55  ;;  %8377 = vmatprep.subr.bf16.mxu0 %v15302_v53 }
 0x1a4   :  { %v2674_v20 = vpop.f32.mrf.mxu0 }
 0x1a5   :  { %3080 = vmatpush1.bf16.msra.mxu1 %v11578_v17  ;;  %8378 = vmatpush3.bf16.msra.mxu0 %v11584_v58 }
 0x1a6   :  { %3081 = vmatprep.subr.bf16.mxu1 %v11590_v56  ;;  %8379 = vmatprep.subr.bf16.mxu0 %v15302_v53  ;;  %v8325_v23 = vpop.f32.mrf.mxu0 }
 0x1a7   :  { %v9467_v46 = vpop.eup %9466  ;;  %v2454_v23 = vunpack.c.l.bf16 %v11676_v4 }
 0x1a8   :  { %v2684_v18 = vadd.f32 1.0, %v9467_v46  ;;  %v2677_v59 = vpop.f32.mrf.mxu0  ;;  %v2675_v46 = vadd.f32 %v2674_v20, %v11647_v51  ;;  %v11694_v20 = vld [vmem:[%s15277_s7 + $0x7c] ss:$12 sps:$4 sm:$0xff]  }
 0x1a9   :  { %v9469_v57 = vpop.eup %9468  ;;  %3082 = vmatpush1.bf16.msra.mxu1 %v11597_v19  ;;  %8380 = vmatpush3.bf16.msra.mxu0 %v11603_v22 }
 0x1aa   :  { %9472 = vrcp.f32 %v2684_v18  ;;  %3083 = vmatprep.subr.bf16.mxu1 %v11609_v21  ;;  %8381 = vmatprep.subr.bf16.mxu0 %v15302_v53  ;;  %v2447_v24 = vmul.f32 %v9469_v57, %v2446_v39  ;;  %v8326_v30 = vpop.f32.mrf.mxu0  ;;  %v9471_v43 = vpop.eup %9470  ;;  %v11682_v39 = vld [vmem:[%s15277_s7 + $0x90] ss:$12 sps:$4 sm:$0xff]   ;;  %v11688_v57 = vld [vmem:[%s15277_s7 + $0x98] ss:$12 sps:$4 sm:$0xff]  }
 0x1ab   :  { %v2691_v42 = vadd.f32 1.0, %v9471_v43 }
 0x1ac   :  { %v11613_v33 = vadd.f32 %v2448_v26, %v2447_v24 }
 0x1ad   :  { %3084 = vmatpush1.bf16.msra.mxu1 %v11618_v61  ;;  %8382 = vmatpush3.bf16.msra.mxu0 %v11624_v10  ;;  %9474 = vrcp.f32 %v2691_v42 }
 0x1ae   :  { %v3068_v35 = vpack.c.bf16 %v11613_v33, %v11613_v33  ;;  %3178 = vmatprep.subr.bf16.mxu1 %v11637_v45  ;;  %8387 = vmatprep.subr.bf16.mxu0 %v15302_v53 }
 0x1b0   :  { %3102 = vmatmul.mubr.bf16.vlgmr.msra.gmra.mxu1 %v3068_v35  ;;  %8384 = vmatmul.mubr.bf16.vlgmr.msra.gmra.mxu0 %v3068_v35 }
 0x1b1   :  { %3179 = vmatpush1.bf16.msra.mxu1 %v11652_v0  ;;  %8388 = vmatpush3.bf16.msra.mxu0 %v11658_v52 }
 0x1b2   :  { %3180 = vmatprep.subr.bf16.mxu1 %v11664_v48  ;;  %8389 = vmatprep.subr.bf16.mxu0 %v15302_v53 }
 0x1b3   :  { %v2885_v2 = vpop.f32.mrf.mxu1  ;;  %3210 = vmatprep.mubr.bf16.mxu1 %v15288_v1  ;;  %8403 = vmatprep.mubr.msk.bf16.mxu0 %vm10282_vm0, %v15302_v53 }
 0x1b4   :  { %v2886_v9 = vadd.f32 %v2885_v2, %v11643_v63  ;;  %v11703_v2 = vld [vmem:[%s15277_s7 + $0x78] ss:$12 sps:$4 sm:$0xff]  }
 0x1b5   :  { %v2887_v18 = vpop.f32.mrf.mxu1  ;;  %3181 = vmatpush1.bf16.msra.mxu1 %v11682_v39  ;;  %8390 = vmatpush3.bf16.msra.mxu0 %v11688_v57  ;;  %15577 = vst [vmem:[#allocation13_spill] sm:$0xff] %v11703_v2 }
 0x1b6   :  { %v2932_v24 = vadd.f32 %v2886_v9, %v2704_v5  ;;  %3182 = vmatprep.subr.bf16.mxu1 %v11694_v20  ;;  %8391 = vmatprep.subr.bf16.mxu0 %v15302_v53  ;;  %v2888_v43 = vadd.f32 %v2887_v18, %v11670_v31  ;;  %v11709_v5 = vld [vmem:[%s15277_s7 + $0x80] ss:$12 sps:$4 sm:$0xff]   ;;  %v11715_v18 = vld [vmem:[%s15277_s7 + $0x64] ss:$12 sps:$4 sm:$0xff]  }
 0x1b7   :  { %v9473_v26 = vpop.eup %9472  ;;  %v2889_v59 = vpop.f32.mrf.mxu1  ;;  %15578 = vst [vmem:[#allocation14_spill] sm:$0xff] %v11709_v5  ;;  %15579 = vst [vmem:[#allocation15_spill] sm:$0xff] %v11715_v18 }
 0x1b8   :  { %v7708_v35 = vmul.f32 -1.442695, %v2932_v24  ;;  %v2694_v30 = vmul.f32 %v9473_v26, %v2675_v46  ;;  %v2705_v46 = vunpack.c.h.bf16 %v2702_v36  ;;  %v11722_v26 = vld [vmem:[%s15277_s7 + $0x60] ss:$12 sps:$4 sm:$0xff]   ;;  %v11728_v36 = vld [vmem:[%s15277_s7 + $0x68] ss:$12 sps:$4 sm:$0xff]  }
 0x1b9   :  { %3183 = vmatpush1.bf16.msra.mxu1 %v11703_v2  ;;  %8392 = vmatpush3.bf16.msra.mxu0 %v11709_v5  ;;  %v2890_v9 = vpop.f32.mrf.mxu1  ;;  %15580 = vst [vmem:[#allocation16_spill] sm:$0xff] %v11722_v26  ;;  %15581 = vst [vmem:[#allocation17_spill] sm:$0xff] %v11728_v36 }
 0x1ba   :  { %9476 = vpow2.f32 %v7708_v35  ;;  %v2695_v42 = vadd.f32 %v2694_v30, %v2454_v23  ;;  %3184 = vmatprep.subr.bf16.mxu1 %v11715_v18  ;;  %8393 = vmatprep.subr.bf16.mxu0 %v15302_v53  ;;  %v2939_v24 = vadd.f32 %v2888_v43, %v2705_v46  ;;  %v11734_v23 = vld [vmem:[%s15277_s7 + $0x4c] ss:$12 sps:$4 sm:$0xff]   ;;  %v11741_v35 = vld [vmem:[%s15277_s7 + $0x48] ss:$12 sps:$4 sm:$0xff]   ;;  %v11747_v30 = vld [vmem:[%s15277_s7 + $0x50] ss:$12 sps:$4 sm:$0xff]   ;;  %v9475_v9 = vpop.eup %9474 }
 0x1bb   :  { %15582 = vst [vmem:[#allocation18_spill] sm:$0xff] %v11734_v23  ;;  %15583 = vst [vmem:[#allocation19_spill] sm:$0xff] %v11741_v35  ;;  %v11753_v43 = vld [vmem:[%s15277_s7 + $0x34] ss:$12 sps:$4 sm:$0xff]   ;;  %v11766_v46 = vld [vmem:[%s15277_s7 + $0x38] ss:$12 sps:$4 sm:$0xff]  }
 0x1bc   :  { %9478 = vtanh.f32 %v2695_v42  ;;  %v7709_v59 = vmul.f32 -1.442695, %v2939_v24  ;;  %15584 = vst [vmem:[#allocation20_spill] sm:$0xff] %v11747_v30  ;;  %15585 = vst [vmem:[#allocation21_spill] sm:$0xff] %v11753_v43  ;;  %v11760_v42 = vld [vmem:[%s15277_s7 + $0x30] ss:$12 sps:$4 sm:$0xff]  }
 0x1bd   :  { %3185 = vmatpush1.bf16.msra.mxu1 %v11722_v26  ;;  %8394 = vmatpush3.bf16.msra.mxu0 %v11728_v36  ;;  %15586 = vst [vmem:[#allocation22_spill] sm:$0xff] %v11760_v42  ;;  %15587 = vst [vmem:[#allocation23_spill] sm:$0xff] %v11766_v46  ;;  %v11772_v24 = vld [vmem:[%s15277_s7 + $0x1c] ss:$12 sps:$4 sm:$0xff]   ;;  %v2697_v29 = vsub.f32 1.0, %v9475_v9 }
 0x1be   :  { %3186 = vmatprep.subr.bf16.mxu1 %v11734_v23  ;;  %8395 = vmatprep.subr.bf16.mxu0 %v15302_v53  ;;  %9480 = vpow2.f32 %v7709_v59  ;;  %15588 = vst [vmem:[#allocation24_spill] sm:$0xff] %v11772_v24 }
 0x1c1   :  { %3187 = vmatpush1.bf16.msra.mxu1 %v11741_v35  ;;  %8396 = vmatpush3.bf16.msra.mxu0 %v11747_v30 }
 0x1c2   :  { %3188 = vmatprep.subr.bf16.mxu1 %v11753_v43  ;;  %8397 = vmatprep.subr.bf16.mxu0 %v15302_v53 }
 0x1c5   :  { %3189 = vmatpush1.bf16.msra.mxu1 %v11760_v42  ;;  %8398 = vmatpush3.bf16.msra.mxu0 %v11766_v46  ;;  %v11779_v42 = vld [vmem:[%s15277_s7 + $0x18] ss:$12 sps:$4 sm:$0xff]   ;;  %v11785_v46 = vld [vmem:[%s15277_s7 + $0x20] ss:$12 sps:$4 sm:$0xff]  }
 0x1c6   :  { %3190 = vmatprep.subr.bf16.mxu1 %v11772_v24  ;;  %8399 = vmatprep.subr.bf16.mxu0 %v15302_v53  ;;  %15589 = vst [vmem:[#allocation25_spill] sm:$0xff] %v11779_v42  ;;  %15590 = vst [vmem:[#allocation26_spill] sm:$0xff] %v11785_v46  ;;  %v2926_v24 = vpop.f32.mrf.mxu0 }
 0x1c7   :  { %v9477_v59 = vpop.eup %9476 }
 0x1c8   :  { %v2936_v1 = vadd.f32 1.0, %v9477_v59  ;;  %v11791_v59 = vld [vmem:[%s15277_s7 + $0x4] ss:$12 sps:$4 sm:$0xff]   ;;  %v8345_v30 = vpop.f32.mrf.mxu0 }
 0x1c9   :  { %v9479_v25 = vpop.eup %9478  ;;  %3191 = vmatpush1.bf16.msra.mxu1 %v11779_v42  ;;  %8400 = vmatpush3.bf16.msra.mxu0 %v11785_v46  ;;  %15591 = vst [vmem:[#allocation27_spill] sm:$0xff] %v11791_v59  ;;  %v2699_v42 = vmul.f32 0.0, %v9475_v9  ;;  %v11800_v46 = vld [vmem:[%s15277_s7] ss:$12 sps:$4 sm:$0xff]   ;;  %v15596_v30 = vmov 0.0   ;;  %v11820_v9 = vrot.slane %v11630_v14, %v11119_v28  ;;  %v15601_v14 = vmov 0  }
 0x1ca   :  { %9482 = vrcp.f32 %v2936_v1  ;;  %3192 = vmatprep.subr.bf16.mxu1 %v11791_v59  ;;  %8401 = vmatprep.subr.bf16.mxu0 %v15302_v53  ;;  %v2698_v43 = vmul.f32 %v9479_v25, %v2697_v29  ;;  %15593 = vst [vmem:[#allocation29_spill] sm:$0xff] %v11800_v46  ;;  %v11806_v1 = vld [vmem:[%s15277_s7 + $0x8] ss:$12 sps:$4 sm:$0xff]   ;;  %v2929_v53 = vpop.f32.mrf.mxu0  ;;  %v11814_v29 = vld [vmem:[%s15277_s7 + $0x16c] ss:$12 sps:$4 sm:$0xff]  }
 0x1cb   :  { %15594 = vst [vmem:[#allocation30_spill] sm:$0xff] %v11806_v1  ;;  %15595 = vst [vmem:[#allocation31_spill] sm:$0xff] %v11814_v29  ;;  %v9481_v53 = vpop.eup %9480  ;;  %v11837_v28 = vld [vmem:[%s15277_s7 + $0x154] ss:$12 sps:$4 sm:$0xff]  }
 0x1cc   :  { %v11795_v35 = vadd.f32 %v2699_v42, %v2698_v43  ;;  %v8346_v43 = vpop.f32.mrf.mxu0  ;;  %15597 = vst [vmem:[#allocation32_spill] sm:$0xff] %v11820_v9  ;;  %v11825_v42 = vld [vmem:[%s15277_s7 + $0x168] ss:$12 sps:$4 sm:$0xff]   ;;  %15600 = vst [vmem:[#allocation35_spill] sm:$0xff] %v11837_v28 }
 0x1cd   :  { %3193 = vmatpush1.bf16.msra.mxu1 %v11800_v46  ;;  %8402 = vmatpush3.bf16.msra.mxu0 %v11806_v1  ;;  %15598 = vst [vmem:[#allocation33_spill] sm:$0xff] %v11825_v42  ;;  %v2927_v43 = vadd.f32 %v2926_v24, %v11820_v9  ;;  %v2706_v9 = vunpack.c.h.bf16 %v11676_v4  ;;  %v11880_v4 = vld [vmem:[%s15277_s7 + $0x124] ss:$12 sps:$4 sm:$0xff]  }
 0x1ce   :  { %15592 = vst [vmem:[#allocation28_spill] sm:$0xff] %v11795_v35  ;;  %v3177_v25 = vpack.c.bf16 %v11795_v35, %v11795_v35  ;;  %3287 = vmatprep.subr.bf16.mxu1 %v11814_v29  ;;  %8407 = vmatprep.subr.bf16.mxu0 %v15596_v30  ;;  %v11831_v29 = vld [vmem:[%s15277_s7 + $0x170] ss:$12 sps:$4 sm:$0xff]   ;;  %15607 = vst [vmem:[#allocation41_spill] sm:$0xff] %v11880_v4 }
 0x1cf   :  { %15599 = vst [vmem:[#allocation34_spill] sm:$0xff] %v11831_v29 }
 0x1d0   :  { %3211 = vmatmul.mubr.bf16.vlgmr.msra.gmra.mxu1 %v3177_v25  ;;  %8404 = vmatmul.mubr.bf16.vlgmr.msra.gmra.mxu0 %v3177_v25  ;;  %v2943_v25 = vadd.f32 1.0, %v9481_v53  ;;  %v11860_v53 = vld [vmem:[%s15277_s7 + $0x13c] ss:$12 sps:$4 sm:$0xff]  }
 0x1d1   :  { %3288 = vmatpush1.bf16.msra.mxu1 %v11825_v42  ;;  %8408 = vmatpush3.bf16.msra.mxu0 %v11831_v29  ;;  %v11848_v29 = vld [vmem:[%s15277_s7 + $0x150] ss:$12 sps:$4 sm:$0xff]   ;;  %15604 = vst [vmem:[#allocation38_spill] sm:$0xff] %v11860_v53  ;;  %v11868_v42 = vld [vmem:[%s15277_s7 + $0x138] ss:$12 sps:$4 sm:$0xff]  }
 0x1d2   :  { %3289 = vmatprep.subr.bf16.mxu1 %v11837_v28  ;;  %8409 = vmatprep.subr.bf16.mxu0 %v15596_v30  ;;  %15602 = vst [vmem:[#allocation36_spill] sm:$0xff] %v11848_v29  ;;  %v11854_v28 = vld [vmem:[%s15277_s7 + $0x158] ss:$12 sps:$4 sm:$0xff]   ;;  %9484 = vrcp.f32 %v2943_v25  ;;  %15605 = vst [vmem:[#allocation39_spill] sm:$0xff] %v11868_v42  ;;  %v11887_v25 = vld [vmem:[%s15277_s7 + $0x120] ss:$12 sps:$4 sm:$0xff]  }
 0x1d3   :  { %3319 = vmatprep.mubr.bf16.mxu1 %v15601_v14  ;;  %8423 = vmatprep.mubr.msk.bf16.mxu0 %vm10282_vm0, %v15596_v30  ;;  %15603 = vst [vmem:[#allocation37_spill] sm:$0xff] %v11854_v28  ;;  %15608 = vst [vmem:[#allocation42_spill] sm:$0xff] %v11887_v25 }
 0x1d5   :  { %3290 = vmatpush1.bf16.msra.mxu1 %v11848_v29  ;;  %8410 = vmatpush3.bf16.msra.mxu0 %v11854_v28  ;;  %v11874_v28 = vld [vmem:[%s15277_s7 + $0x140] ss:$12 sps:$4 sm:$0xff]  }
 0x1d6   :  { %3291 = vmatprep.subr.bf16.mxu1 %v11860_v53  ;;  %8411 = vmatprep.subr.bf16.mxu0 %v15596_v30  ;;  %15606 = vst [vmem:[#allocation40_spill] sm:$0xff] %v11874_v28 }
 0x1d7   :  { %v9483_v24 = vpop.eup %9482 }
 0x1d8   :  { %v2946_v29 = vmul.f32 %v9483_v24, %v2927_v43  ;;  %v11906_v43 = vld [vmem:[%s15277_s7 + $0x108] ss:$12 sps:$4 sm:$0xff]  }
 0x1d9   :  { %3292 = vmatpush1.bf16.msra.mxu1 %v11868_v42  ;;  %8412 = vmatpush3.bf16.msra.mxu0 %v11874_v28  ;;  %15611 = vst [vmem:[#allocation45_spill] sm:$0xff] %v11906_v43  ;;  %v11918_v24 = vld [vmem:[%s15277_s7 + $0xf4] ss:$12 sps:$4 sm:$0xff]  }
 0x1da   :  { %v2947_v53 = vadd.f32 %v2946_v29, %v2706_v9  ;;  %3293 = vmatprep.subr.bf16.mxu1 %v11880_v4  ;;  %8413 = vmatprep.subr.bf16.mxu0 %v15596_v30  ;;  %v11893_v29 = vld [vmem:[%s15277_s7 + $0x128] ss:$12 sps:$4 sm:$0xff]   ;;  %v11899_v9 = vld [vmem:[%s15277_s7 + $0x10c] ss:$12 sps:$4 sm:$0xff]   ;;  %15613 = vst [vmem:[#allocation47_spill] sm:$0xff] %v11918_v24 }
 0x1db   :  { %15609 = vst [vmem:[#allocation43_spill] sm:$0xff] %v11893_v29  ;;  %15610 = vst [vmem:[#allocation44_spill] sm:$0xff] %v11899_v9 }
 0x1dc   :  { %9486 = vtanh.f32 %v2947_v53  ;;  %v11912_v53 = vld [vmem:[%s15277_s7 + $0x110] ss:$12 sps:$4 sm:$0xff]  }
 0x1dd   :  { %3294 = vmatpush1.bf16.msra.mxu1 %v11887_v25  ;;  %8414 = vmatpush3.bf16.msra.mxu0 %v11893_v29  ;;  %15612 = vst [vmem:[#allocation46_spill] sm:$0xff] %v11912_v53 }
 0x1de   :  { %3295 = vmatprep.subr.bf16.mxu1 %v11899_v9  ;;  %8415 = vmatprep.subr.bf16.mxu0 %v15596_v30 }
 0x1df   :  { %v9485_v9 = vpop.eup %9484 }
 0x1e0   :  { %v2949_v29 = vsub.f32 1.0, %v9485_v9  ;;  %v2951_v28 = vmul.f32 0.0, %v9485_v9  ;;  %v11998_v9 = vld [vmem:[%s15276_s3 + $0x94] ss:$12 sps:$4 sm:$0xff]  }
 0x1e1   :  { %3296 = vmatpush1.bf16.msra.mxu1 %v11906_v43  ;;  %8416 = vmatpush3.bf16.msra.mxu0 %v11912_v53  ;;  %v11925_v43 = vld [vmem:[%s15277_s7 + $0xf0] ss:$12 sps:$4 sm:$0xff]   ;;  %v11931_v53 = vld [vmem:[%s15277_s7 + $0xf8] ss:$12 sps:$4 sm:$0xff]   ;;  %15626 = vst [vmem:[#allocation60_spill] sm:$0xff] %v11998_v9 }
 0x1e2   :  { %3297 = vmatprep.subr.bf16.mxu1 %v11918_v24  ;;  %8417 = vmatprep.subr.bf16.mxu0 %v15596_v30  ;;  %15614 = vst [vmem:[#allocation48_spill] sm:$0xff] %v11925_v43  ;;  %15615 = vst [vmem:[#allocation49_spill] sm:$0xff] %v11931_v53  ;;  %v11937_v24 = vld [vmem:[%s15277_s7 + $0xdc] ss:$12 sps:$4 sm:$0xff]  }
 0x1e3   :  { %15616 = vst [vmem:[#allocation50_spill] sm:$0xff] %v11937_v24 }
 0x1e5   :  { %3298 = vmatpush1.bf16.msra.mxu1 %v11925_v43  ;;  %8418 = vmatpush3.bf16.msra.mxu0 %v11931_v53  ;;  %v11944_v43 = vld [vmem:[%s15277_s7 + $0xd8] ss:$12 sps:$4 sm:$0xff]   ;;  %v11950_v53 = vld [vmem:[%s15277_s7 + $0xe0] ss:$12 sps:$4 sm:$0xff]  }
 0x1e6   :  { %3299 = vmatprep.subr.bf16.mxu1 %v11937_v24  ;;  %8419 = vmatprep.subr.bf16.mxu0 %v15596_v30  ;;  %15617 = vst [vmem:[#allocation51_spill] sm:$0xff] %v11944_v43  ;;  %15618 = vst [vmem:[#allocation52_spill] sm:$0xff] %v11950_v53  ;;  %v11956_v24 = vld [vmem:[%s15277_s7 + $0xc4] ss:$12 sps:$4 sm:$0xff]  }
 0x1e7   :  { %15619 = vst [vmem:[#allocation53_spill] sm:$0xff] %v11956_v24 }
 0x1e9   :  { %v9487_v25 = vpop.eup %9486  ;;  %3300 = vmatpush1.bf16.msra.mxu1 %v11944_v43  ;;  %8420 = vmatpush3.bf16.msra.mxu0 %v11950_v53  ;;  %v11965_v43 = vld [vmem:[%s15277_s7 + $0xc0] ss:$12 sps:$4 sm:$0xff]   ;;  %v11971_v53 = vld [vmem:[%s15277_s7 + $0xc8] ss:$12 sps:$4 sm:$0xff]  }
 0x1ea   :  { %3301 = vmatprep.subr.bf16.mxu1 %v11956_v24  ;;  %8421 = vmatprep.subr.bf16.mxu0 %v15596_v30  ;;  %v2950_v4 = vmul.f32 %v9487_v25, %v2949_v29  ;;  %15621 = vst [vmem:[#allocation55_spill] sm:$0xff] %v11965_v43  ;;  %15622 = vst [vmem:[#allocation56_spill] sm:$0xff] %v11971_v53  ;;  %v11992_v29 = vld [vmem:[%s15276_s3 + $0xb0] ss:$12 sps:$4 sm:$0xff]  }
 0x1eb   :  { %15625 = vst [vmem:[#allocation59_spill] sm:$0xff] %v11992_v29 }
 0x1ec   :  { %v11960_v42 = vadd.f32 %v2951_v28, %v2950_v4  ;;  %v11979_v28 = vld [vmem:[%s15276_s3 + $0xac] ss:$12 sps:$4 sm:$0xff]   ;;  %v11986_v4 = vld [vmem:[%s15276_s3 + $0xa8] ss:$12 sps:$4 sm:$0xff]  }
 0x1ed   :  { %3302 = vmatpush1.bf16.msra.mxu1 %v11965_v43  ;;  %8422 = vmatpush3.bf16.msra.mxu0 %v11971_v53  ;;  %15623 = vst [vmem:[#allocation57_spill] sm:$0xff] %v11979_v28  ;;  %15624 = vst [vmem:[#allocation58_spill] sm:$0xff] %v11986_v4 }
 0x1ee   :  { %15620 = vst [vmem:[#allocation54_spill] sm:$0xff] %v11960_v42  ;;  %v3286_v25 = vpack.c.bf16 %v11960_v42, %v11960_v42  ;;  %3396 = vmatprep.subr.bf16.mxu1 %v11979_v28  ;;  %8427 = vmatprep.subr.bf16.mxu0 %v15596_v30 }
 0x1f0   :  { %3320 = vmatmul.mubr.bf16.vlgmr.msra.gmra.mxu1 %v3286_v25  ;;  %8424 = vmatmul.mubr.bf16.vlgmr.msra.gmra.mxu0 %v3286_v25  ;;  %v12008_v25 = vld [vmem:[%s15276_s3 + $0x90] ss:$12 sps:$4 sm:$0xff]  }
 0x1f1   :  { %3397 = vmatpush1.bf16.msra.mxu1 %v11986_v4  ;;  %8428 = vmatpush3.bf16.msra.mxu0 %v11992_v29  ;;  %15627 = vst [vmem:[#allocation61_spill] sm:$0xff] %v12008_v25  ;;  %v12014_v29 = vld [vmem:[%s15276_s3 + $0x98] ss:$12 sps:$4 sm:$0xff]  }
 0x1f2   :  { %3398 = vmatprep.subr.bf16.mxu1 %v11998_v9  ;;  %8429 = vmatprep.subr.bf16.mxu0 %v15596_v30  ;;  %15628 = vst [vmem:[#allocation62_spill] sm:$0xff] %v12014_v29  ;;  %v12020_v9 = vld [vmem:[%s15276_s3 + $0x7c] ss:$12 sps:$4 sm:$0xff]  }
 0x1f3   :  { %3428 = vmatprep.mubr.bf16.mxu1 %v15601_v14  ;;  %8443 = vmatprep.mubr.msk.bf16.mxu0 %vm10282_vm0, %v15596_v30  ;;  %15629 = vst [vmem:[#allocation63_spill] sm:$0xff] %v12020_v9  ;;  %v2954_v4 = vld [vmem:[#allocation2 + $0x18] sm:$0xff] }
 0x1f5   :  { %3399 = vmatpush1.bf16.msra.mxu1 %v12008_v25  ;;  %8430 = vmatpush3.bf16.msra.mxu0 %v12014_v29  ;;  %v12027_v25 = vld [vmem:[%s15276_s3 + $0x78] ss:$12 sps:$4 sm:$0xff]   ;;  %v12033_v29 = vld [vmem:[%s15276_s3 + $0x80] ss:$12 sps:$4 sm:$0xff]  }
 0x1f6   :  { %3400 = vmatprep.subr.bf16.mxu1 %v12020_v9  ;;  %8431 = vmatprep.subr.bf16.mxu0 %v15596_v30  ;;  %15630 = vst [vmem:[#allocation64_spill] sm:$0xff] %v12027_v25  ;;  %15631 = vst [vmem:[#allocation65_spill] sm:$0xff] %v12033_v29  ;;  %v12039_v9 = vld [vmem:[%s15276_s3 + $0x64] ss:$12 sps:$4 sm:$0xff]  }
 0x1f7   :  { %15632 = vst [vmem:[#allocation66_spill] sm:$0xff] %v12039_v9 }
 0x1f9   :  { %3401 = vmatpush1.bf16.msra.mxu1 %v12027_v25  ;;  %8432 = vmatpush3.bf16.msra.mxu0 %v12033_v29  ;;  %v12046_v25 = vld [vmem:[%s15276_s3 + $0x60] ss:$12 sps:$4 sm:$0xff]   ;;  %v12052_v29 = vld [vmem:[%s15276_s3 + $0x68] ss:$12 sps:$4 sm:$0xff]  }
 0x1fa   :  { %3402 = vmatprep.subr.bf16.mxu1 %v12039_v9  ;;  %8433 = vmatprep.subr.bf16.mxu0 %v15596_v30  ;;  %15633 = vst [vmem:[#allocation67_spill] sm:$0xff] %v12046_v25  ;;  %15634 = vst [vmem:[#allocation68_spill] sm:$0xff] %v12052_v29  ;;  %v12058_v9 = vld [vmem:[%s15276_s3 + $0x4c] ss:$12 sps:$4 sm:$0xff]  }
 0x1fb   :  { %15635 = vst [vmem:[#allocation69_spill] sm:$0xff] %v12058_v9 }
 0x1fd   :  { %3403 = vmatpush1.bf16.msra.mxu1 %v12046_v25  ;;  %8434 = vmatpush3.bf16.msra.mxu0 %v12052_v29  ;;  %v12065_v25 = vld [vmem:[%s15276_s3 + $0x48] ss:$12 sps:$4 sm:$0xff]   ;;  %v12071_v29 = vld [vmem:[%s15276_s3 + $0x50] ss:$12 sps:$4 sm:$0xff]  }
 0x1fe   :  { %3404 = vmatprep.subr.bf16.mxu1 %v12058_v9  ;;  %8435 = vmatprep.subr.bf16.mxu0 %v15596_v30  ;;  %15636 = vst [vmem:[#allocation70_spill] sm:$0xff] %v12065_v25  ;;  %15637 = vst [vmem:[#allocation71_spill] sm:$0xff] %v12071_v29  ;;  %v12077_v9 = vld [vmem:[%s15276_s3 + $0x34] ss:$12 sps:$4 sm:$0xff]  }
 0x1ff   :  { %15638 = vst [vmem:[#allocation72_spill] sm:$0xff] %v12077_v9 }
 0x201   :  { %3405 = vmatpush1.bf16.msra.mxu1 %v12065_v25  ;;  %8436 = vmatpush3.bf16.msra.mxu0 %v12071_v29  ;;  %v12084_v25 = vld [vmem:[%s15276_s3 + $0x30] ss:$12 sps:$4 sm:$0xff]   ;;  %v12090_v29 = vld [vmem:[%s15276_s3 + $0x38] ss:$12 sps:$4 sm:$0xff]  }
 0x202   :  { %3406 = vmatprep.subr.bf16.mxu1 %v12077_v9  ;;  %8437 = vmatprep.subr.bf16.mxu0 %v15596_v30  ;;  %15639 = vst [vmem:[#allocation73_spill] sm:$0xff] %v12084_v25  ;;  %15640 = vst [vmem:[#allocation74_spill] sm:$0xff] %v12090_v29  ;;  %v12096_v9 = vld [vmem:[%s15276_s3 + $0x1c] ss:$12 sps:$4 sm:$0xff]  }
 0x203   :  { %15641 = vst [vmem:[#allocation75_spill] sm:$0xff] %v12096_v9 }
 0x205   :  { %3407 = vmatpush1.bf16.msra.mxu1 %v12084_v25  ;;  %8438 = vmatpush3.bf16.msra.mxu0 %v12090_v29  ;;  %v12103_v25 = vld [vmem:[%s15276_s3 + $0x18] ss:$12 sps:$4 sm:$0xff]   ;;  %v12109_v29 = vld [vmem:[%s15276_s3 + $0x20] ss:$12 sps:$4 sm:$0xff]  }
 0x206   :  { %3408 = vmatprep.subr.bf16.mxu1 %v12096_v9  ;;  %8439 = vmatprep.subr.bf16.mxu0 %v15596_v30  ;;  %15642 = vst [vmem:[#allocation76_spill] sm:$0xff] %v12103_v25  ;;  %15643 = vst [vmem:[#allocation77_spill] sm:$0xff] %v12109_v29  ;;  %v12115_v9 = vld [vmem:[%s15276_s3 + $0x4] ss:$12 sps:$4 sm:$0xff]  }
 0x207   :  { %15644 = vst [vmem:[#allocation78_spill] sm:$0xff] %v12115_v9 }
 0x209   :  { %3409 = vmatpush1.bf16.msra.mxu1 %v12103_v25  ;;  %8440 = vmatpush3.bf16.msra.mxu0 %v12109_v29  ;;  %v12122_v25 = vld [vmem:[%s15276_s3] ss:$12 sps:$4 sm:$0xff]   ;;  %v12128_v29 = vld [vmem:[%s15276_s3 + $0x8] ss:$12 sps:$4 sm:$0xff]  }
 0x20a   :  { %3410 = vmatprep.subr.bf16.mxu1 %v12115_v9  ;;  %8441 = vmatprep.subr.bf16.mxu0 %v15596_v30  ;;  %15645 = vst [vmem:[#allocation79_spill] sm:$0xff] %v12122_v25  ;;  %15646 = vst [vmem:[#allocation80_spill] sm:$0xff] %v12128_v29  ;;  %v12134_v9 = vld [vmem:[%s15276_s3 + $0x16c] ss:$12 sps:$4 sm:$0xff]  }
 0x20b   :  { %15647 = vst [vmem:[#allocation81_spill] sm:$0xff] %v12134_v9 }
 0x20d   :  { %3411 = vmatpush1.bf16.msra.mxu1 %v12122_v25  ;;  %8442 = vmatpush3.bf16.msra.mxu0 %v12128_v29  ;;  %v2956_v25 = vunpack.c.l.bf16 %v2954_v4 }
 0x20e   :  { %3505 = vmatprep.subr.bf16.mxu1 %v12134_v9  ;;  %8447 = vmatprep.subr.bf16.mxu0 %v15596_v30  ;;  %v2957_v9 = vunpack.c.h.bf16 %v2954_v4 }
 0x250   :  { %v2994_v28 = vpop.f32.mrf.mxu1  ;;  %v3035_v53 = vpop.f32.mrf.mxu0 }
 0x251   :  { %v2995_v43 = vadd.f32 %v2994_v28, %v11411_v3  ;;  %v3063_v28 = vld [vmem:[#allocation2 + $0xfc] sm:$0xff] }
 0x252   :  { %v2996_v42 = vpop.f32.mrf.mxu1  ;;  %v8365_v24 = vpop.f32.mrf.mxu0 }
 0x253   :  { %v3041_v1 = vadd.f32 %v2995_v43, %v2956_v25  ;;  %v2997_v59 = vadd.f32 %v2996_v42, %v11419_v11  ;;  %v12140_v43 = vld [vmem:[#allocation2 + $0x20] ss:$228 sps:$4 sm:$0xff]  }
 0x254   :  { %v2998_v46 = vpop.f32.mrf.mxu1  ;;  %v3038_v29 = vpop.f32.mrf.mxu0 }
 0x255   :  { %v7710_v35 = vmul.f32 -1.442695, %v3041_v1  ;;  %v3048_v26 = vadd.f32 %v2997_v59, %v2957_v9  ;;  %v3065_v1 = vunpack.c.l.bf16 %v3063_v28 }
 0x256   :  { %v2999_v23 = vpop.f32.mrf.mxu1  ;;  %v8366_v36 = vpop.f32.mrf.mxu0 }
 0x257   :  { %9488 = vpow2.f32 %v7710_v35  ;;  %v7711_v18 = vmul.f32 -1.442695, %v3048_v26  ;;  %v3036_v35 = vadd.f32 %v3035_v53, %v11437_v54 }
 0x259   :  { %9490 = vpow2.f32 %v7711_v18  ;;  %v2958_v18 = vunpack.c.l.bf16 %v12140_v43 }
 0x264   :  { %v9489_v5 = vpop.eup %9488 }
 0x265   :  { %v3045_v2 = vadd.f32 1.0, %v9489_v5 }
 0x266   :  { %v9491_v31 = vpop.eup %9490 }
 0x267   :  { %9492 = vrcp.f32 %v3045_v2  ;;  %v3052_v46 = vadd.f32 1.0, %v9491_v31 }
 0x269   :  { %9494 = vrcp.f32 %v3052_v46 }
 0x270   :  { %v3103_v3 = vpop.f32.mrf.mxu1  ;;  %v3144_v24 = vpop.f32.mrf.mxu0 }
 0x271   :  { %v3104_v42 = vadd.f32 %v3103_v3, %v11440_v47  ;;  %v3066_v3 = vunpack.c.h.bf16 %v3063_v28 }
 0x272   :  { %v3105_v23 = vpop.f32.mrf.mxu1  ;;  %v8385_v36 = vpop.f32.mrf.mxu0 }
 0x273   :  { %v3150_v59 = vadd.f32 %v3104_v42, %v3065_v1  ;;  %v3106_v9 = vadd.f32 %v3105_v23, %v11443_v13 }
 0x274   :  { %v9493_v26 = vpop.eup %9492  ;;  %v3107_v5 = vpop.f32.mrf.mxu1 }
 0x275   :  { %v3147_v2 = vpop.f32.mrf.mxu0  ;;  %v3055_v4 = vmul.f32 %v9493_v26, %v3036_v35  ;;  %v7712_v29 = vmul.f32 -1.442695, %v3150_v59  ;;  %v3157_v36 = vadd.f32 %v3106_v9, %v3066_v3 }
 0x276   :  { %v3108_v25 = vpop.f32.mrf.mxu1  ;;  %v9495_v53 = vpop.eup %9494 }
 0x277   :  { %v8386_v31 = vpop.f32.mrf.mxu0  ;;  %v3056_v11 = vadd.f32 %v3055_v4, %v2958_v18  ;;  %9496 = vpow2.f32 %v7712_v29  ;;  %v7713_v47 = vmul.f32 -1.442695, %v3157_v36  ;;  %v3058_v54 = vsub.f32 1.0, %v9495_v53 }
 0x278   :  { %v3060_v46 = vmul.f32 %v9495_v53, %v11451_v7  ;;  %v3067_v29 = vunpack.c.h.bf16 %v12140_v43 }
 0x279   :  { %9498 = vtanh.f32 %v3056_v11 }
 0x27a   :  { %9500 = vpow2.f32 %v7713_v47  ;;  %v3172_v47 = vld [vmem:[#allocation3 + $0x18] sm:$0xff] }
 0x27b   :  { %v3174_v26 = vunpack.c.l.bf16 %v3172_v47 }
 0x284   :  { %v9497_v1 = vpop.eup %9496 }
 0x285   :  { %v3154_v42 = vadd.f32 1.0, %v9497_v1 }
 0x286   :  { %v9499_v5 = vpop.eup %9498 }
 0x287   :  { %9502 = vrcp.f32 %v3154_v42  ;;  %v3059_v35 = vmul.f32 %v9499_v5, %v3058_v54  ;;  %v9501_v11 = vpop.eup %9500 }
 0x288   :  { %v3161_v7 = vadd.f32 1.0, %v9501_v11 }
 0x289   :  { %v12147_v59 = vadd.f32 %v3060_v46, %v3059_v35 }
 0x28a   :  { %9504 = vrcp.f32 %v3161_v7  ;;  %v15651_v7 = vld [vmem:[#allocation15_spill] sm:$0xff] }
 0x28b   :  { %v3395_v23 = vpack.c.bf16 %v12147_v59, %v12147_v59 }
 0x28d   :  { %3429 = vmatmul.mubr.bf16.vlgmr.msra.gmra.mxu1 %v3395_v23  ;;  %8444 = vmatmul.mubr.bf16.vlgmr.msra.gmra.mxu0 %v3395_v23  ;;  %v15648_v23 = vld [vmem:[#allocation12_spill] sm:$0xff] }
 0x28e   :  { %3506 = vmatpush1.bf16.msra.mxu1 %v11470_v27  ;;  %8448 = vmatpush3.bf16.msra.mxu0 %v11476_v60  ;;  %v3145_v60 = vadd.f32 %v3144_v24, %v11461_v41 }
 0x28f   :  { %3507 = vmatprep.subr.bf16.mxu1 %v11482_v50  ;;  %8449 = vmatprep.subr.bf16.mxu0 %v15596_v30 }
 0x290   :  { %v3212_v54 = vpop.f32.mrf.mxu1  ;;  %v12155_v28 = vpop.f32.mrf.mxu0  ;;  %3537 = vmatprep.mubr.bf16.mxu1 %v15601_v14  ;;  %8463 = vmatprep.mubr.msk.bf16.mxu0 %vm10282_vm0, %v15596_v30 }
 0x291   :  { %v3213_v18 = vadd.f32 %v3212_v54, %v11465_v49  ;;  %v15650_v54 = vld [vmem:[#allocation14_spill] sm:$0xff] }
 0x292   :  { %v3214_v27 = vpop.f32.mrf.mxu1  ;;  %v8405_v2 = vpop.f32.mrf.mxu0  ;;  %3508 = vmatpush1.bf16.msra.mxu1 %v11499_v40  ;;  %8450 = vmatpush3.bf16.msra.mxu0 %v11505_v44 }
 0x293   :  { %v3259_v50 = vadd.f32 %v3213_v18, %v3174_v26  ;;  %3509 = vmatprep.subr.bf16.mxu1 %v11511_v32  ;;  %8451 = vmatprep.subr.bf16.mxu0 %v15596_v30  ;;  %v3215_v36 = vadd.f32 %v3214_v27, %v11488_v34  ;;  %v3175_v32 = vunpack.c.h.bf16 %v3172_v47  ;;  %v15649_v47 = vld [vmem:[#allocation13_spill] sm:$0xff]  ;;  %v15652_v18 = vld [vmem:[#allocation16_spill] sm:$0xff]  ;;  %v15654_v2 = vld [vmem:[#allocation18_spill] sm:$0xff] }
 0x294   :  { %v9503_v4 = vpop.eup %9502  ;;  %v3216_v9 = vpop.f32.mrf.mxu1  ;;  %v15653_v27 = vld [vmem:[#allocation17_spill] sm:$0xff] }
 0x295   :  { %v3256_v25 = vpop.f32.mrf.mxu0  ;;  %v3164_v31 = vmul.f32 %v9503_v4, %v3145_v60  ;;  %v7714_v3 = vmul.f32 -1.442695, %v3259_v50  ;;  %v3266_v24 = vadd.f32 %v3215_v36, %v3175_v32  ;;  %v15655_v50 = vld [vmem:[#allocation19_spill] sm:$0xff]  ;;  %v15656_v4 = vld [vmem:[#allocation20_spill] sm:$0xff]  ;;  %v15661_v32 = vld [vmem:[#allocation25_spill] sm:$0xff] }
 0x296   :  { %v3217_v40 = vpop.f32.mrf.mxu1  ;;  %3510 = vmatpush1.bf16.msra.mxu1 %v11520_v37  ;;  %8452 = vmatpush3.bf16.msra.mxu0 %v11526_v38  ;;  %v15658_v25 = vld [vmem:[#allocation22_spill] sm:$0xff] }
 0x297   :  { %v8406_v53 = vpop.f32.mrf.mxu0  ;;  %v3165_v44 = vadd.f32 %v3164_v31, %v3067_v29  ;;  %9506 = vpow2.f32 %v7714_v3  ;;  %3511 = vmatprep.subr.bf16.mxu1 %v11533_v62  ;;  %8453 = vmatprep.subr.bf16.mxu0 %v15596_v30  ;;  %v7715_v37 = vmul.f32 -1.442695, %v3266_v24  ;;  %v9505_v38 = vpop.eup %9504  ;;  %v15657_v29 = vld [vmem:[#allocation21_spill] sm:$0xff]  ;;  %v15659_v31 = vld [vmem:[#allocation23_spill] sm:$0xff]  ;;  %v15660_v3 = vld [vmem:[#allocation24_spill] sm:$0xff] }
 0x298   :  { %v15662_v24 = vld [vmem:[#allocation26_spill] sm:$0xff] }
 0x299   :  { %9508 = vtanh.f32 %v3165_v44 }
 0x29a   :  { %3512 = vmatpush1.bf16.msra.mxu1 %v11540_v6  ;;  %8454 = vmatpush3.bf16.msra.mxu0 %v11546_v8  ;;  %9510 = vpow2.f32 %v7715_v37  ;;  %v3167_v8 = vsub.f32 1.0, %v9505_v38  ;;  %v15663_v37 = vld [vmem:[#allocation27_spill] sm:$0xff] }
 0x29b   :  { %3513 = vmatprep.subr.bf16.mxu1 %v11552_v16  ;;  %8455 = vmatprep.subr.bf16.mxu0 %v15596_v30 }
 0x29e   :  { %3514 = vmatpush1.bf16.msra.mxu1 %v11559_v12  ;;  %8456 = vmatpush3.bf16.msra.mxu0 %v11565_v15  ;;  %v3169_v15 = vmul.f32 %v9505_v38, %v11613_v33 }
 0x29f   :  { %3515 = vmatprep.subr.bf16.mxu1 %v11571_v55  ;;  %8457 = vmatprep.subr.bf16.mxu0 %v15596_v30 }
 0x2a2   :  { %3516 = vmatpush1.bf16.msra.mxu1 %v11578_v17  ;;  %8458 = vmatpush3.bf16.msra.mxu0 %v11584_v58 }
 0x2a3   :  { %3517 = vmatprep.subr.bf16.mxu1 %v11590_v56  ;;  %8459 = vmatprep.subr.bf16.mxu0 %v15596_v30  ;;  %v3281_v56 = vld [vmem:[#allocation3 + $0x9c] sm:$0xff] }
 0x2a4   :  { %v9507_v62 = vpop.eup %9506 }
 0x2a5   :  { %v3263_v6 = vadd.f32 1.0, %v9507_v62  ;;  %v15664_v62 = vld [vmem:[#allocation28_spill] sm:$0xff] }
 0x2a6   :  { %v9509_v16 = vpop.eup %9508  ;;  %3518 = vmatpush1.bf16.msra.mxu1 %v11597_v19  ;;  %8460 = vmatpush3.bf16.msra.mxu0 %v11603_v22 }
 0x2a7   :  { %9512 = vrcp.f32 %v3263_v6  ;;  %3519 = vmatprep.subr.bf16.mxu1 %v11609_v21  ;;  %8461 = vmatprep.subr.bf16.mxu0 %v15596_v30  ;;  %v3168_v12 = vmul.f32 %v9509_v16, %v3167_v8  ;;  %v9511_v58 = vpop.eup %9510  ;;  %v12206_v21 = vld [vmem:[#allocation3 + $0x20] ss:$132 sps:$4 sm:$0xff]  }
 0x2a8   :  { %v3270_v33 = vadd.f32 1.0, %v9511_v58  ;;  %v3176_v1 = vunpack.c.l.bf16 %v12206_v21  ;;  %v15665_v16 = vld [vmem:[#allocation29_spill] sm:$0xff] }
 0x2a9   :  { %v12189_v55 = vadd.f32 %v3169_v15, %v3168_v12  ;;  %v15666_v12 = vld [vmem:[#allocation30_spill] sm:$0xff] }
 0x2aa   :  { %3520 = vmatpush1.bf16.msra.mxu1 %v11618_v61  ;;  %8462 = vmatpush3.bf16.msra.mxu0 %v11624_v10  ;;  %v3283_v61 = vunpack.c.l.bf16 %v3281_v56  ;;  %9514 = vrcp.f32 %v3270_v33  ;;  %v15670_v33 = vld [vmem:[#allocation35_spill] sm:$0xff] }
 0x2ab   :  { %v3504_v17 = vpack.c.bf16 %v12189_v55, %v12189_v55  ;;  %3614 = vmatprep.subr.bf16.mxu1 %v11637_v45  ;;  %8467 = vmatprep.subr.bf16.mxu0 %v15596_v30 }
 0x2ad   :  { %3538 = vmatmul.mubr.bf16.vlgmr.msra.gmra.mxu1 %v3504_v17  ;;  %8464 = vmatmul.mubr.bf16.vlgmr.msra.gmra.mxu0 %v3504_v17  ;;  %v15667_v17 = vld [vmem:[#allocation31_spill] sm:$0xff] }
 0x2ae   :  { %3615 = vmatpush1.bf16.msra.mxu1 %v11652_v0  ;;  %8468 = vmatpush3.bf16.msra.mxu0 %v11658_v52  ;;  %v3254_v52 = vadd.f32 %v12155_v28, %v11647_v51 }
 0x2af   :  { %3616 = vmatprep.subr.bf16.mxu1 %v11664_v48  ;;  %8469 = vmatprep.subr.bf16.mxu0 %v15596_v30 }
 0x2b0   :  { %v3321_v19 = vpop.f32.mrf.mxu1  ;;  %v12201_v22 = vpop.f32.mrf.mxu0  ;;  %3646 = vmatprep.mubr.bf16.mxu1 %v15601_v14  ;;  %8483 = vmatprep.mubr.msk.bf16.mxu0 %vm10282_vm0, %v15596_v30 }
 0x2b1   :  { %v3322_v10 = vadd.f32 %v3321_v19, %v11643_v63  ;;  %v15669_v19 = vld [vmem:[#allocation34_spill] sm:$0xff] }
 0x2b2   :  { %v3323_v45 = vpop.f32.mrf.mxu1  ;;  %v8425_v0 = vpop.f32.mrf.mxu0  ;;  %3617 = vmatpush1.bf16.msra.mxu1 %v11682_v39  ;;  %8470 = vmatpush3.bf16.msra.mxu0 %v11688_v57 }
 0x2b3   :  { %v3368_v48 = vadd.f32 %v3322_v10, %v3283_v61  ;;  %3618 = vmatprep.subr.bf16.mxu1 %v11694_v20  ;;  %8471 = vmatprep.subr.bf16.mxu0 %v15596_v30  ;;  %v3324_v39 = vadd.f32 %v3323_v45, %v15648_v23  ;;  %v3284_v20 = vunpack.c.h.bf16 %v3281_v56  ;;  %v15668_v56 = vld [vmem:[#allocation33_spill] sm:$0xff]  ;;  %v15671_v10 = vld [vmem:[#allocation36_spill] sm:$0xff] }
 0x2b4   :  { %v9513_v43 = vpop.eup %9512  ;;  %v3325_v42 = vpop.f32.mrf.mxu1  ;;  %v15672_v45 = vld [vmem:[#allocation37_spill] sm:$0xff]  ;;  %v15673_v0 = vld [vmem:[#allocation32_spill] sm:$0xff] }
 0x2b5   :  { %v3365_v5 = vpop.f32.mrf.mxu0  ;;  %v3273_v35 = vmul.f32 %v9513_v43, %v3254_v52  ;;  %v7716_v46 = vmul.f32 -1.442695, %v3368_v48  ;;  %v3375_v26 = vadd.f32 %v3324_v39, %v3284_v20  ;;  %v3363_v52 = vadd.f32 %v12201_v22, %v15673_v0  ;;  %v15674_v48 = vld [vmem:[#allocation38_spill] sm:$0xff]  ;;  %v15677_v39 = vld [vmem:[#allocation41_spill] sm:$0xff]  ;;  %v15684_v20 = vld [vmem:[#allocation48_spill] sm:$0xff] }
 0x2b6   :  { %v3326_v11 = vpop.f32.mrf.mxu1  ;;  %3619 = vmatpush1.bf16.msra.mxu1 %v15649_v47  ;;  %8472 = vmatpush3.bf16.msra.mxu0 %v15650_v54  ;;  %v15675_v5 = vld [vmem:[#allocation39_spill] sm:$0xff]  ;;  %v15678_v22 = vld [vmem:[#allocation42_spill] sm:$0xff] }
 0x2b7   :  { %v8426_v57 = vpop.f32.mrf.mxu0  ;;  %v3274_v28 = vadd.f32 %v3273_v35, %v3176_v1  ;;  %9516 = vpow2.f32 %v7716_v46  ;;  %3620 = vmatprep.subr.bf16.mxu1 %v15651_v7  ;;  %8473 = vmatprep.subr.bf16.mxu0 %v15596_v30  ;;  %v7717_v60 = vmul.f32 -1.442695, %v3375_v26  ;;  %v9515_v9 = vpop.eup %9514  ;;  %v3285_v1 = vunpack.c.h.bf16 %v12206_v21  ;;  %v15676_v35 = vld [vmem:[#allocation40_spill] sm:$0xff]  ;;  %v15679_v11 = vld [vmem:[#allocation43_spill] sm:$0xff]  ;;  %v15681_v21 = vld [vmem:[#allocation45_spill] sm:$0xff] }
 0x2b8   :  { %v3276_v53 = vsub.f32 1.0, %v9515_v9  ;;  %v3278_v6 = vmul.f32 %v9515_v9, %v15664_v62  ;;  %v15680_v57 = vld [vmem:[#allocation44_spill] sm:$0xff]  ;;  %v15682_v47 = vld [vmem:[#allocation46_spill] sm:$0xff]  ;;  %v15683_v54 = vld [vmem:[#allocation47_spill] sm:$0xff] }
 0x2b9   :  { %9518 = vtanh.f32 %v3274_v28  ;;  %v15685_v7 = vld [vmem:[#allocation49_spill] sm:$0xff]  ;;  %v15686_v26 = vld [vmem:[#allocation50_spill] sm:$0xff]  ;;  %v15700_v62 = vld [vmem:[#allocation64_spill] sm:$0xff] }
 0x2ba   :  { %3621 = vmatpush1.bf16.msra.mxu1 %v15652_v18  ;;  %8474 = vmatpush3.bf16.msra.mxu0 %v15653_v27  ;;  %9520 = vpow2.f32 %v7717_v60  ;;  %v15688_v60 = vld [vmem:[#allocation52_spill] sm:$0xff] }
 0x2bb   :  { %3622 = vmatprep.subr.bf16.mxu1 %v15654_v2  ;;  %8475 = vmatprep.subr.bf16.mxu0 %v15596_v30  ;;  %v15687_v2 = vld [vmem:[#allocation51_spill] sm:$0xff] }
 0x2be   :  { %3623 = vmatpush1.bf16.msra.mxu1 %v15655_v50  ;;  %8476 = vmatpush3.bf16.msra.mxu0 %v15656_v4  ;;  %v15689_v50 = vld [vmem:[#allocation53_spill] sm:$0xff] }
 0x2bf   :  { %3624 = vmatprep.subr.bf16.mxu1 %v15657_v29  ;;  %8477 = vmatprep.subr.bf16.mxu0 %v15596_v30  ;;  %v15690_v29 = vld [vmem:[#allocation54_spill] sm:$0xff] }
 0x2c2   :  { %3625 = vmatpush1.bf16.msra.mxu1 %v15658_v25  ;;  %8478 = vmatpush3.bf16.msra.mxu0 %v15659_v31  ;;  %v15691_v31 = vld [vmem:[#allocation55_spill] sm:$0xff] }
 0x2c3   :  { %3626 = vmatprep.subr.bf16.mxu1 %v15660_v3  ;;  %8479 = vmatprep.subr.bf16.mxu0 %v15596_v30  ;;  %v15692_v3 = vld [vmem:[#allocation56_spill] sm:$0xff] }
 0x2c4   :  { %v9517_v36 = vpop.eup %9516 }
 0x2c5   :  { %v3372_v40 = vadd.f32 1.0, %v9517_v36 }
 0x2c6   :  { %v9519_v44 = vpop.eup %9518  ;;  %3627 = vmatpush1.bf16.msra.mxu1 %v15661_v32  ;;  %8480 = vmatpush3.bf16.msra.mxu0 %v15662_v24  ;;  %v15696_v32 = vld [vmem:[#allocation60_spill] sm:$0xff]  ;;  %v15697_v24 = vld [vmem:[#allocation61_spill] sm:$0xff] }
 0x2c7   :  { %9522 = vrcp.f32 %v3372_v40  ;;  %3628 = vmatprep.subr.bf16.mxu1 %v15663_v37  ;;  %8481 = vmatprep.subr.bf16.mxu0 %v15596_v30  ;;  %v3277_v38 = vmul.f32 %v9519_v44, %v3276_v53  ;;  %v9521_v58 = vpop.eup %9520  ;;  %v15693_v40 = vld [vmem:[#allocation57_spill] sm:$0xff]  ;;  %v15694_v53 = vld [vmem:[#allocation58_spill] sm:$0xff]  ;;  %v15695_v44 = vld [vmem:[#allocation59_spill] sm:$0xff] }
 0x2c8   :  { %v3379_v61 = vadd.f32 1.0, %v9521_v58  ;;  %v15698_v37 = vld [vmem:[#allocation62_spill] sm:$0xff] }
 0x2c9   :  { %v12238_v8 = vadd.f32 %v3278_v6, %v3277_v38  ;;  %v15699_v38 = vld [vmem:[#allocation63_spill] sm:$0xff]  ;;  %v15701_v6 = vld [vmem:[#allocation65_spill] sm:$0xff]  ;;  %v15706_v58 = vld [vmem:[#allocation70_spill] sm:$0xff] }
 0x2ca   :  { %3629 = vmatpush1.bf16.msra.mxu1 %v15665_v16  ;;  %8482 = vmatpush3.bf16.msra.mxu0 %v15666_v12  ;;  %9524 = vrcp.f32 %v3379_v61  ;;  %v15702_v16 = vld [vmem:[#allocation66_spill] sm:$0xff]  ;;  %v15703_v12 = vld [vmem:[#allocation67_spill] sm:$0xff] }
 0x2cb   :  { %v3613_v15 = vpack.c.bf16 %v12238_v8, %v12238_v8  ;;  %3723 = vmatprep.subr.bf16.mxu1 %v15667_v17  ;;  %8487 = vmatprep.subr.bf16.mxu0 %v15596_v30  ;;  %v15705_v17 = vld [vmem:[#allocation69_spill] sm:$0xff]  ;;  %v15710_v61 = vld [vmem:[#allocation74_spill] sm:$0xff] }
 0x2cd   :  { %3647 = vmatmul.mubr.bf16.vlgmr.msra.gmra.mxu1 %v3613_v15  ;;  %8484 = vmatmul.mubr.bf16.vlgmr.msra.gmra.mxu0 %v3613_v15  ;;  %v15704_v15 = vld [vmem:[#allocation68_spill] sm:$0xff] }
 0x2ce   :  { %3724 = vmatpush1.bf16.msra.mxu1 %v15668_v56  ;;  %8488 = vmatpush3.bf16.msra.mxu0 %v15669_v19  ;;  %v15707_v56 = vld [vmem:[#allocation71_spill] sm:$0xff]  ;;  %v15708_v19 = vld [vmem:[#allocation72_spill] sm:$0xff] }
 0x2cf   :  { %3725 = vmatprep.subr.bf16.mxu1 %v15670_v33  ;;  %8489 = vmatprep.subr.bf16.mxu0 %v15596_v30  ;;  %v15709_v33 = vld [vmem:[#allocation73_spill] sm:$0xff] }
 0x2d0   :  { %3755 = vmatprep.mubr.bf16.mxu1 %v15601_v14  ;;  %8503 = vmatprep.mubr.msk.bf16.mxu0 %vm10282_vm0, %v15596_v30 }
 0x2d2   :  { %3726 = vmatpush1.bf16.msra.mxu1 %v15671_v10  ;;  %8490 = vmatpush3.bf16.msra.mxu0 %v15672_v45  ;;  %v15711_v10 = vld [vmem:[#allocation75_spill] sm:$0xff]  ;;  %v15712_v45 = vld [vmem:[#allocation76_spill] sm:$0xff] }
 0x2d3   :  { %3727 = vmatprep.subr.bf16.mxu1 %v15674_v48  ;;  %8491 = vmatprep.subr.bf16.mxu0 %v15596_v30  ;;  %v15714_v48 = vld [vmem:[#allocation78_spill] sm:$0xff] }
 0x2d4   :  { %v9523_v43 = vpop.eup %9522 }
 0x2d5   :  { %v3382_v42 = vmul.f32 %v9523_v43, %v3363_v52  ;;  %v15713_v52 = vld [vmem:[#allocation77_spill] sm:$0xff]  ;;  %v15715_v43 = vld [vmem:[#allocation79_spill] sm:$0xff] }
 0x2d6   :  { %3728 = vmatpush1.bf16.msra.mxu1 %v15675_v5  ;;  %8492 = vmatpush3.bf16.msra.mxu0 %v15676_v35  ;;  %v3390_v5 = vld [vmem:[#allocation2 + $0x30] sm:$0xff] }
 0x2d7   :  { %v3383_v46 = vadd.f32 %v3382_v42, %v3285_v1  ;;  %3729 = vmatprep.subr.bf16.mxu1 %v15677_v39  ;;  %8493 = vmatprep.subr.bf16.mxu0 %v15596_v30  ;;  %v9525_v28 = vpop.eup %9524  ;;  %v15716_v1 = vld [vmem:[#allocation80_spill] sm:$0xff]  ;;  %v15717_v42 = vld [vmem:[#allocation81_spill] sm:$0xff]  ;;  %v3392_v39 = vunpack.c.l.bf16 %v3390_v5 }
 0x2d8   :  { %v3385_v18 = vsub.f32 1.0, %v9525_v28  ;;  %v3387_v9 = vmul.f32 %v9525_v28, %v15690_v29 }
 0x2d9   :  { %9526 = vtanh.f32 %v3383_v46 }
 0x2da   :  { %3730 = vmatpush1.bf16.msra.mxu1 %v15678_v22  ;;  %8494 = vmatpush3.bf16.msra.mxu0 %v15679_v11  ;;  %v15718_v22 = vld [vmem:[#allocation7_spill] sm:$0xff] }
 0x2db   :  { %3731 = vmatprep.subr.bf16.mxu1 %v15680_v57  ;;  %8495 = vmatprep.subr.bf16.mxu0 %v15596_v30 }
 0x2de   :  { %3732 = vmatpush1.bf16.msra.mxu1 %v15681_v21  ;;  %8496 = vmatpush3.bf16.msra.mxu0 %v15682_v47 }
 0x2df   :  { %3733 = vmatprep.subr.bf16.mxu1 %v15683_v54  ;;  %8497 = vmatprep.subr.bf16.mxu0 %v15596_v30 }
 0x2e2   :  { %3734 = vmatpush1.bf16.msra.mxu1 %v15684_v20  ;;  %8498 = vmatpush3.bf16.msra.mxu0 %v15685_v7  ;;  %v15719_v7 = vld [vmem:[#allocation8_spill] sm:$0xff] }
 0x2e3   :  { %3735 = vmatprep.subr.bf16.mxu1 %v15686_v26  ;;  %8499 = vmatprep.subr.bf16.mxu0 %v15596_v30 }
 0x2e6   :  { %v9527_v27 = vpop.eup %9526  ;;  %3736 = vmatpush1.bf16.msra.mxu1 %v15687_v2  ;;  %8500 = vmatpush3.bf16.msra.mxu0 %v15688_v60  ;;  %v3393_v2 = vunpack.c.h.bf16 %v3390_v5 }
 0x2e7   :  { %3737 = vmatprep.subr.bf16.mxu1 %v15689_v50  ;;  %8501 = vmatprep.subr.bf16.mxu0 %v15596_v30  ;;  %v3386_v4 = vmul.f32 %v9527_v27, %v3385_v18 }
 0x2e9   :  { %v12281_v25 = vadd.f32 %v3387_v9, %v3386_v4 }
 0x2ea   :  { %3738 = vmatpush1.bf16.msra.mxu1 %v15691_v31  ;;  %8502 = vmatpush3.bf16.msra.mxu0 %v15692_v3  ;;  %v3499_v31 = vld [vmem:[#allocation2 + $0xe4] sm:$0xff] }
 0x2eb   :  { %v3722_v36 = vpack.c.bf16 %v12281_v25, %v12281_v25  ;;  %3832 = vmatprep.subr.bf16.mxu1 %v15693_v40  ;;  %8507 = vmatprep.subr.bf16.mxu0 %v15596_v30  ;;  %v12326_v40 = vld [vmem:[#allocation2 + $0x38] ss:$180 sps:$4 sm:$0xff]  }
 0x2ed   :  { %3756 = vmatmul.mubr.bf16.vlgmr.msra.gmra.mxu1 %v3722_v36  ;;  %8504 = vmatmul.mubr.bf16.vlgmr.msra.gmra.mxu0 %v3722_v36 }
 0x2ee   :  { %3833 = vmatpush1.bf16.msra.mxu1 %v15694_v53  ;;  %8508 = vmatpush3.bf16.msra.mxu0 %v15695_v44  ;;  %v3501_v44 = vunpack.c.l.bf16 %v3499_v31 }
 0x2ef   :  { %3834 = vmatprep.subr.bf16.mxu1 %v15696_v32  ;;  %8509 = vmatprep.subr.bf16.mxu0 %v15596_v30  ;;  %v15720_v32 = vld [vmem:[#allocation10_spill] sm:$0xff] }
 0x2f0   :  { %3864 = vmatprep.mubr.bf16.mxu1 %v15601_v14  ;;  %8523 = vmatprep.mubr.msk.bf16.mxu0 %vm10282_vm0, %v15596_v30 }
 0x2f2   :  { %3835 = vmatpush1.bf16.msra.mxu1 %v15697_v24  ;;  %8510 = vmatpush3.bf16.msra.mxu0 %v15698_v37 }
 0x2f3   :  { %3836 = vmatprep.subr.bf16.mxu1 %v15699_v38  ;;  %8511 = vmatprep.subr.bf16.mxu0 %v15596_v30 }
 0x2f6   :  { %3837 = vmatpush1.bf16.msra.mxu1 %v15700_v62  ;;  %8512 = vmatpush3.bf16.msra.mxu0 %v15701_v6  ;;  %v15721_v62 = vld [vmem:[#allocation9_spill] sm:$0xff] }
 0x2f7   :  { %3838 = vmatprep.subr.bf16.mxu1 %v15702_v16  ;;  %8513 = vmatprep.subr.bf16.mxu0 %v15596_v30 }
 0x2fa   :  { %3839 = vmatpush1.bf16.msra.mxu1 %v15703_v12  ;;  %8514 = vmatpush3.bf16.msra.mxu0 %v15704_v15  ;;  %v3394_v15 = vunpack.c.l.bf16 %v12326_v40 }
 0x2fb   :  { %3840 = vmatprep.subr.bf16.mxu1 %v15705_v17  ;;  %8515 = vmatprep.subr.bf16.mxu0 %v15596_v30 }
 0x2fe   :  { %3841 = vmatpush1.bf16.msra.mxu1 %v15706_v58  ;;  %8516 = vmatpush3.bf16.msra.mxu0 %v15707_v56 }
 0x2ff   :  { %3842 = vmatprep.subr.bf16.mxu1 %v15708_v19  ;;  %8517 = vmatprep.subr.bf16.mxu0 %v15596_v30 }
 0x302   :  { %3843 = vmatpush1.bf16.msra.mxu1 %v15709_v33  ;;  %8518 = vmatpush3.bf16.msra.mxu0 %v15710_v61 }
 0x303   :  { %3844 = vmatprep.subr.bf16.mxu1 %v15711_v10  ;;  %8519 = vmatprep.subr.bf16.mxu0 %v15596_v30 }
 0x306   :  { %3845 = vmatpush1.bf16.msra.mxu1 %v15712_v45  ;;  %8520 = vmatpush3.bf16.msra.mxu0 %v15713_v52  ;;  %v3502_v52 = vunpack.c.h.bf16 %v3499_v31 }
 0x307   :  { %3846 = vmatprep.subr.bf16.mxu1 %v15714_v48  ;;  %8521 = vmatprep.subr.bf16.mxu0 %v15596_v30 }
 0x30a   :  { %3847 = vmatpush1.bf16.msra.mxu1 %v15715_v43  ;;  %8522 = vmatpush3.bf16.msra.mxu0 %v15716_v1 }
 0x30b   :  { %3941 = vmatprep.subr.bf16.mxu1 %v15717_v42  ;;  %8527 = vmatprep.subr.bf16.mxu0 %v15596_v30 }
 0x34d   :  { %v3430_v35 = vpop.f32.mrf.mxu1  ;;  %v3471_v46 = vpop.f32.mrf.mxu0 }
 0x34e   :  { %v3431_v11 = vadd.f32 %v3430_v35, %v15718_v22  ;;  %v3472_v6 = vadd.f32 %v3471_v46, %v15721_v62 }
 0x34f   :  { %v3432_v57 = vpop.f32.mrf.mxu1  ;;  %v8445_v21 = vpop.f32.mrf.mxu0 }
 0x350   :  { %v3477_v47 = vadd.f32 %v3431_v11, %v3392_v39  ;;  %v3433_v26 = vadd.f32 %v3432_v57, %v15719_v7 }
 0x351   :  { %v3434_v54 = vpop.f32.mrf.mxu1  ;;  %v3474_v28 = vpop.f32.mrf.mxu0 }
 0x352   :  { %v7718_v20 = vmul.f32 -1.442695, %v3477_v47  ;;  %v3484_v60 = vadd.f32 %v3433_v26, %v3393_v2  ;;  %v12340_v54 = vld [vmem:[%s15276_s3 + $0x168] ss:$12 sps:$4 sm:$0xff]   ;;  %v12346_v28 = vld [vmem:[%s15276_s3 + $0x170] ss:$12 sps:$4 sm:$0xff]  }
 0x353   :  { %v3435_v18 = vpop.f32.mrf.mxu1  ;;  %v8446_v27 = vpop.f32.mrf.mxu0 }
 0x354   :  { %9528 = vpow2.f32 %v7718_v20  ;;  %v7719_v50 = vmul.f32 -1.442695, %v3484_v60  ;;  %v12352_v20 = vld [vmem:[%s15276_s3 + $0x154] ss:$12 sps:$4 sm:$0xff]  }
 0x356   :  { %9530 = vpow2.f32 %v7719_v50 }
 0x361   :  { %v9529_v4 = vpop.eup %9528 }
 0x362   :  { %v3481_v29 = vadd.f32 1.0, %v9529_v4 }
 0x363   :  { %v9531_v9 = vpop.eup %9530 }
 0x364   :  { %9532 = vrcp.f32 %v3481_v29  ;;  %v3488_v53 = vadd.f32 1.0, %v9531_v9  ;;  %v12365_v29 = vld [vmem:[%s15276_s3 + $0x150] ss:$12 sps:$4 sm:$0xff]   ;;  %v12371_v9 = vld [vmem:[%s15276_s3 + $0x158] ss:$12 sps:$4 sm:$0xff]  }
 0x366   :  { %9534 = vrcp.f32 %v3488_v53  ;;  %v12378_v53 = vld [vmem:[%s15276_s3 + $0x13c] ss:$12 sps:$4 sm:$0xff]  }
 0x36d   :  { %v3539_v3 = vpop.f32.mrf.mxu1  ;;  %v3580_v36 = vpop.f32.mrf.mxu0 }
 0x36e   :  { %v3540_v24 = vadd.f32 %v3539_v3, %v15720_v32  ;;  %v3581_v31 = vadd.f32 %v3580_v36, %v11461_v41 }
 0x36f   :  { %v3541_v37 = vpop.f32.mrf.mxu1  ;;  %v8465_v38 = vpop.f32.mrf.mxu0 }
 0x370   :  { %v3586_v16 = vadd.f32 %v3540_v24, %v3501_v44  ;;  %v3542_v33 = vadd.f32 %v3541_v37, %v11443_v13  ;;  %v3503_v24 = vunpack.c.h.bf16 %v12326_v40  ;;  %v12393_v40 = vld [vmem:[%s15276_s3 + $0x140] ss:$12 sps:$4 sm:$0xff]  }
 0x371   :  { %v9533_v12 = vpop.eup %9532  ;;  %v3543_v17 = vpop.f32.mrf.mxu1 }
 0x372   :  { %v3583_v58 = vpop.f32.mrf.mxu0  ;;  %v3491_v56 = vmul.f32 %v9533_v12, %v3472_v6  ;;  %v7720_v19 = vmul.f32 -1.442695, %v3586_v16  ;;  %v3593_v48 = vadd.f32 %v3542_v33, %v3502_v52  ;;  %v12387_v17 = vld [vmem:[%s15276_s3 + $0x138] ss:$12 sps:$4 sm:$0xff]  }
 0x373   :  { %v3544_v61 = vpop.f32.mrf.mxu1  ;;  %v9535_v1 = vpop.eup %9534 }
 0x374   :  { %v8466_v10 = vpop.f32.mrf.mxu0  ;;  %v3492_v45 = vadd.f32 %v3491_v56, %v3394_v15  ;;  %9536 = vpow2.f32 %v7720_v19  ;;  %v7721_v43 = vmul.f32 -1.442695, %v3593_v48  ;;  %v3494_v35 = vsub.f32 1.0, %v9535_v1  ;;  %v12399_v19 = vld [vmem:[%s15276_s3 + $0x124] ss:$12 sps:$4 sm:$0xff]  }
 0x375   :  { %v3496_v11 = vmul.f32 %v9535_v1, %v12147_v59  ;;  %v3608_v59 = vld [vmem:[#allocation3 + $0x30] sm:$0xff]  ;;  %v12406_v61 = vld [vmem:[%s15276_s3 + $0x120] ss:$12 sps:$4 sm:$0xff]  }
 0x376   :  { %9538 = vtanh.f32 %v3492_v45  ;;  %v3610_v2 = vunpack.c.l.bf16 %v3608_v59  ;;  %v3611_v56 = vunpack.c.h.bf16 %v3608_v59  ;;  %v12412_v10 = vld [vmem:[%s15276_s3 + $0x128] ss:$12 sps:$4 sm:$0xff]   ;;  %v12418_v45 = vld [vmem:[%s15276_s3 + $0x10c] ss:$12 sps:$4 sm:$0xff]  }
 0x377   :  { %9540 = vpow2.f32 %v7721_v43  ;;  %v12425_v48 = vld [vmem:[%s15276_s3 + $0x108] ss:$12 sps:$4 sm:$0xff]   ;;  %v12431_v43 = vld [vmem:[%s15276_s3 + $0x110] ss:$12 sps:$4 sm:$0xff]   ;;  %v12463_v59 = vld [vmem:[%s15276_s3 + $0xd8] ss:$12 sps:$4 sm:$0xff]  }
 0x378   :  { %v12437_v1 = vld [vmem:[%s15276_s3 + $0xf4] ss:$12 sps:$4 sm:$0xff]  }
 0x381   :  { %v9537_v42 = vpop.eup %9536 }
 0x382   :  { %v3590_v5 = vadd.f32 1.0, %v9537_v42 }
 0x383   :  { %v9539_v46 = vpop.eup %9538 }
 0x384   :  { %9542 = vrcp.f32 %v3590_v5  ;;  %v3495_v39 = vmul.f32 %v9539_v46, %v3494_v35  ;;  %v9541_v47 = vpop.eup %9540  ;;  %v12444_v5 = vld [vmem:[%s15276_s3 + $0xf0] ss:$12 sps:$4 sm:$0xff]   ;;  %v12450_v35 = vld [vmem:[%s15276_s3 + $0xf8] ss:$12 sps:$4 sm:$0xff]  }
 0x385   :  { %v3597_v27 = vadd.f32 1.0, %v9541_v47  ;;  %v12456_v46 = vld [vmem:[%s15276_s3 + $0xdc] ss:$12 sps:$4 sm:$0xff]  }
 0x386   :  { %v12333_v57 = vadd.f32 %v3496_v11, %v3495_v39 }
 0x387   :  { %9544 = vrcp.f32 %v3597_v27  ;;  %v12475_v27 = vld [vmem:[%s15276_s3 + $0xc4] ss:$12 sps:$4 sm:$0xff]  }
 0x388   :  { %v3831_v21 = vpack.c.bf16 %v12333_v57, %v12333_v57 }
 0x38a   :  { %3865 = vmatmul.mubr.bf16.vlgmr.msra.gmra.mxu1 %v3831_v21  ;;  %8524 = vmatmul.mubr.bf16.vlgmr.msra.gmra.mxu0 %v3831_v21 }
 0x38b   :  { %3942 = vmatpush1.bf16.msra.mxu1 %v12340_v54  ;;  %8528 = vmatpush3.bf16.msra.mxu0 %v12346_v28 }
 0x38c   :  { %3943 = vmatprep.subr.bf16.mxu1 %v12352_v20  ;;  %8529 = vmatprep.subr.bf16.mxu0 %v15596_v30 }
 0x38d   :  { %v3648_v26 = vpop.f32.mrf.mxu1  ;;  %v12356_v18 = vpop.f32.mrf.mxu0  ;;  %3973 = vmatprep.mubr.bf16.mxu1 %v15601_v14  ;;  %8543 = vmatprep.mubr.msk.bf16.mxu0 %vm10282_vm0, %v15596_v30 }
 0x38e   :  { %v3649_v60 = vadd.f32 %v3648_v26, %v11465_v49  ;;  %v12469_v26 = vld [vmem:[%s15276_s3 + $0xe0] ss:$12 sps:$4 sm:$0xff]  }
 0x38f   :  { %v3650_v50 = vpop.f32.mrf.mxu1  ;;  %v8485_v4 = vpop.f32.mrf.mxu0  ;;  %3944 = vmatpush1.bf16.msra.mxu1 %v12365_v29  ;;  %8530 = vmatpush3.bf16.msra.mxu0 %v12371_v9 }
 0x390   :  { %v3695_v3 = vadd.f32 %v3649_v60, %v3610_v2  ;;  %3945 = vmatprep.subr.bf16.mxu1 %v12378_v53  ;;  %8531 = vmatprep.subr.bf16.mxu0 %v15596_v30  ;;  %v3651_v36 = vadd.f32 %v3650_v50, %v11488_v34  ;;  %v12485_v4 = vld [vmem:[%s15276_s3 + $0xc0] ss:$12 sps:$4 sm:$0xff]  }
 0x391   :  { %v9543_v44 = vpop.eup %9542  ;;  %v3652_v37 = vpop.f32.mrf.mxu1 }
 0x392   :  { %v3692_v38 = vpop.f32.mrf.mxu0  ;;  %v3600_v6 = vmul.f32 %v9543_v44, %v3581_v31  ;;  %v7722_v16 = vmul.f32 -1.442695, %v3695_v3  ;;  %v3702_v33 = vadd.f32 %v3651_v36, %v3611_v56  ;;  %v12491_v31 = vld [vmem:[%s15276_s3 + $0xc8] ss:$12 sps:$4 sm:$0xff]   ;;  %v12512_v37 = vld [vmem:[%s15277_s7 + $0xb0] ss:$12 sps:$4 sm:$0xff]  }
 0x393   :  { %v3653_v12 = vpop.f32.mrf.mxu1  ;;  %3946 = vmatpush1.bf16.msra.mxu1 %v12387_v17  ;;  %8532 = vmatpush3.bf16.msra.mxu0 %v12393_v40  ;;  %v3717_v38 = vld [vmem:[#allocation3 + $0x84] sm:$0xff] }
 0x394   :  { %v8486_v15 = vpop.f32.mrf.mxu0  ;;  %v3601_v58 = vadd.f32 %v3600_v6, %v3503_v24  ;;  %9546 = vpow2.f32 %v7722_v16  ;;  %3947 = vmatprep.subr.bf16.mxu1 %v12399_v19  ;;  %8533 = vmatprep.subr.bf16.mxu0 %v15596_v30  ;;  %v7723_v52 = vmul.f32 -1.442695, %v3702_v33  ;;  %v9545_v42 = vpop.eup %9544  ;;  %v12506_v24 = vld [vmem:[%s15277_s7 + $0xa8] ss:$12 sps:$4 sm:$0xff]   ;;  %v12527_v12 = vld [vmem:[#allocation3 + $0x38] ss:$84 sps:$4 sm:$0xff]  }
 0x395   :  { %v3603_v21 = vsub.f32 1.0, %v9545_v42  ;;  %v3605_v60 = vmul.f32 %v9545_v42, %v12189_v55  ;;  %v12499_v55 = vld [vmem:[%s15277_s7 + $0xac] ss:$12 sps:$4 sm:$0xff]   ;;  %v12518_v6 = vld [vmem:[%s15277_s7 + $0x94] ss:$12 sps:$4 sm:$0xff]  }
 0x396   :  { %9548 = vtanh.f32 %v3601_v58  ;;  %v3719_v58 = vunpack.c.l.bf16 %v3717_v38  ;;  %v12533_v42 = vld [vmem:[%s15277_s7 + $0x90] ss:$12 sps:$4 sm:$0xff]  }
 0x397   :  { %3948 = vmatpush1.bf16.msra.mxu1 %v12406_v61  ;;  %8534 = vmatpush3.bf16.msra.mxu0 %v12412_v10  ;;  %9550 = vpow2.f32 %v7723_v52 }
 0x398   :  { %3949 = vmatprep.subr.bf16.mxu1 %v12418_v45  ;;  %8535 = vmatprep.subr.bf16.mxu0 %v15596_v30 }
 0x39b   :  { %3950 = vmatpush1.bf16.msra.mxu1 %v12425_v48  ;;  %8536 = vmatpush3.bf16.msra.mxu0 %v12431_v43 }
 0x39c   :  { %3951 = vmatprep.subr.bf16.mxu1 %v12437_v1  ;;  %8537 = vmatprep.subr.bf16.mxu0 %v15596_v30 }
 0x39f   :  { %3952 = vmatpush1.bf16.msra.mxu1 %v12444_v5  ;;  %8538 = vmatpush3.bf16.msra.mxu0 %v12450_v35 }
 0x3a0   :  { %3953 = vmatprep.subr.bf16.mxu1 %v12456_v46  ;;  %8539 = vmatprep.subr.bf16.mxu0 %v15596_v30 }
 0x3a1   :  { %v9547_v39 = vpop.eup %9546 }
 0x3a2   :  { %v3699_v11 = vadd.f32 1.0, %v9547_v39  ;;  %v12539_v39 = vld [vmem:[%s15277_s7 + $0x98] ss:$12 sps:$4 sm:$0xff]  }
 0x3a3   :  { %v9549_v47 = vpop.eup %9548  ;;  %3954 = vmatpush1.bf16.msra.mxu1 %v12463_v59  ;;  %8540 = vmatpush3.bf16.msra.mxu0 %v12469_v26 }
 0x3a4   :  { %9552 = vrcp.f32 %v3699_v11  ;;  %3955 = vmatprep.subr.bf16.mxu1 %v12475_v27  ;;  %8541 = vmatprep.subr.bf16.mxu0 %v15596_v30  ;;  %v3604_v2 = vmul.f32 %v9549_v47, %v3603_v21  ;;  %v9551_v44 = vpop.eup %9550  ;;  %v3690_v11 = vadd.f32 %v12356_v18, %v11647_v51  ;;  %v12547_v47 = vld [vmem:[%s15277_s7 + $0x7c] ss:$12 sps:$4 sm:$0xff]   ;;  %v12556_v51 = vld [vmem:[%s15277_s7 + $0x78] ss:$12 sps:$4 sm:$0xff]  }
 0x3a5   :  { %v3706_v15 = vadd.f32 1.0, %v9551_v44  ;;  %15722 = vst [vmem:[#allocation13_spill] sm:$0xff] %v12547_v47 }
 0x3a6   :  { %v12480_v50 = vadd.f32 %v3605_v60, %v3604_v2  ;;  %v3612_v60 = vunpack.c.l.bf16 %v12527_v12 }
 0x3a7   :  { %3956 = vmatpush1.bf16.msra.mxu1 %v12485_v4  ;;  %8542 = vmatpush3.bf16.msra.mxu0 %v12491_v31  ;;  %9554 = vrcp.f32 %v3706_v15 }
 0x3a8   :  { %v3940_v3 = vpack.c.bf16 %v12480_v50, %v12480_v50  ;;  %4050 = vmatprep.subr.bf16.mxu1 %v12499_v55  ;;  %8547 = vmatprep.subr.bf16.mxu0 %v15596_v30 }
 0x3aa   :  { %3974 = vmatmul.mubr.bf16.vlgmr.msra.gmra.mxu1 %v3940_v3  ;;  %8544 = vmatmul.mubr.bf16.vlgmr.msra.gmra.mxu0 %v3940_v3 }
 0x3ab   :  { %4051 = vmatpush1.bf16.msra.mxu1 %v12506_v24  ;;  %8548 = vmatpush3.bf16.msra.mxu0 %v12512_v37 }
 0x3ac   :  { %4052 = vmatprep.subr.bf16.mxu1 %v12518_v6  ;;  %8549 = vmatprep.subr.bf16.mxu0 %v15596_v30 }
 0x3ad   :  { %v3757_v16 = vpop.f32.mrf.mxu1  ;;  %v12522_v36 = vpop.f32.mrf.mxu0  ;;  %4082 = vmatprep.mubr.bf16.mxu1 %v15601_v14  ;;  %8563 = vmatprep.mubr.msk.bf16.mxu0 %vm10282_vm0, %v15596_v30 }
 0x3ae   :  { %v3758_v56 = vadd.f32 %v3757_v16, %v11643_v63 }
 0x3af   :  { %v3759_v33 = vpop.f32.mrf.mxu1  ;;  %v8505_v52 = vpop.f32.mrf.mxu0  ;;  %4053 = vmatpush1.bf16.msra.mxu1 %v12533_v42  ;;  %8550 = vmatpush3.bf16.msra.mxu0 %v12539_v39 }
 0x3b0   :  { %v3804_v21 = vadd.f32 %v3758_v56, %v3719_v58  ;;  %4054 = vmatprep.subr.bf16.mxu1 %v12547_v47  ;;  %8551 = vmatprep.subr.bf16.mxu0 %v15596_v30  ;;  %v3760_v18 = vadd.f32 %v3759_v33, %v15648_v23  ;;  %v12562_v47 = vld [vmem:[%s15277_s7 + $0x80] ss:$12 sps:$4 sm:$0xff]   ;;  %v12568_v33 = vld [vmem:[%s15277_s7 + $0x64] ss:$12 sps:$4 sm:$0xff]  }
 0x3b1   :  { %v9553_v2 = vpop.eup %9552  ;;  %v3761_v3 = vpop.f32.mrf.mxu1  ;;  %15723 = vst [vmem:[#allocation14_spill] sm:$0xff] %v12562_v47  ;;  %15724 = vst [vmem:[#allocation15_spill] sm:$0xff] %v12568_v33 }
 0x3b2   :  { %v3801_v44 = vpop.f32.mrf.mxu0  ;;  %v3709_v16 = vmul.f32 %v9553_v2, %v3690_v11  ;;  %v7724_v52 = vmul.f32 -1.442695, %v3804_v21  ;;  %v3720_v11 = vunpack.c.h.bf16 %v3717_v38  ;;  %v12575_v2 = vld [vmem:[%s15277_s7 + $0x60] ss:$12 sps:$4 sm:$0xff]   ;;  %v12581_v38 = vld [vmem:[%s15277_s7 + $0x68] ss:$12 sps:$4 sm:$0xff]  }
 0x3b3   :  { %v3762_v58 = vpop.f32.mrf.mxu1  ;;  %4055 = vmatpush1.bf16.msra.mxu1 %v12556_v51  ;;  %8552 = vmatpush3.bf16.msra.mxu0 %v12562_v47  ;;  %15725 = vst [vmem:[#allocation16_spill] sm:$0xff] %v12575_v2  ;;  %15726 = vst [vmem:[#allocation17_spill] sm:$0xff] %v12581_v38  ;;  %v12594_v44 = vld [vmem:[%s15277_s7 + $0x48] ss:$12 sps:$4 sm:$0xff]  }
 0x3b4   :  { %v8506_v56 = vpop.f32.mrf.mxu0  ;;  %v3710_v15 = vadd.f32 %v3709_v16, %v3612_v60  ;;  %9556 = vpow2.f32 %v7724_v52  ;;  %4056 = vmatprep.subr.bf16.mxu1 %v12568_v33  ;;  %8553 = vmatprep.subr.bf16.mxu0 %v15596_v30  ;;  %v3811_v21 = vadd.f32 %v3760_v18, %v3720_v11  ;;  %v12587_v60 = vld [vmem:[%s15277_s7 + $0x4c] ss:$12 sps:$4 sm:$0xff]   ;;  %15728 = vst [vmem:[#allocation19_spill] sm:$0xff] %v12594_v44  ;;  %v12600_v16 = vld [vmem:[%s15277_s7 + $0x50] ss:$12 sps:$4 sm:$0xff]   ;;  %v9555_v18 = vpop.eup %9554 }
 0x3b5   :  { %15727 = vst [vmem:[#allocation18_spill] sm:$0xff] %v12587_v60  ;;  %15729 = vst [vmem:[#allocation20_spill] sm:$0xff] %v12600_v16  ;;  %v12606_v52 = vld [vmem:[%s15277_s7 + $0x34] ss:$12 sps:$4 sm:$0xff]   ;;  %v12613_v58 = vld [vmem:[%s15277_s7 + $0x30] ss:$12 sps:$4 sm:$0xff]  }
 0x3b6   :  { %9558 = vtanh.f32 %v3710_v15  ;;  %v7725_v3 = vmul.f32 -1.442695, %v3811_v21  ;;  %15730 = vst [vmem:[#allocation21_spill] sm:$0xff] %v12606_v52  ;;  %15731 = vst [vmem:[#allocation22_spill] sm:$0xff] %v12613_v58  ;;  %v12619_v56 = vld [vmem:[%s15277_s7 + $0x38] ss:$12 sps:$4 sm:$0xff]  }
 0x3b7   :  { %4057 = vmatpush1.bf16.msra.mxu1 %v12575_v2  ;;  %8554 = vmatpush3.bf16.msra.mxu0 %v12581_v38  ;;  %15732 = vst [vmem:[#allocation23_spill] sm:$0xff] %v12619_v56  ;;  %v12625_v15 = vld [vmem:[%s15277_s7 + $0x1c] ss:$12 sps:$4 sm:$0xff]  }
 0x3b8   :  { %4058 = vmatprep.subr.bf16.mxu1 %v12587_v60  ;;  %8555 = vmatprep.subr.bf16.mxu0 %v15596_v30  ;;  %9560 = vpow2.f32 %v7725_v3  ;;  %15733 = vst [vmem:[#allocation24_spill] sm:$0xff] %v12625_v15  ;;  %v3712_v3 = vsub.f32 1.0, %v9555_v18 }
 0x3bb   :  { %4059 = vmatpush1.bf16.msra.mxu1 %v12594_v44  ;;  %8556 = vmatpush3.bf16.msra.mxu0 %v12600_v16  ;;  %v12654_v44 = vld [vmem:[%s15277_s7] ss:$12 sps:$4 sm:$0xff]  }
 0x3bc   :  { %4060 = vmatprep.subr.bf16.mxu1 %v12606_v52  ;;  %8557 = vmatprep.subr.bf16.mxu0 %v15596_v30  ;;  %v12632_v52 = vld [vmem:[%s15277_s7 + $0x18] ss:$12 sps:$4 sm:$0xff]   ;;  %15738 = vst [vmem:[#allocation29_spill] sm:$0xff] %v12654_v44 }
 0x3bd   :  { %15734 = vst [vmem:[#allocation25_spill] sm:$0xff] %v12632_v52 }
 0x3bf   :  { %4061 = vmatpush1.bf16.msra.mxu1 %v12613_v58  ;;  %8558 = vmatpush3.bf16.msra.mxu0 %v12619_v56  ;;  %v12638_v56 = vld [vmem:[%s15277_s7 + $0x20] ss:$12 sps:$4 sm:$0xff]  }
 0x3c0   :  { %4062 = vmatprep.subr.bf16.mxu1 %v12625_v15  ;;  %8559 = vmatprep.subr.bf16.mxu0 %v15596_v30  ;;  %15735 = vst [vmem:[#allocation26_spill] sm:$0xff] %v12638_v56 }
 0x3c1   :  { %v9557_v11 = vpop.eup %9556 }
 0x3c2   :  { %v3808_v21 = vadd.f32 1.0, %v9557_v11  ;;  %v12644_v11 = vld [vmem:[%s15277_s7 + $0x4] ss:$12 sps:$4 sm:$0xff]  }
 0x3c3   :  { %v9559_v58 = vpop.eup %9558  ;;  %4063 = vmatpush1.bf16.msra.mxu1 %v12632_v52  ;;  %8560 = vmatpush3.bf16.msra.mxu0 %v12638_v56  ;;  %15736 = vst [vmem:[#allocation27_spill] sm:$0xff] %v12644_v11  ;;  %v3714_v52 = vmul.f32 %v9555_v18, %v12238_v8  ;;  %v12668_v8 = vld [vmem:[%s15277_s7 + $0x16c] ss:$12 sps:$4 sm:$0xff]   ;;  %v12675_v18 = vld [vmem:[%s15277_s7 + $0x168] ss:$12 sps:$4 sm:$0xff]  }
 0x3c4   :  { %9562 = vrcp.f32 %v3808_v21  ;;  %4064 = vmatprep.subr.bf16.mxu1 %v12644_v11  ;;  %8561 = vmatprep.subr.bf16.mxu0 %v15596_v30  ;;  %v3713_v15 = vmul.f32 %v9559_v58, %v3712_v3  ;;  %v12660_v21 = vld [vmem:[%s15277_s7 + $0x8] ss:$12 sps:$4 sm:$0xff]   ;;  %15740 = vst [vmem:[#allocation31_spill] sm:$0xff] %v12668_v8  ;;  %15741 = vst [vmem:[#allocation33_spill] sm:$0xff] %v12675_v18 }
 0x3c5   :  { %15739 = vst [vmem:[#allocation30_spill] sm:$0xff] %v12660_v21  ;;  %v12687_v3 = vld [vmem:[%s15277_s7 + $0x154] ss:$12 sps:$4 sm:$0xff]  }
 0x3c6   :  { %v12649_v16 = vadd.f32 %v3714_v52, %v3713_v15  ;;  %v9561_v52 = vpop.eup %9560  ;;  %v12681_v15 = vld [vmem:[%s15277_s7 + $0x170] ss:$12 sps:$4 sm:$0xff]   ;;  %15743 = vst [vmem:[#allocation35_spill] sm:$0xff] %v12687_v3 }
 0x3c7   :  { %4065 = vmatpush1.bf16.msra.mxu1 %v12654_v44  ;;  %8562 = vmatpush3.bf16.msra.mxu0 %v12660_v21  ;;  %15742 = vst [vmem:[#allocation34_spill] sm:$0xff] %v12681_v15 }
 0x3c8   :  { %15737 = vst [vmem:[#allocation28_spill] sm:$0xff] %v12649_v16  ;;  %v4049_v58 = vpack.c.bf16 %v12649_v16, %v12649_v16  ;;  %4159 = vmatprep.subr.bf16.mxu1 %v12668_v8  ;;  %8567 = vmatprep.subr.bf16.mxu0 %v15596_v30  ;;  %v3721_v8 = vunpack.c.h.bf16 %v12527_v12  ;;  %v12731_v12 = vld [vmem:[%s15277_s7 + $0x124] ss:$12 sps:$4 sm:$0xff]  }
 0x3c9   :  { %15749 = vst [vmem:[#allocation41_spill] sm:$0xff] %v12731_v12 }
 0x3ca   :  { %4083 = vmatmul.mubr.bf16.vlgmr.msra.gmra.mxu1 %v4049_v58  ;;  %8564 = vmatmul.mubr.bf16.vlgmr.msra.gmra.mxu0 %v4049_v58  ;;  %v3815_v58 = vadd.f32 1.0, %v9561_v52  ;;  %v12711_v52 = vld [vmem:[%s15277_s7 + $0x13c] ss:$12 sps:$4 sm:$0xff]  }
 0x3cb   :  { %4160 = vmatpush1.bf16.msra.mxu1 %v12675_v18  ;;  %8568 = vmatpush3.bf16.msra.mxu0 %v12681_v15  ;;  %v12697_v18 = vld [vmem:[%s15277_s7 + $0x150] ss:$12 sps:$4 sm:$0xff]   ;;  %v12703_v15 = vld [vmem:[%s15277_s7 + $0x158] ss:$12 sps:$4 sm:$0xff]   ;;  %15746 = vst [vmem:[#allocation38_spill] sm:$0xff] %v12711_v52 }
 0x3cc   :  { %4161 = vmatprep.subr.bf16.mxu1 %v12687_v3  ;;  %8569 = vmatprep.subr.bf16.mxu0 %v15596_v30  ;;  %15744 = vst [vmem:[#allocation36_spill] sm:$0xff] %v12697_v18  ;;  %15745 = vst [vmem:[#allocation37_spill] sm:$0xff] %v12703_v15  ;;  %v3799_v3 = vadd.f32 %v12522_v36, %v15673_v0  ;;  %9564 = vrcp.f32 %v3815_v58  ;;  %v12725_v36 = vld [vmem:[%s15277_s7 + $0x140] ss:$12 sps:$4 sm:$0xff]   ;;  %v12763_v58 = vld [vmem:[%s15277_s7 + $0x110] ss:$12 sps:$4 sm:$0xff]  }
 0x3cd   :  { %4191 = vmatprep.mubr.bf16.mxu1 %v15601_v14  ;;  %8583 = vmatprep.mubr.msk.bf16.mxu0 %vm10282_vm0, %v15596_v30  ;;  %15748 = vst [vmem:[#allocation40_spill] sm:$0xff] %v12725_v36  ;;  %15754 = vst [vmem:[#allocation46_spill] sm:$0xff] %v12763_v58 }
 0x3cf   :  { %4162 = vmatpush1.bf16.msra.mxu1 %v12697_v18  ;;  %8570 = vmatpush3.bf16.msra.mxu0 %v12703_v15  ;;  %v12719_v15 = vld [vmem:[%s15277_s7 + $0x138] ss:$12 sps:$4 sm:$0xff]  }
 0x3d0   :  { %4163 = vmatprep.subr.bf16.mxu1 %v12711_v52  ;;  %8571 = vmatprep.subr.bf16.mxu0 %v15596_v30  ;;  %15747 = vst [vmem:[#allocation39_spill] sm:$0xff] %v12719_v15 }
 0x3d1   :  { %v9563_v18 = vpop.eup %9562 }
 0x3d2   :  { %v3818_v21 = vmul.f32 %v9563_v18, %v3799_v3  ;;  %v12738_v18 = vld [vmem:[%s15277_s7 + $0x120] ss:$12 sps:$4 sm:$0xff]   ;;  %v12757_v3 = vld [vmem:[%s15277_s7 + $0x108] ss:$12 sps:$4 sm:$0xff]  }
 0x3d3   :  { %4164 = vmatpush1.bf16.msra.mxu1 %v12719_v15  ;;  %8572 = vmatpush3.bf16.msra.mxu0 %v12725_v36  ;;  %15750 = vst [vmem:[#allocation42_spill] sm:$0xff] %v12738_v18  ;;  %15753 = vst [vmem:[#allocation45_spill] sm:$0xff] %v12757_v3  ;;  %v12817_v15 = vld [vmem:[%s15277_s7 + $0xc0] ss:$12 sps:$4 sm:$0xff]  }
 0x3d4   :  { %v3819_v52 = vadd.f32 %v3818_v21, %v3721_v8  ;;  %4165 = vmatprep.subr.bf16.mxu1 %v12731_v12  ;;  %8573 = vmatprep.subr.bf16.mxu0 %v15596_v30  ;;  %v12744_v21 = vld [vmem:[%s15277_s7 + $0x128] ss:$12 sps:$4 sm:$0xff]   ;;  %v12750_v8 = vld [vmem:[%s15277_s7 + $0x10c] ss:$12 sps:$4 sm:$0xff]   ;;  %15763 = vst [vmem:[#allocation55_spill] sm:$0xff] %v12817_v15 }
 0x3d5   :  { %15751 = vst [vmem:[#allocation43_spill] sm:$0xff] %v12744_v21  ;;  %15752 = vst [vmem:[#allocation44_spill] sm:$0xff] %v12750_v8 }
 0x3d6   :  { %9566 = vtanh.f32 %v3819_v52  ;;  %v12769_v52 = vld [vmem:[%s15277_s7 + $0xf4] ss:$12 sps:$4 sm:$0xff]  }
 0x3d7   :  { %4166 = vmatpush1.bf16.msra.mxu1 %v12738_v18  ;;  %8574 = vmatpush3.bf16.msra.mxu0 %v12744_v21  ;;  %15755 = vst [vmem:[#allocation47_spill] sm:$0xff] %v12769_v52 }
 0x3d8   :  { %4167 = vmatprep.subr.bf16.mxu1 %v12750_v8  ;;  %8575 = vmatprep.subr.bf16.mxu0 %v15596_v30 }
 0x3d9   :  { %v9565_v8 = vpop.eup %9564 }
 0x3da   :  { %v3821_v21 = vsub.f32 1.0, %v9565_v8  ;;  %v3823_v36 = vmul.f32 %v9565_v8, %v12281_v25  ;;  %v12831_v25 = vld [vmem:[%s15276_s3 + $0xac] ss:$12 sps:$4 sm:$0xff]   ;;  %v12860_v8 = vld [vmem:[%s15276_s3 + $0x90] ss:$12 sps:$4 sm:$0xff]  }
 0x3db   :  { %4168 = vmatpush1.bf16.msra.mxu1 %v12757_v3  ;;  %8576 = vmatpush3.bf16.msra.mxu0 %v12763_v58  ;;  %v12776_v3 = vld [vmem:[%s15277_s7 + $0xf0] ss:$12 sps:$4 sm:$0xff]   ;;  %v12782_v58 = vld [vmem:[%s15277_s7 + $0xf8] ss:$12 sps:$4 sm:$0xff]   ;;  %15765 = vst [vmem:[#allocation57_spill] sm:$0xff] %v12831_v25  ;;  %15769 = vst [vmem:[#allocation61_spill] sm:$0xff] %v12860_v8 }
 0x3dc   :  { %4169 = vmatprep.subr.bf16.mxu1 %v12769_v52  ;;  %8577 = vmatprep.subr.bf16.mxu0 %v15596_v30  ;;  %15756 = vst [vmem:[#allocation48_spill] sm:$0xff] %v12776_v3  ;;  %15757 = vst [vmem:[#allocation49_spill] sm:$0xff] %v12782_v58  ;;  %v12788_v52 = vld [vmem:[%s15277_s7 + $0xdc] ss:$12 sps:$4 sm:$0xff]  }
 0x3dd   :  { %15758 = vst [vmem:[#allocation50_spill] sm:$0xff] %v12788_v52 }
 0x3df   :  { %4170 = vmatpush1.bf16.msra.mxu1 %v12776_v3  ;;  %8578 = vmatpush3.bf16.msra.mxu0 %v12782_v58  ;;  %v12795_v3 = vld [vmem:[%s15277_s7 + $0xd8] ss:$12 sps:$4 sm:$0xff]   ;;  %v12801_v58 = vld [vmem:[%s15277_s7 + $0xe0] ss:$12 sps:$4 sm:$0xff]  }
 0x3e0   :  { %4171 = vmatprep.subr.bf16.mxu1 %v12788_v52  ;;  %8579 = vmatprep.subr.bf16.mxu0 %v15596_v30  ;;  %15759 = vst [vmem:[#allocation51_spill] sm:$0xff] %v12795_v3  ;;  %15760 = vst [vmem:[#allocation52_spill] sm:$0xff] %v12801_v58  ;;  %v12807_v52 = vld [vmem:[%s15277_s7 + $0xc4] ss:$12 sps:$4 sm:$0xff]  }
 0x3e1   :  { %15761 = vst [vmem:[#allocation53_spill] sm:$0xff] %v12807_v52 }
 0x3e3   :  { %v9567_v18 = vpop.eup %9566  ;;  %4172 = vmatpush1.bf16.msra.mxu1 %v12795_v3  ;;  %8580 = vmatpush3.bf16.msra.mxu0 %v12801_v58  ;;  %v12823_v58 = vld [vmem:[%s15277_s7 + $0xc8] ss:$12 sps:$4 sm:$0xff]  }
 0x3e4   :  { %4173 = vmatprep.subr.bf16.mxu1 %v12807_v52  ;;  %8581 = vmatprep.subr.bf16.mxu0 %v15596_v30  ;;  %v3822_v12 = vmul.f32 %v9567_v18, %v3821_v21  ;;  %15764 = vst [vmem:[#allocation56_spill] sm:$0xff] %v12823_v58  ;;  %v12850_v21 = vld [vmem:[%s15276_s3 + $0x94] ss:$12 sps:$4 sm:$0xff]  }
 0x3e5   :  { %15768 = vst [vmem:[#allocation60_spill] sm:$0xff] %v12850_v21 }
 0x3e6   :  { %v12812_v3 = vadd.f32 %v3823_v36, %v3822_v12  ;;  %v12838_v36 = vld [vmem:[%s15276_s3 + $0xa8] ss:$12 sps:$4 sm:$0xff]   ;;  %v12844_v12 = vld [vmem:[%s15276_s3 + $0xb0] ss:$12 sps:$4 sm:$0xff]  }
 0x3e7   :  { %4174 = vmatpush1.bf16.msra.mxu1 %v12817_v15  ;;  %8582 = vmatpush3.bf16.msra.mxu0 %v12823_v58  ;;  %15766 = vst [vmem:[#allocation58_spill] sm:$0xff] %v12838_v36  ;;  %15767 = vst [vmem:[#allocation59_spill] sm:$0xff] %v12844_v12 }
 0x3e8   :  { %15762 = vst [vmem:[#allocation54_spill] sm:$0xff] %v12812_v3  ;;  %v4158_v18 = vpack.c.bf16 %v12812_v3, %v12812_v3  ;;  %4268 = vmatprep.subr.bf16.mxu1 %v12831_v25  ;;  %8587 = vmatprep.subr.bf16.mxu0 %v15596_v30 }
 0x3ea   :  { %4192 = vmatmul.mubr.bf16.vlgmr.msra.gmra.mxu1 %v4158_v18  ;;  %8584 = vmatmul.mubr.bf16.vlgmr.msra.gmra.mxu0 %v4158_v18  ;;  %v12866_v18 = vld [vmem:[%s15276_s3 + $0x98] ss:$12 sps:$4 sm:$0xff]  }
 0x3eb   :  { %4269 = vmatpush1.bf16.msra.mxu1 %v12838_v36  ;;  %8588 = vmatpush3.bf16.msra.mxu0 %v12844_v12  ;;  %15770 = vst [vmem:[#allocation62_spill] sm:$0xff] %v12866_v18  ;;  %v3826_v12 = vld [vmem:[#allocation2 + $0x48] sm:$0xff] }
 0x3ec   :  { %4270 = vmatprep.subr.bf16.mxu1 %v12850_v21  ;;  %8589 = vmatprep.subr.bf16.mxu0 %v15596_v30  ;;  %v12872_v21 = vld [vmem:[%s15276_s3 + $0x7c] ss:$12 sps:$4 sm:$0xff]  }
 0x3ed   :  { %4300 = vmatprep.mubr.bf16.mxu1 %v15601_v14  ;;  %8603 = vmatprep.mubr.msk.bf16.mxu0 %vm10282_vm0, %v15596_v30  ;;  %15771 = vst [vmem:[#allocation63_spill] sm:$0xff] %v12872_v21 }
 0x3ef   :  { %4271 = vmatpush1.bf16.msra.mxu1 %v12860_v8  ;;  %8590 = vmatpush3.bf16.msra.mxu0 %v12866_v18  ;;  %v12879_v8 = vld [vmem:[%s15276_s3 + $0x78] ss:$12 sps:$4 sm:$0xff]   ;;  %v12885_v18 = vld [vmem:[%s15276_s3 + $0x80] ss:$12 sps:$4 sm:$0xff]  }
 0x3f0   :  { %4272 = vmatprep.subr.bf16.mxu1 %v12872_v21  ;;  %8591 = vmatprep.subr.bf16.mxu0 %v15596_v30  ;;  %15772 = vst [vmem:[#allocation64_spill] sm:$0xff] %v12879_v8  ;;  %15773 = vst [vmem:[#allocation65_spill] sm:$0xff] %v12885_v18  ;;  %v12891_v21 = vld [vmem:[%s15276_s3 + $0x64] ss:$12 sps:$4 sm:$0xff]  }
 0x3f1   :  { %15774 = vst [vmem:[#allocation66_spill] sm:$0xff] %v12891_v21 }
 0x3f3   :  { %4273 = vmatpush1.bf16.msra.mxu1 %v12879_v8  ;;  %8592 = vmatpush3.bf16.msra.mxu0 %v12885_v18  ;;  %v12898_v8 = vld [vmem:[%s15276_s3 + $0x60] ss:$12 sps:$4 sm:$0xff]   ;;  %v12904_v18 = vld [vmem:[%s15276_s3 + $0x68] ss:$12 sps:$4 sm:$0xff]  }
 0x3f4   :  { %4274 = vmatprep.subr.bf16.mxu1 %v12891_v21  ;;  %8593 = vmatprep.subr.bf16.mxu0 %v15596_v30  ;;  %15775 = vst [vmem:[#allocation67_spill] sm:$0xff] %v12898_v8  ;;  %15776 = vst [vmem:[#allocation68_spill] sm:$0xff] %v12904_v18  ;;  %v12910_v21 = vld [vmem:[%s15276_s3 + $0x4c] ss:$12 sps:$4 sm:$0xff]  }
 0x3f5   :  { %15777 = vst [vmem:[#allocation69_spill] sm:$0xff] %v12910_v21 }
 0x3f7   :  { %4275 = vmatpush1.bf16.msra.mxu1 %v12898_v8  ;;  %8594 = vmatpush3.bf16.msra.mxu0 %v12904_v18  ;;  %v12917_v8 = vld [vmem:[%s15276_s3 + $0x48] ss:$12 sps:$4 sm:$0xff]   ;;  %v12923_v18 = vld [vmem:[%s15276_s3 + $0x50] ss:$12 sps:$4 sm:$0xff]  }
 0x3f8   :  { %4276 = vmatprep.subr.bf16.mxu1 %v12910_v21  ;;  %8595 = vmatprep.subr.bf16.mxu0 %v15596_v30  ;;  %15778 = vst [vmem:[#allocation70_spill] sm:$0xff] %v12917_v8  ;;  %15779 = vst [vmem:[#allocation71_spill] sm:$0xff] %v12923_v18  ;;  %v12929_v21 = vld [vmem:[%s15276_s3 + $0x34] ss:$12 sps:$4 sm:$0xff]  }
 0x3f9   :  { %15780 = vst [vmem:[#allocation72_spill] sm:$0xff] %v12929_v21 }
 0x3fb   :  { %4277 = vmatpush1.bf16.msra.mxu1 %v12917_v8  ;;  %8596 = vmatpush3.bf16.msra.mxu0 %v12923_v18  ;;  %v12936_v8 = vld [vmem:[%s15276_s3 + $0x30] ss:$12 sps:$4 sm:$0xff]   ;;  %v12942_v18 = vld [vmem:[%s15276_s3 + $0x38] ss:$12 sps:$4 sm:$0xff]  }
 0x3fc   :  { %4278 = vmatprep.subr.bf16.mxu1 %v12929_v21  ;;  %8597 = vmatprep.subr.bf16.mxu0 %v15596_v30  ;;  %15781 = vst [vmem:[#allocation73_spill] sm:$0xff] %v12936_v8  ;;  %15782 = vst [vmem:[#allocation74_spill] sm:$0xff] %v12942_v18  ;;  %v12948_v21 = vld [vmem:[%s15276_s3 + $0x1c] ss:$12 sps:$4 sm:$0xff]  }
 0x3fd   :  { %15783 = vst [vmem:[#allocation75_spill] sm:$0xff] %v12948_v21 }
 0x3ff   :  { %4279 = vmatpush1.bf16.msra.mxu1 %v12936_v8  ;;  %8598 = vmatpush3.bf16.msra.mxu0 %v12942_v18  ;;  %v12955_v8 = vld [vmem:[%s15276_s3 + $0x18] ss:$12 sps:$4 sm:$0xff]   ;;  %v12961_v18 = vld [vmem:[%s15276_s3 + $0x20] ss:$12 sps:$4 sm:$0xff]  }
 0x400   :  { %4280 = vmatprep.subr.bf16.mxu1 %v12948_v21  ;;  %8599 = vmatprep.subr.bf16.mxu0 %v15596_v30  ;;  %15784 = vst [vmem:[#allocation76_spill] sm:$0xff] %v12955_v8  ;;  %15785 = vst [vmem:[#allocation77_spill] sm:$0xff] %v12961_v18  ;;  %v12967_v21 = vld [vmem:[%s15276_s3 + $0x4] ss:$12 sps:$4 sm:$0xff]  }
 0x401   :  { %15786 = vst [vmem:[#allocation78_spill] sm:$0xff] %v12967_v21 }
 0x403   :  { %4281 = vmatpush1.bf16.msra.mxu1 %v12955_v8  ;;  %8600 = vmatpush3.bf16.msra.mxu0 %v12961_v18  ;;  %v12974_v8 = vld [vmem:[%s15276_s3] ss:$12 sps:$4 sm:$0xff]   ;;  %v12980_v18 = vld [vmem:[%s15276_s3 + $0x8] ss:$12 sps:$4 sm:$0xff]  }
 0x404   :  { %4282 = vmatprep.subr.bf16.mxu1 %v12967_v21  ;;  %8601 = vmatprep.subr.bf16.mxu0 %v15596_v30  ;;  %15787 = vst [vmem:[#allocation79_spill] sm:$0xff] %v12974_v8  ;;  %15788 = vst [vmem:[#allocation80_spill] sm:$0xff] %v12980_v18  ;;  %v12986_v21 = vld [vmem:[%s15276_s3 + $0x16c] ss:$12 sps:$4 sm:$0xff]  }
 0x405   :  { %15789 = vst [vmem:[#allocation81_spill] sm:$0xff] %v12986_v21 }
 0x407   :  { %4283 = vmatpush1.bf16.msra.mxu1 %v12974_v8  ;;  %8602 = vmatpush3.bf16.msra.mxu0 %v12980_v18  ;;  %v3828_v8 = vunpack.c.l.bf16 %v3826_v12 }
 0x408   :  { %4377 = vmatprep.subr.bf16.mxu1 %v12986_v21  ;;  %8607 = vmatprep.subr.bf16.mxu0 %v15596_v30  ;;  %v3829_v21 = vunpack.c.h.bf16 %v3826_v12 }
 0x44a   :  { %v3866_v36 = vpop.f32.mrf.mxu1  ;;  %v3907_v25 = vpop.f32.mrf.mxu0 }
 0x44b   :  { %v3867_v58 = vadd.f32 %v3866_v36, %v15718_v22  ;;  %v3935_v36 = vld [vmem:[#allocation2 + $0xcc] sm:$0xff] }
 0x44c   :  { %v3868_v15 = vpop.f32.mrf.mxu1  ;;  %v8525_v3 = vpop.f32.mrf.mxu0 }
 0x44d   :  { %v3913_v52 = vadd.f32 %v3867_v58, %v3828_v8  ;;  %v3869_v16 = vadd.f32 %v3868_v15, %v15719_v7  ;;  %v12992_v58 = vld [vmem:[#allocation2 + $0x50] ss:$132 sps:$4 sm:$0xff]  }
 0x44e   :  { %v3870_v0 = vpop.f32.mrf.mxu1  ;;  %v3910_v18 = vpop.f32.mrf.mxu0 }
 0x44f   :  { %v7726_v44 = vmul.f32 -1.442695, %v3913_v52  ;;  %v3920_v60 = vadd.f32 %v3869_v16, %v3829_v21  ;;  %v3937_v52 = vunpack.c.l.bf16 %v3935_v36 }
 0x450   :  { %v3871_v11 = vpop.f32.mrf.mxu1  ;;  %v8526_v56 = vpop.f32.mrf.mxu0 }
 0x451   :  { %9568 = vpow2.f32 %v7726_v44  ;;  %v7727_v38 = vmul.f32 -1.442695, %v3920_v60  ;;  %v3908_v44 = vadd.f32 %v3907_v25, %v15721_v62 }
 0x453   :  { %9570 = vpow2.f32 %v7727_v38  ;;  %v3830_v38 = vunpack.c.l.bf16 %v12992_v58 }
 0x45e   :  { %v9569_v2 = vpop.eup %9568 }
 0x45f   :  { %v3917_v33 = vadd.f32 1.0, %v9569_v2 }
 0x460   :  { %v9571_v47 = vpop.eup %9570 }
 0x461   :  { %9572 = vrcp.f32 %v3917_v33  ;;  %v3924_v0 = vadd.f32 1.0, %v9571_v47 }
 0x463   :  { %9574 = vrcp.f32 %v3924_v0 }
 0x46a   :  { %v3975_v22 = vpop.f32.mrf.mxu1  ;;  %v4016_v3 = vpop.f32.mrf.mxu0 }
 0x46b   :  { %v3976_v15 = vadd.f32 %v3975_v22, %v15720_v32  ;;  %v3938_v22 = vunpack.c.h.bf16 %v3935_v36 }
 0x46c   :  { %v3977_v11 = vpop.f32.mrf.mxu1  ;;  %v8545_v56 = vpop.f32.mrf.mxu0 }
 0x46d   :  { %v4022_v16 = vadd.f32 %v3976_v15, %v3937_v52  ;;  %v3978_v8 = vadd.f32 %v3977_v11, %v11443_v13 }
 0x46e   :  { %v9573_v60 = vpop.eup %9572  ;;  %v3979_v2 = vpop.f32.mrf.mxu1 }
 0x46f   :  { %v4019_v33 = vpop.f32.mrf.mxu0  ;;  %v3927_v12 = vmul.f32 %v9573_v60, %v3908_v44  ;;  %v7728_v21 = vmul.f32 -1.442695, %v4022_v16  ;;  %v4029_v56 = vadd.f32 %v3978_v8, %v3938_v22 }
 0x470   :  { %v3980_v18 = vpop.f32.mrf.mxu1  ;;  %v9575_v25 = vpop.eup %9574 }
 0x471   :  { %v8546_v47 = vpop.f32.mrf.mxu0  ;;  %v3928_v7 = vadd.f32 %v3927_v12, %v3830_v38  ;;  %9576 = vpow2.f32 %v7728_v21  ;;  %v7729_v32 = vmul.f32 -1.442695, %v4029_v56  ;;  %v3930_v62 = vsub.f32 1.0, %v9575_v25 }
 0x472   :  { %v3932_v0 = vmul.f32 %v9575_v25, %v12333_v57  ;;  %v3939_v21 = vunpack.c.h.bf16 %v12992_v58 }
 0x473   :  { %9578 = vtanh.f32 %v3928_v7 }
 0x474   :  { %9580 = vpow2.f32 %v7729_v32  ;;  %v4044_v32 = vld [vmem:[#allocation3 + $0x48] sm:$0xff] }
 0x475   :  { %v4046_v60 = vunpack.c.l.bf16 %v4044_v32 }
 0x47e   :  { %v9577_v52 = vpop.eup %9576 }
 0x47f   :  { %v4026_v15 = vadd.f32 1.0, %v9577_v52  ;;  %v15791_v52 = vld [vmem:[#allocation13_spill] sm:$0xff] }
 0x480   :  { %v9579_v2 = vpop.eup %9578 }
 0x481   :  { %9582 = vrcp.f32 %v4026_v15  ;;  %v3931_v44 = vmul.f32 %v9579_v2, %v3930_v62  ;;  %v9581_v7 = vpop.eup %9580 }
 0x482   :  { %v4033_v57 = vadd.f32 1.0, %v9581_v7 }
 0x483   :  { %v12999_v16 = vadd.f32 %v3932_v0, %v3931_v44 }
 0x484   :  { %9584 = vrcp.f32 %v4033_v57 }
 0x485   :  { %v4267_v11 = vpack.c.bf16 %v12999_v16, %v12999_v16 }
 0x487   :  { %4301 = vmatmul.mubr.bf16.vlgmr.msra.gmra.mxu1 %v4267_v11  ;;  %8604 = vmatmul.mubr.bf16.vlgmr.msra.gmra.mxu0 %v4267_v11 }
 0x488   :  { %4378 = vmatpush1.bf16.msra.mxu1 %v12340_v54  ;;  %8608 = vmatpush3.bf16.msra.mxu0 %v12346_v28  ;;  %v4017_v28 = vadd.f32 %v4016_v3, %v11461_v41 }
 0x489   :  { %4379 = vmatprep.subr.bf16.mxu1 %v12352_v20  ;;  %8609 = vmatprep.subr.bf16.mxu0 %v15596_v30 }
 0x48a   :  { %v4084_v62 = vpop.f32.mrf.mxu1  ;;  %v13007_v36 = vpop.f32.mrf.mxu0  ;;  %4409 = vmatprep.mubr.bf16.mxu1 %v15601_v14  ;;  %8623 = vmatprep.mubr.msk.bf16.mxu0 %vm10282_vm0, %v15596_v30 }
 0x48b   :  { %v4085_v38 = vadd.f32 %v4084_v62, %v11465_v49  ;;  %v15792_v62 = vld [vmem:[#allocation14_spill] sm:$0xff] }
 0x48c   :  { %v4086_v54 = vpop.f32.mrf.mxu1  ;;  %v8565_v33 = vpop.f32.mrf.mxu0  ;;  %4380 = vmatpush1.bf16.msra.mxu1 %v12365_v29  ;;  %8610 = vmatpush3.bf16.msra.mxu0 %v12371_v9 }
 0x48d   :  { %v4131_v20 = vadd.f32 %v4085_v38, %v4046_v60  ;;  %4381 = vmatprep.subr.bf16.mxu1 %v12378_v53  ;;  %8611 = vmatprep.subr.bf16.mxu0 %v15596_v30  ;;  %v4087_v56 = vadd.f32 %v4086_v54, %v11488_v34  ;;  %v4047_v53 = vunpack.c.h.bf16 %v4044_v32  ;;  %v15793_v60 = vld [vmem:[#allocation15_spill] sm:$0xff]  ;;  %v15794_v54 = vld [vmem:[#allocation16_spill] sm:$0xff]  ;;  %v15795_v33 = vld [vmem:[#allocation17_spill] sm:$0xff] }
 0x48e   :  { %v9583_v12 = vpop.eup %9582  ;;  %v4088_v8 = vpop.f32.mrf.mxu1 }
 0x48f   :  { %v4128_v18 = vpop.f32.mrf.mxu0  ;;  %v4036_v47 = vmul.f32 %v9583_v12, %v4017_v28  ;;  %v7730_v22 = vmul.f32 -1.442695, %v4131_v20  ;;  %v4138_v3 = vadd.f32 %v4087_v56, %v4047_v53  ;;  %v15796_v28 = vld [vmem:[#allocation18_spill] sm:$0xff]  ;;  %v15797_v20 = vld [vmem:[#allocation19_spill] sm:$0xff]  ;;  %v15798_v12 = vld [vmem:[#allocation20_spill] sm:$0xff] }
 0x490   :  { %v4089_v29 = vpop.f32.mrf.mxu1  ;;  %4382 = vmatpush1.bf16.msra.mxu1 %v12387_v17  ;;  %8612 = vmatpush3.bf16.msra.mxu0 %v12393_v40  ;;  %v15800_v18 = vld [vmem:[#allocation22_spill] sm:$0xff]  ;;  %v15803_v53 = vld [vmem:[#allocation25_spill] sm:$0xff] }
 0x491   :  { %v8566_v25 = vpop.f32.mrf.mxu0  ;;  %v4037_v9 = vadd.f32 %v4036_v47, %v3939_v21  ;;  %9586 = vpow2.f32 %v7730_v22  ;;  %4383 = vmatprep.subr.bf16.mxu1 %v12399_v19  ;;  %8613 = vmatprep.subr.bf16.mxu0 %v15596_v30  ;;  %v7731_v17 = vmul.f32 -1.442695, %v4138_v3  ;;  %v9585_v40 = vpop.eup %9584  ;;  %v15799_v21 = vld [vmem:[#allocation21_spill] sm:$0xff]  ;;  %v15801_v47 = vld [vmem:[#allocation23_spill] sm:$0xff]  ;;  %v15802_v22 = vld [vmem:[#allocation24_spill] sm:$0xff] }
 0x492   :  { %v15804_v3 = vld [vmem:[#allocation26_spill] sm:$0xff] }
 0x493   :  { %9588 = vtanh.f32 %v4037_v9 }
 0x494   :  { %4384 = vmatpush1.bf16.msra.mxu1 %v12406_v61  ;;  %8614 = vmatpush3.bf16.msra.mxu0 %v12412_v10  ;;  %9590 = vpow2.f32 %v7731_v17  ;;  %v4039_v10 = vsub.f32 1.0, %v9585_v40  ;;  %v15805_v17 = vld [vmem:[#allocation27_spill] sm:$0xff] }
 0x495   :  { %4385 = vmatprep.subr.bf16.mxu1 %v12418_v45  ;;  %8615 = vmatprep.subr.bf16.mxu0 %v15596_v30 }
 0x498   :  { %4386 = vmatpush1.bf16.msra.mxu1 %v12425_v48  ;;  %8616 = vmatpush3.bf16.msra.mxu0 %v12431_v43  ;;  %v4041_v43 = vmul.f32 %v9585_v40, %v12480_v50 }
 0x499   :  { %4387 = vmatprep.subr.bf16.mxu1 %v12437_v1  ;;  %8617 = vmatprep.subr.bf16.mxu0 %v15596_v30 }
 0x49c   :  { %4388 = vmatpush1.bf16.msra.mxu1 %v12444_v5  ;;  %8618 = vmatpush3.bf16.msra.mxu0 %v12450_v35 }
 0x49d   :  { %4389 = vmatprep.subr.bf16.mxu1 %v12456_v46  ;;  %8619 = vmatprep.subr.bf16.mxu0 %v15596_v30  ;;  %v4153_v46 = vld [vmem:[#allocation3 + $0x6c] sm:$0xff] }
 0x49e   :  { %v9587_v19 = vpop.eup %9586  ;;  %v4156_v57 = vunpack.c.h.bf16 %v4153_v46 }
 0x49f   :  { %v4135_v61 = vadd.f32 1.0, %v9587_v19  ;;  %v15806_v19 = vld [vmem:[#allocation28_spill] sm:$0xff] }
 0x4a0   :  { %v9589_v45 = vpop.eup %9588  ;;  %4390 = vmatpush1.bf16.msra.mxu1 %v12463_v59  ;;  %8620 = vmatpush3.bf16.msra.mxu0 %v12469_v26 }
 0x4a1   :  { %9592 = vrcp.f32 %v4135_v61  ;;  %4391 = vmatprep.subr.bf16.mxu1 %v12475_v27  ;;  %8621 = vmatprep.subr.bf16.mxu0 %v15596_v30  ;;  %v4040_v48 = vmul.f32 %v9589_v45, %v4039_v10  ;;  %v9591_v35 = vpop.eup %9590  ;;  %v13058_v27 = vld [vmem:[#allocation3 + $0x50] ss:$36 sps:$4 sm:$0xff]   ;;  %v15807_v45 = vld [vmem:[#allocation29_spill] sm:$0xff] }
 0x4a2   :  { %v4142_v50 = vadd.f32 1.0, %v9591_v35  ;;  %v4048_v2 = vunpack.c.l.bf16 %v13058_v27 }
 0x4a3   :  { %v13041_v1 = vadd.f32 %v4041_v43, %v4040_v48  ;;  %v15808_v48 = vld [vmem:[#allocation30_spill] sm:$0xff] }
 0x4a4   :  { %4392 = vmatpush1.bf16.msra.mxu1 %v12485_v4  ;;  %8622 = vmatpush3.bf16.msra.mxu0 %v12491_v31  ;;  %v4155_v4 = vunpack.c.l.bf16 %v4153_v46  ;;  %9594 = vrcp.f32 %v4142_v50  ;;  %v15810_v46 = vld [vmem:[#allocation33_spill] sm:$0xff]  ;;  %v15812_v50 = vld [vmem:[#allocation35_spill] sm:$0xff] }
 0x4a5   :  { %v4376_v5 = vpack.c.bf16 %v13041_v1, %v13041_v1  ;;  %4485 = vmatprep.subr.bf16.mxu1 %v12499_v55  ;;  %8627 = vmatprep.subr.bf16.mxu0 %v15596_v30 }
 0x4a7   :  { %4410 = vmatmul.mubr.bf16.vlgmr.msra.gmra.mxu1 %v4376_v5  ;;  %8624 = vmatmul.mubr.bf16.vlgmr.msra.gmra.mxu0 %v4376_v5  ;;  %v15809_v5 = vld [vmem:[#allocation31_spill] sm:$0xff] }
 0x4a8   :  { %4486 = vmatpush1.bf16.msra.mxu1 %v12506_v24  ;;  %8628 = vmatpush3.bf16.msra.mxu0 %v12512_v37  ;;  %v15790_v37 = vld [vmem:[#allocation11_spill] sm:$0xff] }
 0x4a9   :  { %4487 = vmatprep.subr.bf16.mxu1 %v12518_v6  ;;  %8629 = vmatprep.subr.bf16.mxu0 %v15596_v30  ;;  %v4126_v6 = vadd.f32 %v13007_v36, %v15790_v37 }
 0x4aa   :  { %v4193_v59 = vpop.f32.mrf.mxu1  ;;  %v13053_v26 = vpop.f32.mrf.mxu0  ;;  %4517 = vmatprep.mubr.bf16.mxu1 %v15601_v14  ;;  %8643 = vmatprep.mubr.msk.bf16.mxu0 %vm10282_vm0, %v15596_v30 }
 0x4ab   :  { %v4194_v31 = vadd.f32 %v4193_v59, %v11643_v63  ;;  %v15811_v59 = vld [vmem:[#allocation34_spill] sm:$0xff] }
 0x4ac   :  { %v4195_v55 = vpop.f32.mrf.mxu1  ;;  %v8585_v24 = vpop.f32.mrf.mxu0  ;;  %4488 = vmatpush1.bf16.msra.mxu1 %v12533_v42  ;;  %8630 = vmatpush3.bf16.msra.mxu0 %v12539_v39 }
 0x4ad   :  { %v4240_v58 = vadd.f32 %v4194_v31, %v4155_v4  ;;  %4489 = vmatprep.subr.bf16.mxu1 %v15791_v52  ;;  %8631 = vmatprep.subr.bf16.mxu0 %v15596_v30  ;;  %v4196_v42 = vadd.f32 %v4195_v55, %v15648_v23  ;;  %v15813_v31 = vld [vmem:[#allocation36_spill] sm:$0xff]  ;;  %v15814_v55 = vld [vmem:[#allocation37_spill] sm:$0xff] }
 0x4ae   :  { %v9593_v15 = vpop.eup %9592  ;;  %v4197_v44 = vpop.f32.mrf.mxu1  ;;  %v15815_v24 = vld [vmem:[#allocation32_spill] sm:$0xff] }
 0x4af   :  { %v4237_v0 = vpop.f32.mrf.mxu0  ;;  %v4145_v11 = vmul.f32 %v9593_v15, %v4126_v6  ;;  %v7732_v7 = vmul.f32 -1.442695, %v4240_v58  ;;  %v4247_v38 = vadd.f32 %v4196_v42, %v4156_v57  ;;  %v4235_v6 = vadd.f32 %v13053_v26, %v15815_v24  ;;  %v15816_v58 = vld [vmem:[#allocation38_spill] sm:$0xff]  ;;  %v15817_v44 = vld [vmem:[#allocation39_spill] sm:$0xff]  ;;  %v15826_v57 = vld [vmem:[#allocation48_spill] sm:$0xff] }
 0x4b0   :  { %v4198_v32 = vpop.f32.mrf.mxu1  ;;  %4490 = vmatpush1.bf16.msra.mxu1 %v12556_v51  ;;  %8632 = vmatpush3.bf16.msra.mxu0 %v15792_v62  ;;  %v4157_v15 = vunpack.c.h.bf16 %v13058_v27  ;;  %v15818_v0 = vld [vmem:[#allocation40_spill] sm:$0xff]  ;;  %v15820_v26 = vld [vmem:[#allocation42_spill] sm:$0xff]  ;;  %v15821_v42 = vld [vmem:[#allocation43_spill] sm:$0xff] }
 0x4b1   :  { %v8586_v39 = vpop.f32.mrf.mxu0  ;;  %v4146_v36 = vadd.f32 %v4145_v11, %v4048_v2  ;;  %9596 = vpow2.f32 %v7732_v7  ;;  %4491 = vmatprep.subr.bf16.mxu1 %v15793_v60  ;;  %8633 = vmatprep.subr.bf16.mxu0 %v15596_v30  ;;  %v7733_v51 = vmul.f32 -1.442695, %v4247_v38  ;;  %v9595_v8 = vpop.eup %9594  ;;  %v15819_v7 = vld [vmem:[#allocation41_spill] sm:$0xff]  ;;  %v15822_v32 = vld [vmem:[#allocation44_spill] sm:$0xff]  ;;  %v15825_v62 = vld [vmem:[#allocation47_spill] sm:$0xff] }
 0x4b2   :  { %v4148_v25 = vsub.f32 1.0, %v9595_v8  ;;  %v4150_v61 = vmul.f32 %v9595_v8, %v15806_v19  ;;  %v15823_v27 = vld [vmem:[#allocation45_spill] sm:$0xff]  ;;  %v15824_v39 = vld [vmem:[#allocation46_spill] sm:$0xff]  ;;  %v15842_v19 = vld [vmem:[#allocation64_spill] sm:$0xff] }
 0x4b3   :  { %9598 = vtanh.f32 %v4146_v36  ;;  %v15827_v60 = vld [vmem:[#allocation49_spill] sm:$0xff]  ;;  %v15828_v38 = vld [vmem:[#allocation50_spill] sm:$0xff] }
 0x4b4   :  { %4492 = vmatpush1.bf16.msra.mxu1 %v15794_v54  ;;  %8634 = vmatpush3.bf16.msra.mxu0 %v15795_v33  ;;  %9600 = vpow2.f32 %v7733_v51  ;;  %v15830_v51 = vld [vmem:[#allocation52_spill] sm:$0xff] }
 0x4b5   :  { %4493 = vmatprep.subr.bf16.mxu1 %v15796_v28  ;;  %8635 = vmatprep.subr.bf16.mxu0 %v15596_v30  ;;  %v15829_v28 = vld [vmem:[#allocation51_spill] sm:$0xff] }
 0x4b8   :  { %4494 = vmatpush1.bf16.msra.mxu1 %v15797_v20  ;;  %8636 = vmatpush3.bf16.msra.mxu0 %v15798_v12  ;;  %v15831_v20 = vld [vmem:[#allocation53_spill] sm:$0xff] }
 0x4b9   :  { %4495 = vmatprep.subr.bf16.mxu1 %v15799_v21  ;;  %8637 = vmatprep.subr.bf16.mxu0 %v15596_v30  ;;  %v15832_v21 = vld [vmem:[#allocation54_spill] sm:$0xff] }
 0x4bc   :  { %4496 = vmatpush1.bf16.msra.mxu1 %v15800_v18  ;;  %8638 = vmatpush3.bf16.msra.mxu0 %v15801_v47  ;;  %v15833_v47 = vld [vmem:[#allocation55_spill] sm:$0xff] }
 0x4bd   :  { %4497 = vmatprep.subr.bf16.mxu1 %v15802_v22  ;;  %8639 = vmatprep.subr.bf16.mxu0 %v15596_v30  ;;  %v15834_v22 = vld [vmem:[#allocation56_spill] sm:$0xff] }
 0x4be   :  { %v9597_v56 = vpop.eup %9596 }
 0x4bf   :  { %v4244_v29 = vadd.f32 1.0, %v9597_v56 }
 0x4c0   :  { %v9599_v9 = vpop.eup %9598  ;;  %4498 = vmatpush1.bf16.msra.mxu1 %v15803_v53  ;;  %8640 = vmatpush3.bf16.msra.mxu0 %v15804_v3  ;;  %v15838_v53 = vld [vmem:[#allocation60_spill] sm:$0xff]  ;;  %v15839_v3 = vld [vmem:[#allocation61_spill] sm:$0xff] }
 0x4c1   :  { %9602 = vrcp.f32 %v4244_v29  ;;  %4499 = vmatprep.subr.bf16.mxu1 %v15805_v17  ;;  %8641 = vmatprep.subr.bf16.mxu0 %v15596_v30  ;;  %v4149_v40 = vmul.f32 %v9599_v9, %v4148_v25  ;;  %v9601_v35 = vpop.eup %9600  ;;  %v15835_v29 = vld [vmem:[#allocation57_spill] sm:$0xff]  ;;  %v15836_v25 = vld [vmem:[#allocation58_spill] sm:$0xff]  ;;  %v15837_v9 = vld [vmem:[#allocation59_spill] sm:$0xff] }
 0x4c2   :  { %v4251_v4 = vadd.f32 1.0, %v9601_v35  ;;  %v15840_v17 = vld [vmem:[#allocation62_spill] sm:$0xff] }
 0x4c3   :  { %v13090_v10 = vadd.f32 %v4150_v61, %v4149_v40  ;;  %v15841_v40 = vld [vmem:[#allocation63_spill] sm:$0xff]  ;;  %v15843_v61 = vld [vmem:[#allocation65_spill] sm:$0xff]  ;;  %v15848_v35 = vld [vmem:[#allocation70_spill] sm:$0xff] }
 0x4c4   :  { %4500 = vmatpush1.bf16.msra.mxu1 %v15807_v45  ;;  %8642 = vmatpush3.bf16.msra.mxu0 %v15808_v48  ;;  %9604 = vrcp.f32 %v4251_v4  ;;  %v15844_v45 = vld [vmem:[#allocation66_spill] sm:$0xff]  ;;  %v15845_v48 = vld [vmem:[#allocation67_spill] sm:$0xff] }
 0x4c5   :  { %v4484_v43 = vpack.c.bf16 %v13090_v10, %v13090_v10  ;;  %4593 = vmatprep.subr.bf16.mxu1 %v15809_v5  ;;  %8647 = vmatprep.subr.bf16.mxu0 %v15596_v30  ;;  %v15847_v5 = vld [vmem:[#allocation69_spill] sm:$0xff]  ;;  %v15852_v4 = vld [vmem:[#allocation74_spill] sm:$0xff] }
 0x4c7   :  { %4518 = vmatmul.mubr.bf16.vlgmr.msra.gmra.mxu1 %v4484_v43  ;;  %8644 = vmatmul.mubr.bf16.vlgmr.msra.gmra.mxu0 %v4484_v43  ;;  %v15846_v43 = vld [vmem:[#allocation68_spill] sm:$0xff] }
 0x4c8   :  { %4594 = vmatpush1.bf16.msra.mxu1 %v15810_v46  ;;  %8648 = vmatpush3.bf16.msra.mxu0 %v15811_v59  ;;  %v15849_v46 = vld [vmem:[#allocation71_spill] sm:$0xff]  ;;  %v15850_v59 = vld [vmem:[#allocation72_spill] sm:$0xff] }
 0x4c9   :  { %4595 = vmatprep.subr.bf16.mxu1 %v15812_v50  ;;  %8649 = vmatprep.subr.bf16.mxu0 %v15596_v30  ;;  %v15851_v50 = vld [vmem:[#allocation73_spill] sm:$0xff] }
 0x4ca   :  { %4625 = vmatprep.mubr.bf16.mxu1 %v15601_v14  ;;  %8663 = vmatprep.mubr.msk.bf16.mxu0 %vm10282_vm0, %v15596_v30 }
 0x4cc   :  { %4596 = vmatpush1.bf16.msra.mxu1 %v15813_v31  ;;  %8650 = vmatpush3.bf16.msra.mxu0 %v15814_v55  ;;  %v15853_v31 = vld [vmem:[#allocation75_spill] sm:$0xff]  ;;  %v15854_v55 = vld [vmem:[#allocation76_spill] sm:$0xff] }
 0x4cd   :  { %4597 = vmatprep.subr.bf16.mxu1 %v15816_v58  ;;  %8651 = vmatprep.subr.bf16.mxu0 %v15596_v30  ;;  %v15856_v58 = vld [vmem:[#allocation78_spill] sm:$0xff] }
 0x4ce   :  { %v9603_v52 = vpop.eup %9602 }
 0x4cf   :  { %v4254_v2 = vmul.f32 %v9603_v52, %v4235_v6  ;;  %v15855_v6 = vld [vmem:[#allocation77_spill] sm:$0xff]  ;;  %v15857_v52 = vld [vmem:[#allocation79_spill] sm:$0xff] }
 0x4d0   :  { %4598 = vmatpush1.bf16.msra.mxu1 %v15817_v44  ;;  %8652 = vmatpush3.bf16.msra.mxu0 %v15818_v0  ;;  %v4262_v44 = vld [vmem:[#allocation2 + $0x60] sm:$0xff] }
 0x4d1   :  { %v4255_v11 = vadd.f32 %v4254_v2, %v4157_v15  ;;  %4599 = vmatprep.subr.bf16.mxu1 %v15819_v7  ;;  %8653 = vmatprep.subr.bf16.mxu0 %v15596_v30  ;;  %v9605_v36 = vpop.eup %9604  ;;  %v15858_v15 = vld [vmem:[#allocation80_spill] sm:$0xff]  ;;  %v15859_v2 = vld [vmem:[#allocation81_spill] sm:$0xff]  ;;  %v4264_v7 = vunpack.c.l.bf16 %v4262_v44 }
 0x4d2   :  { %v4257_v54 = vsub.f32 1.0, %v9605_v36  ;;  %v4259_v8 = vmul.f32 %v9605_v36, %v15832_v21 }
 0x4d3   :  { %9606 = vtanh.f32 %v4255_v11 }
 0x4d4   :  { %4600 = vmatpush1.bf16.msra.mxu1 %v15820_v26  ;;  %8654 = vmatpush3.bf16.msra.mxu0 %v15821_v42  ;;  %v15860_v26 = vld [vmem:[#allocation7_spill] sm:$0xff] }
 0x4d5   :  { %4601 = vmatprep.subr.bf16.mxu1 %v15822_v32  ;;  %8655 = vmatprep.subr.bf16.mxu0 %v15596_v30 }
 0x4d8   :  { %4602 = vmatpush1.bf16.msra.mxu1 %v15823_v27  ;;  %8656 = vmatpush3.bf16.msra.mxu0 %v15824_v39 }
 0x4d9   :  { %4603 = vmatprep.subr.bf16.mxu1 %v15825_v62  ;;  %8657 = vmatprep.subr.bf16.mxu0 %v15596_v30 }
 0x4dc   :  { %4604 = vmatpush1.bf16.msra.mxu1 %v15826_v57  ;;  %8658 = vmatpush3.bf16.msra.mxu0 %v15827_v60  ;;  %v15861_v60 = vld [vmem:[#allocation8_spill] sm:$0xff] }
 0x4dd   :  { %4605 = vmatprep.subr.bf16.mxu1 %v15828_v38  ;;  %8659 = vmatprep.subr.bf16.mxu0 %v15596_v30 }
 0x4e0   :  { %v9607_v33 = vpop.eup %9606  ;;  %4606 = vmatpush1.bf16.msra.mxu1 %v15829_v28  ;;  %8660 = vmatpush3.bf16.msra.mxu0 %v15830_v51  ;;  %v4265_v28 = vunpack.c.h.bf16 %v4262_v44 }
 0x4e1   :  { %4607 = vmatprep.subr.bf16.mxu1 %v15831_v20  ;;  %8661 = vmatprep.subr.bf16.mxu0 %v15596_v30  ;;  %v4258_v12 = vmul.f32 %v9607_v33, %v4257_v54 }
 0x4e3   :  { %v13133_v18 = vadd.f32 %v4259_v8, %v4258_v12 }
 0x4e4   :  { %4608 = vmatpush1.bf16.msra.mxu1 %v15833_v47  ;;  %8662 = vmatpush3.bf16.msra.mxu0 %v15834_v22  ;;  %v4371_v47 = vld [vmem:[#allocation2 + $0xb4] sm:$0xff] }
 0x4e5   :  { %v4592_v56 = vpack.c.bf16 %v13133_v18, %v13133_v18  ;;  %4702 = vmatprep.subr.bf16.mxu1 %v15835_v29  ;;  %8667 = vmatprep.subr.bf16.mxu0 %v15596_v30  ;;  %v13178_v29 = vld [vmem:[#allocation2 + $0x68] ss:$84 sps:$4 sm:$0xff]  }
 0x4e7   :  { %4626 = vmatmul.mubr.bf16.vlgmr.msra.gmra.mxu1 %v4592_v56  ;;  %8664 = vmatmul.mubr.bf16.vlgmr.msra.gmra.mxu0 %v4592_v56 }
 0x4e8   :  { %4703 = vmatpush1.bf16.msra.mxu1 %v15836_v25  ;;  %8668 = vmatpush3.bf16.msra.mxu0 %v15837_v9  ;;  %v4373_v9 = vunpack.c.l.bf16 %v4371_v47 }
 0x4e9   :  { %4704 = vmatprep.subr.bf16.mxu1 %v15838_v53  ;;  %8669 = vmatprep.subr.bf16.mxu0 %v15596_v30  ;;  %v15862_v53 = vld [vmem:[#allocation10_spill] sm:$0xff] }
 0x4ea   :  { %4734 = vmatprep.mubr.bf16.mxu1 %v15601_v14  ;;  %8683 = vmatprep.mubr.msk.bf16.mxu0 %vm10282_vm0, %v15596_v30 }
 0x4ec   :  { %4705 = vmatpush1.bf16.msra.mxu1 %v15839_v3  ;;  %8670 = vmatpush3.bf16.msra.mxu0 %v15840_v17 }
 0x4ed   :  { %4706 = vmatprep.subr.bf16.mxu1 %v15841_v40  ;;  %8671 = vmatprep.subr.bf16.mxu0 %v15596_v30 }
 0x4f0   :  { %4707 = vmatpush1.bf16.msra.mxu1 %v15842_v19  ;;  %8672 = vmatpush3.bf16.msra.mxu0 %v15843_v61  ;;  %v15863_v19 = vld [vmem:[#allocation9_spill] sm:$0xff] }
 0x4f1   :  { %4708 = vmatprep.subr.bf16.mxu1 %v15844_v45  ;;  %8673 = vmatprep.subr.bf16.mxu0 %v15596_v30 }
 0x4f4   :  { %4709 = vmatpush1.bf16.msra.mxu1 %v15845_v48  ;;  %8674 = vmatpush3.bf16.msra.mxu0 %v15846_v43  ;;  %v4266_v43 = vunpack.c.l.bf16 %v13178_v29 }
 0x4f5   :  { %4710 = vmatprep.subr.bf16.mxu1 %v15847_v5  ;;  %8675 = vmatprep.subr.bf16.mxu0 %v15596_v30 }
 0x4f8   :  { %4711 = vmatpush1.bf16.msra.mxu1 %v15848_v35  ;;  %8676 = vmatpush3.bf16.msra.mxu0 %v15849_v46 }
 0x4f9   :  { %4712 = vmatprep.subr.bf16.mxu1 %v15850_v59  ;;  %8677 = vmatprep.subr.bf16.mxu0 %v15596_v30 }
 0x4fc   :  { %4713 = vmatpush1.bf16.msra.mxu1 %v15851_v50  ;;  %8678 = vmatpush3.bf16.msra.mxu0 %v15852_v4 }
 0x4fd   :  { %4714 = vmatprep.subr.bf16.mxu1 %v15853_v31  ;;  %8679 = vmatprep.subr.bf16.mxu0 %v15596_v30 }
 0x500   :  { %4715 = vmatpush1.bf16.msra.mxu1 %v15854_v55  ;;  %8680 = vmatpush3.bf16.msra.mxu0 %v15855_v6  ;;  %v4374_v6 = vunpack.c.h.bf16 %v4371_v47 }
 0x501   :  { %4716 = vmatprep.subr.bf16.mxu1 %v15856_v58  ;;  %8681 = vmatprep.subr.bf16.mxu0 %v15596_v30 }
 0x504   :  { %4717 = vmatpush1.bf16.msra.mxu1 %v15857_v52  ;;  %8682 = vmatpush3.bf16.msra.mxu0 %v15858_v15 }
 0x505   :  { %4811 = vmatprep.subr.bf16.mxu1 %v15859_v2  ;;  %8687 = vmatprep.subr.bf16.mxu0 %v15596_v30 }
 0x547   :  { %v4302_v0 = vpop.f32.mrf.mxu1  ;;  %v4343_v11 = vpop.f32.mrf.mxu0 }
 0x548   :  { %v4303_v42 = vadd.f32 %v4302_v0, %v15860_v26  ;;  %v4344_v61 = vadd.f32 %v4343_v11, %v15863_v19 }
 0x549   :  { %v4304_v32 = vpop.f32.mrf.mxu1  ;;  %v8605_v27 = vpop.f32.mrf.mxu0 }
 0x54a   :  { %v4349_v39 = vadd.f32 %v4303_v42, %v4264_v7  ;;  %v4305_v38 = vadd.f32 %v4304_v32, %v15861_v60 }
 0x54b   :  { %v4306_v62 = vpop.f32.mrf.mxu1  ;;  %v4346_v36 = vpop.f32.mrf.mxu0 }
 0x54c   :  { %v7734_v57 = vmul.f32 -1.442695, %v4349_v39  ;;  %v4356_v51 = vadd.f32 %v4305_v38, %v4265_v28  ;;  %v13192_v62 = vld [vmem:[%s15276_s3 + $0x168] ss:$12 sps:$4 sm:$0xff]   ;;  %v13198_v36 = vld [vmem:[%s15276_s3 + $0x170] ss:$12 sps:$4 sm:$0xff]  }
 0x54d   :  { %v4307_v54 = vpop.f32.mrf.mxu1  ;;  %v8606_v33 = vpop.f32.mrf.mxu0 }
 0x54e   :  { %9608 = vpow2.f32 %v7734_v57  ;;  %v7735_v20 = vmul.f32 -1.442695, %v4356_v51  ;;  %v13204_v57 = vld [vmem:[%s15276_s3 + $0x154] ss:$12 sps:$4 sm:$0xff]  }
 0x550   :  { %9610 = vpow2.f32 %v7735_v20 }
 0x55b   :  { %v9609_v12 = vpop.eup %9608 }
 0x55c   :  { %v4353_v21 = vadd.f32 1.0, %v9609_v12 }
 0x55d   :  { %v9611_v8 = vpop.eup %9610 }
 0x55e   :  { %9612 = vrcp.f32 %v4353_v21  ;;  %v4360_v25 = vadd.f32 1.0, %v9611_v8  ;;  %v13217_v21 = vld [vmem:[%s15276_s3 + $0x150] ss:$12 sps:$4 sm:$0xff]   ;;  %v13223_v8 = vld [vmem:[%s15276_s3 + $0x158] ss:$12 sps:$4 sm:$0xff]  }
 0x560   :  { %9614 = vrcp.f32 %v4360_v25  ;;  %v13230_v25 = vld [vmem:[%s15276_s3 + $0x13c] ss:$12 sps:$4 sm:$0xff]  }
 0x567   :  { %v4411_v22 = vpop.f32.mrf.mxu1  ;;  %v4452_v56 = vpop.f32.mrf.mxu0 }
 0x568   :  { %v4412_v3 = vadd.f32 %v4411_v22, %v15862_v53  ;;  %v4453_v47 = vadd.f32 %v4452_v56, %v11461_v41 }
 0x569   :  { %v4413_v17 = vpop.f32.mrf.mxu1  ;;  %v8625_v40 = vpop.f32.mrf.mxu0 }
 0x56a   :  { %v4458_v45 = vadd.f32 %v4412_v3, %v4373_v9  ;;  %v4414_v50 = vadd.f32 %v4413_v17, %v11443_v13  ;;  %v4375_v3 = vunpack.c.h.bf16 %v13178_v29  ;;  %v13245_v29 = vld [vmem:[%s15276_s3 + $0x140] ss:$12 sps:$4 sm:$0xff]  }
 0x56b   :  { %v9613_v48 = vpop.eup %9612  ;;  %v4415_v5 = vpop.f32.mrf.mxu1 }
 0x56c   :  { %v4455_v35 = vpop.f32.mrf.mxu0  ;;  %v4363_v46 = vmul.f32 %v9613_v48, %v4344_v61  ;;  %v7736_v59 = vmul.f32 -1.442695, %v4458_v45  ;;  %v4465_v58 = vadd.f32 %v4414_v50, %v4374_v6  ;;  %v13239_v5 = vld [vmem:[%s15276_s3 + $0x138] ss:$12 sps:$4 sm:$0xff]  }
 0x56d   :  { %v4416_v4 = vpop.f32.mrf.mxu1  ;;  %v9615_v15 = vpop.eup %9614 }
 0x56e   :  { %v8626_v31 = vpop.f32.mrf.mxu0  ;;  %v4364_v55 = vadd.f32 %v4363_v46, %v4266_v43  ;;  %9616 = vpow2.f32 %v7736_v59  ;;  %v7737_v52 = vmul.f32 -1.442695, %v4465_v58  ;;  %v4366_v0 = vsub.f32 1.0, %v9615_v15  ;;  %v13251_v59 = vld [vmem:[%s15276_s3 + $0x124] ss:$12 sps:$4 sm:$0xff]  }
 0x56f   :  { %v4368_v42 = vmul.f32 %v9615_v15, %v12999_v16  ;;  %v4479_v16 = vld [vmem:[#allocation3 + $0x60] sm:$0xff]  ;;  %v13264_v31 = vld [vmem:[%s15276_s3 + $0x128] ss:$12 sps:$4 sm:$0xff]  }
 0x570   :  { %9618 = vtanh.f32 %v4364_v55  ;;  %v4481_v28 = vunpack.c.l.bf16 %v4479_v16  ;;  %v4482_v46 = vunpack.c.h.bf16 %v4479_v16  ;;  %v13258_v4 = vld [vmem:[%s15276_s3 + $0x120] ss:$12 sps:$4 sm:$0xff]   ;;  %v13277_v58 = vld [vmem:[%s15276_s3 + $0x108] ss:$12 sps:$4 sm:$0xff]   ;;  %v13315_v16 = vld [vmem:[%s15276_s3 + $0xd8] ss:$12 sps:$4 sm:$0xff]  }
 0x571   :  { %9620 = vpow2.f32 %v7737_v52  ;;  %v13270_v55 = vld [vmem:[%s15276_s3 + $0x10c] ss:$12 sps:$4 sm:$0xff]   ;;  %v13283_v52 = vld [vmem:[%s15276_s3 + $0x110] ss:$12 sps:$4 sm:$0xff]   ;;  %v13289_v15 = vld [vmem:[%s15276_s3 + $0xf4] ss:$12 sps:$4 sm:$0xff]  }
 0x57b   :  { %v9617_v2 = vpop.eup %9616 }
 0x57c   :  { %v4462_v44 = vadd.f32 1.0, %v9617_v2 }
 0x57d   :  { %v9619_v11 = vpop.eup %9618 }
 0x57e   :  { %9622 = vrcp.f32 %v4462_v44  ;;  %v4367_v7 = vmul.f32 %v9619_v11, %v4366_v0  ;;  %v9621_v39 = vpop.eup %9620  ;;  %v13296_v44 = vld [vmem:[%s15276_s3 + $0xf0] ss:$12 sps:$4 sm:$0xff]   ;;  %v13302_v0 = vld [vmem:[%s15276_s3 + $0xf8] ss:$12 sps:$4 sm:$0xff]  }
 0x57f   :  { %v4469_v33 = vadd.f32 1.0, %v9621_v39  ;;  %v13308_v11 = vld [vmem:[%s15276_s3 + $0xdc] ss:$12 sps:$4 sm:$0xff]  }
 0x580   :  { %v13185_v32 = vadd.f32 %v4368_v42, %v4367_v7 }
 0x581   :  { %9624 = vrcp.f32 %v4469_v33  ;;  %v13327_v33 = vld [vmem:[%s15276_s3 + $0xc4] ss:$12 sps:$4 sm:$0xff]  }
 0x582   :  { %v4701_v27 = vpack.c.bf16 %v13185_v32, %v13185_v32 }
 0x584   :  { %4735 = vmatmul.mubr.bf16.vlgmr.msra.gmra.mxu1 %v4701_v27  ;;  %8684 = vmatmul.mubr.bf16.vlgmr.msra.gmra.mxu0 %v4701_v27 }
 0x585   :  { %4812 = vmatpush1.bf16.msra.mxu1 %v13192_v62  ;;  %8688 = vmatpush3.bf16.msra.mxu0 %v13198_v36 }
 0x586   :  { %4813 = vmatprep.subr.bf16.mxu1 %v13204_v57  ;;  %8689 = vmatprep.subr.bf16.mxu0 %v15596_v30 }
 0x587   :  { %v4519_v38 = vpop.f32.mrf.mxu1  ;;  %v13208_v54 = vpop.f32.mrf.mxu0  ;;  %4843 = vmatprep.mubr.bf16.mxu1 %v15601_v14  ;;  %8703 = vmatprep.mubr.msk.bf16.mxu0 %vm10282_vm0, %v15596_v30 }
 0x588   :  { %v4520_v51 = vadd.f32 %v4519_v38, %v11465_v49  ;;  %v13321_v38 = vld [vmem:[%s15276_s3 + $0xe0] ss:$12 sps:$4 sm:$0xff]  }
 0x589   :  { %v4521_v20 = vpop.f32.mrf.mxu1  ;;  %v8645_v12 = vpop.f32.mrf.mxu0  ;;  %4814 = vmatpush1.bf16.msra.mxu1 %v13217_v21  ;;  %8690 = vmatpush3.bf16.msra.mxu0 %v13223_v8 }
 0x58a   :  { %v4566_v22 = vadd.f32 %v4520_v51, %v4481_v28  ;;  %4815 = vmatprep.subr.bf16.mxu1 %v13230_v25  ;;  %8691 = vmatprep.subr.bf16.mxu0 %v15596_v30  ;;  %v4522_v56 = vadd.f32 %v4521_v20, %v11488_v34  ;;  %v13337_v12 = vld [vmem:[%s15276_s3 + $0xc0] ss:$12 sps:$4 sm:$0xff]  }
 0x58b   :  { %v9623_v9 = vpop.eup %9622  ;;  %v4523_v17 = vpop.f32.mrf.mxu1 }
 0x58c   :  { %v4563_v40 = vpop.f32.mrf.mxu0  ;;  %v4472_v61 = vmul.f32 %v9623_v9, %v4453_v47  ;;  %v7738_v45 = vmul.f32 -1.442695, %v4566_v22  ;;  %v4573_v50 = vadd.f32 %v4522_v56, %v4482_v46  ;;  %v13343_v47 = vld [vmem:[%s15276_s3 + $0xc8] ss:$12 sps:$4 sm:$0xff]   ;;  %v13364_v17 = vld [vmem:[%s15277_s7 + $0xb0] ss:$12 sps:$4 sm:$0xff]  }
 0x58d   :  { %v4524_v48 = vpop.f32.mrf.mxu1  ;;  %4816 = vmatpush1.bf16.msra.mxu1 %v13239_v5  ;;  %8692 = vmatpush3.bf16.msra.mxu0 %v13245_v29  ;;  %v4587_v40 = vld [vmem:[#allocation3 + $0x54] sm:$0xff] }
 0x58e   :  { %v8646_v43 = vpop.f32.mrf.mxu0  ;;  %v4473_v35 = vadd.f32 %v4472_v61, %v4375_v3  ;;  %9626 = vpow2.f32 %v7738_v45  ;;  %4817 = vmatprep.subr.bf16.mxu1 %v13251_v59  ;;  %8693 = vmatprep.subr.bf16.mxu0 %v15596_v30  ;;  %v7739_v6 = vmul.f32 -1.442695, %v4573_v50  ;;  %v9625_v2 = vpop.eup %9624  ;;  %v13358_v3 = vld [vmem:[%s15277_s7 + $0xa8] ss:$12 sps:$4 sm:$0xff]  }
 0x58f   :  { %v4475_v27 = vsub.f32 1.0, %v9625_v2  ;;  %v4477_v51 = vmul.f32 %v9625_v2, %v13041_v1  ;;  %v13351_v1 = vld [vmem:[%s15277_s7 + $0xac] ss:$12 sps:$4 sm:$0xff]   ;;  %v13370_v61 = vld [vmem:[%s15277_s7 + $0x94] ss:$12 sps:$4 sm:$0xff]  }
 0x590   :  { %9628 = vtanh.f32 %v4473_v35  ;;  %v13379_v48 = vld [vmem:[#allocation3 + $0x5c] ss:$12 sps:$4 sm:$0xff]   ;;  %v4589_v35 = vunpack.c.l.bf16 %v4587_v40 }
 0x591   :  { %4818 = vmatpush1.bf16.msra.mxu1 %v13258_v4  ;;  %8694 = vmatpush3.bf16.msra.mxu0 %v13264_v31  ;;  %9630 = vpow2.f32 %v7739_v6  ;;  %v13385_v2 = vld [vmem:[%s15277_s7 + $0x90] ss:$12 sps:$4 sm:$0xff]  }
 0x592   :  { %4819 = vmatprep.subr.bf16.mxu1 %v13270_v55  ;;  %8695 = vmatprep.subr.bf16.mxu0 %v15596_v30 }
 0x595   :  { %4820 = vmatpush1.bf16.msra.mxu1 %v13277_v58  ;;  %8696 = vmatpush3.bf16.msra.mxu0 %v13283_v52 }
 0x596   :  { %4821 = vmatprep.subr.bf16.mxu1 %v13289_v15  ;;  %8697 = vmatprep.subr.bf16.mxu0 %v15596_v30 }
 0x599   :  { %4822 = vmatpush1.bf16.msra.mxu1 %v13296_v44  ;;  %8698 = vmatpush3.bf16.msra.mxu0 %v13302_v0 }
 0x59a   :  { %4823 = vmatprep.subr.bf16.mxu1 %v13308_v11  ;;  %8699 = vmatprep.subr.bf16.mxu0 %v15596_v30 }
 0x59b   :  { %v9627_v7 = vpop.eup %9626 }
 0x59c   :  { %v4570_v42 = vadd.f32 1.0, %v9627_v7  ;;  %v13391_v7 = vld [vmem:[%s15277_s7 + $0x98] ss:$12 sps:$4 sm:$0xff]  }
 0x59d   :  { %v9629_v39 = vpop.eup %9628  ;;  %4824 = vmatpush1.bf16.msra.mxu1 %v13315_v16  ;;  %8700 = vmatpush3.bf16.msra.mxu0 %v13321_v38 }
 0x59e   :  { %9632 = vrcp.f32 %v4570_v42  ;;  %4825 = vmatprep.subr.bf16.mxu1 %v13327_v33  ;;  %8701 = vmatprep.subr.bf16.mxu0 %v15596_v30  ;;  %v4476_v28 = vmul.f32 %v9629_v39, %v4475_v27  ;;  %v9631_v9 = vpop.eup %9630  ;;  %v4561_v42 = vadd.f32 %v13208_v54, %v15790_v37  ;;  %v13399_v39 = vld [vmem:[%s15277_s7 + $0x7c] ss:$12 sps:$4 sm:$0xff]   ;;  %v13408_v37 = vld [vmem:[%s15277_s7 + $0x78] ss:$12 sps:$4 sm:$0xff]  }
 0x59f   :  { %v4577_v43 = vadd.f32 1.0, %v9631_v9  ;;  %15864 = vst [vmem:[#allocation13_spill] sm:$0xff] %v13399_v39 }
 0x5a0   :  { %v13332_v20 = vadd.f32 %v4477_v51, %v4476_v28  ;;  %v4483_v51 = vunpack.c.h.bf16 %v13379_v48 }
 0x5a1   :  { %4826 = vmatpush1.bf16.msra.mxu1 %v13337_v12  ;;  %8702 = vmatpush3.bf16.msra.mxu0 %v13343_v47  ;;  %9634 = vrcp.f32 %v4577_v43 }
 0x5a2   :  { %v4810_v22 = vpack.c.bf16 %v13332_v20, %v13332_v20  ;;  %4919 = vmatprep.subr.bf16.mxu1 %v13351_v1  ;;  %8707 = vmatprep.subr.bf16.mxu0 %v15596_v30 }
 0x5a4   :  { %4844 = vmatmul.mubr.bf16.vlgmr.msra.gmra.mxu1 %v4810_v22  ;;  %8704 = vmatmul.mubr.bf16.vlgmr.msra.gmra.mxu0 %v4810_v22 }
 0x5a5   :  { %4920 = vmatpush1.bf16.msra.mxu1 %v13358_v3  ;;  %8708 = vmatpush3.bf16.msra.mxu0 %v13364_v17 }
 0x5a6   :  { %4921 = vmatprep.subr.bf16.mxu1 %v13370_v61  ;;  %8709 = vmatprep.subr.bf16.mxu0 %v15596_v30 }
 0x5a7   :  { %v4627_v45 = vpop.f32.mrf.mxu1  ;;  %v13374_v56 = vpop.f32.mrf.mxu0  ;;  %4951 = vmatprep.mubr.bf16.mxu1 %v15601_v14  ;;  %8723 = vmatprep.mubr.msk.bf16.mxu0 %vm10282_vm0, %v15596_v30 }
 0x5a8   :  { %v4628_v46 = vadd.f32 %v4627_v45, %v11643_v63 }
 0x5a9   :  { %v4629_v50 = vpop.f32.mrf.mxu1  ;;  %v8665_v6 = vpop.f32.mrf.mxu0  ;;  %4922 = vmatpush1.bf16.msra.mxu1 %v13385_v2  ;;  %8710 = vmatpush3.bf16.msra.mxu0 %v13391_v7 }
 0x5aa   :  { %v4674_v27 = vadd.f32 %v4628_v46, %v4589_v35  ;;  %4923 = vmatprep.subr.bf16.mxu1 %v13399_v39  ;;  %8711 = vmatprep.subr.bf16.mxu0 %v15596_v30  ;;  %v4630_v54 = vadd.f32 %v4629_v50, %v15648_v23  ;;  %v13414_v39 = vld [vmem:[%s15277_s7 + $0x80] ss:$12 sps:$4 sm:$0xff]   ;;  %v13420_v50 = vld [vmem:[%s15277_s7 + $0x64] ss:$12 sps:$4 sm:$0xff]  }
 0x5ab   :  { %v9633_v28 = vpop.eup %9632  ;;  %v4631_v22 = vpop.f32.mrf.mxu1  ;;  %15865 = vst [vmem:[#allocation14_spill] sm:$0xff] %v13414_v39  ;;  %15866 = vst [vmem:[#allocation15_spill] sm:$0xff] %v13420_v50 }
 0x5ac   :  { %v4671_v9 = vpop.f32.mrf.mxu0  ;;  %v4580_v45 = vmul.f32 %v9633_v28, %v4561_v42  ;;  %v7740_v6 = vmul.f32 -1.442695, %v4674_v27  ;;  %v4590_v42 = vunpack.c.h.bf16 %v4587_v40  ;;  %v13427_v28 = vld [vmem:[%s15277_s7 + $0x60] ss:$12 sps:$4 sm:$0xff]   ;;  %v13433_v40 = vld [vmem:[%s15277_s7 + $0x68] ss:$12 sps:$4 sm:$0xff]  }
 0x5ad   :  { %v4632_v35 = vpop.f32.mrf.mxu1  ;;  %4924 = vmatpush1.bf16.msra.mxu1 %v13408_v37  ;;  %8712 = vmatpush3.bf16.msra.mxu0 %v13414_v39  ;;  %15867 = vst [vmem:[#allocation16_spill] sm:$0xff] %v13427_v28  ;;  %15868 = vst [vmem:[#allocation17_spill] sm:$0xff] %v13433_v40  ;;  %v13446_v9 = vld [vmem:[%s15277_s7 + $0x48] ss:$12 sps:$4 sm:$0xff]  }
 0x5ae   :  { %v8666_v46 = vpop.f32.mrf.mxu0  ;;  %v4581_v43 = vadd.f32 %v4580_v45, %v4483_v51  ;;  %9636 = vpow2.f32 %v7740_v6  ;;  %4925 = vmatprep.subr.bf16.mxu1 %v13420_v50  ;;  %8713 = vmatprep.subr.bf16.mxu0 %v15596_v30  ;;  %v4681_v27 = vadd.f32 %v4630_v54, %v4590_v42  ;;  %v13439_v51 = vld [vmem:[%s15277_s7 + $0x4c] ss:$12 sps:$4 sm:$0xff]   ;;  %15870 = vst [vmem:[#allocation19_spill] sm:$0xff] %v13446_v9  ;;  %v13452_v45 = vld [vmem:[%s15277_s7 + $0x50] ss:$12 sps:$4 sm:$0xff]   ;;  %v9635_v54 = vpop.eup %9634 }
 0x5af   :  { %15869 = vst [vmem:[#allocation18_spill] sm:$0xff] %v13439_v51  ;;  %15871 = vst [vmem:[#allocation20_spill] sm:$0xff] %v13452_v45  ;;  %v13458_v6 = vld [vmem:[%s15277_s7 + $0x34] ss:$12 sps:$4 sm:$0xff]   ;;  %v13465_v35 = vld [vmem:[%s15277_s7 + $0x30] ss:$12 sps:$4 sm:$0xff]  }
 0x5b0   :  { %9638 = vtanh.f32 %v4581_v43  ;;  %v7741_v22 = vmul.f32 -1.442695, %v4681_v27  ;;  %15872 = vst [vmem:[#allocation21_spill] sm:$0xff] %v13458_v6  ;;  %15873 = vst [vmem:[#allocation22_spill] sm:$0xff] %v13465_v35  ;;  %v13471_v46 = vld [vmem:[%s15277_s7 + $0x38] ss:$12 sps:$4 sm:$0xff]  }
 0x5b1   :  { %4926 = vmatpush1.bf16.msra.mxu1 %v13427_v28  ;;  %8714 = vmatpush3.bf16.msra.mxu0 %v13433_v40  ;;  %15874 = vst [vmem:[#allocation23_spill] sm:$0xff] %v13471_v46  ;;  %v13477_v43 = vld [vmem:[%s15277_s7 + $0x1c] ss:$12 sps:$4 sm:$0xff]  }
 0x5b2   :  { %4927 = vmatprep.subr.bf16.mxu1 %v13439_v51  ;;  %8715 = vmatprep.subr.bf16.mxu0 %v15596_v30  ;;  %9640 = vpow2.f32 %v7741_v22  ;;  %15875 = vst [vmem:[#allocation24_spill] sm:$0xff] %v13477_v43  ;;  %v4583_v22 = vsub.f32 1.0, %v9635_v54 }
 0x5b5   :  { %4928 = vmatpush1.bf16.msra.mxu1 %v13446_v9  ;;  %8716 = vmatpush3.bf16.msra.mxu0 %v13452_v45  ;;  %v13506_v9 = vld [vmem:[%s15277_s7] ss:$12 sps:$4 sm:$0xff]  }
 0x5b6   :  { %4929 = vmatprep.subr.bf16.mxu1 %v13458_v6  ;;  %8717 = vmatprep.subr.bf16.mxu0 %v15596_v30  ;;  %v13484_v6 = vld [vmem:[%s15277_s7 + $0x18] ss:$12 sps:$4 sm:$0xff]   ;;  %15880 = vst [vmem:[#allocation29_spill] sm:$0xff] %v13506_v9 }
 0x5b7   :  { %15876 = vst [vmem:[#allocation25_spill] sm:$0xff] %v13484_v6 }
 0x5b9   :  { %4930 = vmatpush1.bf16.msra.mxu1 %v13465_v35  ;;  %8718 = vmatpush3.bf16.msra.mxu0 %v13471_v46  ;;  %v13490_v46 = vld [vmem:[%s15277_s7 + $0x20] ss:$12 sps:$4 sm:$0xff]  }
 0x5ba   :  { %4931 = vmatprep.subr.bf16.mxu1 %v13477_v43  ;;  %8719 = vmatprep.subr.bf16.mxu0 %v15596_v30  ;;  %15877 = vst [vmem:[#allocation26_spill] sm:$0xff] %v13490_v46 }
 0x5bb   :  { %v9637_v42 = vpop.eup %9636 }
 0x5bc   :  { %v4678_v27 = vadd.f32 1.0, %v9637_v42  ;;  %v13496_v42 = vld [vmem:[%s15277_s7 + $0x4] ss:$12 sps:$4 sm:$0xff]  }
 0x5bd   :  { %v9639_v35 = vpop.eup %9638  ;;  %4932 = vmatpush1.bf16.msra.mxu1 %v13484_v6  ;;  %8720 = vmatpush3.bf16.msra.mxu0 %v13490_v46  ;;  %15878 = vst [vmem:[#allocation27_spill] sm:$0xff] %v13496_v42  ;;  %v4585_v6 = vmul.f32 %v9635_v54, %v13090_v10  ;;  %v13520_v10 = vld [vmem:[%s15277_s7 + $0x16c] ss:$12 sps:$4 sm:$0xff]   ;;  %v13527_v54 = vld [vmem:[%s15277_s7 + $0x168] ss:$12 sps:$4 sm:$0xff]  }
 0x5be   :  { %9642 = vrcp.f32 %v4678_v27  ;;  %4933 = vmatprep.subr.bf16.mxu1 %v13496_v42  ;;  %8721 = vmatprep.subr.bf16.mxu0 %v15596_v30  ;;  %v4584_v43 = vmul.f32 %v9639_v35, %v4583_v22  ;;  %v13512_v27 = vld [vmem:[%s15277_s7 + $0x8] ss:$12 sps:$4 sm:$0xff]   ;;  %15882 = vst [vmem:[#allocation31_spill] sm:$0xff] %v13520_v10  ;;  %15883 = vst [vmem:[#allocation33_spill] sm:$0xff] %v13527_v54 }
 0x5bf   :  { %15881 = vst [vmem:[#allocation30_spill] sm:$0xff] %v13512_v27  ;;  %v13539_v22 = vld [vmem:[%s15277_s7 + $0x154] ss:$12 sps:$4 sm:$0xff]  }
 0x5c0   :  { %v13501_v45 = vadd.f32 %v4585_v6, %v4584_v43  ;;  %v9641_v6 = vpop.eup %9640  ;;  %v13533_v43 = vld [vmem:[%s15277_s7 + $0x170] ss:$12 sps:$4 sm:$0xff]   ;;  %15885 = vst [vmem:[#allocation35_spill] sm:$0xff] %v13539_v22 }
 0x5c1   :  { %4934 = vmatpush1.bf16.msra.mxu1 %v13506_v9  ;;  %8722 = vmatpush3.bf16.msra.mxu0 %v13512_v27  ;;  %15884 = vst [vmem:[#allocation34_spill] sm:$0xff] %v13533_v43 }
 0x5c2   :  { %15879 = vst [vmem:[#allocation28_spill] sm:$0xff] %v13501_v45  ;;  %v4918_v35 = vpack.c.bf16 %v13501_v45, %v13501_v45  ;;  %5027 = vmatprep.subr.bf16.mxu1 %v13520_v10  ;;  %8727 = vmatprep.subr.bf16.mxu0 %v15596_v30  ;;  %v4591_v10 = vunpack.c.l.bf16 %v13379_v48  ;;  %v13583_v48 = vld [vmem:[%s15277_s7 + $0x124] ss:$12 sps:$4 sm:$0xff]  }
 0x5c3   :  { %15891 = vst [vmem:[#allocation41_spill] sm:$0xff] %v13583_v48 }
 0x5c4   :  { %4952 = vmatmul.mubr.bf16.vlgmr.msra.gmra.mxu1 %v4918_v35  ;;  %8724 = vmatmul.mubr.bf16.vlgmr.msra.gmra.mxu0 %v4918_v35  ;;  %v4685_v35 = vadd.f32 1.0, %v9641_v6  ;;  %v13563_v6 = vld [vmem:[%s15277_s7 + $0x13c] ss:$12 sps:$4 sm:$0xff]  }
 0x5c5   :  { %5028 = vmatpush1.bf16.msra.mxu1 %v13527_v54  ;;  %8728 = vmatpush3.bf16.msra.mxu0 %v13533_v43  ;;  %v13549_v54 = vld [vmem:[%s15277_s7 + $0x150] ss:$12 sps:$4 sm:$0xff]   ;;  %v13555_v43 = vld [vmem:[%s15277_s7 + $0x158] ss:$12 sps:$4 sm:$0xff]   ;;  %15888 = vst [vmem:[#allocation38_spill] sm:$0xff] %v13563_v6 }
 0x5c6   :  { %5029 = vmatprep.subr.bf16.mxu1 %v13539_v22  ;;  %8729 = vmatprep.subr.bf16.mxu0 %v15596_v30  ;;  %15886 = vst [vmem:[#allocation36_spill] sm:$0xff] %v13549_v54  ;;  %15887 = vst [vmem:[#allocation37_spill] sm:$0xff] %v13555_v43  ;;  %v4669_v22 = vadd.f32 %v13374_v56, %v15815_v24  ;;  %9644 = vrcp.f32 %v4685_v35  ;;  %v13577_v56 = vld [vmem:[%s15277_s7 + $0x140] ss:$12 sps:$4 sm:$0xff]   ;;  %v13615_v35 = vld [vmem:[%s15277_s7 + $0x110] ss:$12 sps:$4 sm:$0xff]  }
 0x5c7   :  { %5059 = vmatprep.mubr.bf16.mxu1 %v15601_v14  ;;  %8743 = vmatprep.mubr.msk.bf16.mxu0 %vm10282_vm0, %v15596_v30  ;;  %15890 = vst [vmem:[#allocation40_spill] sm:$0xff] %v13577_v56  ;;  %15896 = vst [vmem:[#allocation46_spill] sm:$0xff] %v13615_v35 }
 0x5c9   :  { %5030 = vmatpush1.bf16.msra.mxu1 %v13549_v54  ;;  %8730 = vmatpush3.bf16.msra.mxu0 %v13555_v43  ;;  %v13571_v43 = vld [vmem:[%s15277_s7 + $0x138] ss:$12 sps:$4 sm:$0xff]  }
 0x5ca   :  { %5031 = vmatprep.subr.bf16.mxu1 %v13563_v6  ;;  %8731 = vmatprep.subr.bf16.mxu0 %v15596_v30  ;;  %15889 = vst [vmem:[#allocation39_spill] sm:$0xff] %v13571_v43 }
 0x5cb   :  { %v9643_v54 = vpop.eup %9642 }
 0x5cc   :  { %v4688_v27 = vmul.f32 %v9643_v54, %v4669_v22  ;;  %v13590_v54 = vld [vmem:[%s15277_s7 + $0x120] ss:$12 sps:$4 sm:$0xff]   ;;  %v13609_v22 = vld [vmem:[%s15277_s7 + $0x108] ss:$12 sps:$4 sm:$0xff]  }
 0x5cd   :  { %5032 = vmatpush1.bf16.msra.mxu1 %v13571_v43  ;;  %8732 = vmatpush3.bf16.msra.mxu0 %v13577_v56  ;;  %15892 = vst [vmem:[#allocation42_spill] sm:$0xff] %v13590_v54  ;;  %15895 = vst [vmem:[#allocation45_spill] sm:$0xff] %v13609_v22  ;;  %v13669_v43 = vld [vmem:[%s15277_s7 + $0xc0] ss:$12 sps:$4 sm:$0xff]  }
 0x5ce   :  { %v4689_v6 = vadd.f32 %v4688_v27, %v4591_v10  ;;  %5033 = vmatprep.subr.bf16.mxu1 %v13583_v48  ;;  %8733 = vmatprep.subr.bf16.mxu0 %v15596_v30  ;;  %v13596_v27 = vld [vmem:[%s15277_s7 + $0x128] ss:$12 sps:$4 sm:$0xff]   ;;  %v13602_v10 = vld [vmem:[%s15277_s7 + $0x10c] ss:$12 sps:$4 sm:$0xff]   ;;  %15905 = vst [vmem:[#allocation55_spill] sm:$0xff] %v13669_v43 }
 0x5cf   :  { %15893 = vst [vmem:[#allocation43_spill] sm:$0xff] %v13596_v27  ;;  %15894 = vst [vmem:[#allocation44_spill] sm:$0xff] %v13602_v10 }
 0x5d0   :  { %9646 = vtanh.f32 %v4689_v6  ;;  %v13621_v6 = vld [vmem:[%s15277_s7 + $0xf4] ss:$12 sps:$4 sm:$0xff]  }
 0x5d1   :  { %5034 = vmatpush1.bf16.msra.mxu1 %v13590_v54  ;;  %8734 = vmatpush3.bf16.msra.mxu0 %v13596_v27  ;;  %15897 = vst [vmem:[#allocation47_spill] sm:$0xff] %v13621_v6 }
 0x5d2   :  { %5035 = vmatprep.subr.bf16.mxu1 %v13602_v10  ;;  %8735 = vmatprep.subr.bf16.mxu0 %v15596_v30 }
 0x5d3   :  { %v9645_v10 = vpop.eup %9644 }
 0x5d4   :  { %v4691_v27 = vsub.f32 1.0, %v9645_v10  ;;  %v4693_v56 = vmul.f32 %v9645_v10, %v13133_v18  ;;  %v13683_v18 = vld [vmem:[%s15276_s3 + $0xac] ss:$12 sps:$4 sm:$0xff]   ;;  %v13712_v10 = vld [vmem:[%s15276_s3 + $0x90] ss:$12 sps:$4 sm:$0xff]  }
 0x5d5   :  { %5036 = vmatpush1.bf16.msra.mxu1 %v13609_v22  ;;  %8736 = vmatpush3.bf16.msra.mxu0 %v13615_v35  ;;  %v13628_v22 = vld [vmem:[%s15277_s7 + $0xf0] ss:$12 sps:$4 sm:$0xff]   ;;  %v13634_v35 = vld [vmem:[%s15277_s7 + $0xf8] ss:$12 sps:$4 sm:$0xff]   ;;  %15907 = vst [vmem:[#allocation57_spill] sm:$0xff] %v13683_v18  ;;  %15911 = vst [vmem:[#allocation61_spill] sm:$0xff] %v13712_v10 }
 0x5d6   :  { %5037 = vmatprep.subr.bf16.mxu1 %v13621_v6  ;;  %8737 = vmatprep.subr.bf16.mxu0 %v15596_v30  ;;  %15898 = vst [vmem:[#allocation48_spill] sm:$0xff] %v13628_v22  ;;  %15899 = vst [vmem:[#allocation49_spill] sm:$0xff] %v13634_v35  ;;  %v13640_v6 = vld [vmem:[%s15277_s7 + $0xdc] ss:$12 sps:$4 sm:$0xff]  }
 0x5d7   :  { %15900 = vst [vmem:[#allocation50_spill] sm:$0xff] %v13640_v6 }
 0x5d9   :  { %5038 = vmatpush1.bf16.msra.mxu1 %v13628_v22  ;;  %8738 = vmatpush3.bf16.msra.mxu0 %v13634_v35  ;;  %v13647_v22 = vld [vmem:[%s15277_s7 + $0xd8] ss:$12 sps:$4 sm:$0xff]   ;;  %v13653_v35 = vld [vmem:[%s15277_s7 + $0xe0] ss:$12 sps:$4 sm:$0xff]  }
 0x5da   :  { %5039 = vmatprep.subr.bf16.mxu1 %v13640_v6  ;;  %8739 = vmatprep.subr.bf16.mxu0 %v15596_v30  ;;  %15901 = vst [vmem:[#allocation51_spill] sm:$0xff] %v13647_v22  ;;  %15902 = vst [vmem:[#allocation52_spill] sm:$0xff] %v13653_v35  ;;  %v13659_v6 = vld [vmem:[%s15277_s7 + $0xc4] ss:$12 sps:$4 sm:$0xff]  }
 0x5db   :  { %15903 = vst [vmem:[#allocation53_spill] sm:$0xff] %v13659_v6 }
 0x5dd   :  { %v9647_v54 = vpop.eup %9646  ;;  %5040 = vmatpush1.bf16.msra.mxu1 %v13647_v22  ;;  %8740 = vmatpush3.bf16.msra.mxu0 %v13653_v35  ;;  %v13675_v35 = vld [vmem:[%s15277_s7 + $0xc8] ss:$12 sps:$4 sm:$0xff]  }
 0x5de   :  { %5041 = vmatprep.subr.bf16.mxu1 %v13659_v6  ;;  %8741 = vmatprep.subr.bf16.mxu0 %v15596_v30  ;;  %v4692_v48 = vmul.f32 %v9647_v54, %v4691_v27  ;;  %15906 = vst [vmem:[#allocation56_spill] sm:$0xff] %v13675_v35  ;;  %v13702_v27 = vld [vmem:[%s15276_s3 + $0x94] ss:$12 sps:$4 sm:$0xff]  }
 0x5df   :  { %15910 = vst [vmem:[#allocation60_spill] sm:$0xff] %v13702_v27 }
 0x5e0   :  { %v13664_v22 = vadd.f32 %v4693_v56, %v4692_v48  ;;  %v13690_v56 = vld [vmem:[%s15276_s3 + $0xa8] ss:$12 sps:$4 sm:$0xff]   ;;  %v13696_v48 = vld [vmem:[%s15276_s3 + $0xb0] ss:$12 sps:$4 sm:$0xff]  }
 0x5e1   :  { %5042 = vmatpush1.bf16.msra.mxu1 %v13669_v43  ;;  %8742 = vmatpush3.bf16.msra.mxu0 %v13675_v35  ;;  %15908 = vst [vmem:[#allocation58_spill] sm:$0xff] %v13690_v56  ;;  %15909 = vst [vmem:[#allocation59_spill] sm:$0xff] %v13696_v48 }
 0x5e2   :  { %15904 = vst [vmem:[#allocation54_spill] sm:$0xff] %v13664_v22  ;;  %v5026_v54 = vpack.c.bf16 %v13664_v22, %v13664_v22  ;;  %5135 = vmatprep.subr.bf16.mxu1 %v13683_v18  ;;  %8747 = vmatprep.subr.bf16.mxu0 %v15596_v30 }
 0x5e4   :  { %5060 = vmatmul.mubr.bf16.vlgmr.msra.gmra.mxu1 %v5026_v54  ;;  %8744 = vmatmul.mubr.bf16.vlgmr.msra.gmra.mxu0 %v5026_v54  ;;  %v13718_v54 = vld [vmem:[%s15276_s3 + $0x98] ss:$12 sps:$4 sm:$0xff]  }
 0x5e5   :  { %5136 = vmatpush1.bf16.msra.mxu1 %v13690_v56  ;;  %8748 = vmatpush3.bf16.msra.mxu0 %v13696_v48  ;;  %15912 = vst [vmem:[#allocation62_spill] sm:$0xff] %v13718_v54  ;;  %v4696_v48 = vld [vmem:[#allocation2 + $0x78] sm:$0xff] }
 0x5e6   :  { %5137 = vmatprep.subr.bf16.mxu1 %v13702_v27  ;;  %8749 = vmatprep.subr.bf16.mxu0 %v15596_v30  ;;  %v13724_v27 = vld [vmem:[%s15276_s3 + $0x7c] ss:$12 sps:$4 sm:$0xff]  }
 0x5e7   :  { %5167 = vmatprep.mubr.bf16.mxu1 %v15601_v14  ;;  %8763 = vmatprep.mubr.msk.bf16.mxu0 %vm10282_vm0, %v15596_v30  ;;  %15913 = vst [vmem:[#allocation63_spill] sm:$0xff] %v13724_v27 }
 0x5e9   :  { %5138 = vmatpush1.bf16.msra.mxu1 %v13712_v10  ;;  %8750 = vmatpush3.bf16.msra.mxu0 %v13718_v54  ;;  %v13731_v10 = vld [vmem:[%s15276_s3 + $0x78] ss:$12 sps:$4 sm:$0xff]   ;;  %v13737_v54 = vld [vmem:[%s15276_s3 + $0x80] ss:$12 sps:$4 sm:$0xff]  }
 0x5ea   :  { %5139 = vmatprep.subr.bf16.mxu1 %v13724_v27  ;;  %8751 = vmatprep.subr.bf16.mxu0 %v15596_v30  ;;  %15914 = vst [vmem:[#allocation64_spill] sm:$0xff] %v13731_v10  ;;  %15915 = vst [vmem:[#allocation65_spill] sm:$0xff] %v13737_v54  ;;  %v13743_v27 = vld [vmem:[%s15276_s3 + $0x64] ss:$12 sps:$4 sm:$0xff]  }
 0x5eb   :  { %15916 = vst [vmem:[#allocation66_spill] sm:$0xff] %v13743_v27 }
 0x5ed   :  { %5140 = vmatpush1.bf16.msra.mxu1 %v13731_v10  ;;  %8752 = vmatpush3.bf16.msra.mxu0 %v13737_v54  ;;  %v13750_v10 = vld [vmem:[%s15276_s3 + $0x60] ss:$12 sps:$4 sm:$0xff]   ;;  %v13756_v54 = vld [vmem:[%s15276_s3 + $0x68] ss:$12 sps:$4 sm:$0xff]  }
 0x5ee   :  { %5141 = vmatprep.subr.bf16.mxu1 %v13743_v27  ;;  %8753 = vmatprep.subr.bf16.mxu0 %v15596_v30  ;;  %15917 = vst [vmem:[#allocation67_spill] sm:$0xff] %v13750_v10  ;;  %15918 = vst [vmem:[#allocation68_spill] sm:$0xff] %v13756_v54  ;;  %v13762_v27 = vld [vmem:[%s15276_s3 + $0x4c] ss:$12 sps:$4 sm:$0xff]  }
 0x5ef   :  { %15919 = vst [vmem:[#allocation69_spill] sm:$0xff] %v13762_v27 }
 0x5f1   :  { %5142 = vmatpush1.bf16.msra.mxu1 %v13750_v10  ;;  %8754 = vmatpush3.bf16.msra.mxu0 %v13756_v54  ;;  %v13769_v10 = vld [vmem:[%s15276_s3 + $0x48] ss:$12 sps:$4 sm:$0xff]   ;;  %v13775_v54 = vld [vmem:[%s15276_s3 + $0x50] ss:$12 sps:$4 sm:$0xff]  }
 0x5f2   :  { %5143 = vmatprep.subr.bf16.mxu1 %v13762_v27  ;;  %8755 = vmatprep.subr.bf16.mxu0 %v15596_v30  ;;  %15920 = vst [vmem:[#allocation70_spill] sm:$0xff] %v13769_v10  ;;  %15921 = vst [vmem:[#allocation71_spill] sm:$0xff] %v13775_v54  ;;  %v13781_v27 = vld [vmem:[%s15276_s3 + $0x34] ss:$12 sps:$4 sm:$0xff]  }
 0x5f3   :  { %15922 = vst [vmem:[#allocation72_spill] sm:$0xff] %v13781_v27 }
 0x5f5   :  { %5144 = vmatpush1.bf16.msra.mxu1 %v13769_v10  ;;  %8756 = vmatpush3.bf16.msra.mxu0 %v13775_v54  ;;  %v13788_v10 = vld [vmem:[%s15276_s3 + $0x30] ss:$12 sps:$4 sm:$0xff]   ;;  %v13794_v54 = vld [vmem:[%s15276_s3 + $0x38] ss:$12 sps:$4 sm:$0xff]  }
 0x5f6   :  { %5145 = vmatprep.subr.bf16.mxu1 %v13781_v27  ;;  %8757 = vmatprep.subr.bf16.mxu0 %v15596_v30  ;;  %15923 = vst [vmem:[#allocation73_spill] sm:$0xff] %v13788_v10  ;;  %15924 = vst [vmem:[#allocation74_spill] sm:$0xff] %v13794_v54  ;;  %v13800_v27 = vld [vmem:[%s15276_s3 + $0x1c] ss:$12 sps:$4 sm:$0xff]  }
 0x5f7   :  { %15925 = vst [vmem:[#allocation75_spill] sm:$0xff] %v13800_v27 }
 0x5f9   :  { %5146 = vmatpush1.bf16.msra.mxu1 %v13788_v10  ;;  %8758 = vmatpush3.bf16.msra.mxu0 %v13794_v54  ;;  %v13807_v10 = vld [vmem:[%s15276_s3 + $0x18] ss:$12 sps:$4 sm:$0xff]   ;;  %v13813_v54 = vld [vmem:[%s15276_s3 + $0x20] ss:$12 sps:$4 sm:$0xff]  }
 0x5fa   :  { %5147 = vmatprep.subr.bf16.mxu1 %v13800_v27  ;;  %8759 = vmatprep.subr.bf16.mxu0 %v15596_v30  ;;  %15926 = vst [vmem:[#allocation76_spill] sm:$0xff] %v13807_v10  ;;  %15927 = vst [vmem:[#allocation77_spill] sm:$0xff] %v13813_v54  ;;  %v13819_v27 = vld [vmem:[%s15276_s3 + $0x4] ss:$12 sps:$4 sm:$0xff]  }
 0x5fb   :  { %15928 = vst [vmem:[#allocation78_spill] sm:$0xff] %v13819_v27 }
 0x5fd   :  { %5148 = vmatpush1.bf16.msra.mxu1 %v13807_v10  ;;  %8760 = vmatpush3.bf16.msra.mxu0 %v13813_v54  ;;  %v13826_v10 = vld [vmem:[%s15276_s3] ss:$12 sps:$4 sm:$0xff]   ;;  %v13832_v54 = vld [vmem:[%s15276_s3 + $0x8] ss:$12 sps:$4 sm:$0xff]  }
 0x5fe   :  { %5149 = vmatprep.subr.bf16.mxu1 %v13819_v27  ;;  %8761 = vmatprep.subr.bf16.mxu0 %v15596_v30  ;;  %15929 = vst [vmem:[#allocation79_spill] sm:$0xff] %v13826_v10  ;;  %15930 = vst [vmem:[#allocation80_spill] sm:$0xff] %v13832_v54  ;;  %v13838_v27 = vld [vmem:[%s15276_s3 + $0x16c] ss:$12 sps:$4 sm:$0xff]  }
 0x5ff   :  { %15931 = vst [vmem:[#allocation81_spill] sm:$0xff] %v13838_v27 }
 0x601   :  { %5150 = vmatpush1.bf16.msra.mxu1 %v13826_v10  ;;  %8762 = vmatpush3.bf16.msra.mxu0 %v13832_v54  ;;  %v4698_v10 = vunpack.c.l.bf16 %v4696_v48 }
 0x602   :  { %5243 = vmatprep.subr.bf16.mxu1 %v13838_v27  ;;  %8767 = vmatprep.subr.bf16.mxu0 %v15596_v30  ;;  %v4699_v27 = vunpack.c.h.bf16 %v4696_v48 }
 0x644   :  { %v4736_v56 = vpop.f32.mrf.mxu1  ;;  %v4777_v18 = vpop.f32.mrf.mxu0 }
 0x645   :  { %v4737_v35 = vadd.f32 %v4736_v56, %v15860_v26  ;;  %v4805_v56 = vld [vmem:[#allocation2 + $0x9c] sm:$0xff] }
 0x646   :  { %v4738_v43 = vpop.f32.mrf.mxu1  ;;  %v8685_v22 = vpop.f32.mrf.mxu0 }
 0x647   :  { %v4783_v6 = vadd.f32 %v4737_v35, %v4698_v10  ;;  %v4739_v45 = vadd.f32 %v4738_v43, %v15861_v60  ;;  %v13844_v35 = vld [vmem:[#allocation2 + $0x80] ss:$36 sps:$4 sm:$0xff]  }
 0x648   :  { %v4740_v24 = vpop.f32.mrf.mxu1  ;;  %v4780_v54 = vpop.f32.mrf.mxu0 }
 0x649   :  { %v7742_v9 = vmul.f32 -1.442695, %v4783_v6  ;;  %v4790_v51 = vadd.f32 %v4739_v45, %v4699_v27  ;;  %v4807_v6 = vunpack.c.l.bf16 %v4805_v56 }
 0x64a   :  { %v4741_v42 = vpop.f32.mrf.mxu1  ;;  %v8686_v46 = vpop.f32.mrf.mxu0 }
 0x64b   :  { %9648 = vpow2.f32 %v7742_v9  ;;  %v7743_v40 = vmul.f32 -1.442695, %v4790_v51  ;;  %v4778_v9 = vadd.f32 %v4777_v18, %v15863_v19 }
 0x64d   :  { %9650 = vpow2.f32 %v7743_v40  ;;  %v4700_v40 = vunpack.c.l.bf16 %v13844_v35 }
 0x658   :  { %v9649_v28 = vpop.eup %9648 }
 0x659   :  { %v4787_v50 = vadd.f32 1.0, %v9649_v28 }
 0x65a   :  { %v9651_v39 = vpop.eup %9650 }
 0x65b   :  { %9652 = vrcp.f32 %v4787_v50  ;;  %v4794_v24 = vadd.f32 1.0, %v9651_v39 }
 0x65d   :  { %9654 = vrcp.f32 %v4794_v24 }
 0x664   :  { %v4845_v26 = vpop.f32.mrf.mxu1  ;;  %v4886_v22 = vpop.f32.mrf.mxu0 }
 0x665   :  { %v4846_v43 = vadd.f32 %v4845_v26, %v15862_v53  ;;  %v4808_v26 = vunpack.c.h.bf16 %v4805_v56 }
 0x666   :  { %v4847_v42 = vpop.f32.mrf.mxu1  ;;  %v8705_v46 = vpop.f32.mrf.mxu0 }
 0x667   :  { %v4892_v45 = vadd.f32 %v4846_v43, %v4807_v6  ;;  %v4848_v10 = vadd.f32 %v4847_v42, %v11443_v13 }
 0x668   :  { %v9653_v51 = vpop.eup %9652  ;;  %v4849_v28 = vpop.f32.mrf.mxu1 }
 0x669   :  { %v4889_v50 = vpop.f32.mrf.mxu0  ;;  %v4797_v48 = vmul.f32 %v9653_v51, %v4778_v9  ;;  %v7744_v27 = vmul.f32 -1.442695, %v4892_v45  ;;  %v4899_v46 = vadd.f32 %v4848_v10, %v4808_v26 }
 0x66a   :  { %v4850_v54 = vpop.f32.mrf.mxu1  ;;  %v9655_v18 = vpop.eup %9654 }
 0x66b   :  { %v8706_v39 = vpop.f32.mrf.mxu0  ;;  %v4798_v60 = vadd.f32 %v4797_v48, %v4700_v40  ;;  %9656 = vpow2.f32 %v7744_v27  ;;  %v7745_v53 = vmul.f32 -1.442695, %v4899_v46  ;;  %v4800_v19 = vsub.f32 1.0, %v9655_v18 }
 0x66c   :  { %v4802_v24 = vmul.f32 %v9655_v18, %v13185_v32  ;;  %v4809_v27 = vunpack.c.h.bf16 %v13844_v35 }
 0x66d   :  { %9658 = vtanh.f32 %v4798_v60 }
 0x66e   :  { %9660 = vpow2.f32 %v7745_v53  ;;  %v4913_v53 = vld [vmem:[#allocation3 + $0x78] sm:$0xff] }
 0x66f   :  { %v4915_v51 = vunpack.c.l.bf16 %v4913_v53 }
 0x678   :  { %v9657_v6 = vpop.eup %9656 }
 0x679   :  { %v4896_v43 = vadd.f32 1.0, %v9657_v6  ;;  %v15933_v6 = vld [vmem:[#allocation13_spill] sm:$0xff] }
 0x67a   :  { %v9659_v28 = vpop.eup %9658 }
 0x67b   :  { %9662 = vrcp.f32 %v4896_v43  ;;  %v4801_v9 = vmul.f32 %v9659_v28, %v4800_v19  ;;  %v9661_v60 = vpop.eup %9660 }
 0x67c   :  { %v4903_v32 = vadd.f32 1.0, %v9661_v60 }
 0x67d   :  { %v13851_v45 = vadd.f32 %v4802_v24, %v4801_v9 }
 0x67e   :  { %9664 = vrcp.f32 %v4903_v32 }
 0x67f   :  { %v5134_v42 = vpack.c.bf16 %v13851_v45, %v13851_v45 }
 0x681   :  { %5168 = vmatmul.mubr.bf16.vlgmr.msra.gmra.mxu1 %v5134_v42  ;;  %8764 = vmatmul.mubr.bf16.vlgmr.msra.gmra.mxu0 %v5134_v42 }
 0x682   :  { %5244 = vmatpush1.bf16.msra.mxu1 %v13192_v62  ;;  %8768 = vmatpush3.bf16.msra.mxu0 %v13198_v36  ;;  %v4887_v36 = vadd.f32 %v4886_v22, %v11461_v41 }
 0x683   :  { %5245 = vmatprep.subr.bf16.mxu1 %v13204_v57  ;;  %8769 = vmatprep.subr.bf16.mxu0 %v15596_v30 }
 0x684   :  { %v4953_v19 = vpop.f32.mrf.mxu1  ;;  %v13859_v56 = vpop.f32.mrf.mxu0  ;;  %5275 = vmatprep.mubr.bf16.mxu1 %v15601_v14  ;;  %8783 = vmatprep.mubr.msk.bf16.mxu0 %vm10282_vm0, %v15596_v30 }
 0x685   :  { %v4954_v40 = vadd.f32 %v4953_v19, %v11465_v49  ;;  %v15934_v19 = vld [vmem:[#allocation14_spill] sm:$0xff] }
 0x686   :  { %v4955_v62 = vpop.f32.mrf.mxu1  ;;  %v8725_v50 = vpop.f32.mrf.mxu0  ;;  %5246 = vmatpush1.bf16.msra.mxu1 %v13217_v21  ;;  %8770 = vmatpush3.bf16.msra.mxu0 %v13223_v8 }
 0x687   :  { %v5000_v57 = vadd.f32 %v4954_v40, %v4915_v51  ;;  %5247 = vmatprep.subr.bf16.mxu1 %v13230_v25  ;;  %8771 = vmatprep.subr.bf16.mxu0 %v15596_v30  ;;  %v4956_v46 = vadd.f32 %v4955_v62, %v11488_v34  ;;  %v4916_v25 = vunpack.c.h.bf16 %v4913_v53  ;;  %v15935_v51 = vld [vmem:[#allocation15_spill] sm:$0xff]  ;;  %v15936_v62 = vld [vmem:[#allocation16_spill] sm:$0xff]  ;;  %v15937_v50 = vld [vmem:[#allocation17_spill] sm:$0xff] }
 0x688   :  { %v9663_v48 = vpop.eup %9662  ;;  %v4957_v10 = vpop.f32.mrf.mxu1 }
 0x689   :  { %v4997_v54 = vpop.f32.mrf.mxu0  ;;  %v4906_v39 = vmul.f32 %v9663_v48, %v4887_v36  ;;  %v7746_v26 = vmul.f32 -1.442695, %v5000_v57  ;;  %v5007_v22 = vadd.f32 %v4956_v46, %v4916_v25  ;;  %v15938_v36 = vld [vmem:[#allocation18_spill] sm:$0xff]  ;;  %v15939_v57 = vld [vmem:[#allocation19_spill] sm:$0xff]  ;;  %v15940_v48 = vld [vmem:[#allocation20_spill] sm:$0xff] }
 0x68a   :  { %v4958_v21 = vpop.f32.mrf.mxu1  ;;  %5248 = vmatpush1.bf16.msra.mxu1 %v13239_v5  ;;  %8772 = vmatpush3.bf16.msra.mxu0 %v13245_v29  ;;  %v15942_v54 = vld [vmem:[#allocation22_spill] sm:$0xff]  ;;  %v15945_v25 = vld [vmem:[#allocation25_spill] sm:$0xff] }
 0x68b   :  { %v8726_v18 = vpop.f32.mrf.mxu0  ;;  %v4907_v8 = vadd.f32 %v4906_v39, %v4809_v27  ;;  %9666 = vpow2.f32 %v7746_v26  ;;  %5249 = vmatprep.subr.bf16.mxu1 %v13251_v59  ;;  %8773 = vmatprep.subr.bf16.mxu0 %v15596_v30  ;;  %v7747_v5 = vmul.f32 -1.442695, %v5007_v22  ;;  %v9665_v29 = vpop.eup %9664  ;;  %v15941_v27 = vld [vmem:[#allocation21_spill] sm:$0xff]  ;;  %v15943_v39 = vld [vmem:[#allocation23_spill] sm:$0xff]  ;;  %v15944_v26 = vld [vmem:[#allocation24_spill] sm:$0xff] }
 0x68c   :  { %v15946_v22 = vld [vmem:[#allocation26_spill] sm:$0xff] }
 0x68d   :  { %9668 = vtanh.f32 %v4907_v8 }
 0x68e   :  { %5250 = vmatpush1.bf16.msra.mxu1 %v13258_v4  ;;  %8774 = vmatpush3.bf16.msra.mxu0 %v13264_v31  ;;  %9670 = vpow2.f32 %v7747_v5  ;;  %v4909_v31 = vsub.f32 1.0, %v9665_v29  ;;  %v15947_v5 = vld [vmem:[#allocation27_spill] sm:$0xff] }
 0x68f   :  { %5251 = vmatprep.subr.bf16.mxu1 %v13270_v55  ;;  %8775 = vmatprep.subr.bf16.mxu0 %v15596_v30 }
 0x692   :  { %5252 = vmatpush1.bf16.msra.mxu1 %v13277_v58  ;;  %8776 = vmatpush3.bf16.msra.mxu0 %v13283_v52  ;;  %v4911_v52 = vmul.f32 %v9665_v29, %v13332_v20 }
 0x693   :  { %5253 = vmatprep.subr.bf16.mxu1 %v13289_v15  ;;  %8777 = vmatprep.subr.bf16.mxu0 %v15596_v30 }
 0x696   :  { %5254 = vmatpush1.bf16.msra.mxu1 %v13296_v44  ;;  %8778 = vmatpush3.bf16.msra.mxu0 %v13302_v0 }
 0x697   :  { %5255 = vmatprep.subr.bf16.mxu1 %v13308_v11  ;;  %8779 = vmatprep.subr.bf16.mxu0 %v15596_v30  ;;  %v5021_v11 = vld [vmem:[#allocation3 + $0x3c] sm:$0xff] }
 0x698   :  { %v9667_v59 = vpop.eup %9666  ;;  %v5024_v32 = vunpack.c.h.bf16 %v5021_v11 }
 0x699   :  { %v5004_v4 = vadd.f32 1.0, %v9667_v59  ;;  %v15948_v59 = vld [vmem:[#allocation28_spill] sm:$0xff] }
 0x69a   :  { %v9669_v55 = vpop.eup %9668  ;;  %5256 = vmatpush1.bf16.msra.mxu1 %v13315_v16  ;;  %8780 = vmatpush3.bf16.msra.mxu0 %v13321_v38 }
 0x69b   :  { %9672 = vrcp.f32 %v5004_v4  ;;  %5257 = vmatprep.subr.bf16.mxu1 %v13327_v33  ;;  %8781 = vmatprep.subr.bf16.mxu0 %v15596_v30  ;;  %v4910_v58 = vmul.f32 %v9669_v55, %v4909_v31  ;;  %v9671_v0 = vpop.eup %9670  ;;  %v13910_v33 = vld [vmem:[#allocation3 + $0x44] ss:$60 sps:$4 sm:$0xff]  }
 0x69c   :  { %v5011_v20 = vadd.f32 1.0, %v9671_v0  ;;  %v4917_v28 = vunpack.c.h.bf16 %v13910_v33  ;;  %v15949_v55 = vld [vmem:[#allocation29_spill] sm:$0xff] }
 0x69d   :  { %v13893_v15 = vadd.f32 %v4911_v52, %v4910_v58  ;;  %v15950_v58 = vld [vmem:[#allocation30_spill] sm:$0xff] }
 0x69e   :  { %5258 = vmatpush1.bf16.msra.mxu1 %v13337_v12  ;;  %8782 = vmatpush3.bf16.msra.mxu0 %v13343_v47  ;;  %v5023_v12 = vunpack.c.l.bf16 %v5021_v11  ;;  %9674 = vrcp.f32 %v5011_v20  ;;  %v15952_v11 = vld [vmem:[#allocation33_spill] sm:$0xff]  ;;  %v15954_v20 = vld [vmem:[#allocation35_spill] sm:$0xff] }
 0x69f   :  { %v5242_v44 = vpack.c.bf16 %v13893_v15, %v13893_v15  ;;  %5351 = vmatprep.subr.bf16.mxu1 %v13351_v1  ;;  %8787 = vmatprep.subr.bf16.mxu0 %v15596_v30 }
 0x6a1   :  { %5276 = vmatmul.mubr.bf16.vlgmr.msra.gmra.mxu1 %v5242_v44  ;;  %8784 = vmatmul.mubr.bf16.vlgmr.msra.gmra.mxu0 %v5242_v44  ;;  %v15951_v44 = vld [vmem:[#allocation31_spill] sm:$0xff] }
 0x6a2   :  { %5352 = vmatpush1.bf16.msra.mxu1 %v13358_v3  ;;  %8788 = vmatpush3.bf16.msra.mxu0 %v13364_v17  ;;  %v15932_v17 = vld [vmem:[#allocation11_spill] sm:$0xff] }
 0x6a3   :  { %5353 = vmatprep.subr.bf16.mxu1 %v13370_v61  ;;  %8789 = vmatprep.subr.bf16.mxu0 %v15596_v30  ;;  %v4995_v61 = vadd.f32 %v13859_v56, %v15932_v17 }
 0x6a4   :  { %v5061_v16 = vpop.f32.mrf.mxu1  ;;  %v13905_v38 = vpop.f32.mrf.mxu0  ;;  %5383 = vmatprep.mubr.bf16.mxu1 %v15601_v14  ;;  %8803 = vmatprep.mubr.msk.bf16.mxu0 %vm10282_vm0, %v15596_v30 }
 0x6a5   :  { %v5062_v47 = vadd.f32 %v5061_v16, %v11643_v63  ;;  %v15953_v16 = vld [vmem:[#allocation34_spill] sm:$0xff] }
 0x6a6   :  { %v5063_v1 = vpop.f32.mrf.mxu1  ;;  %v8745_v3 = vpop.f32.mrf.mxu0  ;;  %5354 = vmatpush1.bf16.msra.mxu1 %v13385_v2  ;;  %8790 = vmatpush3.bf16.msra.mxu0 %v13391_v7 }
 0x6a7   :  { %v5108_v35 = vadd.f32 %v5062_v47, %v5023_v12  ;;  %5355 = vmatprep.subr.bf16.mxu1 %v15933_v6  ;;  %8791 = vmatprep.subr.bf16.mxu0 %v15596_v30  ;;  %v5064_v2 = vadd.f32 %v5063_v1, %v15648_v23  ;;  %v15955_v47 = vld [vmem:[#allocation36_spill] sm:$0xff]  ;;  %v15956_v1 = vld [vmem:[#allocation37_spill] sm:$0xff] }
 0x6a8   :  { %v9673_v43 = vpop.eup %9672  ;;  %v5065_v9 = vpop.f32.mrf.mxu1  ;;  %v15957_v3 = vld [vmem:[#allocation32_spill] sm:$0xff] }
 0x6a9   :  { %v5105_v24 = vpop.f32.mrf.mxu0  ;;  %v5014_v42 = vmul.f32 %v9673_v43, %v4995_v61  ;;  %v7748_v60 = vmul.f32 -1.442695, %v5108_v35  ;;  %v5115_v40 = vadd.f32 %v5064_v2, %v5024_v32  ;;  %v5103_v61 = vadd.f32 %v13905_v38, %v15957_v3  ;;  %v15958_v35 = vld [vmem:[#allocation38_spill] sm:$0xff]  ;;  %v15959_v9 = vld [vmem:[#allocation39_spill] sm:$0xff]  ;;  %v15968_v32 = vld [vmem:[#allocation48_spill] sm:$0xff] }
 0x6aa   :  { %v5066_v53 = vpop.f32.mrf.mxu1  ;;  %5356 = vmatpush1.bf16.msra.mxu1 %v13408_v37  ;;  %8792 = vmatpush3.bf16.msra.mxu0 %v15934_v19  ;;  %v5025_v43 = vunpack.c.l.bf16 %v13910_v33  ;;  %v15960_v24 = vld [vmem:[#allocation40_spill] sm:$0xff]  ;;  %v15962_v38 = vld [vmem:[#allocation42_spill] sm:$0xff]  ;;  %v15963_v2 = vld [vmem:[#allocation43_spill] sm:$0xff] }
 0x6ab   :  { %v8746_v7 = vpop.f32.mrf.mxu0  ;;  %v5015_v56 = vadd.f32 %v5014_v42, %v4917_v28  ;;  %9676 = vpow2.f32 %v7748_v60  ;;  %5357 = vmatprep.subr.bf16.mxu1 %v15935_v51  ;;  %8793 = vmatprep.subr.bf16.mxu0 %v15596_v30  ;;  %v7749_v37 = vmul.f32 -1.442695, %v5115_v40  ;;  %v9675_v10 = vpop.eup %9674  ;;  %v15961_v60 = vld [vmem:[#allocation41_spill] sm:$0xff]  ;;  %v15964_v53 = vld [vmem:[#allocation44_spill] sm:$0xff]  ;;  %v15967_v19 = vld [vmem:[#allocation47_spill] sm:$0xff] }
 0x6ac   :  { %v5017_v18 = vsub.f32 1.0, %v9675_v10  ;;  %v5019_v4 = vmul.f32 %v9675_v10, %v15948_v59  ;;  %v15965_v33 = vld [vmem:[#allocation45_spill] sm:$0xff]  ;;  %v15966_v7 = vld [vmem:[#allocation46_spill] sm:$0xff]  ;;  %v15984_v59 = vld [vmem:[#allocation64_spill] sm:$0xff] }
 0x6ad   :  { %9678 = vtanh.f32 %v5015_v56  ;;  %v15969_v51 = vld [vmem:[#allocation49_spill] sm:$0xff]  ;;  %v15970_v40 = vld [vmem:[#allocation50_spill] sm:$0xff] }
 0x6ae   :  { %5358 = vmatpush1.bf16.msra.mxu1 %v15936_v62  ;;  %8794 = vmatpush3.bf16.msra.mxu0 %v15937_v50  ;;  %9680 = vpow2.f32 %v7749_v37  ;;  %v15972_v37 = vld [vmem:[#allocation52_spill] sm:$0xff] }
 0x6af   :  { %5359 = vmatprep.subr.bf16.mxu1 %v15938_v36  ;;  %8795 = vmatprep.subr.bf16.mxu0 %v15596_v30  ;;  %v15971_v36 = vld [vmem:[#allocation51_spill] sm:$0xff] }
 0x6b2   :  { %5360 = vmatpush1.bf16.msra.mxu1 %v15939_v57  ;;  %8796 = vmatpush3.bf16.msra.mxu0 %v15940_v48  ;;  %v15973_v57 = vld [vmem:[#allocation53_spill] sm:$0xff] }
 0x6b3   :  { %5361 = vmatprep.subr.bf16.mxu1 %v15941_v27  ;;  %8797 = vmatprep.subr.bf16.mxu0 %v15596_v30  ;;  %v15974_v27 = vld [vmem:[#allocation54_spill] sm:$0xff] }
 0x6b6   :  { %5362 = vmatpush1.bf16.msra.mxu1 %v15942_v54  ;;  %8798 = vmatpush3.bf16.msra.mxu0 %v15943_v39  ;;  %v15975_v39 = vld [vmem:[#allocation55_spill] sm:$0xff] }
 0x6b7   :  { %5363 = vmatprep.subr.bf16.mxu1 %v15944_v26  ;;  %8799 = vmatprep.subr.bf16.mxu0 %v15596_v30  ;;  %v15976_v26 = vld [vmem:[#allocation56_spill] sm:$0xff] }
 0x6b8   :  { %v9677_v46 = vpop.eup %9676 }
 0x6b9   :  { %v5112_v21 = vadd.f32 1.0, %v9677_v46 }
 0x6ba   :  { %v9679_v8 = vpop.eup %9678  ;;  %5364 = vmatpush1.bf16.msra.mxu1 %v15945_v25  ;;  %8800 = vmatpush3.bf16.msra.mxu0 %v15946_v22  ;;  %v15980_v25 = vld [vmem:[#allocation60_spill] sm:$0xff]  ;;  %v15981_v22 = vld [vmem:[#allocation61_spill] sm:$0xff] }
 0x6bb   :  { %9682 = vrcp.f32 %v5112_v21  ;;  %5365 = vmatprep.subr.bf16.mxu1 %v15947_v5  ;;  %8801 = vmatprep.subr.bf16.mxu0 %v15596_v30  ;;  %v5018_v29 = vmul.f32 %v9679_v8, %v5017_v18  ;;  %v9681_v0 = vpop.eup %9680  ;;  %v15977_v21 = vld [vmem:[#allocation57_spill] sm:$0xff]  ;;  %v15978_v18 = vld [vmem:[#allocation58_spill] sm:$0xff]  ;;  %v15979_v8 = vld [vmem:[#allocation59_spill] sm:$0xff] }
 0x6bc   :  { %v5119_v12 = vadd.f32 1.0, %v9681_v0  ;;  %v15982_v5 = vld [vmem:[#allocation62_spill] sm:$0xff] }
 0x6bd   :  { %v13942_v31 = vadd.f32 %v5019_v4, %v5018_v29  ;;  %v15983_v29 = vld [vmem:[#allocation63_spill] sm:$0xff]  ;;  %v15985_v4 = vld [vmem:[#allocation65_spill] sm:$0xff]  ;;  %v15990_v0 = vld [vmem:[#allocation70_spill] sm:$0xff] }
 0x6be   :  { %5366 = vmatpush1.bf16.msra.mxu1 %v15949_v55  ;;  %8802 = vmatpush3.bf16.msra.mxu0 %v15950_v58  ;;  %9684 = vrcp.f32 %v5119_v12  ;;  %v15986_v55 = vld [vmem:[#allocation66_spill] sm:$0xff]  ;;  %v15987_v58 = vld [vmem:[#allocation67_spill] sm:$0xff] }
 0x6bf   :  { %v5350_v52 = vpack.c.bf16 %v13942_v31, %v13942_v31  ;;  %5459 = vmatprep.subr.bf16.mxu1 %v15951_v44  ;;  %8807 = vmatprep.subr.bf16.mxu0 %v15596_v30  ;;  %v15989_v44 = vld [vmem:[#allocation69_spill] sm:$0xff]  ;;  %v15994_v12 = vld [vmem:[#allocation74_spill] sm:$0xff] }
 0x6c1   :  { %5384 = vmatmul.mubr.bf16.vlgmr.msra.gmra.mxu1 %v5350_v52  ;;  %8804 = vmatmul.mubr.bf16.vlgmr.msra.gmra.mxu0 %v5350_v52  ;;  %v15988_v52 = vld [vmem:[#allocation68_spill] sm:$0xff] }
 0x6c2   :  { %5460 = vmatpush1.bf16.msra.mxu1 %v15952_v11  ;;  %8808 = vmatpush3.bf16.msra.mxu0 %v15953_v16  ;;  %v15991_v11 = vld [vmem:[#allocation71_spill] sm:$0xff]  ;;  %v15992_v16 = vld [vmem:[#allocation72_spill] sm:$0xff] }
 0x6c3   :  { %5461 = vmatprep.subr.bf16.mxu1 %v15954_v20  ;;  %8809 = vmatprep.subr.bf16.mxu0 %v15596_v30  ;;  %v15993_v20 = vld [vmem:[#allocation73_spill] sm:$0xff] }
 0x6c4   :  { %5491 = vmatprep.mubr.bf16.mxu1 %v15601_v14  ;;  %8823 = vmatprep.mubr.msk.bf16.mxu0 %vm10282_vm0, %v15596_v30 }
 0x6c6   :  { %5462 = vmatpush1.bf16.msra.mxu1 %v15955_v47  ;;  %8810 = vmatpush3.bf16.msra.mxu0 %v15956_v1  ;;  %v15995_v47 = vld [vmem:[#allocation75_spill] sm:$0xff]  ;;  %v15996_v1 = vld [vmem:[#allocation76_spill] sm:$0xff] }
 0x6c7   :  { %5463 = vmatprep.subr.bf16.mxu1 %v15958_v35  ;;  %8811 = vmatprep.subr.bf16.mxu0 %v15596_v30  ;;  %v15998_v35 = vld [vmem:[#allocation78_spill] sm:$0xff] }
 0x6c8   :  { %v9683_v6 = vpop.eup %9682 }
 0x6c9   :  { %v5122_v28 = vmul.f32 %v9683_v6, %v5103_v61  ;;  %v15997_v61 = vld [vmem:[#allocation77_spill] sm:$0xff]  ;;  %v15999_v6 = vld [vmem:[#allocation79_spill] sm:$0xff] }
 0x6ca   :  { %5464 = vmatpush1.bf16.msra.mxu1 %v15959_v9  ;;  %8812 = vmatpush3.bf16.msra.mxu0 %v15960_v24  ;;  %v5129_v9 = vld [vmem:[#allocation2 + $0x90] sm:$0xff] }
 0x6cb   :  { %v5123_v42 = vadd.f32 %v5122_v28, %v5025_v43  ;;  %5465 = vmatprep.subr.bf16.mxu1 %v15961_v60  ;;  %8813 = vmatprep.subr.bf16.mxu0 %v15596_v30  ;;  %v9685_v56 = vpop.eup %9684  ;;  %v16000_v43 = vld [vmem:[#allocation80_spill] sm:$0xff]  ;;  %v16001_v28 = vld [vmem:[#allocation81_spill] sm:$0xff]  ;;  %v5131_v60 = vunpack.c.l.bf16 %v5129_v9 }
 0x6cc   :  { %v5125_v62 = vsub.f32 1.0, %v9685_v56  ;;  %v5127_v10 = vmul.f32 %v9685_v56, %v15974_v27 }
 0x6cd   :  { %9686 = vtanh.f32 %v5123_v42 }
 0x6ce   :  { %5466 = vmatpush1.bf16.msra.mxu1 %v15962_v38  ;;  %8814 = vmatpush3.bf16.msra.mxu0 %v15963_v2  ;;  %v16002_v38 = vld [vmem:[#allocation7_spill] sm:$0xff] }
 0x6cf   :  { %5467 = vmatprep.subr.bf16.mxu1 %v15964_v53  ;;  %8815 = vmatprep.subr.bf16.mxu0 %v15596_v30 }
 0x6d2   :  { %5468 = vmatpush1.bf16.msra.mxu1 %v15965_v33  ;;  %8816 = vmatpush3.bf16.msra.mxu0 %v15966_v7 }
 0x6d3   :  { %5469 = vmatprep.subr.bf16.mxu1 %v15967_v19  ;;  %8817 = vmatprep.subr.bf16.mxu0 %v15596_v30 }
 0x6d6   :  { %5470 = vmatpush1.bf16.msra.mxu1 %v15968_v32  ;;  %8818 = vmatpush3.bf16.msra.mxu0 %v15969_v51  ;;  %v16003_v51 = vld [vmem:[#allocation8_spill] sm:$0xff] }
 0x6d7   :  { %5471 = vmatprep.subr.bf16.mxu1 %v15970_v40  ;;  %8819 = vmatprep.subr.bf16.mxu0 %v15596_v30 }
 0x6da   :  { %v9687_v50 = vpop.eup %9686  ;;  %5472 = vmatpush1.bf16.msra.mxu1 %v15971_v36  ;;  %8820 = vmatpush3.bf16.msra.mxu0 %v15972_v37  ;;  %v5132_v36 = vunpack.c.h.bf16 %v5129_v9 }
 0x6db   :  { %5473 = vmatprep.subr.bf16.mxu1 %v15973_v57  ;;  %8821 = vmatprep.subr.bf16.mxu0 %v15596_v30  ;;  %v5126_v48 = vmul.f32 %v9687_v50, %v5125_v62 }
 0x6dd   :  { %v13985_v54 = vadd.f32 %v5127_v10, %v5126_v48 }
 0x6de   :  { %5474 = vmatpush1.bf16.msra.mxu1 %v15975_v39  ;;  %8822 = vmatpush3.bf16.msra.mxu0 %v15976_v26  ;;  %v5237_v39 = vld [vmem:[#allocation2 + $0x84] sm:$0xff] }
 0x6df   :  { %v5458_v46 = vpack.c.bf16 %v13985_v54, %v13985_v54  ;;  %5567 = vmatprep.subr.bf16.mxu1 %v15977_v21  ;;  %8827 = vmatprep.subr.bf16.mxu0 %v15596_v30  ;;  %v14030_v21 = vld [vmem:[#allocation2 + $0x8c] ss:$12 sps:$4 sm:$0xff]  }
 0x6e1   :  { %5492 = vmatmul.mubr.bf16.vlgmr.msra.gmra.mxu1 %v5458_v46  ;;  %8824 = vmatmul.mubr.bf16.vlgmr.msra.gmra.mxu0 %v5458_v46 }
 0x6e2   :  { %5568 = vmatpush1.bf16.msra.mxu1 %v15978_v18  ;;  %8828 = vmatpush3.bf16.msra.mxu0 %v15979_v8  ;;  %v5239_v8 = vunpack.c.l.bf16 %v5237_v39 }
 0x6e3   :  { %5569 = vmatprep.subr.bf16.mxu1 %v15980_v25  ;;  %8829 = vmatprep.subr.bf16.mxu0 %v15596_v30  ;;  %v16004_v25 = vld [vmem:[#allocation10_spill] sm:$0xff] }
 0x6e4   :  { %5599 = vmatprep.mubr.bf16.mxu1 %v15601_v14  ;;  %8843 = vmatprep.mubr.msk.bf16.mxu0 %vm10282_vm0, %v15596_v30 }
 0x6e6   :  { %5570 = vmatpush1.bf16.msra.mxu1 %v15981_v22  ;;  %8830 = vmatpush3.bf16.msra.mxu0 %v15982_v5 }
 0x6e7   :  { %5571 = vmatprep.subr.bf16.mxu1 %v15983_v29  ;;  %8831 = vmatprep.subr.bf16.mxu0 %v15596_v30 }
 0x6ea   :  { %5572 = vmatpush1.bf16.msra.mxu1 %v15984_v59  ;;  %8832 = vmatpush3.bf16.msra.mxu0 %v15985_v4  ;;  %v16005_v59 = vld [vmem:[#allocation9_spill] sm:$0xff] }
 0x6eb   :  { %5573 = vmatprep.subr.bf16.mxu1 %v15986_v55  ;;  %8833 = vmatprep.subr.bf16.mxu0 %v15596_v30 }
 0x6ee   :  { %5574 = vmatpush1.bf16.msra.mxu1 %v15987_v58  ;;  %8834 = vmatpush3.bf16.msra.mxu0 %v15988_v52  ;;  %v5133_v52 = vunpack.c.h.bf16 %v14030_v21 }
 0x6ef   :  { %5575 = vmatprep.subr.bf16.mxu1 %v15989_v44  ;;  %8835 = vmatprep.subr.bf16.mxu0 %v15596_v30 }
 0x6f2   :  { %5576 = vmatpush1.bf16.msra.mxu1 %v15990_v0  ;;  %8836 = vmatpush3.bf16.msra.mxu0 %v15991_v11 }
 0x6f3   :  { %5577 = vmatprep.subr.bf16.mxu1 %v15992_v16  ;;  %8837 = vmatprep.subr.bf16.mxu0 %v15596_v30 }
 0x6f6   :  { %5578 = vmatpush1.bf16.msra.mxu1 %v15993_v20  ;;  %8838 = vmatpush3.bf16.msra.mxu0 %v15994_v12 }
 0x6f7   :  { %5579 = vmatprep.subr.bf16.mxu1 %v15995_v47  ;;  %8839 = vmatprep.subr.bf16.mxu0 %v15596_v30 }
 0x6fa   :  { %5580 = vmatpush1.bf16.msra.mxu1 %v15996_v1  ;;  %8840 = vmatpush3.bf16.msra.mxu0 %v15997_v61  ;;  %v5240_v61 = vunpack.c.h.bf16 %v5237_v39 }
 0x6fb   :  { %5581 = vmatprep.subr.bf16.mxu1 %v15998_v35  ;;  %8841 = vmatprep.subr.bf16.mxu0 %v15596_v30 }
 0x6fe   :  { %5582 = vmatpush1.bf16.msra.mxu1 %v15999_v6  ;;  %8842 = vmatpush3.bf16.msra.mxu0 %v16000_v43 }
 0x6ff   :  { %5675 = vmatprep.subr.bf16.mxu1 %v16001_v28  ;;  %8847 = vmatprep.subr.bf16.mxu0 %v15596_v30 }
 0x741   :  { %v5169_v24 = vpop.f32.mrf.mxu1  ;;  %v5210_v42 = vpop.f32.mrf.mxu0 }
 0x742   :  { %v5170_v2 = vadd.f32 %v5169_v24, %v16002_v38  ;;  %v5211_v4 = vadd.f32 %v5210_v42, %v16005_v59 }
 0x743   :  { %v5171_v53 = vpop.f32.mrf.mxu1  ;;  %v8765_v33 = vpop.f32.mrf.mxu0 }
 0x744   :  { %v5216_v7 = vadd.f32 %v5170_v2, %v5131_v60  ;;  %v5172_v40 = vadd.f32 %v5171_v53, %v16003_v51 }
 0x745   :  { %v5173_v19 = vpop.f32.mrf.mxu1  ;;  %v5213_v56 = vpop.f32.mrf.mxu0 }
 0x746   :  { %v7750_v32 = vmul.f32 -1.442695, %v5216_v7  ;;  %v5223_v37 = vadd.f32 %v5172_v40, %v5132_v36  ;;  %v14044_v19 = vld [vmem:[%s15276_s3 + $0x168] ss:$12 sps:$4 sm:$0xff]   ;;  %v14050_v56 = vld [vmem:[%s15276_s3 + $0x170] ss:$12 sps:$4 sm:$0xff]  }
 0x747   :  { %v5174_v62 = vpop.f32.mrf.mxu1  ;;  %v8766_v50 = vpop.f32.mrf.mxu0 }
 0x748   :  { %9688 = vpow2.f32 %v7750_v32  ;;  %v7751_v57 = vmul.f32 -1.442695, %v5223_v37  ;;  %v14056_v32 = vld [vmem:[%s15276_s3 + $0x154] ss:$12 sps:$4 sm:$0xff]  }
 0x74a   :  { %9690 = vpow2.f32 %v7751_v57 }
 0x755   :  { %v9689_v48 = vpop.eup %9688 }
 0x756   :  { %v5220_v27 = vadd.f32 1.0, %v9689_v48 }
 0x757   :  { %v9691_v10 = vpop.eup %9690 }
 0x758   :  { %9692 = vrcp.f32 %v5220_v27  ;;  %v5227_v18 = vadd.f32 1.0, %v9691_v10  ;;  %v14069_v27 = vld [vmem:[%s15276_s3 + $0x150] ss:$12 sps:$4 sm:$0xff]   ;;  %v14075_v10 = vld [vmem:[%s15276_s3 + $0x158] ss:$12 sps:$4 sm:$0xff]  }
 0x75a   :  { %9694 = vrcp.f32 %v5227_v18  ;;  %v14082_v18 = vld [vmem:[%s15276_s3 + $0x13c] ss:$12 sps:$4 sm:$0xff]  }
 0x761   :  { %v5277_v26 = vpop.f32.mrf.mxu1  ;;  %v5318_v46 = vpop.f32.mrf.mxu0 }
 0x762   :  { %v5278_v22 = vadd.f32 %v5277_v26, %v16004_v25  ;;  %v5319_v39 = vadd.f32 %v5318_v46, %v11461_v41 }
 0x763   :  { %v5279_v5 = vpop.f32.mrf.mxu1  ;;  %v8785_v29 = vpop.f32.mrf.mxu0 }
 0x764   :  { %v5324_v55 = vadd.f32 %v5278_v22, %v5239_v8  ;;  %v5280_v20 = vadd.f32 %v5279_v5, %v11443_v13  ;;  %v5241_v22 = vunpack.c.l.bf16 %v14030_v21  ;;  %v14097_v21 = vld [vmem:[%s15276_s3 + $0x140] ss:$12 sps:$4 sm:$0xff]  }
 0x765   :  { %v9693_v58 = vpop.eup %9692  ;;  %v5281_v44 = vpop.f32.mrf.mxu1 }
 0x766   :  { %v5321_v0 = vpop.f32.mrf.mxu0  ;;  %v5230_v11 = vmul.f32 %v9693_v58, %v5211_v4  ;;  %v7752_v16 = vmul.f32 -1.442695, %v5324_v55  ;;  %v5331_v35 = vadd.f32 %v5280_v20, %v5240_v61  ;;  %v14091_v44 = vld [vmem:[%s15276_s3 + $0x138] ss:$12 sps:$4 sm:$0xff]  }
 0x767   :  { %v5282_v12 = vpop.f32.mrf.mxu1  ;;  %v9695_v43 = vpop.eup %9694 }
 0x768   :  { %v8786_v47 = vpop.f32.mrf.mxu0  ;;  %v5231_v1 = vadd.f32 %v5230_v11, %v5133_v52  ;;  %9696 = vpow2.f32 %v7752_v16  ;;  %v7753_v6 = vmul.f32 -1.442695, %v5331_v35  ;;  %v5233_v24 = vsub.f32 1.0, %v9695_v43  ;;  %v14103_v16 = vld [vmem:[%s15276_s3 + $0x124] ss:$12 sps:$4 sm:$0xff]  }
 0x769   :  { %v5235_v2 = vmul.f32 %v9695_v43, %v13851_v45  ;;  %v5345_v45 = vld [vmem:[#allocation3 + $0x90] sm:$0xff]  ;;  %v14110_v12 = vld [vmem:[%s15276_s3 + $0x120] ss:$12 sps:$4 sm:$0xff]  }
 0x76a   :  { %9698 = vtanh.f32 %v5231_v1  ;;  %v5347_v36 = vunpack.c.l.bf16 %v5345_v45  ;;  %v5348_v11 = vunpack.c.h.bf16 %v5345_v45  ;;  %v14116_v47 = vld [vmem:[%s15276_s3 + $0x128] ss:$12 sps:$4 sm:$0xff]   ;;  %v14122_v1 = vld [vmem:[%s15276_s3 + $0x10c] ss:$12 sps:$4 sm:$0xff]  }
 0x76b   :  { %9700 = vpow2.f32 %v7753_v6  ;;  %v14129_v35 = vld [vmem:[%s15276_s3 + $0x108] ss:$12 sps:$4 sm:$0xff]   ;;  %v14135_v6 = vld [vmem:[%s15276_s3 + $0x110] ss:$12 sps:$4 sm:$0xff]   ;;  %v14167_v45 = vld [vmem:[%s15276_s3 + $0xd8] ss:$12 sps:$4 sm:$0xff]  }
 0x76c   :  { %v14141_v43 = vld [vmem:[%s15276_s3 + $0xf4] ss:$12 sps:$4 sm:$0xff]  }
 0x775   :  { %v9697_v28 = vpop.eup %9696 }
 0x776   :  { %v5328_v9 = vadd.f32 1.0, %v9697_v28 }
 0x777   :  { %v9699_v42 = vpop.eup %9698 }
 0x778   :  { %9702 = vrcp.f32 %v5328_v9  ;;  %v5234_v60 = vmul.f32 %v9699_v42, %v5233_v24  ;;  %v9701_v7 = vpop.eup %9700  ;;  %v14148_v9 = vld [vmem:[%s15276_s3 + $0xf0] ss:$12 sps:$4 sm:$0xff]   ;;  %v14154_v24 = vld [vmem:[%s15276_s3 + $0xf8] ss:$12 sps:$4 sm:$0xff]  }
 0x779   :  { %v5335_v50 = vadd.f32 1.0, %v9701_v7  ;;  %v14160_v42 = vld [vmem:[%s15276_s3 + $0xdc] ss:$12 sps:$4 sm:$0xff]  }
 0x77a   :  { %v14037_v53 = vadd.f32 %v5235_v2, %v5234_v60 }
 0x77b   :  { %9704 = vrcp.f32 %v5335_v50  ;;  %v14179_v50 = vld [vmem:[%s15276_s3 + $0xc4] ss:$12 sps:$4 sm:$0xff]  }
 0x77c   :  { %v5566_v33 = vpack.c.bf16 %v14037_v53, %v14037_v53 }
 0x77e   :  { %5600 = vmatmul.mubr.bf16.vlgmr.msra.gmra.mxu1 %v5566_v33  ;;  %8844 = vmatmul.mubr.bf16.vlgmr.msra.gmra.mxu0 %v5566_v33 }
 0x77f   :  { %5676 = vmatpush1.bf16.msra.mxu1 %v14044_v19  ;;  %8848 = vmatpush3.bf16.msra.mxu0 %v14050_v56 }
 0x780   :  { %5677 = vmatprep.subr.bf16.mxu1 %v14056_v32  ;;  %8849 = vmatprep.subr.bf16.mxu0 %v15596_v30 }
 0x781   :  { %v5385_v40 = vpop.f32.mrf.mxu1  ;;  %v14060_v62 = vpop.f32.mrf.mxu0  ;;  %5707 = vmatprep.mubr.bf16.mxu1 %v15601_v14  ;;  %8863 = vmatprep.mubr.msk.bf16.mxu0 %vm10282_vm0, %v15596_v30 }
 0x782   :  { %v5386_v37 = vadd.f32 %v5385_v40, %v11465_v49  ;;  %v14173_v40 = vld [vmem:[%s15276_s3 + $0xe0] ss:$12 sps:$4 sm:$0xff]  }
 0x783   :  { %v5387_v57 = vpop.f32.mrf.mxu1  ;;  %v8805_v48 = vpop.f32.mrf.mxu0  ;;  %5678 = vmatpush1.bf16.msra.mxu1 %v14069_v27  ;;  %8850 = vmatpush3.bf16.msra.mxu0 %v14075_v10 }
 0x784   :  { %v5432_v26 = vadd.f32 %v5386_v37, %v5347_v36  ;;  %5679 = vmatprep.subr.bf16.mxu1 %v14082_v18  ;;  %8851 = vmatprep.subr.bf16.mxu0 %v15596_v30  ;;  %v5388_v46 = vadd.f32 %v5387_v57, %v11488_v34  ;;  %v14189_v48 = vld [vmem:[%s15276_s3 + $0xc0] ss:$12 sps:$4 sm:$0xff]  }
 0x785   :  { %v9703_v8 = vpop.eup %9702  ;;  %v5389_v5 = vpop.f32.mrf.mxu1 }
 0x786   :  { %v5429_v29 = vpop.f32.mrf.mxu0  ;;  %v5338_v4 = vmul.f32 %v9703_v8, %v5319_v39  ;;  %v7754_v55 = vmul.f32 -1.442695, %v5432_v26  ;;  %v5439_v20 = vadd.f32 %v5388_v46, %v5348_v11  ;;  %v14195_v39 = vld [vmem:[%s15276_s3 + $0xc8] ss:$12 sps:$4 sm:$0xff]   ;;  %v10161_v5 = vld [vmem:[%s15277_s7 + $0xb0] ss:$12 sps:$4 sm:$0xff]  }
 0x787   :  { %v5390_v58 = vpop.f32.mrf.mxu1  ;;  %5680 = vmatpush1.bf16.msra.mxu1 %v14091_v44  ;;  %8852 = vmatpush3.bf16.msra.mxu0 %v14097_v21  ;;  %v5453_v29 = vld [vmem:[#allocation3 + $0x24] sm:$0xff] }
 0x788   :  { %v8806_v52 = vpop.f32.mrf.mxu0  ;;  %v5339_v0 = vadd.f32 %v5338_v4, %v5241_v22  ;;  %9706 = vpow2.f32 %v7754_v55  ;;  %5681 = vmatprep.subr.bf16.mxu1 %v14103_v16  ;;  %8853 = vmatprep.subr.bf16.mxu0 %v15596_v30  ;;  %v7755_v61 = vmul.f32 -1.442695, %v5439_v20  ;;  %v9705_v28 = vpop.eup %9704  ;;  %v10160_v22 = vld [vmem:[%s15277_s7 + $0xa8] ss:$12 sps:$4 sm:$0xff]   ;;  %v14219_v58 = vld [vmem:[#allocation3 + $0x2c] ss:$108 sps:$4 sm:$0xff]  }
 0x789   :  { %v5341_v33 = vsub.f32 1.0, %v9705_v28  ;;  %v5343_v37 = vmul.f32 %v9705_v28, %v13893_v15  ;;  %v10159_v15 = vld [vmem:[%s15277_s7 + $0xac] ss:$12 sps:$4 sm:$0xff]   ;;  %v10162_v4 = vld [vmem:[%s15277_s7 + $0x94] ss:$12 sps:$4 sm:$0xff]  }
 0x78a   :  { %9708 = vtanh.f32 %v5339_v0  ;;  %v5455_v0 = vunpack.c.l.bf16 %v5453_v29  ;;  %v10163_v28 = vld [vmem:[%s15277_s7 + $0x90] ss:$12 sps:$4 sm:$0xff]  }
 0x78b   :  { %5682 = vmatpush1.bf16.msra.mxu1 %v14110_v12  ;;  %8854 = vmatpush3.bf16.msra.mxu0 %v14116_v47  ;;  %9710 = vpow2.f32 %v7755_v61 }
 0x78c   :  { %5683 = vmatprep.subr.bf16.mxu1 %v14122_v1  ;;  %8855 = vmatprep.subr.bf16.mxu0 %v15596_v30 }
 0x78f   :  { %5684 = vmatpush1.bf16.msra.mxu1 %v14129_v35  ;;  %8856 = vmatpush3.bf16.msra.mxu0 %v14135_v6 }
 0x790   :  { %5685 = vmatprep.subr.bf16.mxu1 %v14141_v43  ;;  %8857 = vmatprep.subr.bf16.mxu0 %v15596_v30 }
 0x793   :  { %5686 = vmatpush1.bf16.msra.mxu1 %v14148_v9  ;;  %8858 = vmatpush3.bf16.msra.mxu0 %v14154_v24 }
 0x794   :  { %5687 = vmatprep.subr.bf16.mxu1 %v14160_v42  ;;  %8859 = vmatprep.subr.bf16.mxu0 %v15596_v30 }
 0x795   :  { %v9707_v60 = vpop.eup %9706 }
 0x796   :  { %v5436_v2 = vadd.f32 1.0, %v9707_v60  ;;  %v10164_v60 = vld [vmem:[%s15277_s7 + $0x98] ss:$12 sps:$4 sm:$0xff]  }
 0x797   :  { %v9709_v7 = vpop.eup %9708  ;;  %5688 = vmatpush1.bf16.msra.mxu1 %v14167_v45  ;;  %8860 = vmatpush3.bf16.msra.mxu0 %v14173_v40 }
 0x798   :  { %9712 = vrcp.f32 %v5436_v2  ;;  %5689 = vmatprep.subr.bf16.mxu1 %v14179_v50  ;;  %8861 = vmatprep.subr.bf16.mxu0 %v15596_v30  ;;  %v5342_v36 = vmul.f32 %v9709_v7, %v5341_v33  ;;  %v9711_v8 = vpop.eup %9710  ;;  %v5427_v2 = vadd.f32 %v14060_v62, %v15932_v17  ;;  %v10165_v7 = vld [vmem:[%s15277_s7 + $0x7c] ss:$12 sps:$4 sm:$0xff]  }
 0x799   :  { %v5443_v52 = vadd.f32 1.0, %v9711_v8 }
 0x79a   :  { %v14184_v57 = vadd.f32 %v5343_v37, %v5342_v36  ;;  %v5349_v37 = vunpack.c.h.bf16 %v14219_v58 }
 0x79b   :  { %5690 = vmatpush1.bf16.msra.mxu1 %v14189_v48  ;;  %8862 = vmatpush3.bf16.msra.mxu0 %v14195_v39  ;;  %9714 = vrcp.f32 %v5443_v52  ;;  %v10168_v52 = vld [vmem:[%s15277_s7 + $0x64] ss:$12 sps:$4 sm:$0xff]  }
 0x79c   :  { %v5674_v26 = vpack.c.bf16 %v14184_v57, %v14184_v57  ;;  %5783 = vmatprep.subr.bf16.mxu1 %v10159_v15  ;;  %8867 = vmatprep.subr.bf16.mxu0 %v15596_v30 }
 0x79e   :  { %5708 = vmatmul.mubr.bf16.vlgmr.msra.gmra.mxu1 %v5674_v26  ;;  %8864 = vmatmul.mubr.bf16.vlgmr.msra.gmra.mxu0 %v5674_v26 }
 0x79f   :  { %5784 = vmatpush1.bf16.msra.mxu1 %v10160_v22  ;;  %8868 = vmatpush3.bf16.msra.mxu0 %v10161_v5 }
 0x7a0   :  { %5785 = vmatprep.subr.bf16.mxu1 %v10162_v4  ;;  %8869 = vmatprep.subr.bf16.mxu0 %v15596_v30 }
 0x7a1   :  { %v5493_v55 = vpop.f32.mrf.mxu1  ;;  %v14214_v46 = vpop.f32.mrf.mxu0  ;;  %5815 = vmatprep.mubr.bf16.mxu1 %v15601_v14  ;;  %8883 = vmatprep.mubr.msk.bf16.mxu0 %vm10282_vm0, %v15596_v30 }
 0x7a2   :  { %v5494_v11 = vadd.f32 %v5493_v55, %v11643_v63  ;;  %v10166_v55 = vld [vmem:[%s15277_s7 + $0x78] ss:$12 sps:$4 sm:$0xff]  }
 0x7a3   :  { %v5495_v20 = vpop.f32.mrf.mxu1  ;;  %v8825_v61 = vpop.f32.mrf.mxu0  ;;  %5786 = vmatpush1.bf16.msra.mxu1 %v10163_v28  ;;  %8870 = vmatpush3.bf16.msra.mxu0 %v10164_v60  ;;  %v10169_v28 = vld [vmem:[%s15277_s7 + $0x60] ss:$12 sps:$4 sm:$0xff]   ;;  %v10170_v60 = vld [vmem:[%s15277_s7 + $0x68] ss:$12 sps:$4 sm:$0xff]  }
 0x7a4   :  { %v5540_v33 = vadd.f32 %v5494_v11, %v5455_v0  ;;  %5787 = vmatprep.subr.bf16.mxu1 %v10165_v7  ;;  %8871 = vmatprep.subr.bf16.mxu0 %v15596_v30  ;;  %v5496_v5 = vadd.f32 %v5495_v20, %v15648_v23  ;;  %v10167_v0 = vld [vmem:[%s15277_s7 + $0x80] ss:$12 sps:$4 sm:$0xff]   ;;  %v5456_v61 = vunpack.c.h.bf16 %v5453_v29  ;;  %v10173_v7 = vld [vmem:[%s15277_s7 + $0x50] ss:$12 sps:$4 sm:$0xff]  }
 0x7a5   :  { %v9713_v36 = vpop.eup %9712  ;;  %v5497_v26 = vpop.f32.mrf.mxu1  ;;  %v10171_v29 = vld [vmem:[%s15277_s7 + $0x4c] ss:$12 sps:$4 sm:$0xff]  }
 0x7a6   :  { %v5537_v15 = vpop.f32.mrf.mxu0  ;;  %v5446_v8 = vmul.f32 %v9713_v36, %v5427_v2  ;;  %v7756_v22 = vmul.f32 -1.442695, %v5540_v33  ;;  %v5547_v20 = vadd.f32 %v5496_v5, %v5456_v61  ;;  %v10172_v33 = vld [vmem:[%s15277_s7 + $0x48] ss:$12 sps:$4 sm:$0xff]   ;;  %v10175_v26 = vld [vmem:[%s15277_s7 + $0x30] ss:$12 sps:$4 sm:$0xff]  }
 0x7a7   :  { %v5498_v4 = vpop.f32.mrf.mxu1  ;;  %5788 = vmatpush1.bf16.msra.mxu1 %v10166_v55  ;;  %8872 = vmatpush3.bf16.msra.mxu0 %v10167_v0  ;;  %v10174_v36 = vld [vmem:[%s15277_s7 + $0x34] ss:$12 sps:$4 sm:$0xff]   ;;  %v10176_v15 = vld [vmem:[%s15277_s7 + $0x38] ss:$12 sps:$4 sm:$0xff]  }
 0x7a8   :  { %v8826_v62 = vpop.f32.mrf.mxu0  ;;  %v5447_v11 = vadd.f32 %v5446_v8, %v5349_v37  ;;  %9716 = vpow2.f32 %v7756_v22  ;;  %5789 = vmatprep.subr.bf16.mxu1 %v10168_v52  ;;  %8873 = vmatprep.subr.bf16.mxu0 %v15596_v30  ;;  %v7757_v2 = vmul.f32 -1.442695, %v5547_v20  ;;  %v9715_v37 = vpop.eup %9714  ;;  %v10177_v8 = vld [vmem:[%s15277_s7 + $0x1c] ss:$12 sps:$4 sm:$0xff]   ;;  %v10178_v55 = vld [vmem:[%s15277_s7 + $0x18] ss:$12 sps:$4 sm:$0xff]  }
 0x7a9   :  { %v5449_v4 = vsub.f32 1.0, %v9715_v37  ;;  %v10179_v0 = vld [vmem:[%s15277_s7 + $0x20] ss:$12 sps:$4 sm:$0xff]   ;;  %v5451_v52 = vmul.f32 %v9715_v37, %v13942_v31 }
 0x7aa   :  { %9718 = vtanh.f32 %v5447_v11  ;;  %v10180_v11 = vld [vmem:[%s15277_s7 + $0x4] ss:$12 sps:$4 sm:$0xff]  }
 0x7ab   :  { %5790 = vmatpush1.bf16.msra.mxu1 %v10169_v28  ;;  %8874 = vmatpush3.bf16.msra.mxu0 %v10170_v60  ;;  %9720 = vpow2.f32 %v7757_v2  ;;  %v10181_v28 = vld [vmem:[%s15277_s7] ss:$12 sps:$4 sm:$0xff]   ;;  %v10182_v60 = vld [vmem:[%s15277_s7 + $0x8] ss:$12 sps:$4 sm:$0xff]  }
 0x7ac   :  { %5791 = vmatprep.subr.bf16.mxu1 %v10171_v29  ;;  %8875 = vmatprep.subr.bf16.mxu0 %v15596_v30  ;;  %v10183_v2 = vld [vmem:[%s15277_s7 + $0x16c] ss:$12 sps:$4 sm:$0xff]  }
 0x7af   :  { %5792 = vmatpush1.bf16.msra.mxu1 %v10172_v33  ;;  %8876 = vmatpush3.bf16.msra.mxu0 %v10173_v7  ;;  %v10184_v33 = vld [vmem:[%s15277_s7 + $0x168] ss:$12 sps:$4 sm:$0xff]   ;;  %v10185_v7 = vld [vmem:[%s15277_s7 + $0x170] ss:$12 sps:$4 sm:$0xff]  }
 0x7b0   :  { %5793 = vmatprep.subr.bf16.mxu1 %v10174_v36  ;;  %8877 = vmatprep.subr.bf16.mxu0 %v15596_v30  ;;  %v10186_v36 = vld [vmem:[%s15277_s7 + $0x154] ss:$12 sps:$4 sm:$0xff]  }
 0x7b3   :  { %5794 = vmatpush1.bf16.msra.mxu1 %v10175_v26  ;;  %8878 = vmatpush3.bf16.msra.mxu0 %v10176_v15  ;;  %v10187_v26 = vld [vmem:[%s15277_s7 + $0x150] ss:$12 sps:$4 sm:$0xff]   ;;  %v10188_v15 = vld [vmem:[%s15277_s7 + $0x158] ss:$12 sps:$4 sm:$0xff]  }
 0x7b4   :  { %5795 = vmatprep.subr.bf16.mxu1 %v10177_v8  ;;  %8879 = vmatprep.subr.bf16.mxu0 %v15596_v30  ;;  %v5535_v8 = vadd.f32 %v14214_v46, %v15957_v3  ;;  %v10191_v46 = vld [vmem:[%s15277_s7 + $0x140] ss:$12 sps:$4 sm:$0xff]  }
 0x7b5   :  { %v9717_v22 = vpop.eup %9716  ;;  %v14546_v3 = vld [vmem:[%s15276_s3 + $0x16c] ss:$12 sps:$4 sm:$0xff]  }
 0x7b6   :  { %v5544_v5 = vadd.f32 1.0, %v9717_v22  ;;  %v10189_v22 = vld [vmem:[%s15277_s7 + $0x13c] ss:$12 sps:$4 sm:$0xff]   ;;  %16025 = vst [vmem:[#allocation31_spill] sm:$0xff] %v14546_v3 }
 0x7b7   :  { %v9719_v62 = vpop.eup %9718  ;;  %5796 = vmatpush1.bf16.msra.mxu1 %v10178_v55  ;;  %8880 = vmatpush3.bf16.msra.mxu0 %v10179_v0  ;;  %v10190_v55 = vld [vmem:[%s15277_s7 + $0x138] ss:$12 sps:$4 sm:$0xff]  }
 0x7b8   :  { %9722 = vrcp.f32 %v5544_v5  ;;  %5797 = vmatprep.subr.bf16.mxu1 %v10180_v11  ;;  %8881 = vmatprep.subr.bf16.mxu0 %v15596_v30  ;;  %v5450_v61 = vmul.f32 %v9719_v62, %v5449_v4  ;;  %v9721_v31 = vpop.eup %9720  ;;  %v5457_v4 = vunpack.c.l.bf16 %v14219_v58  ;;  %v10192_v11 = vld [vmem:[%s15277_s7 + $0x124] ss:$12 sps:$4 sm:$0xff]   ;;  %v10193_v58 = vld [vmem:[%s15277_s7 + $0x120] ss:$12 sps:$4 sm:$0xff]  }
 0x7b9   :  { %v5551_v37 = vadd.f32 1.0, %v9721_v31  ;;  %v10199_v31 = vld [vmem:[%s15277_s7 + $0xf0] ss:$12 sps:$4 sm:$0xff]  }
 0x7ba   :  { %v14287_v20 = vadd.f32 %v5451_v52, %v5450_v61  ;;  %v10194_v61 = vld [vmem:[%s15277_s7 + $0x128] ss:$12 sps:$4 sm:$0xff]   ;;  %v10195_v52 = vld [vmem:[%s15277_s7 + $0x10c] ss:$12 sps:$4 sm:$0xff]  }
 0x7bb   :  { %5798 = vmatpush1.bf16.msra.mxu1 %v10181_v28  ;;  %8882 = vmatpush3.bf16.msra.mxu0 %v10182_v60  ;;  %9724 = vrcp.f32 %v5551_v37  ;;  %v10196_v28 = vld [vmem:[%s15277_s7 + $0x108] ss:$12 sps:$4 sm:$0xff]   ;;  %v10197_v60 = vld [vmem:[%s15277_s7 + $0x110] ss:$12 sps:$4 sm:$0xff]  }
 0x7bc   :  { %16006 = vst [vmem:[#allocation11_spill] sm:$0xff] %v14287_v20  ;;  %v5782_v29 = vpack.c.bf16 %v14287_v20, %v14287_v20  ;;  %5891 = vmatprep.subr.bf16.mxu1 %v10183_v2  ;;  %8887 = vmatprep.subr.bf16.mxu0 %v15596_v30  ;;  %v5561_v20 = vld [vmem:[#allocation2 + $0xa8] sm:$0xff] }
 0x7be   :  { %5816 = vmatmul.mubr.bf16.vlgmr.msra.gmra.mxu1 %v5782_v29  ;;  %8884 = vmatmul.mubr.bf16.vlgmr.msra.gmra.mxu0 %v5782_v29  ;;  %v10198_v29 = vld [vmem:[%s15277_s7 + $0xf4] ss:$12 sps:$4 sm:$0xff]  }
 0x7bf   :  { %5892 = vmatpush1.bf16.msra.mxu1 %v10184_v33  ;;  %8888 = vmatpush3.bf16.msra.mxu0 %v10185_v7  ;;  %v10200_v33 = vld [vmem:[%s15277_s7 + $0xf8] ss:$12 sps:$4 sm:$0xff]   ;;  %v10201_v7 = vld [vmem:[%s15277_s7 + $0xdc] ss:$12 sps:$4 sm:$0xff]  }
 0x7c0   :  { %5893 = vmatprep.subr.bf16.mxu1 %v10186_v36  ;;  %8889 = vmatprep.subr.bf16.mxu0 %v15596_v30 }
 0x7c1   :  { %5923 = vmatprep.mubr.bf16.mxu1 %v15601_v14  ;;  %8903 = vmatprep.mubr.msk.bf16.mxu0 %vm10282_vm0, %v15596_v30 }
 0x7c3   :  { %5894 = vmatpush1.bf16.msra.mxu1 %v10187_v26  ;;  %8890 = vmatpush3.bf16.msra.mxu0 %v10188_v15  ;;  %v10202_v26 = vld [vmem:[%s15277_s7 + $0xd8] ss:$12 sps:$4 sm:$0xff]   ;;  %v10203_v15 = vld [vmem:[%s15277_s7 + $0xe0] ss:$12 sps:$4 sm:$0xff]  }
 0x7c4   :  { %5895 = vmatprep.subr.bf16.mxu1 %v10189_v22  ;;  %8891 = vmatprep.subr.bf16.mxu0 %v15596_v30 }
 0x7c5   :  { %v9723_v5 = vpop.eup %9722 }
 0x7c6   :  { %v5554_v62 = vmul.f32 %v9723_v5, %v5535_v8  ;;  %v10204_v8 = vld [vmem:[%s15277_s7 + $0xc4] ss:$12 sps:$4 sm:$0xff]  }
 0x7c7   :  { %5896 = vmatpush1.bf16.msra.mxu1 %v10190_v55  ;;  %8892 = vmatpush3.bf16.msra.mxu0 %v10191_v46  ;;  %v10206_v55 = vld [vmem:[%s15277_s7 + $0xc8] ss:$12 sps:$4 sm:$0xff]  }
 0x7c8   :  { %v5555_v0 = vadd.f32 %v5554_v62, %v5457_v4  ;;  %5897 = vmatprep.subr.bf16.mxu1 %v10192_v11  ;;  %8893 = vmatprep.subr.bf16.mxu0 %v15596_v30  ;;  %v9725_v2 = vpop.eup %9724  ;;  %v10205_v62 = vld [vmem:[%s15277_s7 + $0xc0] ss:$12 sps:$4 sm:$0xff]   ;;  %v14404_v11 = vld [vmem:[%s15276_s3 + $0xb0] ss:$12 sps:$4 sm:$0xff]  }
 0x7c9   :  { %v5557_v36 = vsub.f32 1.0, %v9725_v2  ;;  %v5559_v5 = vmul.f32 %v9725_v2, %v13985_v54  ;;  %v14398_v54 = vld [vmem:[%s15276_s3 + $0xa8] ss:$12 sps:$4 sm:$0xff]   ;;  %v14451_v2 = vld [vmem:[%s15276_s3 + $0x64] ss:$12 sps:$4 sm:$0xff]  }
 0x7ca   :  { %9726 = vtanh.f32 %v5555_v0  ;;  %v14391_v0 = vld [vmem:[%s15276_s3 + $0xac] ss:$12 sps:$4 sm:$0xff]   ;;  %16010 = vst [vmem:[#allocation16_spill] sm:$0xff] %v14451_v2 }
 0x7cb   :  { %5898 = vmatpush1.bf16.msra.mxu1 %v10193_v58  ;;  %8894 = vmatpush3.bf16.msra.mxu0 %v10194_v61  ;;  %v14410_v58 = vld [vmem:[%s15276_s3 + $0x94] ss:$12 sps:$4 sm:$0xff]   ;;  %v14420_v61 = vld [vmem:[%s15276_s3 + $0x90] ss:$12 sps:$4 sm:$0xff]  }
 0x7cc   :  { %5899 = vmatprep.subr.bf16.mxu1 %v10195_v52  ;;  %8895 = vmatprep.subr.bf16.mxu0 %v15596_v30  ;;  %v14426_v52 = vld [vmem:[%s15276_s3 + $0x98] ss:$12 sps:$4 sm:$0xff]  }
 0x7cf   :  { %5900 = vmatpush1.bf16.msra.mxu1 %v10196_v28  ;;  %8896 = vmatpush3.bf16.msra.mxu0 %v10197_v60  ;;  %v14432_v28 = vld [vmem:[%s15276_s3 + $0x7c] ss:$12 sps:$4 sm:$0xff]   ;;  %v14439_v60 = vld [vmem:[%s15276_s3 + $0x78] ss:$12 sps:$4 sm:$0xff]  }
 0x7d0   :  { %5901 = vmatprep.subr.bf16.mxu1 %v10198_v29  ;;  %8897 = vmatprep.subr.bf16.mxu0 %v15596_v30  ;;  %16008 = vst [vmem:[#allocation14_spill] sm:$0xff] %v14439_v60  ;;  %v14445_v29 = vld [vmem:[%s15276_s3 + $0x80] ss:$12 sps:$4 sm:$0xff]  }
 0x7d1   :  { %16009 = vst [vmem:[#allocation15_spill] sm:$0xff] %v14445_v29 }
 0x7d3   :  { %5902 = vmatpush1.bf16.msra.mxu1 %v10199_v31  ;;  %8898 = vmatpush3.bf16.msra.mxu0 %v10200_v33  ;;  %v14458_v31 = vld [vmem:[%s15276_s3 + $0x60] ss:$12 sps:$4 sm:$0xff]   ;;  %v14464_v33 = vld [vmem:[%s15276_s3 + $0x68] ss:$12 sps:$4 sm:$0xff]  }
 0x7d4   :  { %5903 = vmatprep.subr.bf16.mxu1 %v10201_v7  ;;  %8899 = vmatprep.subr.bf16.mxu0 %v15596_v30  ;;  %16011 = vst [vmem:[#allocation17_spill] sm:$0xff] %v14458_v31  ;;  %16012 = vst [vmem:[#allocation18_spill] sm:$0xff] %v14464_v33  ;;  %v14470_v7 = vld [vmem:[%s15276_s3 + $0x4c] ss:$12 sps:$4 sm:$0xff]  }
 0x7d5   :  { %16013 = vst [vmem:[#allocation19_spill] sm:$0xff] %v14470_v7 }
 0x7d7   :  { %v9727_v37 = vpop.eup %9726  ;;  %5904 = vmatpush1.bf16.msra.mxu1 %v10202_v26  ;;  %8900 = vmatpush3.bf16.msra.mxu0 %v10203_v15  ;;  %v14489_v26 = vld [vmem:[%s15276_s3 + $0x34] ss:$12 sps:$4 sm:$0xff]   ;;  %v14496_v15 = vld [vmem:[%s15276_s3 + $0x30] ss:$12 sps:$4 sm:$0xff]  }
 0x7d8   :  { %5905 = vmatprep.subr.bf16.mxu1 %v10204_v8  ;;  %8901 = vmatprep.subr.bf16.mxu0 %v15596_v30  ;;  %v5558_v22 = vmul.f32 %v9727_v37, %v5557_v36  ;;  %v14477_v36 = vld [vmem:[%s15276_s3 + $0x48] ss:$12 sps:$4 sm:$0xff]   ;;  %v14483_v37 = vld [vmem:[%s15276_s3 + $0x50] ss:$12 sps:$4 sm:$0xff]   ;;  %16016 = vst [vmem:[#allocation22_spill] sm:$0xff] %v14489_v26  ;;  %16017 = vst [vmem:[#allocation23_spill] sm:$0xff] %v14496_v15 }
 0x7d9   :  { %16014 = vst [vmem:[#allocation20_spill] sm:$0xff] %v14477_v36  ;;  %16015 = vst [vmem:[#allocation21_spill] sm:$0xff] %v14483_v37  ;;  %v14502_v8 = vld [vmem:[%s15276_s3 + $0x38] ss:$12 sps:$4 sm:$0xff]  }
 0x7da   :  { %v14378_v4 = vadd.f32 %v5559_v5, %v5558_v22  ;;  %16018 = vst [vmem:[#allocation24_spill] sm:$0xff] %v14502_v8  ;;  %v14508_v22 = vld [vmem:[%s15276_s3 + $0x1c] ss:$12 sps:$4 sm:$0xff]   ;;  %v14515_v5 = vld [vmem:[%s15276_s3 + $0x18] ss:$12 sps:$4 sm:$0xff]  }
 0x7db   :  { %5906 = vmatpush1.bf16.msra.mxu1 %v10205_v62  ;;  %8902 = vmatpush3.bf16.msra.mxu0 %v10206_v55  ;;  %16019 = vst [vmem:[#allocation25_spill] sm:$0xff] %v14508_v22  ;;  %16020 = vst [vmem:[#allocation26_spill] sm:$0xff] %v14515_v5  ;;  %v14521_v62 = vld [vmem:[%s15276_s3 + $0x20] ss:$12 sps:$4 sm:$0xff]   ;;  %v14527_v55 = vld [vmem:[%s15276_s3 + $0x4] ss:$12 sps:$4 sm:$0xff]  }
 0x7dc   :  { %16007 = vst [vmem:[#allocation13_spill] sm:$0xff] %v14378_v4  ;;  %v5890_v46 = vpack.c.bf16 %v14378_v4, %v14378_v4  ;;  %5999 = vmatprep.subr.bf16.mxu1 %v14391_v0  ;;  %8907 = vmatprep.subr.bf16.mxu0 %v15596_v30  ;;  %16021 = vst [vmem:[#allocation27_spill] sm:$0xff] %v14521_v62  ;;  %v14540_v4 = vld [vmem:[%s15276_s3 + $0x8] ss:$12 sps:$4 sm:$0xff]  }
 0x7dd   :  { %16022 = vst [vmem:[#allocation28_spill] sm:$0xff] %v14527_v55  ;;  %16024 = vst [vmem:[#allocation30_spill] sm:$0xff] %v14540_v4 }
 0x7de   :  { %5924 = vmatmul.mubr.bf16.vlgmr.msra.gmra.mxu1 %v5890_v46  ;;  %8904 = vmatmul.mubr.bf16.vlgmr.msra.gmra.mxu0 %v5890_v46  ;;  %v14534_v46 = vld [vmem:[%s15276_s3] ss:$12 sps:$4 sm:$0xff]  }
 0x7df   :  { %6000 = vmatpush1.bf16.msra.mxu1 %v14398_v54  ;;  %8908 = vmatpush3.bf16.msra.mxu0 %v14404_v11  ;;  %16023 = vst [vmem:[#allocation29_spill] sm:$0xff] %v14534_v46 }
 0x7e0   :  { %6001 = vmatprep.subr.bf16.mxu1 %v14410_v58  ;;  %8909 = vmatprep.subr.bf16.mxu0 %v15596_v30 }
 0x7e1   :  { %6031 = vmatprep.mubr.bf16.mxu1 %v15601_v14  ;;  %8923 = vmatprep.mubr.msk.bf16.mxu0 %vm10282_vm0, %v15596_v30 }
 0x7e3   :  { %6002 = vmatpush1.bf16.msra.mxu1 %v14420_v61  ;;  %8910 = vmatpush3.bf16.msra.mxu0 %v14426_v52 }
 0x7e4   :  { %6003 = vmatprep.subr.bf16.mxu1 %v14432_v28  ;;  %8911 = vmatprep.subr.bf16.mxu0 %v15596_v30 }
 0x7e7   :  { %6004 = vmatpush1.bf16.msra.mxu1 %v14439_v60  ;;  %8912 = vmatpush3.bf16.msra.mxu0 %v14445_v29 }
 0x7e8   :  { %6005 = vmatprep.subr.bf16.mxu1 %v14451_v2  ;;  %8913 = vmatprep.subr.bf16.mxu0 %v15596_v30 }
 0x7eb   :  { %6006 = vmatpush1.bf16.msra.mxu1 %v14458_v31  ;;  %8914 = vmatpush3.bf16.msra.mxu0 %v14464_v33 }
 0x7ec   :  { %6007 = vmatprep.subr.bf16.mxu1 %v14470_v7  ;;  %8915 = vmatprep.subr.bf16.mxu0 %v15596_v30 }
 0x7ef   :  { %6008 = vmatpush1.bf16.msra.mxu1 %v14477_v36  ;;  %8916 = vmatpush3.bf16.msra.mxu0 %v14483_v37 }
 0x7f0   :  { %6009 = vmatprep.subr.bf16.mxu1 %v14489_v26  ;;  %8917 = vmatprep.subr.bf16.mxu0 %v15596_v30 }
 0x7f3   :  { %6010 = vmatpush1.bf16.msra.mxu1 %v14496_v15  ;;  %8918 = vmatpush3.bf16.msra.mxu0 %v14502_v8 }
 0x7f4   :  { %6011 = vmatprep.subr.bf16.mxu1 %v14508_v22  ;;  %8919 = vmatprep.subr.bf16.mxu0 %v15596_v30 }
 0x7f7   :  { %6012 = vmatpush1.bf16.msra.mxu1 %v14515_v5  ;;  %8920 = vmatpush3.bf16.msra.mxu0 %v14521_v62 }
 0x7f8   :  { %6013 = vmatprep.subr.bf16.mxu1 %v14527_v55  ;;  %8921 = vmatprep.subr.bf16.mxu0 %v15596_v30 }
 0x7fb   :  { %6014 = vmatpush1.bf16.msra.mxu1 %v14534_v46  ;;  %8922 = vmatpush3.bf16.msra.mxu0 %v14540_v4  ;;  %v5563_v46 = vunpack.c.l.bf16 %v5561_v20 }
 0x7fc   :  { %6107 = vmatprep.subr.bf16.mxu1 %v14546_v3  ;;  %8927 = vmatprep.subr.bf16.mxu0 %v15596_v30  ;;  %v5564_v3 = vunpack.c.h.bf16 %v5561_v20 }
 0x83e   :  { %v5601_v55 = vpop.f32.mrf.mxu1  ;;  %v5642_v62 = vpop.f32.mrf.mxu0 }
 0x83f   :  { %v5602_v5 = vadd.f32 %v5601_v55, %v16002_v38  ;;  %v5669_v55 = vld [vmem:[#allocation2 + $0x6c] sm:$0xff]  ;;  %v5643_v20 = vadd.f32 %v5642_v62, %v16005_v59 }
 0x840   :  { %v5603_v22 = vpop.f32.mrf.mxu1  ;;  %v8845_v8 = vpop.f32.mrf.mxu0 }
 0x841   :  { %v5648_v15 = vadd.f32 %v5602_v5, %v5563_v46  ;;  %v5604_v36 = vadd.f32 %v5603_v22, %v16003_v51  ;;  %v14552_v5 = vld [vmem:[#allocation2 + $0x74] ss:$60 sps:$4 sm:$0xff]  }
 0x842   :  { %v5605_v26 = vpop.f32.mrf.mxu1  ;;  %v5645_v4 = vpop.f32.mrf.mxu0 }
 0x843   :  { %v7758_v37 = vmul.f32 -1.442695, %v5648_v15  ;;  %v5655_v31 = vadd.f32 %v5604_v36, %v5564_v3  ;;  %v5671_v26 = vunpack.c.l.bf16 %v5669_v55 }
 0x844   :  { %v5606_v7 = vpop.f32.mrf.mxu1  ;;  %v8846_v33 = vpop.f32.mrf.mxu0 }
 0x845   :  { %9728 = vpow2.f32 %v7758_v37  ;;  %v7759_v2 = vmul.f32 -1.442695, %v5655_v31 }
 0x847   :  { %9730 = vpow2.f32 %v7759_v2  ;;  %v5565_v2 = vunpack.c.h.bf16 %v14552_v5 }
 0x852   :  { %v9729_v29 = vpop.eup %9728 }
 0x853   :  { %v5652_v60 = vadd.f32 1.0, %v9729_v29 }
 0x854   :  { %v9731_v23 = vpop.eup %9730 }
 0x855   :  { %9732 = vrcp.f32 %v5652_v60  ;;  %v5659_v4 = vadd.f32 1.0, %v9731_v23 }
 0x857   :  { %9734 = vrcp.f32 %v5659_v4 }
 0x85e   :  { %v5709_v38 = vpop.f32.mrf.mxu1  ;;  %v5750_v8 = vpop.f32.mrf.mxu0 }
 0x85f   :  { %v5710_v15 = vadd.f32 %v5709_v38, %v16004_v25  ;;  %v5672_v38 = vunpack.c.h.bf16 %v5669_v55 }
 0x860   :  { %v5711_v7 = vpop.f32.mrf.mxu1  ;;  %v8865_v33 = vpop.f32.mrf.mxu0 }
 0x861   :  { %v5756_v3 = vadd.f32 %v5710_v15, %v5671_v26  ;;  %v5712_v22 = vadd.f32 %v5711_v7, %v11443_v13 }
 0x862   :  { %v9733_v31 = vpop.eup %9732  ;;  %v5713_v29 = vpop.f32.mrf.mxu1 }
 0x863   :  { %v5753_v60 = vpop.f32.mrf.mxu0  ;;  %v5662_v36 = vmul.f32 %v9733_v31, %v5643_v20  ;;  %v7760_v37 = vmul.f32 -1.442695, %v5756_v3  ;;  %v5763_v33 = vadd.f32 %v5712_v22, %v5672_v38 }
 0x864   :  { %v5714_v46 = vpop.f32.mrf.mxu1  ;;  %v9735_v62 = vpop.eup %9734 }
 0x865   :  { %v8866_v23 = vpop.f32.mrf.mxu0  ;;  %v5663_v51 = vadd.f32 %v5662_v36, %v5565_v2  ;;  %9736 = vpow2.f32 %v7760_v37  ;;  %v7761_v25 = vmul.f32 -1.442695, %v5763_v33  ;;  %v5665_v59 = vsub.f32 1.0, %v9735_v62 }
 0x866   :  { %v5667_v4 = vmul.f32 %v9735_v62, %v14037_v53  ;;  %v5673_v37 = vunpack.c.l.bf16 %v14552_v5 }
 0x867   :  { %9738 = vtanh.f32 %v5663_v51 }
 0x868   :  { %9740 = vpow2.f32 %v7761_v25  ;;  %v5777_v25 = vld [vmem:[#allocation3 + $0xa8] sm:$0xff] }
 0x869   :  { %v5779_v31 = vunpack.c.l.bf16 %v5777_v25 }
 0x872   :  { %v9737_v26 = vpop.eup %9736 }
 0x873   :  { %v5760_v15 = vadd.f32 1.0, %v9737_v26 }
 0x874   :  { %v9739_v29 = vpop.eup %9738 }
 0x875   :  { %9742 = vrcp.f32 %v5760_v15  ;;  %v5666_v20 = vmul.f32 %v9739_v29, %v5665_v59  ;;  %v9741_v51 = vpop.eup %9740 }
 0x876   :  { %v5767_v53 = vadd.f32 1.0, %v9741_v51 }
 0x877   :  { %v14559_v3 = vadd.f32 %v5667_v4, %v5666_v20 }
 0x878   :  { %9744 = vrcp.f32 %v5767_v53 }
 0x879   :  { %v5998_v7 = vpack.c.bf16 %v14559_v3, %v14559_v3 }
 0x87b   :  { %6032 = vmatmul.mubr.bf16.vlgmr.msra.gmra.mxu1 %v5998_v7  ;;  %8924 = vmatmul.mubr.bf16.vlgmr.msra.gmra.mxu0 %v5998_v7 }
 0x87c   :  { %6108 = vmatpush1.bf16.msra.mxu1 %v14044_v19  ;;  %8928 = vmatpush3.bf16.msra.mxu0 %v14050_v56  ;;  %v5751_v56 = vadd.f32 %v5750_v8, %v11461_v41 }
 0x87d   :  { %6109 = vmatprep.subr.bf16.mxu1 %v14056_v32  ;;  %8929 = vmatprep.subr.bf16.mxu0 %v15596_v30 }
 0x87e   :  { %v5817_v59 = vpop.f32.mrf.mxu1  ;;  %v14567_v55 = vpop.f32.mrf.mxu0  ;;  %6139 = vmatprep.mubr.bf16.mxu1 %v15601_v14  ;;  %8943 = vmatprep.mubr.msk.bf16.mxu0 %vm10282_vm0, %v15596_v30 }
 0x87f   :  { %v5818_v2 = vadd.f32 %v5817_v59, %v11465_v49  ;;  %v5885_v59 = vld [vmem:[#allocation3 + $0xc] sm:$0xff] }
 0x880   :  { %v5819_v19 = vpop.f32.mrf.mxu1  ;;  %v8885_v60 = vpop.f32.mrf.mxu0  ;;  %6110 = vmatpush1.bf16.msra.mxu1 %v14069_v27  ;;  %8930 = vmatpush3.bf16.msra.mxu0 %v14075_v10 }
 0x881   :  { %v5864_v32 = vadd.f32 %v5818_v2, %v5779_v31  ;;  %6111 = vmatprep.subr.bf16.mxu1 %v14082_v18  ;;  %8931 = vmatprep.subr.bf16.mxu0 %v15596_v30  ;;  %v5820_v38 = vadd.f32 %v5819_v19, %v11488_v34  ;;  %v5780_v18 = vunpack.c.h.bf16 %v5777_v25  ;;  %v14618_v31 = vld [vmem:[#allocation3 + $0x14] ss:$156 sps:$4 sm:$0xff]   ;;  %v5887_v19 = vunpack.c.l.bf16 %v5885_v59 }
 0x882   :  { %v9743_v36 = vpop.eup %9742  ;;  %v5821_v22 = vpop.f32.mrf.mxu1 }
 0x883   :  { %v5861_v46 = vpop.f32.mrf.mxu0  ;;  %v5770_v23 = vmul.f32 %v9743_v36, %v5751_v56  ;;  %v7762_v49 = vmul.f32 -1.442695, %v5864_v32  ;;  %v5871_v8 = vadd.f32 %v5820_v38, %v5780_v18  ;;  %v5859_v36 = vadd.f32 %v14567_v55, %v15932_v17  ;;  %v16028_v17 = vld [vmem:[#allocation15_spill] sm:$0xff] }
 0x884   :  { %v5822_v27 = vpop.f32.mrf.mxu1  ;;  %6112 = vmatpush1.bf16.msra.mxu1 %v14091_v44  ;;  %8932 = vmatpush3.bf16.msra.mxu0 %v14097_v21  ;;  %v5781_v46 = vunpack.c.h.bf16 %v14618_v31 }
 0x885   :  { %v8886_v33 = vpop.f32.mrf.mxu0  ;;  %v5771_v10 = vadd.f32 %v5770_v23, %v5673_v37  ;;  %9746 = vpow2.f32 %v7762_v49  ;;  %6113 = vmatprep.subr.bf16.mxu1 %v14103_v16  ;;  %8933 = vmatprep.subr.bf16.mxu0 %v15596_v30  ;;  %v7763_v34 = vmul.f32 -1.442695, %v5871_v8  ;;  %v9745_v5 = vpop.eup %9744  ;;  %v16026_v27 = vld [vmem:[#allocation12_spill] sm:$0xff]  ;;  %v16027_v8 = vld [vmem:[#allocation14_spill] sm:$0xff] }
 0x886   :  { %v5773_v15 = vsub.f32 1.0, %v9745_v5  ;;  %v5775_v4 = vmul.f32 %v9745_v5, %v14184_v57  ;;  %v16029_v5 = vld [vmem:[#allocation16_spill] sm:$0xff] }
 0x887   :  { %9748 = vtanh.f32 %v5771_v10 }
 0x888   :  { %6114 = vmatpush1.bf16.msra.mxu1 %v14110_v12  ;;  %8934 = vmatpush3.bf16.msra.mxu0 %v14116_v47  ;;  %9750 = vpow2.f32 %v7763_v34  ;;  %v5888_v34 = vunpack.c.h.bf16 %v5885_v59 }
 0x889   :  { %6115 = vmatprep.subr.bf16.mxu1 %v14122_v1  ;;  %8935 = vmatprep.subr.bf16.mxu0 %v15596_v30 }
 0x88c   :  { %6116 = vmatpush1.bf16.msra.mxu1 %v14129_v35  ;;  %8936 = vmatpush3.bf16.msra.mxu0 %v14135_v6 }
 0x88d   :  { %6117 = vmatprep.subr.bf16.mxu1 %v14141_v43  ;;  %8937 = vmatprep.subr.bf16.mxu0 %v15596_v30 }
 0x890   :  { %6118 = vmatpush1.bf16.msra.mxu1 %v14148_v9  ;;  %8938 = vmatpush3.bf16.msra.mxu0 %v14154_v24 }
 0x891   :  { %6119 = vmatprep.subr.bf16.mxu1 %v14160_v42  ;;  %8939 = vmatprep.subr.bf16.mxu0 %v15596_v30 }
 0x892   :  { %v9747_v62 = vpop.eup %9746 }
 0x893   :  { %v5868_v26 = vadd.f32 1.0, %v9747_v62 }
 0x894   :  { %v9749_v29 = vpop.eup %9748  ;;  %6120 = vmatpush1.bf16.msra.mxu1 %v14167_v45  ;;  %8940 = vmatpush3.bf16.msra.mxu0 %v14173_v40 }
 0x895   :  { %9752 = vrcp.f32 %v5868_v26  ;;  %6121 = vmatprep.subr.bf16.mxu1 %v14179_v50  ;;  %8941 = vmatprep.subr.bf16.mxu0 %v15596_v30  ;;  %v5774_v20 = vmul.f32 %v9749_v29, %v5773_v15  ;;  %v9751_v25 = vpop.eup %9750  ;;  %v16030_v26 = vld [vmem:[#allocation17_spill] sm:$0xff]  ;;  %v16031_v15 = vld [vmem:[#allocation18_spill] sm:$0xff]  ;;  %v16032_v29 = vld [vmem:[#allocation19_spill] sm:$0xff] }
 0x896   :  { %v5875_v2 = vadd.f32 1.0, %v9751_v25  ;;  %v16035_v25 = vld [vmem:[#allocation22_spill] sm:$0xff] }
 0x897   :  { %v14601_v7 = vadd.f32 %v5775_v4, %v5774_v20  ;;  %v16033_v4 = vld [vmem:[#allocation20_spill] sm:$0xff] }
 0x898   :  { %6122 = vmatpush1.bf16.msra.mxu1 %v14189_v48  ;;  %8942 = vmatpush3.bf16.msra.mxu0 %v14195_v39  ;;  %9754 = vrcp.f32 %v5875_v2  ;;  %v16037_v2 = vld [vmem:[#allocation24_spill] sm:$0xff] }
 0x899   :  { %v6106_v51 = vpack.c.bf16 %v14601_v7, %v14601_v7  ;;  %6215 = vmatprep.subr.bf16.mxu1 %v14391_v0  ;;  %8947 = vmatprep.subr.bf16.mxu0 %v15596_v30 }
 0x89b   :  { %6140 = vmatmul.mubr.bf16.vlgmr.msra.gmra.mxu1 %v6106_v51  ;;  %8944 = vmatmul.mubr.bf16.vlgmr.msra.gmra.mxu0 %v6106_v51  ;;  %v16034_v51 = vld [vmem:[#allocation21_spill] sm:$0xff] }
 0x89c   :  { %6216 = vmatpush1.bf16.msra.mxu1 %v14398_v54  ;;  %8948 = vmatpush3.bf16.msra.mxu0 %v14404_v11 }
 0x89d   :  { %6217 = vmatprep.subr.bf16.mxu1 %v14410_v58  ;;  %8949 = vmatprep.subr.bf16.mxu0 %v15596_v30 }
 0x89e   :  { %v5925_v57 = vpop.f32.mrf.mxu1  ;;  %v14613_v53 = vpop.f32.mrf.mxu0  ;;  %6247 = vmatprep.mubr.bf16.mxu1 %v15601_v14  ;;  %8963 = vmatprep.mubr.msk.bf16.mxu0 %vm10282_vm0, %v15596_v30 }
 0x89f   :  { %v5926_v60 = vadd.f32 %v5925_v57, %v11643_v63  ;;  %v16036_v57 = vld [vmem:[#allocation23_spill] sm:$0xff] }
 0x8a0   :  { %v5927_v56 = vpop.f32.mrf.mxu1  ;;  %v8905_v32 = vpop.f32.mrf.mxu0  ;;  %6218 = vmatpush1.bf16.msra.mxu1 %v14420_v61  ;;  %8950 = vmatpush3.bf16.msra.mxu0 %v14426_v52 }
 0x8a1   :  { %v5972_v37 = vadd.f32 %v5926_v60, %v5887_v19  ;;  %6219 = vmatprep.subr.bf16.mxu1 %v14432_v28  ;;  %8951 = vmatprep.subr.bf16.mxu0 %v15596_v30  ;;  %v5928_v33 = vadd.f32 %v5927_v56, %v16026_v27  ;;  %v16038_v19 = vld [vmem:[#allocation25_spill] sm:$0xff] }
 0x8a2   :  { %v9753_v22 = vpop.eup %9752  ;;  %v5929_v23 = vpop.f32.mrf.mxu1  ;;  %v16044_v27 = vld [vmem:[#allocation29_spill] sm:$0xff] }
 0x8a3   :  { %v5969_v49 = vpop.f32.mrf.mxu0  ;;  %v5878_v63 = vmul.f32 %v9753_v22, %v5859_v36  ;;  %v7764_v38 = vmul.f32 -1.442695, %v5972_v37  ;;  %v5979_v62 = vadd.f32 %v5928_v33, %v5888_v34  ;;  %v16039_v37 = vld [vmem:[#allocation26_spill] sm:$0xff]  ;;  %v16040_v22 = vld [vmem:[#allocation27_spill] sm:$0xff]  ;;  %v16047_v34 = vld [vmem:[#allocation32_spill] sm:$0xff] }
 0x8a4   :  { %v5930_v10 = vpop.f32.mrf.mxu1  ;;  %6220 = vmatpush1.bf16.msra.mxu1 %v16027_v8  ;;  %8952 = vmatpush3.bf16.msra.mxu0 %v16028_v17  ;;  %v16042_v49 = vld [vmem:[#allocation11_spill] sm:$0xff]  ;;  %v16045_v33 = vld [vmem:[#allocation30_spill] sm:$0xff] }
 0x8a5   :  { %v8906_v18 = vpop.f32.mrf.mxu0  ;;  %v5879_v55 = vadd.f32 %v5878_v63, %v5781_v46  ;;  %9756 = vpow2.f32 %v7764_v38  ;;  %6221 = vmatprep.subr.bf16.mxu1 %v16029_v5  ;;  %8953 = vmatprep.subr.bf16.mxu0 %v15596_v30  ;;  %v7765_v20 = vmul.f32 -1.442695, %v5979_v62  ;;  %v9755_v59 = vpop.eup %9754  ;;  %v16041_v46 = vld [vmem:[#allocation28_spill] sm:$0xff]  ;;  %v16046_v10 = vld [vmem:[#allocation31_spill] sm:$0xff]  ;;  %v5967_v62 = vadd.f32 %v14613_v53, %v16047_v34 }
 0x8a6   :  { %v5881_v32 = vsub.f32 1.0, %v9755_v59  ;;  %v5883_v63 = vmul.f32 %v9755_v59, %v16042_v49  ;;  %v16050_v53 = vld [vmem:[#allocation7_spill] sm:$0xff] }
 0x8a7   :  { %9758 = vtanh.f32 %v5879_v55 }
 0x8a8   :  { %6222 = vmatpush1.bf16.msra.mxu1 %v16030_v26  ;;  %8954 = vmatpush3.bf16.msra.mxu0 %v16031_v15  ;;  %9760 = vpow2.f32 %v7765_v20 }
 0x8a9   :  { %6223 = vmatprep.subr.bf16.mxu1 %v16032_v29  ;;  %8955 = vmatprep.subr.bf16.mxu0 %v15596_v30 }
 0x8ac   :  { %6224 = vmatpush1.bf16.msra.mxu1 %v16033_v4  ;;  %8956 = vmatpush3.bf16.msra.mxu0 %v16034_v51 }
 0x8ad   :  { %6225 = vmatprep.subr.bf16.mxu1 %v16035_v25  ;;  %8957 = vmatprep.subr.bf16.mxu0 %v15596_v30 }
 0x8b0   :  { %6226 = vmatpush1.bf16.msra.mxu1 %v16036_v57  ;;  %8958 = vmatpush3.bf16.msra.mxu0 %v16037_v2 }
 0x8b1   :  { %6227 = vmatprep.subr.bf16.mxu1 %v16038_v19  ;;  %8959 = vmatprep.subr.bf16.mxu0 %v15596_v30 }
 0x8b2   :  { %v9757_v60 = vpop.eup %9756 }
 0x8b3   :  { %v5976_v56 = vadd.f32 1.0, %v9757_v60  ;;  %v5889_v60 = vunpack.c.l.bf16 %v14618_v31 }
 0x8b4   :  { %v9759_v36 = vpop.eup %9758  ;;  %6228 = vmatpush1.bf16.msra.mxu1 %v16039_v37  ;;  %8960 = vmatpush3.bf16.msra.mxu0 %v16040_v22 }
 0x8b5   :  { %9762 = vrcp.f32 %v5976_v56  ;;  %6229 = vmatprep.subr.bf16.mxu1 %v16041_v46  ;;  %8961 = vmatprep.subr.bf16.mxu0 %v15596_v30  ;;  %v5882_v23 = vmul.f32 %v9759_v36, %v5881_v32  ;;  %v9761_v18 = vpop.eup %9760 }
 0x8b6   :  { %v5983_v55 = vadd.f32 1.0, %v9761_v18 }
 0x8b7   :  { %v14650_v38 = vadd.f32 %v5883_v63, %v5882_v23  ;;  %v16048_v63 = vld [vmem:[#allocation13_spill] sm:$0xff] }
 0x8b8   :  { %6230 = vmatpush1.bf16.msra.mxu1 %v16044_v27  ;;  %8962 = vmatpush3.bf16.msra.mxu0 %v16045_v33  ;;  %9764 = vrcp.f32 %v5983_v55  ;;  %v5993_v33 = vld [vmem:[#allocation2 + $0xc0] sm:$0xff] }
 0x8b9   :  { %16043 = vst [vmem:[#allocation33_spill] sm:$0xff] %v14650_v38  ;;  %6323 = vmatprep.subr.bf16.mxu1 %v16046_v10  ;;  %8967 = vmatprep.subr.bf16.mxu0 %v15596_v30  ;;  %v5995_v46 = vunpack.c.l.bf16 %v5993_v33 }
 0x8c2   :  { %v9763_v20 = vpop.eup %9762 }
 0x8c3   :  { %v5986_v56 = vmul.f32 %v9763_v20, %v5967_v62 }
 0x8c5   :  { %v5987_v59 = vadd.f32 %v5986_v56, %v5889_v60  ;;  %v9765_v32 = vpop.eup %9764  ;;  %v16051_v56 = vld [vmem:[#allocation8_spill] sm:$0xff] }
 0x8c6   :  { %v5989_v36 = vsub.f32 1.0, %v9765_v32  ;;  %v5991_v38 = vmul.f32 %v9765_v32, %v16048_v63  ;;  %v5996_v32 = vunpack.c.h.bf16 %v5993_v33 }
 0x8c7   :  { %9766 = vtanh.f32 %v5987_v59 }
 0x8d4   :  { %v9767_v23 = vpop.eup %9766 }
 0x8d5   :  { %v5990_v49 = vmul.f32 %v9767_v23, %v5989_v36 }
 0x8d7   :  { %v14660_v10 = vadd.f32 %v5991_v38, %v5990_v49 }
 0x8d9   :  { %16049 = vst [vmem:[#allocation34_spill] sm:$0xff] %v14660_v10 }
 0x93b   :  { %v6033_v18 = vpop.f32.mrf.mxu1  ;;  %v6074_v27 = vpop.f32.mrf.mxu0 }
 0x93c   :  { %v6034_v34 = vadd.f32 %v6033_v18, %v16050_v53  ;;  %v6101_v18 = vld [vmem:[#allocation2 + $0x54] sm:$0xff] }
 0x93d   :  { %v6035_v22 = vpop.f32.mrf.mxu1  ;;  %v8925_v31 = vpop.f32.mrf.mxu0 }
 0x93e   :  { %v6080_v62 = vadd.f32 %v6034_v34, %v5995_v46  ;;  %v6036_v59 = vadd.f32 %v6035_v22, %v16051_v56  ;;  %v14664_v46 = vld [vmem:[#allocation2 + $0x5c] ss:$108 sps:$4 sm:$0xff]  }
 0x93f   :  { %v6037_v55 = vpop.f32.mrf.mxu1  ;;  %v6077_v20 = vpop.f32.mrf.mxu0 }
 0x940   :  { %v7766_v60 = vmul.f32 -1.442695, %v6080_v62  ;;  %v6087_v38 = vadd.f32 %v6036_v59, %v5996_v32  ;;  %v6103_v62 = vunpack.c.l.bf16 %v6101_v18  ;;  %v16052_v55 = vld [vmem:[#allocation10_spill] sm:$0xff]  ;;  %v5997_v32 = vunpack.c.h.bf16 %v14664_v46 }
 0x941   :  { %v6038_v37 = vpop.f32.mrf.mxu1  ;;  %v8926_v36 = vpop.f32.mrf.mxu0 }
 0x942   :  { %9768 = vpow2.f32 %v7766_v60  ;;  %v7767_v23 = vmul.f32 -1.442695, %v6087_v38  ;;  %v16053_v60 = vld [vmem:[#allocation9_spill] sm:$0xff] }
 0x943   :  { %v6075_v33 = vadd.f32 %v6074_v27, %v16053_v60 }
 0x944   :  { %9770 = vpow2.f32 %v7767_v23 }
 0x94f   :  { %v9769_v49 = vpop.eup %9768 }
 0x950   :  { %v6084_v63 = vadd.f32 1.0, %v9769_v49 }
 0x951   :  { %v9771_v10 = vpop.eup %9770 }
 0x952   :  { %9772 = vrcp.f32 %v6084_v63  ;;  %v6091_v34 = vadd.f32 1.0, %v9771_v10 }
 0x954   :  { %9774 = vrcp.f32 %v6091_v34 }
 0x95b   :  { %v6141_v53 = vpop.f32.mrf.mxu1  ;;  %v6182_v31 = vpop.f32.mrf.mxu0 }
 0x95c   :  { %v6142_v22 = vadd.f32 %v6141_v53, %v16052_v55  ;;  %v6104_v53 = vunpack.c.h.bf16 %v6101_v18  ;;  %v14684_v18 = vld [vmem:[%s15276_s3 + $0x170] ss:$12 sps:$4 sm:$0xff]  }
 0x95d   :  { %v6143_v37 = vpop.f32.mrf.mxu1  ;;  %v8945_v20 = vpop.f32.mrf.mxu0 }
 0x95e   :  { %v6188_v59 = vadd.f32 %v6142_v22, %v6103_v62  ;;  %v6144_v56 = vadd.f32 %v6143_v37, %v11443_v13  ;;  %v14700_v37 = vld [vmem:[%s15276_s3 + $0x150] ss:$12 sps:$4 sm:$0xff]  }
 0x95f   :  { %v9773_v36 = vpop.eup %9772  ;;  %v6145_v38 = vpop.f32.mrf.mxu1 }
 0x960   :  { %v6185_v23 = vpop.f32.mrf.mxu0  ;;  %v6094_v49 = vmul.f32 %v9773_v36, %v6075_v33  ;;  %v7768_v63 = vmul.f32 -1.442695, %v6188_v59  ;;  %v6195_v20 = vadd.f32 %v6144_v56, %v6104_v53  ;;  %v14678_v56 = vld [vmem:[%s15276_s3 + $0x168] ss:$12 sps:$4 sm:$0xff]   ;;  %v6183_v36 = vadd.f32 %v6182_v31, %v11461_v41  ;;  %v6317_v53 = vld [vmem:[#allocation2 + $0x3c] sm:$0xff] }
 0x961   :  { %v6146_v19 = vpop.f32.mrf.mxu1  ;;  %v9775_v27 = vpop.eup %9774 }
 0x962   :  { %v8946_v10 = vpop.f32.mrf.mxu0  ;;  %v6095_v2 = vadd.f32 %v6094_v49, %v5997_v32  ;;  %9776 = vpow2.f32 %v7768_v63  ;;  %v7769_v55 = vmul.f32 -1.442695, %v6195_v20  ;;  %v6097_v60 = vsub.f32 1.0, %v9775_v27  ;;  %v14713_v32 = vld [vmem:[%s15276_s3 + $0x13c] ss:$12 sps:$4 sm:$0xff]  }
 0x963   :  { %v6099_v34 = vmul.f32 %v9775_v27, %v14559_v3  ;;  %v14690_v3 = vld [vmem:[%s15276_s3 + $0x154] ss:$12 sps:$4 sm:$0xff]   ;;  %v6105_v49 = vunpack.c.l.bf16 %v14664_v46 }
 0x964   :  { %9778 = vtanh.f32 %v6095_v2 }
 0x965   :  { %9780 = vpow2.f32 %v7769_v55 }
 0x96f   :  { %v9777_v62 = vpop.eup %9776 }
 0x970   :  { %v6192_v22 = vadd.f32 1.0, %v9777_v62  ;;  %v6210_v62 = vld [vmem:[#allocation2 + $0x44] ss:$156 sps:$4 sm:$0xff]  }
 0x971   :  { %v9779_v38 = vpop.eup %9778 }
 0x972   :  { %9782 = vrcp.f32 %v6192_v22  ;;  %v6098_v33 = vmul.f32 %v9779_v38, %v6097_v60  ;;  %v9781_v2 = vpop.eup %9780  ;;  %v14706_v60 = vld [vmem:[%s15276_s3 + $0x158] ss:$12 sps:$4 sm:$0xff]   ;;  %v6319_v38 = vunpack.c.l.bf16 %v6317_v53 }
 0x973   :  { %v6199_v55 = vadd.f32 1.0, %v9781_v2 }
 0x974   :  { %v14671_v59 = vadd.f32 %v6099_v34, %v6098_v33  ;;  %v16064_v33 = vld [vmem:[#allocation10_spill] sm:$0xff] }
 0x975   :  { %9784 = vrcp.f32 %v6199_v55  ;;  %v16065_v55 = vld [vmem:[#allocation9_spill] sm:$0xff] }
 0x976   :  { %v6214_v19 = vpack.c.bf16 %v14671_v59, %v14671_v59 }
 0x978   :  { %6248 = vmatmul.mubr.bf16.vlgmr.msra.gmra.mxu1 %v6214_v19  ;;  %8964 = vmatmul.mubr.bf16.vlgmr.msra.gmra.mxu0 %v6214_v19 }
 0x979   :  { %6324 = vmatpush1.bf16.msra.mxu1 %v14678_v56  ;;  %8968 = vmatpush3.bf16.msra.mxu0 %v14684_v18 }
 0x97a   :  { %6325 = vmatprep.subr.bf16.mxu1 %v14690_v3  ;;  %8969 = vmatprep.subr.bf16.mxu0 %v15596_v30 }
 0x97b   :  { %6355 = vmatprep.mubr.bf16.mxu1 %v15601_v14  ;;  %8983 = vmatprep.mubr.msk.bf16.mxu0 %vm10282_vm0, %v15596_v30 }
 0x97d   :  { %6326 = vmatpush1.bf16.msra.mxu1 %v14700_v37  ;;  %8970 = vmatpush3.bf16.msra.mxu0 %v14706_v60 }
 0x97e   :  { %6327 = vmatprep.subr.bf16.mxu1 %v14713_v32  ;;  %8971 = vmatprep.subr.bf16.mxu0 %v15596_v30 }
 0x97f   :  { %v9783_v23 = vpop.eup %9782 }
 0x980   :  { %v6202_v63 = vmul.f32 %v9783_v23, %v6183_v36 }
 0x981   :  { %6328 = vmatpush1.bf16.msra.mxu1 %v14091_v44  ;;  %8972 = vmatpush3.bf16.msra.mxu0 %v14097_v21 }
 0x982   :  { %v6203_v10 = vadd.f32 %v6202_v63, %v6105_v49  ;;  %6329 = vmatprep.subr.bf16.mxu1 %v14103_v16  ;;  %8973 = vmatprep.subr.bf16.mxu0 %v15596_v30  ;;  %v9785_v44 = vpop.eup %9784  ;;  %v6213_v63 = vunpack.c.h.bf16 %v6210_v62 }
 0x983   :  { %v6205_v21 = vsub.f32 1.0, %v9785_v44 }
 0x984   :  { %9786 = vtanh.f32 %v6203_v10 }
 0x985   :  { %6330 = vmatpush1.bf16.msra.mxu1 %v14110_v12  ;;  %8974 = vmatpush3.bf16.msra.mxu0 %v14116_v47  ;;  %v6207_v47 = vmul.f32 %v9785_v44, %v14601_v7 }
 0x986   :  { %6331 = vmatprep.subr.bf16.mxu1 %v14122_v1  ;;  %8975 = vmatprep.subr.bf16.mxu0 %v15596_v30 }
 0x989   :  { %6332 = vmatpush1.bf16.msra.mxu1 %v14129_v35  ;;  %8976 = vmatpush3.bf16.msra.mxu0 %v14135_v6  ;;  %v16054_v6 = vld [vmem:[#allocation24_spill] sm:$0xff] }
 0x98a   :  { %6333 = vmatprep.subr.bf16.mxu1 %v14141_v43  ;;  %8977 = vmatprep.subr.bf16.mxu0 %v15596_v30  ;;  %v16055_v43 = vld [vmem:[#allocation25_spill] sm:$0xff] }
 0x98d   :  { %6334 = vmatpush1.bf16.msra.mxu1 %v14148_v9  ;;  %8978 = vmatpush3.bf16.msra.mxu0 %v14154_v24  ;;  %v16056_v9 = vld [vmem:[#allocation26_spill] sm:$0xff]  ;;  %v16057_v24 = vld [vmem:[#allocation27_spill] sm:$0xff] }
 0x98e   :  { %6335 = vmatprep.subr.bf16.mxu1 %v14160_v42  ;;  %8979 = vmatprep.subr.bf16.mxu0 %v15596_v30  ;;  %v16058_v42 = vld [vmem:[#allocation28_spill] sm:$0xff] }
 0x991   :  { %v9787_v16 = vpop.eup %9786  ;;  %6336 = vmatpush1.bf16.msra.mxu1 %v14167_v45  ;;  %8980 = vmatpush3.bf16.msra.mxu0 %v14173_v40  ;;  %v16059_v45 = vld [vmem:[#allocation29_spill] sm:$0xff]  ;;  %v16060_v40 = vld [vmem:[#allocation30_spill] sm:$0xff] }
 0x992   :  { %6337 = vmatprep.subr.bf16.mxu1 %v14179_v50  ;;  %8981 = vmatprep.subr.bf16.mxu0 %v15596_v30  ;;  %v6206_v12 = vmul.f32 %v9787_v16, %v6205_v21  ;;  %v16061_v50 = vld [vmem:[#allocation31_spill] sm:$0xff] }
 0x994   :  { %v14739_v1 = vadd.f32 %v6207_v47, %v6206_v12 }
 0x995   :  { %6338 = vmatpush1.bf16.msra.mxu1 %v14189_v48  ;;  %8982 = vmatpush3.bf16.msra.mxu0 %v14195_v39  ;;  %v6209_v48 = vld [vmem:[#allocation2 + $0xd8] sm:$0xff] }
 0x996   :  { %v6322_v35 = vpack.c.bf16 %v14739_v1, %v14739_v1  ;;  %6431 = vmatprep.subr.bf16.mxu1 %v14391_v0  ;;  %8987 = vmatprep.subr.bf16.mxu0 %v15596_v30 }
 0x998   :  { %6356 = vmatmul.mubr.bf16.vlgmr.msra.gmra.mxu1 %v6322_v35  ;;  %8984 = vmatmul.mubr.bf16.vlgmr.msra.gmra.mxu0 %v6322_v35 }
 0x999   :  { %6432 = vmatpush1.bf16.msra.mxu1 %v14398_v54  ;;  %8988 = vmatpush3.bf16.msra.mxu0 %v14404_v11  ;;  %v6211_v54 = vunpack.c.l.bf16 %v6209_v48  ;;  %v16062_v11 = vld [vmem:[#allocation7_spill] sm:$0xff] }
 0x99a   :  { %6433 = vmatprep.subr.bf16.mxu1 %v14410_v58  ;;  %8989 = vmatprep.subr.bf16.mxu0 %v15596_v30 }
 0x99b   :  { %6463 = vmatprep.mubr.bf16.mxu1 %v15601_v14  ;;  %9003 = vmatprep.mubr.msk.bf16.mxu0 %vm10282_vm0, %v15596_v30 }
 0x99d   :  { %6434 = vmatpush1.bf16.msra.mxu1 %v14420_v61  ;;  %8990 = vmatpush3.bf16.msra.mxu0 %v14426_v52 }
 0x99e   :  { %6435 = vmatprep.subr.bf16.mxu1 %v14432_v28  ;;  %8991 = vmatprep.subr.bf16.mxu0 %v15596_v30 }
 0x9a1   :  { %6436 = vmatpush1.bf16.msra.mxu1 %v16027_v8  ;;  %8992 = vmatpush3.bf16.msra.mxu0 %v16028_v17 }
 0x9a2   :  { %6437 = vmatprep.subr.bf16.mxu1 %v16029_v5  ;;  %8993 = vmatprep.subr.bf16.mxu0 %v15596_v30  ;;  %v16063_v5 = vld [vmem:[#allocation8_spill] sm:$0xff] }
 0x9a5   :  { %6438 = vmatpush1.bf16.msra.mxu1 %v16030_v26  ;;  %8994 = vmatpush3.bf16.msra.mxu0 %v16031_v15 }
 0x9a6   :  { %6439 = vmatprep.subr.bf16.mxu1 %v16032_v29  ;;  %8995 = vmatprep.subr.bf16.mxu0 %v15596_v30 }
 0x9a9   :  { %6440 = vmatpush1.bf16.msra.mxu1 %v16033_v4  ;;  %8996 = vmatpush3.bf16.msra.mxu0 %v16034_v51  ;;  %v6212_v4 = vunpack.c.h.bf16 %v6209_v48 }
 0x9aa   :  { %6441 = vmatprep.subr.bf16.mxu1 %v16035_v25  ;;  %8997 = vmatprep.subr.bf16.mxu0 %v15596_v30 }
 0x9ad   :  { %6442 = vmatpush1.bf16.msra.mxu1 %v16036_v57  ;;  %8998 = vmatpush3.bf16.msra.mxu0 %v16054_v6 }
 0x9ae   :  { %6443 = vmatprep.subr.bf16.mxu1 %v16055_v43  ;;  %8999 = vmatprep.subr.bf16.mxu0 %v15596_v30  ;;  %v6320_v43 = vunpack.c.h.bf16 %v6317_v53 }
 0x9b1   :  { %6444 = vmatpush1.bf16.msra.mxu1 %v16056_v9  ;;  %9000 = vmatpush3.bf16.msra.mxu0 %v16057_v24 }
 0x9b2   :  { %6445 = vmatprep.subr.bf16.mxu1 %v16058_v42  ;;  %9001 = vmatprep.subr.bf16.mxu0 %v15596_v30 }
 0x9b5   :  { %6446 = vmatpush1.bf16.msra.mxu1 %v16059_v45  ;;  %9002 = vmatpush3.bf16.msra.mxu0 %v16060_v40 }
 0x9b6   :  { %6539 = vmatprep.subr.bf16.mxu1 %v16061_v50  ;;  %9007 = vmatprep.subr.bf16.mxu0 %v15596_v30 }
 0xa38   :  { %v6249_v39 = vpop.f32.mrf.mxu1  ;;  %v6290_v0 = vpop.f32.mrf.mxu0 }
 0xa39   :  { %v6250_v58 = vadd.f32 %v6249_v39, %v16062_v11  ;;  %v6291_v36 = vadd.f32 %v6290_v0, %v16065_v55 }
 0xa3a   :  { %v6251_v61 = vpop.f32.mrf.mxu1  ;;  %v8965_v52 = vpop.f32.mrf.mxu0 }
 0xa3b   :  { %v6296_v28 = vadd.f32 %v6250_v58, %v6211_v54  ;;  %v6252_v26 = vadd.f32 %v6251_v61, %v16063_v5 }
 0xa3c   :  { %v6253_v7 = vpop.f32.mrf.mxu1  ;;  %v6293_v8 = vpop.f32.mrf.mxu0 }
 0xa3d   :  { %v7770_v17 = vmul.f32 -1.442695, %v6296_v28  ;;  %v6303_v51 = vadd.f32 %v6252_v26, %v6212_v4  ;;  %v6321_v7 = vunpack.c.l.bf16 %v6210_v62  ;;  %v14813_v26 = vld [vmem:[%s15276_s3 + $0x140] ss:$12 sps:$4 sm:$0xff]   ;;  %v14876_v62 = vld [vmem:[%s15276_s3 + $0xdc] ss:$12 sps:$4 sm:$0xff]  }
 0xa3e   :  { %v6254_v15 = vpop.f32.mrf.mxu1  ;;  %v8966_v29 = vpop.f32.mrf.mxu0  ;;  %v14826_v4 = vld [vmem:[%s15276_s3 + $0x120] ss:$12 sps:$4 sm:$0xff]  }
 0xa3f   :  { %9788 = vpow2.f32 %v7770_v17  ;;  %v7771_v25 = vmul.f32 -1.442695, %v6303_v51  ;;  %v14807_v17 = vld [vmem:[%s15276_s3 + $0x138] ss:$12 sps:$4 sm:$0xff]   ;;  %v14832_v51 = vld [vmem:[%s15276_s3 + $0x128] ss:$12 sps:$4 sm:$0xff]  }
 0xa40   :  { %v14819_v29 = vld [vmem:[%s15276_s3 + $0x124] ss:$12 sps:$4 sm:$0xff]  }
 0xa41   :  { %9790 = vpow2.f32 %v7771_v25  ;;  %v14838_v25 = vld [vmem:[%s15276_s3 + $0x10c] ss:$12 sps:$4 sm:$0xff]  }
 0xa4c   :  { %v9789_v57 = vpop.eup %9788 }
 0xa4d   :  { %v6300_v31 = vadd.f32 1.0, %v9789_v57  ;;  %v14845_v57 = vld [vmem:[%s15276_s3 + $0x108] ss:$12 sps:$4 sm:$0xff]  }
 0xa4e   :  { %v9791_v46 = vpop.eup %9790 }
 0xa4f   :  { %9792 = vrcp.f32 %v6300_v31  ;;  %v6307_v22 = vadd.f32 1.0, %v9791_v46  ;;  %v14851_v31 = vld [vmem:[%s15276_s3 + $0x110] ss:$12 sps:$4 sm:$0xff]   ;;  %v14857_v46 = vld [vmem:[%s15276_s3 + $0xf4] ss:$12 sps:$4 sm:$0xff]  }
 0xa51   :  { %9794 = vrcp.f32 %v6307_v22 }
 0xa58   :  { %v6357_v20 = vpop.f32.mrf.mxu1  ;;  %v6398_v27 = vpop.f32.mrf.mxu0 }
 0xa59   :  { %v6358_v34 = vadd.f32 %v6357_v20, %v16064_v33  ;;  %v6399_v52 = vadd.f32 %v6398_v27, %v11461_v41  ;;  %v14864_v20 = vld [vmem:[%s15276_s3 + $0xf0] ss:$12 sps:$4 sm:$0xff]   ;;  %v14870_v27 = vld [vmem:[%s15276_s3 + $0xf8] ss:$12 sps:$4 sm:$0xff]  }
 0xa5a   :  { %v6359_v19 = vpop.f32.mrf.mxu1  ;;  %v8985_v2 = vpop.f32.mrf.mxu0 }
 0xa5b   :  { %v6404_v23 = vadd.f32 %v6358_v34, %v6319_v38  ;;  %v6360_v12 = vadd.f32 %v6359_v19, %v11443_v13  ;;  %v14883_v34 = vld [vmem:[%s15276_s3 + $0xd8] ss:$12 sps:$4 sm:$0xff]   ;;  %v14889_v19 = vld [vmem:[%s15276_s3 + $0xe0] ss:$12 sps:$4 sm:$0xff]  }
 0xa5c   :  { %v9793_v49 = vpop.eup %9792  ;;  %v6361_v10 = vpop.f32.mrf.mxu1  ;;  %v14895_v2 = vld [vmem:[%s15276_s3 + $0xc4] ss:$12 sps:$4 sm:$0xff]  }
 0xa5d   :  { %v6401_v44 = vpop.f32.mrf.mxu0  ;;  %v6310_v21 = vmul.f32 %v9793_v49, %v6291_v36  ;;  %v7772_v16 = vmul.f32 -1.442695, %v6404_v23  ;;  %v6411_v9 = vadd.f32 %v6360_v12, %v6320_v43  ;;  %v14911_v10 = vld [vmem:[%s15276_s3 + $0xc8] ss:$12 sps:$4 sm:$0xff]   ;;  %v10262_v43 = vld [vmem:[%s15276_s3 + $0x78] ss:$12 sps:$4 sm:$0xff]  }
 0xa5e   :  { %v6362_v47 = vpop.f32.mrf.mxu1  ;;  %v9795_v42 = vpop.eup %9794  ;;  %v10258_v12 = vld [vmem:[%s15276_s3 + $0x94] ss:$12 sps:$4 sm:$0xff]  }
 0xa5f   :  { %v8986_v35 = vpop.f32.mrf.mxu0  ;;  %v6311_v6 = vadd.f32 %v6310_v21, %v6213_v63  ;;  %9796 = vpow2.f32 %v7772_v16  ;;  %v7773_v24 = vmul.f32 -1.442695, %v6411_v9  ;;  %v6313_v50 = vsub.f32 1.0, %v9795_v42  ;;  %v14905_v63 = vld [vmem:[%s15276_s3 + $0xc0] ss:$12 sps:$4 sm:$0xff]  }
 0xa60   :  { %v6315_v0 = vmul.f32 %v9795_v42, %v14671_v59  ;;  %v10256_v21 = vld [vmem:[%s15276_s3 + $0xa8] ss:$12 sps:$4 sm:$0xff]   ;;  %v10257_v16 = vld [vmem:[%s15276_s3 + $0xb0] ss:$12 sps:$4 sm:$0xff]   ;;  %v10260_v35 = vld [vmem:[%s15276_s3 + $0x98] ss:$12 sps:$4 sm:$0xff]  }
 0xa61   :  { %9798 = vtanh.f32 %v6311_v6  ;;  %v10259_v47 = vld [vmem:[%s15276_s3 + $0x90] ss:$12 sps:$4 sm:$0xff]   ;;  %v10263_v9 = vld [vmem:[%s15276_s3 + $0x80] ss:$12 sps:$4 sm:$0xff]  }
 0xa62   :  { %9800 = vpow2.f32 %v7773_v24  ;;  %v10261_v6 = vld [vmem:[%s15276_s3 + $0x7c] ss:$12 sps:$4 sm:$0xff]   ;;  %v10264_v24 = vld [vmem:[%s15276_s3 + $0x64] ss:$12 sps:$4 sm:$0xff]   ;;  %v10265_v42 = vld [vmem:[%s15276_s3 + $0x60] ss:$12 sps:$4 sm:$0xff]  }
 0xa6c   :  { %v9797_v45 = vpop.eup %9796 }
 0xa6d   :  { %v6408_v40 = vadd.f32 1.0, %v9797_v45  ;;  %v10266_v45 = vld [vmem:[%s15276_s3 + $0x68] ss:$12 sps:$4 sm:$0xff]  }
 0xa6e   :  { %v9799_v48 = vpop.eup %9798 }
 0xa6f   :  { %9802 = vrcp.f32 %v6408_v40  ;;  %v6314_v39 = vmul.f32 %v9799_v48, %v6313_v50  ;;  %v9801_v61 = vpop.eup %9800  ;;  %v10267_v40 = vld [vmem:[%s15276_s3 + $0x4c] ss:$12 sps:$4 sm:$0xff]   ;;  %v10268_v50 = vld [vmem:[%s15276_s3 + $0x48] ss:$12 sps:$4 sm:$0xff]   ;;  %v10269_v48 = vld [vmem:[%s15276_s3 + $0x50] ss:$12 sps:$4 sm:$0xff]  }
 0xa70   :  { %v6415_v59 = vadd.f32 1.0, %v9801_v61  ;;  %v10273_v61 = vld [vmem:[%s15276_s3 + $0x1c] ss:$12 sps:$4 sm:$0xff]  }
 0xa71   :  { %v14788_v54 = vadd.f32 %v6315_v0, %v6314_v39  ;;  %v10270_v39 = vld [vmem:[%s15276_s3 + $0x34] ss:$12 sps:$4 sm:$0xff]   ;;  %v10271_v0 = vld [vmem:[%s15276_s3 + $0x30] ss:$12 sps:$4 sm:$0xff]  }
 0xa72   :  { %9804 = vrcp.f32 %v6415_v59  ;;  %v10274_v59 = vld [vmem:[%s15276_s3 + $0x18] ss:$12 sps:$4 sm:$0xff]  }
 0xa73   :  { %v6430_v58 = vpack.c.bf16 %v14788_v54, %v14788_v54 }
 0xa75   :  { %6464 = vmatmul.mubr.bf16.vlgmr.msra.gmra.mxu1 %v6430_v58  ;;  %9004 = vmatmul.mubr.bf16.vlgmr.msra.gmra.mxu0 %v6430_v58  ;;  %v10272_v58 = vld [vmem:[%s15276_s3 + $0x38] ss:$12 sps:$4 sm:$0xff]  }
 0xa76   :  { %6540 = vmatpush1.bf16.msra.mxu1 %v14678_v56  ;;  %9008 = vmatpush3.bf16.msra.mxu0 %v14684_v18 }
 0xa77   :  { %6541 = vmatprep.subr.bf16.mxu1 %v14690_v3  ;;  %9009 = vmatprep.subr.bf16.mxu0 %v15596_v30 }
 0xa78   :  { %6571 = vmatprep.mubr.bf16.mxu1 %v15601_v14  ;;  %9023 = vmatprep.mubr.msk.bf16.mxu0 %vm10282_vm0, %v15596_v30 }
 0xa7a   :  { %6542 = vmatpush1.bf16.msra.mxu1 %v14700_v37  ;;  %9010 = vmatpush3.bf16.msra.mxu0 %v14706_v60 }
 0xa7b   :  { %6543 = vmatprep.subr.bf16.mxu1 %v14713_v32  ;;  %9011 = vmatprep.subr.bf16.mxu0 %v15596_v30 }
 0xa7c   :  { %v9803_v28 = vpop.eup %9802 }
 0xa7d   :  { %v6418_v8 = vmul.f32 %v9803_v28, %v6399_v52  ;;  %v10275_v52 = vld [vmem:[%s15276_s3 + $0x20] ss:$12 sps:$4 sm:$0xff]   ;;  %v10276_v28 = vld [vmem:[%s15276_s3 + $0x4] ss:$12 sps:$4 sm:$0xff]  }
 0xa7e   :  { %6544 = vmatpush1.bf16.msra.mxu1 %v14807_v17  ;;  %9012 = vmatpush3.bf16.msra.mxu0 %v14813_v26 }
 0xa7f   :  { %v6419_v15 = vadd.f32 %v6418_v8, %v6321_v7  ;;  %6545 = vmatprep.subr.bf16.mxu1 %v14819_v29  ;;  %9013 = vmatprep.subr.bf16.mxu0 %v15596_v30  ;;  %v9805_v53 = vpop.eup %9804  ;;  %v10277_v7 = vld [vmem:[%s15276_s3] ss:$12 sps:$4 sm:$0xff]   ;;  %v10278_v8 = vld [vmem:[%s15276_s3 + $0x8] ss:$12 sps:$4 sm:$0xff]  }
 0xa80   :  { %v6421_v22 = vsub.f32 1.0, %v9805_v53  ;;  %v6423_v23 = vmul.f32 %v9805_v53, %v14739_v1  ;;  %v10255_v1 = vld [vmem:[%s15276_s3 + $0xac] ss:$12 sps:$4 sm:$0xff]   ;;  %v6425_v53 = vld [vmem:[#allocation2 + $0xf0] sm:$0xff] }
 0xa81   :  { %9806 = vtanh.f32 %v6419_v15  ;;  %v10279_v15 = vld [vmem:[%s15276_s3 + $0x16c] ss:$12 sps:$4 sm:$0xff]  }
 0xa82   :  { %6546 = vmatpush1.bf16.msra.mxu1 %v14826_v4  ;;  %9014 = vmatpush3.bf16.msra.mxu0 %v14832_v51 }
 0xa83   :  { %6547 = vmatprep.subr.bf16.mxu1 %v14838_v25  ;;  %9015 = vmatprep.subr.bf16.mxu0 %v15596_v30 }
 0xa86   :  { %6548 = vmatpush1.bf16.msra.mxu1 %v14845_v57  ;;  %9016 = vmatpush3.bf16.msra.mxu0 %v14851_v31 }
 0xa87   :  { %6549 = vmatprep.subr.bf16.mxu1 %v14857_v46  ;;  %9017 = vmatprep.subr.bf16.mxu0 %v15596_v30 }
 0xa8a   :  { %6550 = vmatpush1.bf16.msra.mxu1 %v14864_v20  ;;  %9018 = vmatpush3.bf16.msra.mxu0 %v14870_v27 }
 0xa8b   :  { %6551 = vmatprep.subr.bf16.mxu1 %v14876_v62  ;;  %9019 = vmatprep.subr.bf16.mxu0 %v15596_v30 }
 0xa8e   :  { %v9807_v38 = vpop.eup %9806  ;;  %6552 = vmatpush1.bf16.msra.mxu1 %v14883_v34  ;;  %9020 = vmatpush3.bf16.msra.mxu0 %v14889_v19 }
 0xa8f   :  { %6553 = vmatprep.subr.bf16.mxu1 %v14895_v2  ;;  %9021 = vmatprep.subr.bf16.mxu0 %v15596_v30  ;;  %v6422_v36 = vmul.f32 %v9807_v38, %v6421_v22 }
 0xa91   :  { %v14900_v49 = vadd.f32 %v6423_v23, %v6422_v36  ;;  %v6427_v36 = vunpack.c.l.bf16 %v6425_v53 }
 0xa92   :  { %6554 = vmatpush1.bf16.msra.mxu1 %v14905_v63  ;;  %9022 = vmatpush3.bf16.msra.mxu0 %v14911_v10 }
 0xa93   :  { %v6538_v44 = vpack.c.bf16 %v14900_v49, %v14900_v49  ;;  %6647 = vmatprep.subr.bf16.mxu1 %v10255_v1  ;;  %9027 = vmatprep.subr.bf16.mxu0 %v15596_v30 }
 0xa95   :  { %6572 = vmatmul.mubr.bf16.vlgmr.msra.gmra.mxu1 %v6538_v44  ;;  %9024 = vmatmul.mubr.bf16.vlgmr.msra.gmra.mxu0 %v6538_v44 }
 0xa96   :  { %6648 = vmatpush1.bf16.msra.mxu1 %v10256_v21  ;;  %9028 = vmatpush3.bf16.msra.mxu0 %v10257_v16 }
 0xa97   :  { %6649 = vmatprep.subr.bf16.mxu1 %v10258_v12  ;;  %9029 = vmatprep.subr.bf16.mxu0 %v15596_v30 }
 0xa98   :  { %6679 = vmatprep.mubr.bf16.mxu1 %v15601_v14  ;;  %9043 = vmatprep.mubr.msk.bf16.mxu0 %vm10282_vm0, %v15596_v30 }
 0xa9a   :  { %6650 = vmatpush1.bf16.msra.mxu1 %v10259_v47  ;;  %9030 = vmatpush3.bf16.msra.mxu0 %v10260_v35 }
 0xa9b   :  { %6651 = vmatprep.subr.bf16.mxu1 %v10261_v6  ;;  %9031 = vmatprep.subr.bf16.mxu0 %v15596_v30 }
 0xa9e   :  { %6652 = vmatpush1.bf16.msra.mxu1 %v10262_v43  ;;  %9032 = vmatpush3.bf16.msra.mxu0 %v10263_v9  ;;  %v6428_v9 = vunpack.c.h.bf16 %v6425_v53 }
 0xa9f   :  { %6653 = vmatprep.subr.bf16.mxu1 %v10264_v24  ;;  %9033 = vmatprep.subr.bf16.mxu0 %v15596_v30 }
 0xaa2   :  { %6654 = vmatpush1.bf16.msra.mxu1 %v10265_v42  ;;  %9034 = vmatpush3.bf16.msra.mxu0 %v10266_v45 }
 0xaa3   :  { %6655 = vmatprep.subr.bf16.mxu1 %v10267_v40  ;;  %9035 = vmatprep.subr.bf16.mxu0 %v15596_v30 }
 0xaa6   :  { %6656 = vmatpush1.bf16.msra.mxu1 %v10268_v50  ;;  %9036 = vmatpush3.bf16.msra.mxu0 %v10269_v48  ;;  %v6533_v48 = vld [vmem:[#allocation2 + $0x24] sm:$0xff] }
 0xaa7   :  { %6657 = vmatprep.subr.bf16.mxu1 %v10270_v39  ;;  %9037 = vmatprep.subr.bf16.mxu0 %v15596_v30 }
 0xaaa   :  { %6658 = vmatpush1.bf16.msra.mxu1 %v10271_v0  ;;  %9038 = vmatpush3.bf16.msra.mxu0 %v10272_v58  ;;  %v6426_v58 = vld [vmem:[#allocation2 + $0x2c] ss:$204 sps:$4 sm:$0xff]  }
 0xaab   :  { %6659 = vmatprep.subr.bf16.mxu1 %v10273_v61  ;;  %9039 = vmatprep.subr.bf16.mxu0 %v15596_v30 }
 0xaae   :  { %6660 = vmatpush1.bf16.msra.mxu1 %v10274_v59  ;;  %9040 = vmatpush3.bf16.msra.mxu0 %v10275_v52  ;;  %v6535_v59 = vunpack.c.l.bf16 %v6533_v48 }
 0xaaf   :  { %6661 = vmatprep.subr.bf16.mxu1 %v10276_v28  ;;  %9041 = vmatprep.subr.bf16.mxu0 %v15596_v30 }
 0xab2   :  { %6662 = vmatpush1.bf16.msra.mxu1 %v10277_v7  ;;  %9042 = vmatpush3.bf16.msra.mxu0 %v10278_v8 }
 0xab3   :  { %6755 = vmatprep.subr.bf16.mxu1 %v10279_v15  ;;  %9047 = vmatprep.subr.bf16.mxu0 %v15596_v30 }
 0xb35   :  { %v6465_v22 = vpop.f32.mrf.mxu1  ;;  %v6506_v38 = vpop.f32.mrf.mxu0 }
 0xb36   :  { %v6466_v23 = vadd.f32 %v6465_v22, %v16062_v11  ;;  %v6507_v8 = vadd.f32 %v6506_v38, %v16065_v55  ;;  %v6429_v22 = vunpack.c.h.bf16 %v6426_v58 }
 0xb37   :  { %v6467_v44 = vpop.f32.mrf.mxu1  ;;  %v9005_v1 = vpop.f32.mrf.mxu0 }
 0xb38   :  { %v6512_v21 = vadd.f32 %v6466_v23, %v6427_v36  ;;  %v6468_v35 = vadd.f32 %v6467_v44, %v16063_v5 }
 0xb39   :  { %v6469_v16 = vpop.f32.mrf.mxu1  ;;  %v6509_v12 = vpop.f32.mrf.mxu0 }
 0xb3a   :  { %v7774_v47 = vmul.f32 -1.442695, %v6512_v21  ;;  %v6519_v24 = vadd.f32 %v6468_v35, %v6428_v9  ;;  %v6536_v35 = vunpack.c.h.bf16 %v6533_v48 }
 0xb3b   :  { %v6470_v6 = vpop.f32.mrf.mxu1  ;;  %v9006_v43 = vpop.f32.mrf.mxu0 }
 0xb3c   :  { %9808 = vpow2.f32 %v7774_v47  ;;  %v7775_v42 = vmul.f32 -1.442695, %v6519_v24 }
 0xb3e   :  { %9810 = vpow2.f32 %v7775_v42 }
 0xb49   :  { %v9809_v45 = vpop.eup %9808 }
 0xb4a   :  { %v6516_v40 = vadd.f32 1.0, %v9809_v45 }
 0xb4b   :  { %v9811_v50 = vpop.eup %9810 }
 0xb4c   :  { %9812 = vrcp.f32 %v6516_v40  ;;  %v6523_v61 = vadd.f32 1.0, %v9811_v50 }
 0xb4e   :  { %9814 = vrcp.f32 %v6523_v61 }
 0xb55   :  { %v6573_v39 = vpop.f32.mrf.mxu1  ;;  %v6614_v0 = vpop.f32.mrf.mxu0 }
 0xb56   :  { %v6574_v52 = vadd.f32 %v6573_v39, %v16064_v33 }
 0xb57   :  { %v6575_v28 = vpop.f32.mrf.mxu1  ;;  %v9025_v7 = vpop.f32.mrf.mxu0 }
 0xb58   :  { %v6620_v15 = vadd.f32 %v6574_v52, %v6535_v59  ;;  %v6576_v21 = vadd.f32 %v6575_v28, %v11443_v13  ;;  %v6615_v59 = vadd.f32 %v6614_v0, %v11461_v41  ;;  %v9370_v0 = vld [vmem:[%s15282_s11 + $0x10] ss:$8 sps:$4 sm:$0xff]   ;;  %v9373_v52 = vld [vmem:[%s15282_s11] ss:$8 sps:$4 sm:$0xff]   ;;  %v9378_v28 = vld [vmem:[%s15282_s11 + $0xf4] ss:$8 sps:$4 sm:$0xff]  }
 0xb59   :  { %v9813_v53 = vpop.eup %9812  ;;  %v6577_v36 = vpop.f32.mrf.mxu1  ;;  %v9376_v7 = vld [vmem:[%s15282_s11 + $0xf0] ss:$8 sps:$4 sm:$0xff]  }
 0xb5a   :  { %v6617_v23 = vpop.f32.mrf.mxu0  ;;  %v6526_v44 = vmul.f32 %v9813_v53, %v6507_v8  ;;  %v7776_v1 = vmul.f32 -1.442695, %v6620_v15  ;;  %v6627_v6 = vadd.f32 %v6576_v21, %v6536_v35  ;;  %v9381_v8 = vld [vmem:[%s15282_s11 + $0xe4] ss:$8 sps:$4 sm:$0xff]   ;;  %v9379_v15 = vld [vmem:[%s15282_s11 + $0xe0] ss:$8 sps:$4 sm:$0xff]  }
 0xb5b   :  { %v6578_v16 = vpop.f32.mrf.mxu1  ;;  %v9815_v38 = vpop.eup %9814  ;;  %v9384_v53 = vld [vmem:[%s15282_s11 + $0xd4] ss:$8 sps:$4 sm:$0xff]   ;;  %v9387_v36 = vld [vmem:[%s15282_s11 + $0xc4] ss:$8 sps:$4 sm:$0xff]   ;;  %v9385_v23 = vld [vmem:[%s15282_s11 + $0xc0] ss:$8 sps:$4 sm:$0xff]  }
 0xb5c   :  { %v9026_v12 = vpop.f32.mrf.mxu0  ;;  %v6527_v47 = vadd.f32 %v6526_v44, %v6429_v22  ;;  %9816 = vpow2.f32 %v7776_v1  ;;  %v7777_v43 = vmul.f32 -1.442695, %v6627_v6  ;;  %v6529_v42 = vsub.f32 1.0, %v9815_v38  ;;  %v9382_v22 = vld [vmem:[%s15282_s11 + $0xd0] ss:$8 sps:$4 sm:$0xff]  }
 0xb5d   :  { %v6531_v50 = vmul.f32 %v9815_v38, %v14788_v54  ;;  %v9390_v44 = vld [vmem:[%s15282_s11 + $0xb4] ss:$8 sps:$4 sm:$0xff]   ;;  %v9388_v1 = vld [vmem:[%s15282_s11 + $0xb0] ss:$8 sps:$4 sm:$0xff]   ;;  %v9393_v21 = vld [vmem:[%s15282_s11 + $0xa4] ss:$8 sps:$4 sm:$0xff]  }
 0xb5e   :  { %9818 = vtanh.f32 %v6527_v47  ;;  %v9391_v16 = vld [vmem:[%s15282_s11 + $0xa0] ss:$8 sps:$4 sm:$0xff]   ;;  %v9396_v12 = vld [vmem:[%s15282_s11 + $0x94] ss:$8 sps:$4 sm:$0xff]   ;;  %v9394_v47 = vld [vmem:[%s15282_s11 + $0x90] ss:$8 sps:$4 sm:$0xff]  }
 0xb5f   :  { %9820 = vpow2.f32 %v7777_v43  ;;  %v9399_v35 = vld [vmem:[%s15282_s11 + $0x84] ss:$8 sps:$4 sm:$0xff]   ;;  %v9397_v6 = vld [vmem:[%s15282_s11 + $0x80] ss:$8 sps:$4 sm:$0xff]  }
 0xb60   :  { %v16067_v43 = vld [vmem:[#allocation33_spill] sm:$0xff] }
 0xb61   :  { %v6891_v38 = vpack.c.bf16 %v16067_v43, %v16067_v43 }
 0xb69   :  { %v9817_v9 = vpop.eup %9816 }
 0xb6a   :  { %v6624_v24 = vadd.f32 1.0, %v9817_v9  ;;  %v9402_v9 = vld [vmem:[%s15283_s10 + $0x74] ss:$8 sps:$4 sm:$0xff]  }
 0xb6b   :  { %v9819_v45 = vpop.eup %9818 }
 0xb6c   :  { %9822 = vrcp.f32 %v6624_v24  ;;  %v6530_v40 = vmul.f32 %v9819_v45, %v6529_v42  ;;  %v9821_v48 = vpop.eup %9820  ;;  %v9400_v24 = vld [vmem:[%s15283_s10 + $0x70] ss:$8 sps:$4 sm:$0xff]   ;;  %v9405_v42 = vld [vmem:[%s15283_s10 + $0x64] ss:$8 sps:$4 sm:$0xff]   ;;  %v9403_v45 = vld [vmem:[%s15283_s10 + $0x60] ss:$8 sps:$4 sm:$0xff]  }
 0xb6d   :  { %v6631_v54 = vadd.f32 1.0, %v9821_v48  ;;  %v9409_v48 = vld [vmem:[%s15283_s10 + $0x40] ss:$8 sps:$4 sm:$0xff]  }
 0xb6e   :  { %v15009_v39 = vadd.f32 %v6531_v50, %v6530_v40  ;;  %v9408_v40 = vld [vmem:[%s15283_s10 + $0x54] ss:$8 sps:$4 sm:$0xff]   ;;  %v9406_v50 = vld [vmem:[%s15283_s10 + $0x50] ss:$8 sps:$4 sm:$0xff]  }
 0xb6f   :  { %9824 = vrcp.f32 %v6631_v54  ;;  %v9414_v54 = vld [vmem:[%s15283_s10 + $0x34] ss:$8 sps:$4 sm:$0xff]  }
 0xb70   :  { %v6646_v61 = vpack.c.bf16 %v15009_v39, %v15009_v39 }
 0xb72   :  { %6680 = vmatmul.mubr.bf16.vlgmr.msra.gmra.mxu1 %v6646_v61  ;;  %9044 = vmatmul.mubr.bf16.vlgmr.msra.gmra.mxu0 %v6646_v61  ;;  %v9411_v61 = vld [vmem:[%s15283_s10 + $0x44] ss:$8 sps:$4 sm:$0xff]  }
 0xb73   :  { %6756 = vmatpush1.bf16.msra.mxu1 %v14678_v56  ;;  %9048 = vmatpush3.bf16.msra.mxu0 %v14684_v18  ;;  %v6537_v18 = vunpack.c.l.bf16 %v6426_v58  ;;  %v9375_v58 = vld [vmem:[%s15282_s11 + $0x4] ss:$8 sps:$4 sm:$0xff]  }
 0xb74   :  { %6757 = vmatprep.subr.bf16.mxu1 %v14690_v3  ;;  %9049 = vmatprep.subr.bf16.mxu0 %v15596_v30 }
 0xb75   :  { %6787 = vmatprep.mubr.bf16.mxu1 %v15601_v14  ;;  %9063 = vmatprep.mubr.msk.bf16.mxu0 %vm10282_vm0, %v15596_v30 }
 0xb77   :  { %6758 = vmatpush1.bf16.msra.mxu1 %v14700_v37  ;;  %9050 = vmatpush3.bf16.msra.mxu0 %v14706_v60 }
 0xb78   :  { %6759 = vmatprep.subr.bf16.mxu1 %v14713_v32  ;;  %9051 = vmatprep.subr.bf16.mxu0 %v15596_v30 }
 0xb79   :  { %v9823_v56 = vpop.eup %9822 }
 0xb7a   :  { %v6634_v3 = vmul.f32 %v9823_v56, %v6615_v59  ;;  %v9412_v59 = vld [vmem:[%s15283_s10 + $0x30] ss:$8 sps:$4 sm:$0xff]   ;;  %v9417_v56 = vld [vmem:[%s15283_s10 + $0x24] ss:$8 sps:$4 sm:$0xff]  }
 0xb7b   :  { %6760 = vmatpush1.bf16.msra.mxu1 %v14807_v17  ;;  %9052 = vmatpush3.bf16.msra.mxu0 %v14813_v26 }
 0xb7c   :  { %v6635_v14 = vadd.f32 %v6634_v3, %v6537_v18  ;;  %6761 = vmatprep.subr.bf16.mxu1 %v14819_v29  ;;  %9053 = vmatprep.subr.bf16.mxu0 %v15596_v30  ;;  %v9825_v37 = vpop.eup %9824  ;;  %v9354_v29 = vld [vmem:[%s15282_s11 + $0x74] ss:$8 sps:$4 sm:$0xff]   ;;  %v9415_v18 = vld [vmem:[%s15283_s10 + $0x20] ss:$8 sps:$4 sm:$0xff]  }
 0xb7d   :  { %v6637_v60 = vsub.f32 1.0, %v9825_v37  ;;  %v6639_v26 = vmul.f32 %v9825_v37, %v14900_v49  ;;  %v9369_v49 = vld [vmem:[%s15282_s11 + $0x24] ss:$8 sps:$4 sm:$0xff]   ;;  %v9420_v3 = vld [vmem:[%s15283_s10 + $0x14] ss:$8 sps:$4 sm:$0xff]  }
 0xb7e   :  { %9826 = vtanh.f32 %v6635_v14  ;;  %v9418_v14 = vld [vmem:[%s15283_s10 + $0x10] ss:$8 sps:$4 sm:$0xff]   ;;  %v9423_v37 = vld [vmem:[%s15283_s10 + $0x4] ss:$8 sps:$4 sm:$0xff]  }
 0xb7f   :  { %6762 = vmatpush1.bf16.msra.mxu1 %v14826_v4  ;;  %9054 = vmatpush3.bf16.msra.mxu0 %v14832_v51  ;;  %v9352_v51 = vld [vmem:[%s15282_s11 + $0x70] ss:$8 sps:$4 sm:$0xff]  }
 0xb80   :  { %6763 = vmatprep.subr.bf16.mxu1 %v14838_v25  ;;  %9055 = vmatprep.subr.bf16.mxu0 %v15596_v30  ;;  %v9357_v25 = vld [vmem:[%s15282_s11 + $0x64] ss:$8 sps:$4 sm:$0xff]  }
 0xb83   :  { %6764 = vmatpush1.bf16.msra.mxu1 %v14845_v57  ;;  %9056 = vmatpush3.bf16.msra.mxu0 %v14851_v31  ;;  %v16066_v57 = vld [vmem:[#allocation34_spill] sm:$0xff] }
 0xb84   :  { %6765 = vmatprep.subr.bf16.mxu1 %v14857_v46  ;;  %9057 = vmatprep.subr.bf16.mxu0 %v15596_v30  ;;  %v6892_v31 = vpack.c.bf16 %v16066_v57, %v16066_v57  ;;  %v9355_v46 = vld [vmem:[%s15282_s11 + $0x60] ss:$8 sps:$4 sm:$0xff]   ;;  %v9435_v57 = vld [vmem:[%s15283_s10 + $0xc4] ss:$8 sps:$4 sm:$0xff]  }
 0xb87   :  { %6766 = vmatpush1.bf16.msra.mxu1 %v14864_v20  ;;  %9058 = vmatpush3.bf16.msra.mxu0 %v14870_v27  ;;  %v9360_v20 = vld [vmem:[%s15282_s11 + $0x54] ss:$8 sps:$4 sm:$0xff]   ;;  %v9358_v27 = vld [vmem:[%s15282_s11 + $0x50] ss:$8 sps:$4 sm:$0xff]  }
 0xb88   :  { %6767 = vmatprep.subr.bf16.mxu1 %v14876_v62  ;;  %9059 = vmatprep.subr.bf16.mxu0 %v15596_v30  ;;  %v9363_v62 = vld [vmem:[%s15282_s11 + $0x44] ss:$8 sps:$4 sm:$0xff]  }
 0xb8b   :  { %v9827_v32 = vpop.eup %9826  ;;  %6768 = vmatpush1.bf16.msra.mxu1 %v14883_v34  ;;  %9060 = vmatpush3.bf16.msra.mxu0 %v14889_v19  ;;  %v9361_v34 = vld [vmem:[%s15282_s11 + $0x40] ss:$8 sps:$4 sm:$0xff]   ;;  %v9366_v19 = vld [vmem:[%s15282_s11 + $0x34] ss:$8 sps:$4 sm:$0xff]  }
 0xb8c   :  { %6769 = vmatprep.subr.bf16.mxu1 %v14895_v2  ;;  %9061 = vmatprep.subr.bf16.mxu0 %v15596_v30  ;;  %v6638_v17 = vmul.f32 %v9827_v32, %v6637_v60  ;;  %v9364_v2 = vld [vmem:[%s15282_s11 + $0x30] ss:$8 sps:$4 sm:$0xff]   ;;  %v9421_v60 = vld [vmem:[%s15283_s10] ss:$8 sps:$4 sm:$0xff]   ;;  %v9426_v32 = vld [vmem:[%s15283_s10 + $0xf4] ss:$8 sps:$4 sm:$0xff]  }
 0xb8e   :  { %v15049_v4 = vadd.f32 %v6639_v26, %v6638_v17  ;;  %v9424_v17 = vld [vmem:[%s15283_s10 + $0xf0] ss:$8 sps:$4 sm:$0xff]   ;;  %v9429_v26 = vld [vmem:[%s15283_s10 + $0xe4] ss:$8 sps:$4 sm:$0xff]  }
 0xb8f   :  { %6770 = vmatpush1.bf16.msra.mxu1 %v14905_v63  ;;  %9062 = vmatpush3.bf16.msra.mxu0 %v14911_v10  ;;  %v9367_v63 = vld [vmem:[%s15282_s11 + $0x20] ss:$8 sps:$4 sm:$0xff]   ;;  %v9372_v10 = vld [vmem:[%s15282_s11 + $0x14] ss:$8 sps:$4 sm:$0xff]  }
 0xb90   :  { %v6754_v30 = vpack.c.bf16 %v15049_v4, %v15049_v4  ;;  %7085 = vmatprep.subr.bf16.mxu1 %v9354_v29  ;;  %7286 = vmatprep.subr.bf16.mxu0 %v9402_v9  ;;  %v9427_v29 = vld [vmem:[%s15283_s10 + $0xe0] ss:$8 sps:$4 sm:$0xff]  }
 0xb92   :  { %6788 = vmatmul.mubr.bf16.vlgmr.msra.gmra.mxu1 %v6754_v30  ;;  %9064 = vmatmul.mubr.bf16.vlgmr.msra.gmra.mxu0 %v6754_v30  ;;  %v9430_v30 = vld [vmem:[%s15283_s10 + $0xd0] ss:$8 sps:$4 sm:$0xff]  }
 0xb93   :  { %7086 = vmatpush1.bf16.msra.mxu1 %v9352_v51  ;;  %7117 = vmatprep.mubr.bf16.mxu1 %v6892_v31  ;;  %v9432_v51 = vld [vmem:[%s15283_s10 + $0xd4] ss:$8 sps:$4 sm:$0xff]  }
 0xb94   :  { %7087 = vmatprep.subr.bf16.mxu1 %v9357_v25  ;;  %7287 = vmatpush1.bf16.msra.mxu0 %v9400_v24  ;;  %v9433_v25 = vld [vmem:[%s15283_s10 + $0xc0] ss:$8 sps:$4 sm:$0xff]   ;;  %v9438_v31 = vld [vmem:[%s15283_s10 + $0xb4] ss:$8 sps:$4 sm:$0xff]  }
 0xb95   :  { %7288 = vmatprep.subr.bf16.mxu0 %v9405_v42 }
 0xb97   :  { %7088 = vmatpush1.bf16.msra.mxu1 %v9355_v46  ;;  %v9436_v46 = vld [vmem:[%s15283_s10 + $0xb0] ss:$8 sps:$4 sm:$0xff]  }
 0xb98   :  { %7089 = vmatprep.subr.bf16.mxu1 %v9360_v20  ;;  %7289 = vmatpush1.bf16.msra.mxu0 %v9403_v45  ;;  %v9441_v20 = vld [vmem:[%s15283_s10 + $0xa4] ss:$8 sps:$4 sm:$0xff]  }
 0xb99   :  { %7290 = vmatprep.subr.bf16.mxu0 %v9408_v40 }
 0xb9b   :  { %7090 = vmatpush1.bf16.msra.mxu1 %v9358_v27  ;;  %v9439_v27 = vld [vmem:[%s15283_s10 + $0xa0] ss:$8 sps:$4 sm:$0xff]  }
 0xb9c   :  { %7091 = vmatprep.subr.bf16.mxu1 %v9363_v62  ;;  %7291 = vmatpush1.bf16.msra.mxu0 %v9406_v50  ;;  %v9444_v62 = vld [vmem:[%s15283_s10 + $0x94] ss:$8 sps:$4 sm:$0xff]  }
 0xb9d   :  { %7292 = vmatprep.subr.bf16.mxu0 %v9411_v61 }
 0xb9f   :  { %7092 = vmatpush1.bf16.msra.mxu1 %v9361_v34  ;;  %v9442_v34 = vld [vmem:[%s15283_s10 + $0x90] ss:$8 sps:$4 sm:$0xff]  }
 0xba0   :  { %7093 = vmatprep.subr.bf16.mxu1 %v9366_v19  ;;  %7293 = vmatpush1.bf16.msra.mxu0 %v9409_v48  ;;  %v9447_v19 = vld [vmem:[%s15283_s10 + $0x84] ss:$8 sps:$4 sm:$0xff]  }
 0xba1   :  { %7294 = vmatprep.subr.bf16.mxu0 %v9414_v54 }
 0xba3   :  { %7094 = vmatpush1.bf16.msra.mxu1 %v9364_v2  ;;  %v9445_v2 = vld [vmem:[%s15283_s10 + $0x80] ss:$8 sps:$4 sm:$0xff]  }
 0xba4   :  { %7095 = vmatprep.subr.bf16.mxu1 %v9369_v49  ;;  %7295 = vmatpush1.bf16.msra.mxu0 %v9412_v59 }
 0xba5   :  { %7296 = vmatprep.subr.bf16.mxu0 %v9417_v56 }
 0xba7   :  { %7096 = vmatpush1.bf16.msra.mxu1 %v9367_v63 }
 0xba8   :  { %7097 = vmatprep.subr.bf16.mxu1 %v9372_v10  ;;  %7297 = vmatpush1.bf16.msra.mxu0 %v9415_v18 }
 0xba9   :  { %7298 = vmatprep.subr.bf16.mxu0 %v9420_v3 }
 0xbab   :  { %7098 = vmatpush1.bf16.msra.mxu1 %v9370_v0 }
 0xbac   :  { %7099 = vmatprep.subr.bf16.mxu1 %v9375_v58  ;;  %7299 = vmatpush1.bf16.msra.mxu0 %v9418_v14 }
 0xbad   :  { %7300 = vmatprep.subr.bf16.mxu0 %v9423_v37 }
 0xbaf   :  { %7100 = vmatpush1.bf16.msra.mxu1 %v9373_v52 }
 0xbb0   :  { %7101 = vmatprep.subr.bf16.mxu1 %v9378_v28  ;;  %7301 = vmatpush1.bf16.msra.mxu0 %v9421_v60 }
 0xbb1   :  { %7302 = vmatprep.subr.bf16.mxu0 %v9426_v32 }
 0xbb3   :  { %7102 = vmatpush2.bf16.msra.mxu1 %v9376_v7 }
 0xbb4   :  { %7103 = vmatprep.subr.bf16.mxu1 %v9381_v8  ;;  %7303 = vmatpush2.bf16.msra.mxu0 %v9424_v17  ;;  %v6641_v8 = vld [vmem:[#allocation2 + $0x108] sm:$0xff] }
 0xbb5   :  { %7304 = vmatprep.subr.bf16.mxu0 %v9429_v26  ;;  %v6644_v43 = vunpack.c.h.bf16 %v6641_v8 }
 0xbb7   :  { %7104 = vmatpush2.bf16.msra.mxu1 %v9379_v15 }
 0xbb8   :  { %7105 = vmatprep.subr.bf16.mxu1 %v9384_v53  ;;  %7305 = vmatpush2.bf16.msra.mxu0 %v9427_v29  ;;  %v6643_v53 = vunpack.c.l.bf16 %v6641_v8 }
 0xbb9   :  { %7306 = vmatprep.subr.bf16.mxu0 %v9432_v51  ;;  %v6750_v51 = vld [vmem:[#allocation2 + $0x14] sm:$0xf] }
 0xbbb   :  { %7106 = vmatpush2.bf16.msra.mxu1 %v9382_v22 }
 0xbbc   :  { %7107 = vmatprep.subr.bf16.mxu1 %v9387_v36  ;;  %7307 = vmatpush2.bf16.msra.mxu0 %v9430_v30 }
 0xbbd   :  { %7308 = vmatprep.subr.bf16.mxu0 %v9435_v57  ;;  %v6753_v57 = vunpack.c.l.bf16 %v6750_v51 }
 0xbbf   :  { %7108 = vmatpush2.bf16.msra.mxu1 %v9385_v23  ;;  %v6749_v23 = vld [vmem:[#allocation2 + $0xc] sm:$0xff] }
 0xbc0   :  { %7109 = vmatprep.subr.bf16.mxu1 %v9390_v44  ;;  %7309 = vmatpush2.bf16.msra.mxu0 %v9433_v25  ;;  %v6752_v61 = vunpack.c.h.bf16 %v6749_v23 }
 0xbc1   :  { %7310 = vmatprep.subr.bf16.mxu0 %v9438_v31 }
 0xbc3   :  { %7110 = vmatpush2.bf16.msra.mxu1 %v9388_v1 }
 0xbc4   :  { %7111 = vmatprep.subr.bf16.mxu1 %v9393_v21  ;;  %7311 = vmatpush2.bf16.msra.mxu0 %v9436_v46  ;;  %v6751_v21 = vunpack.c.l.bf16 %v6749_v23 }
 0xbc5   :  { %7312 = vmatprep.subr.bf16.mxu0 %v9441_v20 }
 0xbc7   :  { %7112 = vmatpush2.bf16.msra.mxu1 %v9391_v16 }
 0xbc8   :  { %7113 = vmatprep.subr.bf16.mxu1 %v9396_v12  ;;  %7313 = vmatpush2.bf16.msra.mxu0 %v9439_v27 }
 0xbc9   :  { %7314 = vmatprep.subr.bf16.mxu0 %v9444_v62 }
 0xbcb   :  { %7114 = vmatpush2.bf16.msra.mxu1 %v9394_v47 }
 0xbcc   :  { %7115 = vmatprep.subr.bf16.mxu1 %v9399_v35  ;;  %7315 = vmatpush2.bf16.msra.mxu0 %v9442_v34 }
 0xbcd   :  { %7316 = vmatprep.subr.bf16.mxu0 %v9447_v19 }
 0xbcf   :  { %7116 = vmatpush2.bf16.msra.mxu1 %v9397_v6 }
 0xbd0   :  { %7317 = vmatpush2.bf16.msra.mxu0 %v9445_v2 }
 0xbd2   :  { %7118 = vmatmul.mubr.bf16.vlgmr.msra.gmra.mxu1 %v6891_v38 }
 0xc32   :  { %v6681_v49 = vpop.f32.mrf.mxu1  ;;  %v6722_v63 = vpop.f32.mrf.mxu0 }
 0xc33   :  { %v6682_v15 = vadd.f32 %v6681_v49, %v16062_v11  ;;  %v6723_v3 = vadd.f32 %v6722_v63, %v16065_v55 }
 0xc34   :  { %v6683_v10 = vpop.f32.mrf.mxu1  ;;  %v9045_v0 = vpop.f32.mrf.mxu0 }
 0xc35   :  { %v6728_v22 = vadd.f32 %v6682_v15, %v6643_v53  ;;  %v6684_v12 = vadd.f32 %v6683_v10, %v16063_v5  ;;  %v20_v53 = vstv %s15284_s14 }
 0xc36   :  { %v6685_v58 = vpop.f32.mrf.mxu1  ;;  %v6725_v52 = vpop.f32.mrf.mxu0  ;;  %21 = vst [vmem:[#allocation4] sm:$0x1] %v20_v53 }
 0xc37   :  { %v7778_v36 = vmul.f32 -1.442695, %v6728_v22  ;;  %v6735_v45 = vadd.f32 %v6684_v12, %v6644_v43 }
 0xc38   :  { %v6686_v28 = vpop.f32.mrf.mxu1  ;;  %v9046_v7 = vpop.f32.mrf.mxu0 }
 0xc39   :  { %9828 = vpow2.f32 %v7778_v36 }
 0xc46   :  { %v9829_v24 = vpop.eup %9828 }
 0xc47   :  { %v6732_v48 = vadd.f32 1.0, %v9829_v24 }
 0xc52   :  { %v6789_v44 = vpop.f32.mrf.mxu1  ;;  %v6830_v1 = vpop.f32.mrf.mxu0 }
 0xc53   :  { %v6790_v16 = vadd.f32 %v6789_v44, %v16064_v33  ;;  %v7779_v33 = vmul.f32 -1.442695, %v6735_v45  ;;  %v6831_v30 = vadd.f32 %v6830_v1, %v11461_v41  ;;  %v16069_v44 = vld [vmem:[#allocation6_spill] sm:$0xff] }
 0xc54   :  { %v6791_v47 = vpop.f32.mrf.mxu1  ;;  %v9065_v35 = vpop.f32.mrf.mxu0 }
 0xc55   :  { %v6836_v6 = vadd.f32 %v6790_v16, %v6751_v21  ;;  %v6792_v42 = vadd.f32 %v6791_v47, %v11443_v13  ;;  %v6642_v13 = vld [vmem:[#allocation2 + $0x110] sm:$0xf]  ;;  %v7343_v16 = vld [vmem:[%s15286_s13] sm:$0x3] }
 0xc56   :  { %v6793_v38 = vpop.f32.mrf.mxu1  ;;  %v6833_v9 = vpop.f32.mrf.mxu0  ;;  %v6645_v32 = vunpack.c.l.bf16 %v6642_v13 }
 0xc57   :  { %v7780_v11 = vmul.f32 -1.442695, %v6836_v6  ;;  %v6843_v54 = vadd.f32 %v6792_v42, %v6752_v61  ;;  %v7352_v9 = vrot.slane %v7343_v16, %v16069_v44 }
 0xc58   :  { %v6794_v40 = vpop.f32.mrf.mxu1  ;;  %v9066_v50 = vpop.f32.mrf.mxu0 }
 0xc59   :  { %9830 = vpow2.f32 %v7780_v11  ;;  %v7781_v5 = vmul.f32 -1.442695, %v6843_v54  ;;  %v7846_v50 = vld [vmem:[#allocation4] ss:$0 sm:$0xff] }
 0xc5a   :  { %9832 = vrcp.f32 %v6732_v48 }
 0xc5b   :  { %9834 = vpow2.f32 %v7779_v33 }
 0xc5c   :  { %9836 = vpow2.f32 %v7781_v5 }
 0xc66   :  { %v9831_v59 = vpop.eup %9830 }
 0xc67   :  { %v6840_v56 = vadd.f32 1.0, %v9831_v59  ;;  %v9833_v18 = vpop.eup %9832 }
 0xc68   :  { %v9835_v14 = vpop.eup %9834  ;;  %v6742_v37 = vmul.f32 %v9833_v18, %v6723_v3 }
 0xc69   :  { %9838 = vrcp.f32 %v6840_v56  ;;  %v9837_v60 = vpop.eup %9836  ;;  %v6739_v17 = vadd.f32 1.0, %v9835_v14 }
 0xc6a   :  { %v6743_v26 = vadd.f32 %v6742_v37, %v6645_v32  ;;  %v6847_v29 = vadd.f32 1.0, %v9837_v60 }
 0xc6b   :  { %9840 = vrcp.f32 %v6739_v17 }
 0xc6c   :  { %9842 = vtanh.f32 %v6743_v26 }
 0xc6d   :  { %9844 = vrcp.f32 %v6847_v29 }
 0xc76   :  { %v9839_v25 = vpop.eup %9838 }
 0xc77   :  { %v6850_v31 = vmul.f32 %v9839_v25, %v6831_v30 }
 0xc78   :  { %v9841_v55 = vpop.eup %9840 }
 0xc79   :  { %v6851_v46 = vadd.f32 %v6850_v31, %v6753_v57  ;;  %v9843_v20 = vpop.eup %9842  ;;  %v6745_v62 = vsub.f32 1.0, %v9841_v55  ;;  %v6747_v49 = vmul.f32 %v9841_v55, %v15009_v39  ;;  %v7327_v39 = vld [vmem:[%s15285_s12] sm:$0x3] }
 0xc7a   :  { %v9845_v27 = vpop.eup %9844  ;;  %v7336_v1 = vrot.slane %v7327_v39, %v16069_v44 }
 0xc7b   :  { %9846 = vtanh.f32 %v6851_v46  ;;  %v6746_v34 = vmul.f32 %v9843_v20, %v6745_v62  ;;  %v6853_v19 = vsub.f32 1.0, %v9845_v27  ;;  %v6855_v10 = vmul.f32 %v9845_v27, %v15049_v4  ;;  %v16068_v4 = vld [vmem:[#allocation5_spill] sm:$0xff] }
 0xc7c   :  { %v7332_v22 = vrot.slane %v7327_v39, %v16068_v4  ;;  %v7348_v38 = vrot.slane %v7343_v16, %v16068_v4 }
 0xc7d   :  { %v6748_v41 = vadd.f32 %v6747_v49, %v6746_v34 }
 0xc7f   :  { %v6857_v52 = vpack.c.bf16 %v6748_v41, %v6748_v41 }
 0xc88   :  { %v9847_v2 = vpop.eup %9846 }
 0xc89   :  { %v6854_v63 = vmul.f32 %v9847_v2, %v6853_v19 }
 0xc8b   :  { %v6856_v0 = vadd.f32 %v6855_v10, %v6854_v63 }
 0xc8d   :  { %v6858_v58 = vpack.c.bf16 %v6856_v0, %v6856_v0 }
 0xc8f   :  { %7318 = vmatprep.mubr.bf16.mxu0 %v6858_v58 }
 0xc90   :  { %7319 = vmatmul.mubr.bf16.vlgmr.msra.gmra.mxu0 %v6857_v52 }
 0xc92   :  { %v7119_v28 = vpop.f32.mrf.mxu1 }
 0xc94   :  { %v7121_v7 = vpop.f32.mrf.mxu1 }
 0xc96   :  { %v7123_v8 = vpop.f32.mrf.mxu1 }
 0xc98   :  { %v7124_v15 = vpop.f32.mrf.mxu1 }
 0xd50   :  { %v7320_v36 = vpop.f32.mrf.mxu0 }
 0xd51   :  { %v7321_v23 = vadd.f32 %v7320_v36, %v7119_v28 }
 0xd52   :  { %v7322_v21 = vpop.f32.mrf.mxu0 }
 0xd53   :  { %v7339_v12 = vadd.f32 %v7332_v22, %v7321_v23  ;;  %v7323_v47 = vadd.f32 %v7322_v21, %v7121_v7 }
 0xd54   :  { %v7324_v35 = vpop.f32.mrf.mxu0 }
 0xd55   :  { %v7341_v6 = vmax.f32 %v7339_v12, 0.0  ;;  %v7340_v43 = vadd.f32 %v7336_v1, %v7323_v47 }
 0xd56   :  { %v7325_v24 = vpop.f32.mrf.mxu0 }
 0xd57   :  { %v7342_v11 = vmax.f32 %v7340_v43, 0.0  ;;  %v7355_v42 = vmul.f32 %v7348_v38, %v7341_v6 }
 0xd59   :  { %v7356_v45 = vmul.f32 %v7352_v9, %v7342_v11 }
 0xd5b   :  { %v7357_v40 = vadd.f32 %v7356_v45, %v7355_v42 }
 0xd5d   :  { %7358 = vadd.xlane.f32.xlu0 %v7357_v40 }
 0xde6   :  { %v7359_v61 = vpop.xlane.xlu0 %7358 }
 0xde7   :  { %v7367_v48 = vadd.f32 %v7846_v50, %v7359_v61 }
 0xde9   :  { %7369 = vst.msk [vmem:[%s15287_s15] sm:$0xff] %vm7368_vm1, %v7367_v48 }

</bundles_post_ra>
